<compile_context>
chip_gen: v5e
topology: v5e:2x2
jax: 0.10.0
libtpu: 0.0.40
codegen_flags: <defaults>
</compile_context>

<pallas_src>
import numpy as np

import jax
import jax.numpy as jnp
from jax.experimental import pallas as pl
from jax.experimental.pallas import tpu as pltpu

CHANNELS = (4, 8, 8, 16)
N_BINS = 8
BN_EPS = 1e-5
SPATIAL = 16
Y_LANES = 128                 # conv-output slabs padded to one full vreg of lanes
ROW_PITCH = (24, 16, 8)       # 8-aligned (d, h) row pitch per block (>= s + 2)


# --------------------------- static geometry ---------------------------------

def _round_up(v, m):
    return (v + m - 1) // m * m


def _block_geom():
    geoms = []
    s = SPATIAL
    for b in range(3):
        ci, co = CHANNELS[b], CHANNELS[b + 1]
        rp = ROW_PITCH[b]
        assert rp % 8 == 0 and rp >= s + 2
        in_lanes = s * ci                       # (w, ci) lanes, no W padding
        lr = _round_up((s - 1) * rp + s, 8)     # conv-output rows computed
        in_rows = max((s + 2) * rp, _round_up(lr + 2 * rp + 2, 8))
        geoms.append(dict(s=s, s2=s // 2, ci=ci, co=co, rp=rp,
                          in_lanes=in_lanes, lr=lr, in_rows=in_rows))
        s //= 2
    return geoms


GEOM = _block_geom()
POOL_ROWS = GEOM[0]["s2"] ** 2        # 64 pooled (d2, h2) rows for block 1


# --------------------------- fused Pallas kernel ------------------------------

def _sfcn_kernel(
    x1_ref,
    t1_ref, sc1_ref, bi1_ref, col1_ref,
    t2_ref, sc2_ref, bi2_ref, col2_ref,
    t3_ref, sc3_ref, bi3_ref, hm_ref, hb_ref,
    o_ref,
    y1_ref, x2_ref, y2_ref, x3_ref, y3_ref, pool_ref,
):
    """Whole SFCN forward for one sample, fully resident in VMEM."""

    def conv_bn_relu(x_ref, t_ref, sc_ref, bi_ref, y_ref, g):
        """3x3x3 'same' conv = 9 banded matmuls, weight stationary (full-slab M
        per tap), per-kd grouping, fused BN(eval)+ReLU on the last group."""
        rp, lr = g["rp"], g["lr"]
        for kd in range(3):
            acc = None
            for kh in range(3):
                xs = x_ref[pl.ds(kd * rp + kh, lr), :]
                part = jnp.dot(xs, t_ref[kd * 3 + kh],
                               preferred_element_type=jnp.float32)
                acc = part if acc is None else acc + part
            if kd == 0:
                y_ref[...] = acc
            elif kd == 1:
                y_ref[...] = y_ref[...] + acc
            else:
                y_ref[...] = jnp.maximum(
                    (y_ref[...] + acc) * sc_ref[...] + bi_ref[...], 0.0)

    def maxpool(y_ref, col_ref, g):
        """MaxPool3d(2,2): per-d2 strided sublane reads + maxes for the (d, h)
        window, an XLU lane roll + max for the w window, then one
        lane-compaction matmul.  Returns (s2*s2, next_lanes) pooled rows in
        (d2, h2)-major order."""
        rp, s2, co = g["rp"], g["s2"], g["co"]
        for d2 in range(s2):
            base = 2 * d2 * rp
            r00 = y_ref[pl.ds(base, s2, stride=2), :]
            r01 = y_ref[pl.ds(base + 1, s2, stride=2), :]
            r10 = y_ref[pl.ds(base + rp, s2, stride=2), :]
            r11 = y_ref[pl.ds(base + rp + 1, s2, stride=2), :]
            pool_ref[pl.ds(d2 * s2, s2), :] = jnp.maximum(
                jnp.maximum(r00, r01), jnp.maximum(r10, r11))
        m = pool_ref[pl.ds(0, s2 * s2), :]
        # w window via lane rotation (XLU) instead of a shift matmul.  The
        # wrapped top lanes only pollute odd / zero-padded w groups, which the
        # compaction matrix never selects.
        m = jnp.maximum(m, pltpu.roll(m, shift=Y_LANES - co, axis=1))
        return jnp.dot(m, col_ref[...], preferred_element_type=jnp.float32)

    def scatter(cols, xn_ref, g, gn):
        """Write pooled voxels straight into the zero-initialised padded input
        slab of the next block (short contiguous stores, no scatter matmul)."""
        s2, rpn = g["s2"], gn["rp"]
        for d2 in range(s2):
            xn_ref[pl.ds((d2 + 1) * rpn + 1, s2), :] = \
                cols[d2 * s2:(d2 + 1) * s2, :]

    # Zero the intermediate slabs: the scatter only writes the data rows, the
    # zero borders implement the 'same' padding of the next conv.
    x2_ref[...] = jnp.zeros_like(x2_ref)
    x3_ref[...] = jnp.zeros_like(x3_ref)

    # ---- encoder: three DownBlocks (Conv3d + BatchNorm(eval) + ReLU + MaxPool) --
    conv_bn_relu(x1_ref, t1_ref, sc1_ref, bi1_ref, y1_ref, GEOM[0])
    scatter(maxpool(y1_ref, col1_ref, GEOM[0]), x2_ref, GEOM[0], GEOM[1])

    conv_bn_relu(x2_ref, t2_ref, sc2_ref, bi2_ref, y2_ref, GEOM[1])
    scatter(maxpool(y2_ref, col2_ref, GEOM[1]), x3_ref, GEOM[1], GEOM[2])

    conv_bn_relu(x3_ref, t3_ref, sc3_ref, bi3_ref, y3_ref, GEOM[2])
    # The last block's compaction matrix already folds AdaptiveAvgPool3d(1)
    # (sum over w2, scaled by 1/8) and the 1x1x1 head-conv weights.
    head_rows = maxpool(y3_ref, hm_ref, GEOM[2])             # (4, N_BINS)

    # ---- SFCN head: AdaptiveAvgPool3d(1) -> 1x1x1 Conv3d -> Flatten -> Softmax
    # TODO(synk): nn.Dropout is an identity at inference (eval mode), omitted.
    logits = jnp.sum(head_rows, axis=0, keepdims=True) + hb_ref[...]
    z = logits - jnp.max(logits, axis=-1, keepdims=True)
    e = jnp.exp(z)
    o_ref[...] = e / jnp.sum(e, axis=-1, keepdims=True)


# --------------------------- parameter preprocessing --------------------------

def build_kernel_params(params):
    """Pre-compute banded conv matrices, fused BN vectors and the constant
    lane-compaction matrices consumed by the fused kernel (weights only)."""
    out = {"blocks": []}
    for b, g in enumerate(GEOM):
        p = params["blocks"][b]
        s, s2, ci, co = g["s"], g["s2"], g["ci"], g["co"]
        w = np.asarray(p["w"], np.float32)              # (3,3,3,ci,co)  DHWIO

        # Banded (Toeplitz over W, 'same' boundary) weight matrix per (kd, kh)
        # tap; output columns zero-padded to a full 128-lane vreg.
        t = np.zeros((9, g["in_lanes"], Y_LANES), np.float32)
        for kd in range(3):
            for kh in range(3):
                for kw in range(3):
                    for wo in range(s):
                        wi = wo + kw - 1
                        if 0 <= wi < s:
                            t[kd * 3 + kh,
                              wi * ci:(wi + 1) * ci,
                              wo * co:(wo + 1) * co] = w[kd, kh, kw]

        inv = np.asarray(p["gamma"], np.float32) / np.sqrt(
            np.asarray(p["var"], np.float32) + BN_EPS)
        shift = (np.asarray(p["b"], np.float32) -
                 np.asarray(p["mean"], np.float32)) * inv + np.asarray(
                     p["beta"], np.float32)
        scale = np.zeros((1, Y_LANES), np.float32)
        bias = np.zeros((1, Y_LANES), np.float32)
        scale[0, :s * co] = np.tile(inv, s)
        bias[0, :s * co] = np.tile(shift, s)

        if b + 1 < len(GEOM):
            # Pick even-w pooled lane groups -> next block's (w2, c) lanes.
            col = np.zeros((Y_LANES, GEOM[b + 1]["in_lanes"]), np.float32)
            for w2 in range(s2):
                for c in range(co):
                    col[2 * w2 * co + c, w2 * co + c] = 1.0
        else:
            # Fold the sum over w2, the 1/8 AdaptiveAvgPool3d scaling and the
            # 1x1x1 head conv weights into one (128, N_BINS) matrix.
            n_vox = s2 ** 3
            wh = np.asarray(params["head_w"], np.float32)    # (co, N_BINS)
            col = np.zeros((Y_LANES, N_BINS), np.float32)
            for w2 in range(s2):
                for c in range(co):
                    col[2 * w2 * co + c, :] = wh[c, :] / float(n_vox)

        out["blocks"].append(dict(
            t=jnp.asarray(t), scale=jnp.asarray(scale), bias=jnp.asarray(bias),
            col=jnp.asarray(col)))

    out["head_b"] = jnp.asarray(
        np.asarray(params["head_b"], np.float32).reshape(1, N_BINS))
    return out


# --------------------------- wrapper ------------------------------------------

def sfcn_forward(x_ncdhw, kp):
    """ScriptableGenericSFCNModel.forward as ONE fused Pallas TPU kernel."""
    n = x_ncdhw.shape[0]
    g1 = GEOM[0]
    s, rp = g1["s"], g1["rp"]
    d_groups = g1["in_rows"] // rp            # in_rows is a multiple of rp

    # Interface glue only: NCDHW -> NDHWC, fold (W, C) into lanes, zero-pad the
    # D/H borders to the aligned row pitch (W padding lives in the Toeplitz).
    x = jnp.transpose(x_ncdhw, (0, 2, 3, 4, 1)).astype(jnp.float32)
    x = x.reshape(n, s, s, g1["in_lanes"])
    x = jnp.pad(x, ((0, 0), (1, d_groups - s - 1), (1, rp - s - 1), (0, 0)))
    x = x.reshape(n, g1["in_rows"], g1["in_lanes"])

    def const_spec(arr):
        nd = arr.ndim
        return pl.BlockSpec(tuple(arr.shape), lambda i, _nd=nd: (0,) * _nd)

    in_specs = [pl.BlockSpec((None, g1["in_rows"], g1["in_lanes"]),
                             lambda i: (i, 0, 0))]
    operands = [x]
    for b in range(3):
        for key in ("t", "scale", "bias", "col"):
            arr = kp["blocks"][b][key]
            in_specs.append(const_spec(arr))
            operands.append(arr)
    in_specs.append(const_spec(kp["head_b"]))
    operands.append(kp["head_b"])

    scratch = [
        pltpu.VMEM((GEOM[0]["lr"], Y_LANES), jnp.float32),                  # y1
        pltpu.VMEM((GEOM[1]["in_rows"], GEOM[1]["in_lanes"]), jnp.float32), # x2
        pltpu.VMEM((GEOM[1]["lr"], Y_LANES), jnp.float32),                  # y2
        pltpu.VMEM((GEOM[2]["in_rows"], GEOM[2]["in_lanes"]), jnp.float32), # x3
        pltpu.VMEM((GEOM[2]["lr"], Y_LANES), jnp.float32),                  # y3
        pltpu.VMEM((POOL_ROWS, Y_LANES), jnp.float32),                      # pool
    ]

    out = pl.pallas_call(
        _sfcn_kernel,
        out_shape=jax.ShapeDtypeStruct((n, 1, N_BINS), jnp.float32),
        grid=(n,),
        in_specs=in_specs,
        out_specs=pl.BlockSpec((None, 1, N_BINS), lambda i: (i, 0, 0)),
        scratch_shapes=scratch,
        compiler_params=pltpu.CompilerParams(
            dimension_semantics=("parallel",),          # megacore on v7x
            vmem_limit_bytes=16 * 1024 * 1024,          # working set ~3 MB
        ),
    )(*operands)
    return out.reshape(n, N_BINS)


# --------------------------- parameters & reference ---------------------------

def init_params(key):
    blocks = []
    for i in range(3):
        ci, co = CHANNELS[i], CHANNELS[i + 1]
        key, k1, k2, k3, k4, k5 = jax.random.split(key, 6)
        blocks.append(dict(
            w=0.15 * jax.random.normal(k1, (3, 3, 3, ci, co), jnp.float32),
            b=0.05 * jax.random.normal(k2, (co,), jnp.float32),
            gamma=1.0 + 0.1 * jax.random.normal(k3, (co,), jnp.float32),
            beta=0.05 * jax.random.normal(k4, (co,), jnp.float32),
            mean=0.05 * jax.random.normal(k5, (co,), jnp.float32),
            var=jnp.full((co,), 0.8, jnp.float32),
        ))
    key, kw, kb = jax.random.split(key, 3)
    head_w = 0.2 * jax.random.normal(kw, (CHANNELS[-1], N_BINS), jnp.float32)
    head_b = 0.05 * jax.random.normal(kb, (N_BINS,), jnp.float32)
    return dict(blocks=blocks, head_w=head_w, head_b=head_b)


def reference_forward(x_ncdhw, params):
    """Pure-JAX reference (same semantics as the PyTorch module in eval mode)."""
    x = jnp.transpose(x_ncdhw, (0, 2, 3, 4, 1)).astype(jnp.float32)
    for p in params["blocks"]:
        y = jax.lax.conv_general_dilated(
            x, p["w"], window_strides=(1, 1, 1), padding="SAME",
            dimension_numbers=("NDHWC", "DHWIO", "NDHWC"),
            precision=jax.lax.Precision.HIGHEST)
        y = y + p["b"]
        y = (y - p["mean"]) / jnp.sqrt(p["var"] + BN_EPS) * p["gamma"] + p["beta"]
        y = jnp.maximum(y, 0.0)
        nb, d, h, w, c = y.shape
        x = y.reshape(nb, d // 2, 2, h // 2, 2, w // 2, 2, c).max(axis=(2, 4, 6))
    m = x.mean(axis=(1, 2, 3))
    logits = jnp.dot(m, params["head_w"],
                     precision=jax.lax.Precision.HIGHEST) + params["head_b"]
    return jax.nn.softmax(logits, axis=1)


# --------------------------------- main ----------------------------------------

if __name__ == "__main__":
    key = jax.random.PRNGKey(0)
    kx, kpar = jax.random.split(key)
    x = jax.random.normal(kx, (2, CHANNELS[0], SPATIAL, SPATIAL, SPATIAL),
                          jnp.float32)                     # NCDHW
    params = init_params(kpar)
    kparams = build_kernel_params(params)

    fwd = jax.jit(sfcn_forward)
    out = jax.block_until_ready(fwd(x, kparams))

    ref = reference_forward(x, params)
    assert out.shape == (2, N_BINS)
    assert bool(jnp.all(jnp.isfinite(out)))
    assert bool(jnp.allclose(jnp.sum(out, axis=1), 1.0, atol=1e-5))
    err = float(jnp.max(jnp.abs(out - ref)))
    assert err < 1e-4, f"mismatch vs reference: {err}"
    print("KERNEL_OK")
</pallas_src>

<mosaic_0001>
module attributes {stable_mosaic.version = 11 : i64} {
  func.func @_sfcn_kernel(%arg0: i32, %arg1: memref<1x432x64xf32, #tpu.memory_space<vmem>>, %arg2: memref<9x64x128xf32, #tpu.memory_space<vmem>>, %arg3: memref<1x128xf32, #tpu.memory_space<vmem>>, %arg4: memref<1x128xf32, #tpu.memory_space<vmem>>, %arg5: memref<128x64xf32, #tpu.memory_space<vmem>>, %arg6: memref<9x64x128xf32, #tpu.memory_space<vmem>>, %arg7: memref<1x128xf32, #tpu.memory_space<vmem>>, %arg8: memref<1x128xf32, #tpu.memory_space<vmem>>, %arg9: memref<128x32xf32, #tpu.memory_space<vmem>>, %arg10: memref<9x32x128xf32, #tpu.memory_space<vmem>>, %arg11: memref<1x128xf32, #tpu.memory_space<vmem>>, %arg12: memref<1x128xf32, #tpu.memory_space<vmem>>, %arg13: memref<128x8xf32, #tpu.memory_space<vmem>>, %arg14: memref<1x8xf32, #tpu.memory_space<vmem>>, %arg15: memref<1x1x8xf32, #tpu.memory_space<vmem>>, %arg16: memref<376x128xf32, #tpu.memory_space<vmem>>, %arg17: memref<160x64xf32, #tpu.memory_space<vmem>>, %arg18: memref<120x128xf32, #tpu.memory_space<vmem>>, %arg19: memref<56x32xf32, #tpu.memory_space<vmem>>, %arg20: memref<32x128xf32, #tpu.memory_space<vmem>>, %arg21: memref<64x128xf32, #tpu.memory_space<vmem>>) attributes {dimension_semantics = [#tpu.dimension_semantics<parallel>], iteration_bounds = array<i64: 2>, scalar_prefetch = 0 : i64, scratch_operands = 6 : i64, tpu.core_type = #tpu.core_type<tc>, window_params = [{transform_indices = @transform_0, window_bounds = array<i64: 1, 432, 64>}, {pipeline_mode = #tpu.pipeline_mode<synchronous>, transform_indices = @transform_1, window_bounds = array<i64: 9, 64, 128>}, {pipeline_mode = #tpu.pipeline_mode<synchronous>, transform_indices = @transform_2, window_bounds = array<i64: 1, 128>}, {pipeline_mode = #tpu.pipeline_mode<synchronous>, transform_indices = @transform_3, window_bounds = array<i64: 1, 128>}, {pipeline_mode = #tpu.pipeline_mode<synchronous>, transform_indices = @transform_4, window_bounds = array<i64: 128, 64>}, {pipeline_mode = #tpu.pipeline_mode<synchronous>, transform_indices = @transform_5, window_bounds = array<i64: 9, 64, 128>}, {pipeline_mode = #tpu.pipeline_mode<synchronous>, transform_indices = @transform_6, window_bounds = array<i64: 1, 128>}, {pipeline_mode = #tpu.pipeline_mode<synchronous>, transform_indices = @transform_7, window_bounds = array<i64: 1, 128>}, {pipeline_mode = #tpu.pipeline_mode<synchronous>, transform_indices = @transform_8, window_bounds = array<i64: 128, 32>}, {pipeline_mode = #tpu.pipeline_mode<synchronous>, transform_indices = @transform_9, window_bounds = array<i64: 9, 32, 128>}, {pipeline_mode = #tpu.pipeline_mode<synchronous>, transform_indices = @transform_10, window_bounds = array<i64: 1, 128>}, {pipeline_mode = #tpu.pipeline_mode<synchronous>, transform_indices = @transform_11, window_bounds = array<i64: 1, 128>}, {pipeline_mode = #tpu.pipeline_mode<synchronous>, transform_indices = @transform_12, window_bounds = array<i64: 128, 8>}, {pipeline_mode = #tpu.pipeline_mode<synchronous>, transform_indices = @transform_13, window_bounds = array<i64: 1, 8>}, {transform_indices = @transform_14, window_bounds = array<i64: 1, 1, 8>}]} {
    %cst = arith.constant 0.000000e+00 : f32
    %0 = vector.broadcast %cst : f32 to vector<160x64xf32>
    %c0 = arith.constant 0 : index
    %c0_0 = arith.constant 0 : index
    %1 = vector.load %arg17[%c0, %c0_0] : memref<160x64xf32, #tpu.memory_space<vmem>>, vector<160x64xf32>
    tpu.vector_store %arg17[%c0, %c0_0], %0 {strides = array<i32>} : memref<160x64xf32, #tpu.memory_space<vmem>>, vector<160x64xf32>,
    %cst_1 = arith.constant 0.000000e+00 : f32
    %2 = vector.broadcast %cst_1 : f32 to vector<56x32xf32>
    %c0_2 = arith.constant 0 : index
    %c0_3 = arith.constant 0 : index
    %3 = vector.load %arg19[%c0_2, %c0_3] : memref<56x32xf32, #tpu.memory_space<vmem>>, vector<56x32xf32>
    tpu.vector_store %arg19[%c0_2, %c0_3], %2 {strides = array<i32>} : memref<56x32xf32, #tpu.memory_space<vmem>>, vector<56x32xf32>,
    %c0_4 = arith.constant 0 : index
    %c0_5 = arith.constant 0 : index
    %c0_6 = arith.constant 0 : index
    %4 = vector.load %arg1[%c0_4, %c0_5, %c0_6] : memref<1x432x64xf32, #tpu.memory_space<vmem>>, vector<1x376x64xf32>
    %5 = vector.shape_cast %4 : vector<1x376x64xf32> to vector<376x64xf32>
    %c0_7 = arith.constant 0 : index
    %c0_8 = arith.constant 0 : index
    %c0_9 = arith.constant 0 : index
    %6 = vector.load %arg2[%c0_7, %c0_8, %c0_9] : memref<9x64x128xf32, #tpu.memory_space<vmem>>, vector<1x64x128xf32>
    %7 = vector.shape_cast %6 : vector<1x64x128xf32> to vector<64x128xf32>
    %cst_10 = arith.constant dense<0.000000e+00> : vector<376x128xf32>
    %8 = tpu.matmul %5, %7, %cst_10 {dimension_numbers = #tpu.dot_dimension_numbers<[1], [0], [0], [1], [0, 0, 1, 1], [], []>} : vector<376x64xf32>, vector<64x128xf32>, vector<376x128xf32> -> vector<376x128xf32>
    %c0_11 = arith.constant 0 : index
    %c1 = arith.constant 1 : index
    %c0_12 = arith.constant 0 : index
    %9 = vector.load %arg1[%c0_11, %c1, %c0_12] : memref<1x432x64xf32, #tpu.memory_space<vmem>>, vector<1x376x64xf32>
    %10 = vector.shape_cast %9 : vector<1x376x64xf32> to vector<376x64xf32>
    %c1_13 = arith.constant 1 : index
    %c0_14 = arith.constant 0 : index
    %c0_15 = arith.constant 0 : index
    %11 = vector.load %arg2[%c1_13, %c0_14, %c0_15] : memref<9x64x128xf32, #tpu.memory_space<vmem>>, vector<1x64x128xf32>
    %12 = vector.shape_cast %11 : vector<1x64x128xf32> to vector<64x128xf32>
    %cst_16 = arith.constant dense<0.000000e+00> : vector<376x128xf32>
    %13 = tpu.matmul %10, %12, %cst_16 {dimension_numbers = #tpu.dot_dimension_numbers<[1], [0], [0], [1], [0, 0, 1, 1], [], []>} : vector<376x64xf32>, vector<64x128xf32>, vector<376x128xf32> -> vector<376x128xf32>
    %14 = arith.addf %8, %13 : vector<376x128xf32>
    %c0_17 = arith.constant 0 : index
    %c2 = arith.constant 2 : index
    %c0_18 = arith.constant 0 : index
    %15 = vector.load %arg1[%c0_17, %c2, %c0_18] : memref<1x432x64xf32, #tpu.memory_space<vmem>>, vector<1x376x64xf32>
    %16 = vector.shape_cast %15 : vector<1x376x64xf32> to vector<376x64xf32>
    %c2_19 = arith.constant 2 : index
    %c0_20 = arith.constant 0 : index
    %c0_21 = arith.constant 0 : index
    %17 = vector.load %arg2[%c2_19, %c0_20, %c0_21] : memref<9x64x128xf32, #tpu.memory_space<vmem>>, vector<1x64x128xf32>
    %18 = vector.shape_cast %17 : vector<1x64x128xf32> to vector<64x128xf32>
    %cst_22 = arith.constant dense<0.000000e+00> : vector<376x128xf32>
    %19 = tpu.matmul %16, %18, %cst_22 {dimension_numbers = #tpu.dot_dimension_numbers<[1], [0], [0], [1], [0, 0, 1, 1], [], []>} : vector<376x64xf32>, vector<64x128xf32>, vector<376x128xf32> -> vector<376x128xf32>
    %20 = arith.addf %14, %19 : vector<376x128xf32>
    %c0_23 = arith.constant 0 : index
    %c0_24 = arith.constant 0 : index
    %21 = vector.load %arg16[%c0_23, %c0_24] : memref<376x128xf32, #tpu.memory_space<vmem>>, vector<376x128xf32>
    tpu.vector_store %arg16[%c0_23, %c0_24], %20 {strides = array<i32>} : memref<376x128xf32, #tpu.memory_space<vmem>>, vector<376x128xf32>,
    %c0_25 = arith.constant 0 : index
    %c24 = arith.constant 24 : index
    %c0_26 = arith.constant 0 : index
    %22 = vector.load %arg1[%c0_25, %c24, %c0_26] : memref<1x432x64xf32, #tpu.memory_space<vmem>>, vector<1x376x64xf32>
    %23 = vector.shape_cast %22 : vector<1x376x64xf32> to vector<376x64xf32>
    %c3 = arith.constant 3 : index
    %c0_27 = arith.constant 0 : index
    %c0_28 = arith.constant 0 : index
    %24 = vector.load %arg2[%c3, %c0_27, %c0_28] : memref<9x64x128xf32, #tpu.memory_space<vmem>>, vector<1x64x128xf32>
    %25 = vector.shape_cast %24 : vector<1x64x128xf32> to vector<64x128xf32>
    %cst_29 = arith.constant dense<0.000000e+00> : vector<376x128xf32>
    %26 = tpu.matmul %23, %25, %cst_29 {dimension_numbers = #tpu.dot_dimension_numbers<[1], [0], [0], [1], [0, 0, 1, 1], [], []>} : vector<376x64xf32>, vector<64x128xf32>, vector<376x128xf32> -> vector<376x128xf32>
    %c0_30 = arith.constant 0 : index
    %c25 = arith.constant 25 : index
    %c0_31 = arith.constant 0 : index
    %27 = vector.load %arg1[%c0_30, %c25, %c0_31] : memref<1x432x64xf32, #tpu.memory_space<vmem>>, vector<1x376x64xf32>
    %28 = vector.shape_cast %27 : vector<1x376x64xf32> to vector<376x64xf32>
    %c4 = arith.constant 4 : index
    %c0_32 = arith.constant 0 : index
    %c0_33 = arith.constant 0 : index
    %29 = vector.load %arg2[%c4, %c0_32, %c0_33] : memref<9x64x128xf32, #tpu.memory_space<vmem>>, vector<1x64x128xf32>
    %30 = vector.shape_cast %29 : vector<1x64x128xf32> to vector<64x128xf32>
    %cst_34 = arith.constant dense<0.000000e+00> : vector<376x128xf32>
    %31 = tpu.matmul %28, %30, %cst_34 {dimension_numbers = #tpu.dot_dimension_numbers<[1], [0], [0], [1], [0, 0, 1, 1], [], []>} : vector<376x64xf32>, vector<64x128xf32>, vector<376x128xf32> -> vector<376x128xf32>
    %32 = arith.addf %26, %31 : vector<376x128xf32>
    %c0_35 = arith.constant 0 : index
    %c26 = arith.constant 26 : index
    %c0_36 = arith.constant 0 : index
    %33 = vector.load %arg1[%c0_35, %c26, %c0_36] : memref<1x432x64xf32, #tpu.memory_space<vmem>>, vector<1x376x64xf32>
    %34 = vector.shape_cast %33 : vector<1x376x64xf32> to vector<376x64xf32>
    %c5 = arith.constant 5 : index
    %c0_37 = arith.constant 0 : index
    %c0_38 = arith.constant 0 : index
    %35 = vector.load %arg2[%c5, %c0_37, %c0_38] : memref<9x64x128xf32, #tpu.memory_space<vmem>>, vector<1x64x128xf32>
    %36 = vector.shape_cast %35 : vector<1x64x128xf32> to vector<64x128xf32>
    %cst_39 = arith.constant dense<0.000000e+00> : vector<376x128xf32>
    %37 = tpu.matmul %34, %36, %cst_39 {dimension_numbers = #tpu.dot_dimension_numbers<[1], [0], [0], [1], [0, 0, 1, 1], [], []>} : vector<376x64xf32>, vector<64x128xf32>, vector<376x128xf32> -> vector<376x128xf32>
    %38 = arith.addf %32, %37 : vector<376x128xf32>
    %c0_40 = arith.constant 0 : index
    %c0_41 = arith.constant 0 : index
    %39 = vector.load %arg16[%c0_40, %c0_41] : memref<376x128xf32, #tpu.memory_space<vmem>>, vector<376x128xf32>
    %40 = arith.addf %39, %38 : vector<376x128xf32>
    %c0_42 = arith.constant 0 : index
    %c0_43 = arith.constant 0 : index
    %41 = vector.load %arg16[%c0_42, %c0_43] : memref<376x128xf32, #tpu.memory_space<vmem>>, vector<376x128xf32>
    tpu.vector_store %arg16[%c0_42, %c0_43], %40 {strides = array<i32>} : memref<376x128xf32, #tpu.memory_space<vmem>>, vector<376x128xf32>,
    %c0_44 = arith.constant 0 : index
    %c48 = arith.constant 48 : index
    %c0_45 = arith.constant 0 : index
    %42 = vector.load %arg1[%c0_44, %c48, %c0_45] : memref<1x432x64xf32, #tpu.memory_space<vmem>>, vector<1x376x64xf32>
    %43 = vector.shape_cast %42 : vector<1x376x64xf32> to vector<376x64xf32>
    %c6 = arith.constant 6 : index
    %c0_46 = arith.constant 0 : index
    %c0_47 = arith.constant 0 : index
    %44 = vector.load %arg2[%c6, %c0_46, %c0_47] : memref<9x64x128xf32, #tpu.memory_space<vmem>>, vector<1x64x128xf32>
    %45 = vector.shape_cast %44 : vector<1x64x128xf32> to vector<64x128xf32>
    %cst_48 = arith.constant dense<0.000000e+00> : vector<376x128xf32>
    %46 = tpu.matmul %43, %45, %cst_48 {dimension_numbers = #tpu.dot_dimension_numbers<[1], [0], [0], [1], [0, 0, 1, 1], [], []>} : vector<376x64xf32>, vector<64x128xf32>, vector<376x128xf32> -> vector<376x128xf32>
    %c0_49 = arith.constant 0 : index
    %c49 = arith.constant 49 : index
    %c0_50 = arith.constant 0 : index
    %47 = vector.load %arg1[%c0_49, %c49, %c0_50] : memref<1x432x64xf32, #tpu.memory_space<vmem>>, vector<1x376x64xf32>
    %48 = vector.shape_cast %47 : vector<1x376x64xf32> to vector<376x64xf32>
    %c7 = arith.constant 7 : index
    %c0_51 = arith.constant 0 : index
    %c0_52 = arith.constant 0 : index
    %49 = vector.load %arg2[%c7, %c0_51, %c0_52] : memref<9x64x128xf32, #tpu.memory_space<vmem>>, vector<1x64x128xf32>
    %50 = vector.shape_cast %49 : vector<1x64x128xf32> to vector<64x128xf32>
    %cst_53 = arith.constant dense<0.000000e+00> : vector<376x128xf32>
    %51 = tpu.matmul %48, %50, %cst_53 {dimension_numbers = #tpu.dot_dimension_numbers<[1], [0], [0], [1], [0, 0, 1, 1], [], []>} : vector<376x64xf32>, vector<64x128xf32>, vector<376x128xf32> -> vector<376x128xf32>
    %52 = arith.addf %46, %51 : vector<376x128xf32>
    %c0_54 = arith.constant 0 : index
    %c50 = arith.constant 50 : index
    %c0_55 = arith.constant 0 : index
    %53 = vector.load %arg1[%c0_54, %c50, %c0_55] : memref<1x432x64xf32, #tpu.memory_space<vmem>>, vector<1x376x64xf32>
    %54 = vector.shape_cast %53 : vector<1x376x64xf32> to vector<376x64xf32>
    %c8 = arith.constant 8 : index
    %c0_56 = arith.constant 0 : index
    %c0_57 = arith.constant 0 : index
    %55 = vector.load %arg2[%c8, %c0_56, %c0_57] : memref<9x64x128xf32, #tpu.memory_space<vmem>>, vector<1x64x128xf32>
    %56 = vector.shape_cast %55 : vector<1x64x128xf32> to vector<64x128xf32>
    %cst_58 = arith.constant dense<0.000000e+00> : vector<376x128xf32>
    %57 = tpu.matmul %54, %56, %cst_58 {dimension_numbers = #tpu.dot_dimension_numbers<[1], [0], [0], [1], [0, 0, 1, 1], [], []>} : vector<376x64xf32>, vector<64x128xf32>, vector<376x128xf32> -> vector<376x128xf32>
    %58 = arith.addf %52, %57 : vector<376x128xf32>
    %c0_59 = arith.constant 0 : index
    %c0_60 = arith.constant 0 : index
    %59 = vector.load %arg16[%c0_59, %c0_60] : memref<376x128xf32, #tpu.memory_space<vmem>>, vector<376x128xf32>
    %60 = arith.addf %59, %58 : vector<376x128xf32>
    %c0_61 = arith.constant 0 : index
    %c0_62 = arith.constant 0 : index
    %61 = vector.load %arg3[%c0_61, %c0_62] : memref<1x128xf32, #tpu.memory_space<vmem>>, vector<1x128xf32>
    %62 = vector.broadcast %61 : vector<1x128xf32> to vector<376x128xf32>
    %63 = arith.mulf %60, %62 : vector<376x128xf32>
    %c0_63 = arith.constant 0 : index
    %c0_64 = arith.constant 0 : index
    %64 = vector.load %arg4[%c0_63, %c0_64] : memref<1x128xf32, #tpu.memory_space<vmem>>, vector<1x128xf32>
    %65 = vector.broadcast %64 : vector<1x128xf32> to vector<376x128xf32>
    %66 = arith.addf %63, %65 : vector<376x128xf32>
    %cst_65 = arith.constant 0.000000e+00 : f32
    %67 = vector.broadcast %cst_65 : f32 to vector<376x128xf32>
    %68 = arith.maximumf %66, %67 : vector<376x128xf32>
    %c0_66 = arith.constant 0 : index
    %c0_67 = arith.constant 0 : index
    %69 = vector.load %arg16[%c0_66, %c0_67] : memref<376x128xf32, #tpu.memory_space<vmem>>, vector<376x128xf32>
    tpu.vector_store %arg16[%c0_66, %c0_67], %68 {strides = array<i32>} : memref<376x128xf32, #tpu.memory_space<vmem>>, vector<376x128xf32>,
    %c0_68 = arith.constant 0 : index
    %c0_69 = arith.constant 0 : index
    %70 = tpu.strided_load %arg16[%c0_68, %c0_69] {strides = array<i32: 2, 1>} : memref<376x128xf32, #tpu.memory_space<vmem>>, vector<8x128xf32>
    %c1_70 = arith.constant 1 : index
    %c0_71 = arith.constant 0 : index
    %71 = tpu.strided_load %arg16[%c1_70, %c0_71] {strides = array<i32: 2, 1>} : memref<376x128xf32, #tpu.memory_space<vmem>>, vector<8x128xf32>
    %c24_72 = arith.constant 24 : index
    %c0_73 = arith.constant 0 : index
    %72 = tpu.strided_load %arg16[%c24_72, %c0_73] {strides = array<i32: 2, 1>} : memref<376x128xf32, #tpu.memory_space<vmem>>, vector<8x128xf32>
    %c25_74 = arith.constant 25 : index
    %c0_75 = arith.constant 0 : index
    %73 = tpu.strided_load %arg16[%c25_74, %c0_75] {strides = array<i32: 2, 1>} : memref<376x128xf32, #tpu.memory_space<vmem>>, vector<8x128xf32>
    %74 = arith.maximumf %70, %71 : vector<8x128xf32>
    %75 = arith.maximumf %72, %73 : vector<8x128xf32>
    %76 = arith.maximumf %74, %75 : vector<8x128xf32>
    %c0_76 = arith.constant 0 : index
    %c0_77 = arith.constant 0 : index
    %77 = vector.load %arg21[%c0_76, %c0_77] : memref<64x128xf32, #tpu.memory_space<vmem>>, vector<8x128xf32>
    tpu.vector_store %arg21[%c0_76, %c0_77], %76 {strides = array<i32>} : memref<64x128xf32, #tpu.memory_space<vmem>>, vector<8x128xf32>,
    %c48_78 = arith.constant 48 : index
    %c0_79 = arith.constant 0 : index
    %78 = tpu.strided_load %arg16[%c48_78, %c0_79] {strides = array<i32: 2, 1>} : memref<376x128xf32, #tpu.memory_space<vmem>>, vector<8x128xf32>
    %c49_80 = arith.constant 49 : index
    %c0_81 = arith.constant 0 : index
    %79 = tpu.strided_load %arg16[%c49_80, %c0_81] {strides = array<i32: 2, 1>} : memref<376x128xf32, #tpu.memory_space<vmem>>, vector<8x128xf32>
    %c72 = arith.constant 72 : index
    %c0_82 = arith.constant 0 : index
    %80 = tpu.strided_load %arg16[%c72, %c0_82] {strides = array<i32: 2, 1>} : memref<376x128xf32, #tpu.memory_space<vmem>>, vector<8x128xf32>
    %c73 = arith.constant 73 : index
    %c0_83 = arith.constant 0 : index
    %81 = tpu.strided_load %arg16[%c73, %c0_83] {strides = array<i32: 2, 1>} : memref<376x128xf32, #tpu.memory_space<vmem>>, vector<8x128xf32>
    %82 = arith.maximumf %78, %79 : vector<8x128xf32>
    %83 = arith.maximumf %80, %81 : vector<8x128xf32>
    %84 = arith.maximumf %82, %83 : vector<8x128xf32>
    %c8_84 = arith.constant 8 : index
    %c0_85 = arith.constant 0 : index
    %85 = vector.load %arg21[%c8_84, %c0_85] : memref<64x128xf32, #tpu.memory_space<vmem>>, vector<8x128xf32>
    tpu.vector_store %arg21[%c8_84, %c0_85], %84 {strides = array<i32>} : memref<64x128xf32, #tpu.memory_space<vmem>>, vector<8x128xf32>,
    %c96 = arith.constant 96 : index
    %c0_86 = arith.constant 0 : index
    %86 = tpu.strided_load %arg16[%c96, %c0_86] {strides = array<i32: 2, 1>} : memref<376x128xf32, #tpu.memory_space<vmem>>, vector<8x128xf32>
    %c97 = arith.constant 97 : index
    %c0_87 = arith.constant 0 : index
    %87 = tpu.strided_load %arg16[%c97, %c0_87] {strides = array<i32: 2, 1>} : memref<376x128xf32, #tpu.memory_space<vmem>>, vector<8x128xf32>
    %c120 = arith.constant 120 : index
    %c0_88 = arith.constant 0 : index
    %88 = tpu.strided_load %arg16[%c120, %c0_88] {strides = array<i32: 2, 1>} : memref<376x128xf32, #tpu.memory_space<vmem>>, vector<8x128xf32>
    %c121 = arith.constant 121 : index
    %c0_89 = arith.constant 0 : index
    %89 = tpu.strided_load %arg16[%c121, %c0_89] {strides = array<i32: 2, 1>} : memref<376x128xf32, #tpu.memory_space<vmem>>, vector<8x128xf32>
    %90 = arith.maximumf %86, %87 : vector<8x128xf32>
    %91 = arith.maximumf %88, %89 : vector<8x128xf32>
    %92 = arith.maximumf %90, %91 : vector<8x128xf32>
    %c16 = arith.constant 16 : index
    %c0_90 = arith.constant 0 : index
    %93 = vector.load %arg21[%c16, %c0_90] : memref<64x128xf32, #tpu.memory_space<vmem>>, vector<8x128xf32>
    tpu.vector_store %arg21[%c16, %c0_90], %92 {strides = array<i32>} : memref<64x128xf32, #tpu.memory_space<vmem>>, vector<8x128xf32>,
    %c144 = arith.constant 144 : index
    %c0_91 = arith.constant 0 : index
    %94 = tpu.strided_load %arg16[%c144, %c0_91] {strides = array<i32: 2, 1>} : memref<376x128xf32, #tpu.memory_space<vmem>>, vector<8x128xf32>
    %c145 = arith.constant 145 : index
    %c0_92 = arith.constant 0 : index
    %95 = tpu.strided_load %arg16[%c145, %c0_92] {strides = array<i32: 2, 1>} : memref<376x128xf32, #tpu.memory_space<vmem>>, vector<8x128xf32>
    %c168 = arith.constant 168 : index
    %c0_93 = arith.constant 0 : index
    %96 = tpu.strided_load %arg16[%c168, %c0_93] {strides = array<i32: 2, 1>} : memref<376x128xf32, #tpu.memory_space<vmem>>, vector<8x128xf32>
    %c169 = arith.constant 169 : index
    %c0_94 = arith.constant 0 : index
    %97 = tpu.strided_load %arg16[%c169, %c0_94] {strides = array<i32: 2, 1>} : memref<376x128xf32, #tpu.memory_space<vmem>>, vector<8x128xf32>
    %98 = arith.maximumf %94, %95 : vector<8x128xf32>
    %99 = arith.maximumf %96, %97 : vector<8x128xf32>
    %100 = arith.maximumf %98, %99 : vector<8x128xf32>
    %c24_95 = arith.constant 24 : index
    %c0_96 = arith.constant 0 : index
    %101 = vector.load %arg21[%c24_95, %c0_96] : memref<64x128xf32, #tpu.memory_space<vmem>>, vector<8x128xf32>
    tpu.vector_store %arg21[%c24_95, %c0_96], %100 {strides = array<i32>} : memref<64x128xf32, #tpu.memory_space<vmem>>, vector<8x128xf32>,
    %c192 = arith.constant 192 : index
    %c0_97 = arith.constant 0 : index
    %102 = tpu.strided_load %arg16[%c192, %c0_97] {strides = array<i32: 2, 1>} : memref<376x128xf32, #tpu.memory_space<vmem>>, vector<8x128xf32>
    %c193 = arith.constant 193 : index
    %c0_98 = arith.constant 0 : index
    %103 = tpu.strided_load %arg16[%c193, %c0_98] {strides = array<i32: 2, 1>} : memref<376x128xf32, #tpu.memory_space<vmem>>, vector<8x128xf32>
    %c216 = arith.constant 216 : index
    %c0_99 = arith.constant 0 : index
    %104 = tpu.strided_load %arg16[%c216, %c0_99] {strides = array<i32: 2, 1>} : memref<376x128xf32, #tpu.memory_space<vmem>>, vector<8x128xf32>
    %c217 = arith.constant 217 : index
    %c0_100 = arith.constant 0 : index
    %105 = tpu.strided_load %arg16[%c217, %c0_100] {strides = array<i32: 2, 1>} : memref<376x128xf32, #tpu.memory_space<vmem>>, vector<8x128xf32>
    %106 = arith.maximumf %102, %103 : vector<8x128xf32>
    %107 = arith.maximumf %104, %105 : vector<8x128xf32>
    %108 = arith.maximumf %106, %107 : vector<8x128xf32>
    %c32 = arith.constant 32 : index
    %c0_101 = arith.constant 0 : index
    %109 = vector.load %arg21[%c32, %c0_101] : memref<64x128xf32, #tpu.memory_space<vmem>>, vector<8x128xf32>
    tpu.vector_store %arg21[%c32, %c0_101], %108 {strides = array<i32>} : memref<64x128xf32, #tpu.memory_space<vmem>>, vector<8x128xf32>,
    %c240 = arith.constant 240 : index
    %c0_102 = arith.constant 0 : index
    %110 = tpu.strided_load %arg16[%c240, %c0_102] {strides = array<i32: 2, 1>} : memref<376x128xf32, #tpu.memory_space<vmem>>, vector<8x128xf32>
    %c241 = arith.constant 241 : index
    %c0_103 = arith.constant 0 : index
    %111 = tpu.strided_load %arg16[%c241, %c0_103] {strides = array<i32: 2, 1>} : memref<376x128xf32, #tpu.memory_space<vmem>>, vector<8x128xf32>
    %c264 = arith.constant 264 : index
    %c0_104 = arith.constant 0 : index
    %112 = tpu.strided_load %arg16[%c264, %c0_104] {strides = array<i32: 2, 1>} : memref<376x128xf32, #tpu.memory_space<vmem>>, vector<8x128xf32>
    %c265 = arith.constant 265 : index
    %c0_105 = arith.constant 0 : index
    %113 = tpu.strided_load %arg16[%c265, %c0_105] {strides = array<i32: 2, 1>} : memref<376x128xf32, #tpu.memory_space<vmem>>, vector<8x128xf32>
    %114 = arith.maximumf %110, %111 : vector<8x128xf32>
    %115 = arith.maximumf %112, %113 : vector<8x128xf32>
    %116 = arith.maximumf %114, %115 : vector<8x128xf32>
    %c40 = arith.constant 40 : index
    %c0_106 = arith.constant 0 : index
    %117 = vector.load %arg21[%c40, %c0_106] : memref<64x128xf32, #tpu.memory_space<vmem>>, vector<8x128xf32>
    tpu.vector_store %arg21[%c40, %c0_106], %116 {strides = array<i32>} : memref<64x128xf32, #tpu.memory_space<vmem>>, vector<8x128xf32>,
    %c288 = arith.constant 288 : index
    %c0_107 = arith.constant 0 : index
    %118 = tpu.strided_load %arg16[%c288, %c0_107] {strides = array<i32: 2, 1>} : memref<376x128xf32, #tpu.memory_space<vmem>>, vector<8x128xf32>
    %c289 = arith.constant 289 : index
    %c0_108 = arith.constant 0 : index
    %119 = tpu.strided_load %arg16[%c289, %c0_108] {strides = array<i32: 2, 1>} : memref<376x128xf32, #tpu.memory_space<vmem>>, vector<8x128xf32>
    %c312 = arith.constant 312 : index
    %c0_109 = arith.constant 0 : index
    %120 = tpu.strided_load %arg16[%c312, %c0_109] {strides = array<i32: 2, 1>} : memref<376x128xf32, #tpu.memory_space<vmem>>, vector<8x128xf32>
    %c313 = arith.constant 313 : index
    %c0_110 = arith.constant 0 : index
    %121 = tpu.strided_load %arg16[%c313, %c0_110] {strides = array<i32: 2, 1>} : memref<376x128xf32, #tpu.memory_space<vmem>>, vector<8x128xf32>
    %122 = arith.maximumf %118, %119 : vector<8x128xf32>
    %123 = arith.maximumf %120, %121 : vector<8x128xf32>
    %124 = arith.maximumf %122, %123 : vector<8x128xf32>
    %c48_111 = arith.constant 48 : index
    %c0_112 = arith.constant 0 : index
    %125 = vector.load %arg21[%c48_111, %c0_112] : memref<64x128xf32, #tpu.memory_space<vmem>>, vector<8x128xf32>
    tpu.vector_store %arg21[%c48_111, %c0_112], %124 {strides = array<i32>} : memref<64x128xf32, #tpu.memory_space<vmem>>, vector<8x128xf32>,
    %c336 = arith.constant 336 : index
    %c0_113 = arith.constant 0 : index
    %126 = tpu.strided_load %arg16[%c336, %c0_113] {strides = array<i32: 2, 1>} : memref<376x128xf32, #tpu.memory_space<vmem>>, vector<8x128xf32>
    %c337 = arith.constant 337 : index
    %c0_114 = arith.constant 0 : index
    %127 = tpu.strided_load %arg16[%c337, %c0_114] {strides = array<i32: 2, 1>} : memref<376x128xf32, #tpu.memory_space<vmem>>, vector<8x128xf32>
    %c360 = arith.constant 360 : index
    %c0_115 = arith.constant 0 : index
    %128 = tpu.strided_load %arg16[%c360, %c0_115] {strides = array<i32: 2, 1>} : memref<376x128xf32, #tpu.memory_space<vmem>>, vector<8x128xf32>
    %c361 = arith.constant 361 : index
    %c0_116 = arith.constant 0 : index
    %129 = tpu.strided_load %arg16[%c361, %c0_116] {strides = array<i32: 2, 1>} : memref<376x128xf32, #tpu.memory_space<vmem>>, vector<8x128xf32>
    %130 = arith.maximumf %126, %127 : vector<8x128xf32>
    %131 = arith.maximumf %128, %129 : vector<8x128xf32>
    %132 = arith.maximumf %130, %131 : vector<8x128xf32>
    %c56 = arith.constant 56 : index
    %c0_117 = arith.constant 0 : index
    %133 = vector.load %arg21[%c56, %c0_117] : memref<64x128xf32, #tpu.memory_space<vmem>>, vector<8x128xf32>
    tpu.vector_store %arg21[%c56, %c0_117], %132 {strides = array<i32>} : memref<64x128xf32, #tpu.memory_space<vmem>>, vector<8x128xf32>,
    %c0_118 = arith.constant 0 : index
    %c0_119 = arith.constant 0 : index
    %134 = vector.load %arg21[%c0_118, %c0_119] : memref<64x128xf32, #tpu.memory_space<vmem>>, vector<64x128xf32>
    %c120_i32 = arith.constant 120 : i32
    %135 = tpu.dynamic_rotate %134 by %c120_i32 dim 1 : vector<64x128xf32>, i32 -> vector<64x128xf32>
    %136 = arith.maximumf %134, %135 : vector<64x128xf32>
    %c0_120 = arith.constant 0 : index
    %c0_121 = arith.constant 0 : index
    %137 = vector.load %arg5[%c0_120, %c0_121] : memref<128x64xf32, #tpu.memory_space<vmem>>, vector<128x64xf32>
    %cst_122 = arith.constant dense<0.000000e+00> : vector<64x64xf32>
    %138 = tpu.matmul %136, %137, %cst_122 {dimension_numbers = #tpu.dot_dimension_numbers<[1], [0], [0], [1], [0, 0, 1, 1], [], []>} : vector<64x128xf32>, vector<128x64xf32>, vector<64x64xf32> -> vector<64x64xf32>
    %139 = vector.extract_strided_slice %138 {offsets = [0, 0], sizes = [8, 64], strides = [1, 1]} : vector<64x64xf32> to vector<8x64xf32>
    %c17 = arith.constant 17 : index
    %c0_123 = arith.constant 0 : index
    %140 = vector.load %arg17[%c17, %c0_123] : memref<160x64xf32, #tpu.memory_space<vmem>>, vector<8x64xf32>
    tpu.vector_store %arg17[%c17, %c0_123], %139 {strides = array<i32>} : memref<160x64xf32, #tpu.memory_space<vmem>>, vector<8x64xf32>,
    %141 = vector.extract_strided_slice %138 {offsets = [8, 0], sizes = [8, 64], strides = [1, 1]} : vector<64x64xf32> to vector<8x64xf32>
    %c33 = arith.constant 33 : index
    %c0_124 = arith.constant 0 : index
    %142 = vector.load %arg17[%c33, %c0_124] : memref<160x64xf32, #tpu.memory_space<vmem>>, vector<8x64xf32>
    tpu.vector_store %arg17[%c33, %c0_124], %141 {strides = array<i32>} : memref<160x64xf32, #tpu.memory_space<vmem>>, vector<8x64xf32>,
    %143 = vector.extract_strided_slice %138 {offsets = [16, 0], sizes = [8, 64], strides = [1, 1]} : vector<64x64xf32> to vector<8x64xf32>
    %c49_125 = arith.constant 49 : index
    %c0_126 = arith.constant 0 : index
    %144 = vector.load %arg17[%c49_125, %c0_126] : memref<160x64xf32, #tpu.memory_space<vmem>>, vector<8x64xf32>
    tpu.vector_store %arg17[%c49_125, %c0_126], %143 {strides = array<i32>} : memref<160x64xf32, #tpu.memory_space<vmem>>, vector<8x64xf32>,
    %145 = vector.extract_strided_slice %138 {offsets = [24, 0], sizes = [8, 64], strides = [1, 1]} : vector<64x64xf32> to vector<8x64xf32>
    %c65 = arith.constant 65 : index
    %c0_127 = arith.constant 0 : index
    %146 = vector.load %arg17[%c65, %c0_127] : memref<160x64xf32, #tpu.memory_space<vmem>>, vector<8x64xf32>
    tpu.vector_store %arg17[%c65, %c0_127], %145 {strides = array<i32>} : memref<160x64xf32, #tpu.memory_space<vmem>>, vector<8x64xf32>,
    %147 = vector.extract_strided_slice %138 {offsets = [32, 0], sizes = [8, 64], strides = [1, 1]} : vector<64x64xf32> to vector<8x64xf32>
    %c81 = arith.constant 81 : index
    %c0_128 = arith.constant 0 : index
    %148 = vector.load %arg17[%c81, %c0_128] : memref<160x64xf32, #tpu.memory_space<vmem>>, vector<8x64xf32>
    tpu.vector_store %arg17[%c81, %c0_128], %147 {strides = array<i32>} : memref<160x64xf32, #tpu.memory_space<vmem>>, vector<8x64xf32>,
    %149 = vector.extract_strided_slice %138 {offsets = [40, 0], sizes = [8, 64], strides = [1, 1]} : vector<64x64xf32> to vector<8x64xf32>
    %c97_129 = arith.constant 97 : index
    %c0_130 = arith.constant 0 : index
    %150 = vector.load %arg17[%c97_129, %c0_130] : memref<160x64xf32, #tpu.memory_space<vmem>>, vector<8x64xf32>
    tpu.vector_store %arg17[%c97_129, %c0_130], %149 {strides = array<i32>} : memref<160x64xf32, #tpu.memory_space<vmem>>, vector<8x64xf32>,
    %151 = vector.extract_strided_slice %138 {offsets = [48, 0], sizes = [8, 64], strides = [1, 1]} : vector<64x64xf32> to vector<8x64xf32>
    %c113 = arith.constant 113 : index
    %c0_131 = arith.constant 0 : index
    %152 = vector.load %arg17[%c113, %c0_131] : memref<160x64xf32, #tpu.memory_space<vmem>>, vector<8x64xf32>
    tpu.vector_store %arg17[%c113, %c0_131], %151 {strides = array<i32>} : memref<160x64xf32, #tpu.memory_space<vmem>>, vector<8x64xf32>,
    %153 = vector.extract_strided_slice %138 {offsets = [56, 0], sizes = [8, 64], strides = [1, 1]} : vector<64x64xf32> to vector<8x64xf32>
    %c129 = arith.constant 129 : index
    %c0_132 = arith.constant 0 : index
    %154 = vector.load %arg17[%c129, %c0_132] : memref<160x64xf32, #tpu.memory_space<vmem>>, vector<8x64xf32>
    tpu.vector_store %arg17[%c129, %c0_132], %153 {strides = array<i32>} : memref<160x64xf32, #tpu.memory_space<vmem>>, vector<8x64xf32>,
    %c0_133 = arith.constant 0 : index
    %c0_134 = arith.constant 0 : index
    %155 = vector.load %arg17[%c0_133, %c0_134] : memref<160x64xf32, #tpu.memory_space<vmem>>, vector<120x64xf32>
    %c0_135 = arith.constant 0 : index
    %c0_136 = arith.constant 0 : index
    %c0_137 = arith.constant 0 : index
    %156 = vector.load %arg6[%c0_135, %c0_136, %c0_137] : memref<9x64x128xf32, #tpu.memory_space<vmem>>, vector<1x64x128xf32>
    %157 = vector.shape_cast %156 : vector<1x64x128xf32> to vector<64x128xf32>
    %cst_138 = arith.constant dense<0.000000e+00> : vector<120x128xf32>
    %158 = tpu.matmul %155, %157, %cst_138 {dimension_numbers = #tpu.dot_dimension_numbers<[1], [0], [0], [1], [0, 0, 1, 1], [], []>} : vector<120x64xf32>, vector<64x128xf32>, vector<120x128xf32> -> vector<120x128xf32>
    %c1_139 = arith.constant 1 : index
    %c0_140 = arith.constant 0 : index
    %159 = vector.load %arg17[%c1_139, %c0_140] : memref<160x64xf32, #tpu.memory_space<vmem>>, vector<120x64xf32>
    %c1_141 = arith.constant 1 : index
    %c0_142 = arith.constant 0 : index
    %c0_143 = arith.constant 0 : index
    %160 = vector.load %arg6[%c1_141, %c0_142, %c0_143] : memref<9x64x128xf32, #tpu.memory_space<vmem>>, vector<1x64x128xf32>
    %161 = vector.shape_cast %160 : vector<1x64x128xf32> to vector<64x128xf32>
    %cst_144 = arith.constant dense<0.000000e+00> : vector<120x128xf32>
    %162 = tpu.matmul %159, %161, %cst_144 {dimension_numbers = #tpu.dot_dimension_numbers<[1], [0], [0], [1], [0, 0, 1, 1], [], []>} : vector<120x64xf32>, vector<64x128xf32>, vector<120x128xf32> -> vector<120x128xf32>
    %163 = arith.addf %158, %162 : vector<120x128xf32>
    %c2_145 = arith.constant 2 : index
    %c0_146 = arith.constant 0 : index
    %164 = vector.load %arg17[%c2_145, %c0_146] : memref<160x64xf32, #tpu.memory_space<vmem>>, vector<120x64xf32>
    %c2_147 = arith.constant 2 : index
    %c0_148 = arith.constant 0 : index
    %c0_149 = arith.constant 0 : index
    %165 = vector.load %arg6[%c2_147, %c0_148, %c0_149] : memref<9x64x128xf32, #tpu.memory_space<vmem>>, vector<1x64x128xf32>
    %166 = vector.shape_cast %165 : vector<1x64x128xf32> to vector<64x128xf32>
    %cst_150 = arith.constant dense<0.000000e+00> : vector<120x128xf32>
    %167 = tpu.matmul %164, %166, %cst_150 {dimension_numbers = #tpu.dot_dimension_numbers<[1], [0], [0], [1], [0, 0, 1, 1], [], []>} : vector<120x64xf32>, vector<64x128xf32>, vector<120x128xf32> -> vector<120x128xf32>
    %168 = arith.addf %163, %167 : vector<120x128xf32>
    %c0_151 = arith.constant 0 : index
    %c0_152 = arith.constant 0 : index
    %169 = vector.load %arg18[%c0_151, %c0_152] : memref<120x128xf32, #tpu.memory_space<vmem>>, vector<120x128xf32>
    tpu.vector_store %arg18[%c0_151, %c0_152], %168 {strides = array<i32>} : memref<120x128xf32, #tpu.memory_space<vmem>>, vector<120x128xf32>,
    %c16_153 = arith.constant 16 : index
    %c0_154 = arith.constant 0 : index
    %170 = vector.load %arg17[%c16_153, %c0_154] : memref<160x64xf32, #tpu.memory_space<vmem>>, vector<120x64xf32>
    %c3_155 = arith.constant 3 : index
    %c0_156 = arith.constant 0 : index
    %c0_157 = arith.constant 0 : index
    %171 = vector.load %arg6[%c3_155, %c0_156, %c0_157] : memref<9x64x128xf32, #tpu.memory_space<vmem>>, vector<1x64x128xf32>
    %172 = vector.shape_cast %171 : vector<1x64x128xf32> to vector<64x128xf32>
    %cst_158 = arith.constant dense<0.000000e+00> : vector<120x128xf32>
    %173 = tpu.matmul %170, %172, %cst_158 {dimension_numbers = #tpu.dot_dimension_numbers<[1], [0], [0], [1], [0, 0, 1, 1], [], []>} : vector<120x64xf32>, vector<64x128xf32>, vector<120x128xf32> -> vector<120x128xf32>
    %c17_159 = arith.constant 17 : index
    %c0_160 = arith.constant 0 : index
    %174 = vector.load %arg17[%c17_159, %c0_160] : memref<160x64xf32, #tpu.memory_space<vmem>>, vector<120x64xf32>
    %c4_161 = arith.constant 4 : index
    %c0_162 = arith.constant 0 : index
    %c0_163 = arith.constant 0 : index
    %175 = vector.load %arg6[%c4_161, %c0_162, %c0_163] : memref<9x64x128xf32, #tpu.memory_space<vmem>>, vector<1x64x128xf32>
    %176 = vector.shape_cast %175 : vector<1x64x128xf32> to vector<64x128xf32>
    %cst_164 = arith.constant dense<0.000000e+00> : vector<120x128xf32>
    %177 = tpu.matmul %174, %176, %cst_164 {dimension_numbers = #tpu.dot_dimension_numbers<[1], [0], [0], [1], [0, 0, 1, 1], [], []>} : vector<120x64xf32>, vector<64x128xf32>, vector<120x128xf32> -> vector<120x128xf32>
    %178 = arith.addf %173, %177 : vector<120x128xf32>
    %c18 = arith.constant 18 : index
    %c0_165 = arith.constant 0 : index
    %179 = vector.load %arg17[%c18, %c0_165] : memref<160x64xf32, #tpu.memory_space<vmem>>, vector<120x64xf32>
    %c5_166 = arith.constant 5 : index
    %c0_167 = arith.constant 0 : index
    %c0_168 = arith.constant 0 : index
    %180 = vector.load %arg6[%c5_166, %c0_167, %c0_168] : memref<9x64x128xf32, #tpu.memory_space<vmem>>, vector<1x64x128xf32>
    %181 = vector.shape_cast %180 : vector<1x64x128xf32> to vector<64x128xf32>
    %cst_169 = arith.constant dense<0.000000e+00> : vector<120x128xf32>
    %182 = tpu.matmul %179, %181, %cst_169 {dimension_numbers = #tpu.dot_dimension_numbers<[1], [0], [0], [1], [0, 0, 1, 1], [], []>} : vector<120x64xf32>, vector<64x128xf32>, vector<120x128xf32> -> vector<120x128xf32>
    %183 = arith.addf %178, %182 : vector<120x128xf32>
    %c0_170 = arith.constant 0 : index
    %c0_171 = arith.constant 0 : index
    %184 = vector.load %arg18[%c0_170, %c0_171] : memref<120x128xf32, #tpu.memory_space<vmem>>, vector<120x128xf32>
    %185 = arith.addf %184, %183 : vector<120x128xf32>
    %c0_172 = arith.constant 0 : index
    %c0_173 = arith.constant 0 : index
    %186 = vector.load %arg18[%c0_172, %c0_173] : memref<120x128xf32, #tpu.memory_space<vmem>>, vector<120x128xf32>
    tpu.vector_store %arg18[%c0_172, %c0_173], %185 {strides = array<i32>} : memref<120x128xf32, #tpu.memory_space<vmem>>, vector<120x128xf32>,
    %c32_174 = arith.constant 32 : index
    %c0_175 = arith.constant 0 : index
    %187 = vector.load %arg17[%c32_174, %c0_175] : memref<160x64xf32, #tpu.memory_space<vmem>>, vector<120x64xf32>
    %c6_176 = arith.constant 6 : index
    %c0_177 = arith.constant 0 : index
    %c0_178 = arith.constant 0 : index
    %188 = vector.load %arg6[%c6_176, %c0_177, %c0_178] : memref<9x64x128xf32, #tpu.memory_space<vmem>>, vector<1x64x128xf32>
    %189 = vector.shape_cast %188 : vector<1x64x128xf32> to vector<64x128xf32>
    %cst_179 = arith.constant dense<0.000000e+00> : vector<120x128xf32>
    %190 = tpu.matmul %187, %189, %cst_179 {dimension_numbers = #tpu.dot_dimension_numbers<[1], [0], [0], [1], [0, 0, 1, 1], [], []>} : vector<120x64xf32>, vector<64x128xf32>, vector<120x128xf32> -> vector<120x128xf32>
    %c33_180 = arith.constant 33 : index
    %c0_181 = arith.constant 0 : index
    %191 = vector.load %arg17[%c33_180, %c0_181] : memref<160x64xf32, #tpu.memory_space<vmem>>, vector<120x64xf32>
    %c7_182 = arith.constant 7 : index
    %c0_183 = arith.constant 0 : index
    %c0_184 = arith.constant 0 : index
    %192 = vector.load %arg6[%c7_182, %c0_183, %c0_184] : memref<9x64x128xf32, #tpu.memory_space<vmem>>, vector<1x64x128xf32>
    %193 = vector.shape_cast %192 : vector<1x64x128xf32> to vector<64x128xf32>
    %cst_185 = arith.constant dense<0.000000e+00> : vector<120x128xf32>
    %194 = tpu.matmul %191, %193, %cst_185 {dimension_numbers = #tpu.dot_dimension_numbers<[1], [0], [0], [1], [0, 0, 1, 1], [], []>} : vector<120x64xf32>, vector<64x128xf32>, vector<120x128xf32> -> vector<120x128xf32>
    %195 = arith.addf %190, %194 : vector<120x128xf32>
    %c34 = arith.constant 34 : index
    %c0_186 = arith.constant 0 : index
    %196 = vector.load %arg17[%c34, %c0_186] : memref<160x64xf32, #tpu.memory_space<vmem>>, vector<120x64xf32>
    %c8_187 = arith.constant 8 : index
    %c0_188 = arith.constant 0 : index
    %c0_189 = arith.constant 0 : index
    %197 = vector.load %arg6[%c8_187, %c0_188, %c0_189] : memref<9x64x128xf32, #tpu.memory_space<vmem>>, vector<1x64x128xf32>
    %198 = vector.shape_cast %197 : vector<1x64x128xf32> to vector<64x128xf32>
    %cst_190 = arith.constant dense<0.000000e+00> : vector<120x128xf32>
    %199 = tpu.matmul %196, %198, %cst_190 {dimension_numbers = #tpu.dot_dimension_numbers<[1], [0], [0], [1], [0, 0, 1, 1], [], []>} : vector<120x64xf32>, vector<64x128xf32>, vector<120x128xf32> -> vector<120x128xf32>
    %200 = arith.addf %195, %199 : vector<120x128xf32>
    %c0_191 = arith.constant 0 : index
    %c0_192 = arith.constant 0 : index
    %201 = vector.load %arg18[%c0_191, %c0_192] : memref<120x128xf32, #tpu.memory_space<vmem>>, vector<120x128xf32>
    %202 = arith.addf %201, %200 : vector<120x128xf32>
    %c0_193 = arith.constant 0 : index
    %c0_194 = arith.constant 0 : index
    %203 = vector.load %arg7[%c0_193, %c0_194] : memref<1x128xf32, #tpu.memory_space<vmem>>, vector<1x128xf32>
    %204 = vector.broadcast %203 : vector<1x128xf32> to vector<120x128xf32>
    %205 = arith.mulf %202, %204 : vector<120x128xf32>
    %c0_195 = arith.constant 0 : index
    %c0_196 = arith.constant 0 : index
    %206 = vector.load %arg8[%c0_195, %c0_196] : memref<1x128xf32, #tpu.memory_space<vmem>>, vector<1x128xf32>
    %207 = vector.broadcast %206 : vector<1x128xf32> to vector<120x128xf32>
    %208 = arith.addf %205, %207 : vector<120x128xf32>
    %cst_197 = arith.constant 0.000000e+00 : f32
    %209 = vector.broadcast %cst_197 : f32 to vector<120x128xf32>
    %210 = arith.maximumf %208, %209 : vector<120x128xf32>
    %c0_198 = arith.constant 0 : index
    %c0_199 = arith.constant 0 : index
    %211 = vector.load %arg18[%c0_198, %c0_199] : memref<120x128xf32, #tpu.memory_space<vmem>>, vector<120x128xf32>
    tpu.vector_store %arg18[%c0_198, %c0_199], %210 {strides = array<i32>} : memref<120x128xf32, #tpu.memory_space<vmem>>, vector<120x128xf32>,
    %c0_200 = arith.constant 0 : index
    %c0_201 = arith.constant 0 : index
    %212 = tpu.strided_load %arg18[%c0_200, %c0_201] {strides = array<i32: 2, 1>} : memref<120x128xf32, #tpu.memory_space<vmem>>, vector<4x128xf32>
    %c1_202 = arith.constant 1 : index
    %c0_203 = arith.constant 0 : index
    %213 = tpu.strided_load %arg18[%c1_202, %c0_203] {strides = array<i32: 2, 1>} : memref<120x128xf32, #tpu.memory_space<vmem>>, vector<4x128xf32>
    %c16_204 = arith.constant 16 : index
    %c0_205 = arith.constant 0 : index
    %214 = tpu.strided_load %arg18[%c16_204, %c0_205] {strides = array<i32: 2, 1>} : memref<120x128xf32, #tpu.memory_space<vmem>>, vector<4x128xf32>
    %c17_206 = arith.constant 17 : index
    %c0_207 = arith.constant 0 : index
    %215 = tpu.strided_load %arg18[%c17_206, %c0_207] {strides = array<i32: 2, 1>} : memref<120x128xf32, #tpu.memory_space<vmem>>, vector<4x128xf32>
    %216 = arith.maximumf %212, %213 : vector<4x128xf32>
    %217 = arith.maximumf %214, %215 : vector<4x128xf32>
    %218 = arith.maximumf %216, %217 : vector<4x128xf32>
    %c0_208 = arith.constant 0 : index
    %c0_209 = arith.constant 0 : index
    %219 = vector.load %arg21[%c0_208, %c0_209] : memref<64x128xf32, #tpu.memory_space<vmem>>, vector<4x128xf32>
    tpu.vector_store %arg21[%c0_208, %c0_209], %218 {strides = array<i32>} : memref<64x128xf32, #tpu.memory_space<vmem>>, vector<4x128xf32>,
    %c32_210 = arith.constant 32 : index
    %c0_211 = arith.constant 0 : index
    %220 = tpu.strided_load %arg18[%c32_210, %c0_211] {strides = array<i32: 2, 1>} : memref<120x128xf32, #tpu.memory_space<vmem>>, vector<4x128xf32>
    %c33_212 = arith.constant 33 : index
    %c0_213 = arith.constant 0 : index
    %221 = tpu.strided_load %arg18[%c33_212, %c0_213] {strides = array<i32: 2, 1>} : memref<120x128xf32, #tpu.memory_space<vmem>>, vector<4x128xf32>
    %c48_214 = arith.constant 48 : index
    %c0_215 = arith.constant 0 : index
    %222 = tpu.strided_load %arg18[%c48_214, %c0_215] {strides = array<i32: 2, 1>} : memref<120x128xf32, #tpu.memory_space<vmem>>, vector<4x128xf32>
    %c49_216 = arith.constant 49 : index
    %c0_217 = arith.constant 0 : index
    %223 = tpu.strided_load %arg18[%c49_216, %c0_217] {strides = array<i32: 2, 1>} : memref<120x128xf32, #tpu.memory_space<vmem>>, vector<4x128xf32>
    %224 = arith.maximumf %220, %221 : vector<4x128xf32>
    %225 = arith.maximumf %222, %223 : vector<4x128xf32>
    %226 = arith.maximumf %224, %225 : vector<4x128xf32>
    %c4_218 = arith.constant 4 : index
    %c0_219 = arith.constant 0 : index
    %227 = vector.load %arg21[%c4_218, %c0_219] : memref<64x128xf32, #tpu.memory_space<vmem>>, vector<4x128xf32>
    tpu.vector_store %arg21[%c4_218, %c0_219], %226 {strides = array<i32>} : memref<64x128xf32, #tpu.memory_space<vmem>>, vector<4x128xf32>,
    %c64 = arith.constant 64 : index
    %c0_220 = arith.constant 0 : index
    %228 = tpu.strided_load %arg18[%c64, %c0_220] {strides = array<i32: 2, 1>} : memref<120x128xf32, #tpu.memory_space<vmem>>, vector<4x128xf32>
    %c65_221 = arith.constant 65 : index
    %c0_222 = arith.constant 0 : index
    %229 = tpu.strided_load %arg18[%c65_221, %c0_222] {strides = array<i32: 2, 1>} : memref<120x128xf32, #tpu.memory_space<vmem>>, vector<4x128xf32>
    %c80 = arith.constant 80 : index
    %c0_223 = arith.constant 0 : index
    %230 = tpu.strided_load %arg18[%c80, %c0_223] {strides = array<i32: 2, 1>} : memref<120x128xf32, #tpu.memory_space<vmem>>, vector<4x128xf32>
    %c81_224 = arith.constant 81 : index
    %c0_225 = arith.constant 0 : index
    %231 = tpu.strided_load %arg18[%c81_224, %c0_225] {strides = array<i32: 2, 1>} : memref<120x128xf32, #tpu.memory_space<vmem>>, vector<4x128xf32>
    %232 = arith.maximumf %228, %229 : vector<4x128xf32>
    %233 = arith.maximumf %230, %231 : vector<4x128xf32>
    %234 = arith.maximumf %232, %233 : vector<4x128xf32>
    %c8_226 = arith.constant 8 : index
    %c0_227 = arith.constant 0 : index
    %235 = vector.load %arg21[%c8_226, %c0_227] : memref<64x128xf32, #tpu.memory_space<vmem>>, vector<4x128xf32>
    tpu.vector_store %arg21[%c8_226, %c0_227], %234 {strides = array<i32>} : memref<64x128xf32, #tpu.memory_space<vmem>>, vector<4x128xf32>,
    %c96_228 = arith.constant 96 : index
    %c0_229 = arith.constant 0 : index
    %236 = tpu.strided_load %arg18[%c96_228, %c0_229] {strides = array<i32: 2, 1>} : memref<120x128xf32, #tpu.memory_space<vmem>>, vector<4x128xf32>
    %c97_230 = arith.constant 97 : index
    %c0_231 = arith.constant 0 : index
    %237 = tpu.strided_load %arg18[%c97_230, %c0_231] {strides = array<i32: 2, 1>} : memref<120x128xf32, #tpu.memory_space<vmem>>, vector<4x128xf32>
    %c112 = arith.constant 112 : index
    %c0_232 = arith.constant 0 : index
    %238 = tpu.strided_load %arg18[%c112, %c0_232] {strides = array<i32: 2, 1>} : memref<120x128xf32, #tpu.memory_space<vmem>>, vector<4x128xf32>
    %c113_233 = arith.constant 113 : index
    %c0_234 = arith.constant 0 : index
    %239 = tpu.strided_load %arg18[%c113_233, %c0_234] {strides = array<i32: 2, 1>} : memref<120x128xf32, #tpu.memory_space<vmem>>, vector<4x128xf32>
    %240 = arith.maximumf %236, %237 : vector<4x128xf32>
    %241 = arith.maximumf %238, %239 : vector<4x128xf32>
    %242 = arith.maximumf %240, %241 : vector<4x128xf32>
    %c12 = arith.constant 12 : index
    %c0_235 = arith.constant 0 : index
    %243 = vector.load %arg21[%c12, %c0_235] : memref<64x128xf32, #tpu.memory_space<vmem>>, vector<4x128xf32>
    tpu.vector_store %arg21[%c12, %c0_235], %242 {strides = array<i32>} : memref<64x128xf32, #tpu.memory_space<vmem>>, vector<4x128xf32>,
    %c0_236 = arith.constant 0 : index
    %c0_237 = arith.constant 0 : index
    %244 = vector.load %arg21[%c0_236, %c0_237] : memref<64x128xf32, #tpu.memory_space<vmem>>, vector<16x128xf32>
    %c120_i32_238 = arith.constant 120 : i32
    %245 = tpu.dynamic_rotate %244 by %c120_i32_238 dim 1 : vector<16x128xf32>, i32 -> vector<16x128xf32>
    %246 = arith.maximumf %244, %245 : vector<16x128xf32>
    %c0_239 = arith.constant 0 : index
    %c0_240 = arith.constant 0 : index
    %247 = vector.load %arg9[%c0_239, %c0_240] : memref<128x32xf32, #tpu.memory_space<vmem>>, vector<128x32xf32>
    %cst_241 = arith.constant dense<0.000000e+00> : vector<16x32xf32>
    %248 = tpu.matmul %246, %247, %cst_241 {dimension_numbers = #tpu.dot_dimension_numbers<[1], [0], [0], [1], [0, 0, 1, 1], [], []>} : vector<16x128xf32>, vector<128x32xf32>, vector<16x32xf32> -> vector<16x32xf32>
    %249 = vector.extract_strided_slice %248 {offsets = [0, 0], sizes = [4, 32], strides = [1, 1]} : vector<16x32xf32> to vector<4x32xf32>
    %c9 = arith.constant 9 : index
    %c0_242 = arith.constant 0 : index
    %250 = vector.load %arg19[%c9, %c0_242] : memref<56x32xf32, #tpu.memory_space<vmem>>, vector<4x32xf32>
    tpu.vector_store %arg19[%c9, %c0_242], %249 {strides = array<i32>} : memref<56x32xf32, #tpu.memory_space<vmem>>, vector<4x32xf32>,
    %251 = vector.extract_strided_slice %248 {offsets = [4, 0], sizes = [4, 32], strides = [1, 1]} : vector<16x32xf32> to vector<4x32xf32>
    %c17_243 = arith.constant 17 : index
    %c0_244 = arith.constant 0 : index
    %252 = vector.load %arg19[%c17_243, %c0_244] : memref<56x32xf32, #tpu.memory_space<vmem>>, vector<4x32xf32>
    tpu.vector_store %arg19[%c17_243, %c0_244], %251 {strides = array<i32>} : memref<56x32xf32, #tpu.memory_space<vmem>>, vector<4x32xf32>,
    %253 = vector.extract_strided_slice %248 {offsets = [8, 0], sizes = [4, 32], strides = [1, 1]} : vector<16x32xf32> to vector<4x32xf32>
    %c25_245 = arith.constant 25 : index
    %c0_246 = arith.constant 0 : index
    %254 = vector.load %arg19[%c25_245, %c0_246] : memref<56x32xf32, #tpu.memory_space<vmem>>, vector<4x32xf32>
    tpu.vector_store %arg19[%c25_245, %c0_246], %253 {strides = array<i32>} : memref<56x32xf32, #tpu.memory_space<vmem>>, vector<4x32xf32>,
    %255 = vector.extract_strided_slice %248 {offsets = [12, 0], sizes = [4, 32], strides = [1, 1]} : vector<16x32xf32> to vector<4x32xf32>
    %c33_247 = arith.constant 33 : index
    %c0_248 = arith.constant 0 : index
    %256 = vector.load %arg19[%c33_247, %c0_248] : memref<56x32xf32, #tpu.memory_space<vmem>>, vector<4x32xf32>
    tpu.vector_store %arg19[%c33_247, %c0_248], %255 {strides = array<i32>} : memref<56x32xf32, #tpu.memory_space<vmem>>, vector<4x32xf32>,
    %c0_249 = arith.constant 0 : index
    %c0_250 = arith.constant 0 : index
    %257 = vector.load %arg19[%c0_249, %c0_250] : memref<56x32xf32, #tpu.memory_space<vmem>>, vector<32x32xf32>
    %c0_251 = arith.constant 0 : index
    %c0_252 = arith.constant 0 : index
    %c0_253 = arith.constant 0 : index
    %258 = vector.load %arg10[%c0_251, %c0_252, %c0_253] : memref<9x32x128xf32, #tpu.memory_space<vmem>>, vector<1x32x128xf32>
    %259 = vector.shape_cast %258 : vector<1x32x128xf32> to vector<32x128xf32>
    %cst_254 = arith.constant dense<0.000000e+00> : vector<32x128xf32>
    %260 = tpu.matmul %257, %259, %cst_254 {dimension_numbers = #tpu.dot_dimension_numbers<[1], [0], [0], [1], [0, 0, 1, 1], [], []>} : vector<32x32xf32>, vector<32x128xf32>, vector<32x128xf32> -> vector<32x128xf32>
    %c1_255 = arith.constant 1 : index
    %c0_256 = arith.constant 0 : index
    %261 = vector.load %arg19[%c1_255, %c0_256] : memref<56x32xf32, #tpu.memory_space<vmem>>, vector<32x32xf32>
    %c1_257 = arith.constant 1 : index
    %c0_258 = arith.constant 0 : index
    %c0_259 = arith.constant 0 : index
    %262 = vector.load %arg10[%c1_257, %c0_258, %c0_259] : memref<9x32x128xf32, #tpu.memory_space<vmem>>, vector<1x32x128xf32>
    %263 = vector.shape_cast %262 : vector<1x32x128xf32> to vector<32x128xf32>
    %cst_260 = arith.constant dense<0.000000e+00> : vector<32x128xf32>
    %264 = tpu.matmul %261, %263, %cst_260 {dimension_numbers = #tpu.dot_dimension_numbers<[1], [0], [0], [1], [0, 0, 1, 1], [], []>} : vector<32x32xf32>, vector<32x128xf32>, vector<32x128xf32> -> vector<32x128xf32>
    %265 = arith.addf %260, %264 : vector<32x128xf32>
    %c2_261 = arith.constant 2 : index
    %c0_262 = arith.constant 0 : index
    %266 = vector.load %arg19[%c2_261, %c0_262] : memref<56x32xf32, #tpu.memory_space<vmem>>, vector<32x32xf32>
    %c2_263 = arith.constant 2 : index
    %c0_264 = arith.constant 0 : index
    %c0_265 = arith.constant 0 : index
    %267 = vector.load %arg10[%c2_263, %c0_264, %c0_265] : memref<9x32x128xf32, #tpu.memory_space<vmem>>, vector<1x32x128xf32>
    %268 = vector.shape_cast %267 : vector<1x32x128xf32> to vector<32x128xf32>
    %cst_266 = arith.constant dense<0.000000e+00> : vector<32x128xf32>
    %269 = tpu.matmul %266, %268, %cst_266 {dimension_numbers = #tpu.dot_dimension_numbers<[1], [0], [0], [1], [0, 0, 1, 1], [], []>} : vector<32x32xf32>, vector<32x128xf32>, vector<32x128xf32> -> vector<32x128xf32>
    %270 = arith.addf %265, %269 : vector<32x128xf32>
    %c0_267 = arith.constant 0 : index
    %c0_268 = arith.constant 0 : index
    %271 = vector.load %arg20[%c0_267, %c0_268] : memref<32x128xf32, #tpu.memory_space<vmem>>, vector<32x128xf32>
    tpu.vector_store %arg20[%c0_267, %c0_268], %270 {strides = array<i32>} : memref<32x128xf32, #tpu.memory_space<vmem>>, vector<32x128xf32>,
    %c8_269 = arith.constant 8 : index
    %c0_270 = arith.constant 0 : index
    %272 = vector.load %arg19[%c8_269, %c0_270] : memref<56x32xf32, #tpu.memory_space<vmem>>, vector<32x32xf32>
    %c3_271 = arith.constant 3 : index
    %c0_272 = arith.constant 0 : index
    %c0_273 = arith.constant 0 : index
    %273 = vector.load %arg10[%c3_271, %c0_272, %c0_273] : memref<9x32x128xf32, #tpu.memory_space<vmem>>, vector<1x32x128xf32>
    %274 = vector.shape_cast %273 : vector<1x32x128xf32> to vector<32x128xf32>
    %cst_274 = arith.constant dense<0.000000e+00> : vector<32x128xf32>
    %275 = tpu.matmul %272, %274, %cst_274 {dimension_numbers = #tpu.dot_dimension_numbers<[1], [0], [0], [1], [0, 0, 1, 1], [], []>} : vector<32x32xf32>, vector<32x128xf32>, vector<32x128xf32> -> vector<32x128xf32>
    %c9_275 = arith.constant 9 : index
    %c0_276 = arith.constant 0 : index
    %276 = vector.load %arg19[%c9_275, %c0_276] : memref<56x32xf32, #tpu.memory_space<vmem>>, vector<32x32xf32>
    %c4_277 = arith.constant 4 : index
    %c0_278 = arith.constant 0 : index
    %c0_279 = arith.constant 0 : index
    %277 = vector.load %arg10[%c4_277, %c0_278, %c0_279] : memref<9x32x128xf32, #tpu.memory_space<vmem>>, vector<1x32x128xf32>
    %278 = vector.shape_cast %277 : vector<1x32x128xf32> to vector<32x128xf32>
    %cst_280 = arith.constant dense<0.000000e+00> : vector<32x128xf32>
    %279 = tpu.matmul %276, %278, %cst_280 {dimension_numbers = #tpu.dot_dimension_numbers<[1], [0], [0], [1], [0, 0, 1, 1], [], []>} : vector<32x32xf32>, vector<32x128xf32>, vector<32x128xf32> -> vector<32x128xf32>
    %280 = arith.addf %275, %279 : vector<32x128xf32>
    %c10 = arith.constant 10 : index
    %c0_281 = arith.constant 0 : index
    %281 = vector.load %arg19[%c10, %c0_281] : memref<56x32xf32, #tpu.memory_space<vmem>>, vector<32x32xf32>
    %c5_282 = arith.constant 5 : index
    %c0_283 = arith.constant 0 : index
    %c0_284 = arith.constant 0 : index
    %282 = vector.load %arg10[%c5_282, %c0_283, %c0_284] : memref<9x32x128xf32, #tpu.memory_space<vmem>>, vector<1x32x128xf32>
    %283 = vector.shape_cast %282 : vector<1x32x128xf32> to vector<32x128xf32>
    %cst_285 = arith.constant dense<0.000000e+00> : vector<32x128xf32>
    %284 = tpu.matmul %281, %283, %cst_285 {dimension_numbers = #tpu.dot_dimension_numbers<[1], [0], [0], [1], [0, 0, 1, 1], [], []>} : vector<32x32xf32>, vector<32x128xf32>, vector<32x128xf32> -> vector<32x128xf32>
    %285 = arith.addf %280, %284 : vector<32x128xf32>
    %c0_286 = arith.constant 0 : index
    %c0_287 = arith.constant 0 : index
    %286 = vector.load %arg20[%c0_286, %c0_287] : memref<32x128xf32, #tpu.memory_space<vmem>>, vector<32x128xf32>
    %287 = arith.addf %286, %285 : vector<32x128xf32>
    %c0_288 = arith.constant 0 : index
    %c0_289 = arith.constant 0 : index
    %288 = vector.load %arg20[%c0_288, %c0_289] : memref<32x128xf32, #tpu.memory_space<vmem>>, vector<32x128xf32>
    tpu.vector_store %arg20[%c0_288, %c0_289], %287 {strides = array<i32>} : memref<32x128xf32, #tpu.memory_space<vmem>>, vector<32x128xf32>,
    %c16_290 = arith.constant 16 : index
    %c0_291 = arith.constant 0 : index
    %289 = vector.load %arg19[%c16_290, %c0_291] : memref<56x32xf32, #tpu.memory_space<vmem>>, vector<32x32xf32>
    %c6_292 = arith.constant 6 : index
    %c0_293 = arith.constant 0 : index
    %c0_294 = arith.constant 0 : index
    %290 = vector.load %arg10[%c6_292, %c0_293, %c0_294] : memref<9x32x128xf32, #tpu.memory_space<vmem>>, vector<1x32x128xf32>
    %291 = vector.shape_cast %290 : vector<1x32x128xf32> to vector<32x128xf32>
    %cst_295 = arith.constant dense<0.000000e+00> : vector<32x128xf32>
    %292 = tpu.matmul %289, %291, %cst_295 {dimension_numbers = #tpu.dot_dimension_numbers<[1], [0], [0], [1], [0, 0, 1, 1], [], []>} : vector<32x32xf32>, vector<32x128xf32>, vector<32x128xf32> -> vector<32x128xf32>
    %c17_296 = arith.constant 17 : index
    %c0_297 = arith.constant 0 : index
    %293 = vector.load %arg19[%c17_296, %c0_297] : memref<56x32xf32, #tpu.memory_space<vmem>>, vector<32x32xf32>
    %c7_298 = arith.constant 7 : index
    %c0_299 = arith.constant 0 : index
    %c0_300 = arith.constant 0 : index
    %294 = vector.load %arg10[%c7_298, %c0_299, %c0_300] : memref<9x32x128xf32, #tpu.memory_space<vmem>>, vector<1x32x128xf32>
    %295 = vector.shape_cast %294 : vector<1x32x128xf32> to vector<32x128xf32>
    %cst_301 = arith.constant dense<0.000000e+00> : vector<32x128xf32>
    %296 = tpu.matmul %293, %295, %cst_301 {dimension_numbers = #tpu.dot_dimension_numbers<[1], [0], [0], [1], [0, 0, 1, 1], [], []>} : vector<32x32xf32>, vector<32x128xf32>, vector<32x128xf32> -> vector<32x128xf32>
    %297 = arith.addf %292, %296 : vector<32x128xf32>
    %c18_302 = arith.constant 18 : index
    %c0_303 = arith.constant 0 : index
    %298 = vector.load %arg19[%c18_302, %c0_303] : memref<56x32xf32, #tpu.memory_space<vmem>>, vector<32x32xf32>
    %c8_304 = arith.constant 8 : index
    %c0_305 = arith.constant 0 : index
    %c0_306 = arith.constant 0 : index
    %299 = vector.load %arg10[%c8_304, %c0_305, %c0_306] : memref<9x32x128xf32, #tpu.memory_space<vmem>>, vector<1x32x128xf32>
    %300 = vector.shape_cast %299 : vector<1x32x128xf32> to vector<32x128xf32>
    %cst_307 = arith.constant dense<0.000000e+00> : vector<32x128xf32>
    %301 = tpu.matmul %298, %300, %cst_307 {dimension_numbers = #tpu.dot_dimension_numbers<[1], [0], [0], [1], [0, 0, 1, 1], [], []>} : vector<32x32xf32>, vector<32x128xf32>, vector<32x128xf32> -> vector<32x128xf32>
    %302 = arith.addf %297, %301 : vector<32x128xf32>
    %c0_308 = arith.constant 0 : index
    %c0_309 = arith.constant 0 : index
    %303 = vector.load %arg20[%c0_308, %c0_309] : memref<32x128xf32, #tpu.memory_space<vmem>>, vector<32x128xf32>
    %304 = arith.addf %303, %302 : vector<32x128xf32>
    %c0_310 = arith.constant 0 : index
    %c0_311 = arith.constant 0 : index
    %305 = vector.load %arg11[%c0_310, %c0_311] : memref<1x128xf32, #tpu.memory_space<vmem>>, vector<1x128xf32>
    %306 = vector.broadcast %305 : vector<1x128xf32> to vector<32x128xf32>
    %307 = arith.mulf %304, %306 : vector<32x128xf32>
    %c0_312 = arith.constant 0 : index
    %c0_313 = arith.constant 0 : index
    %308 = vector.load %arg12[%c0_312, %c0_313] : memref<1x128xf32, #tpu.memory_space<vmem>>, vector<1x128xf32>
    %309 = vector.broadcast %308 : vector<1x128xf32> to vector<32x128xf32>
    %310 = arith.addf %307, %309 : vector<32x128xf32>
    %cst_314 = arith.constant 0.000000e+00 : f32
    %311 = vector.broadcast %cst_314 : f32 to vector<32x128xf32>
    %312 = arith.maximumf %310, %311 : vector<32x128xf32>
    %c0_315 = arith.constant 0 : index
    %c0_316 = arith.constant 0 : index
    %313 = vector.load %arg20[%c0_315, %c0_316] : memref<32x128xf32, #tpu.memory_space<vmem>>, vector<32x128xf32>
    tpu.vector_store %arg20[%c0_315, %c0_316], %312 {strides = array<i32>} : memref<32x128xf32, #tpu.memory_space<vmem>>, vector<32x128xf32>,
    %c0_317 = arith.constant 0 : index
    %c0_318 = arith.constant 0 : index
    %314 = tpu.strided_load %arg20[%c0_317, %c0_318] {strides = array<i32: 2, 1>} : memref<32x128xf32, #tpu.memory_space<vmem>>, vector<2x128xf32>
    %c1_319 = arith.constant 1 : index
    %c0_320 = arith.constant 0 : index
    %315 = tpu.strided_load %arg20[%c1_319, %c0_320] {strides = array<i32: 2, 1>} : memref<32x128xf32, #tpu.memory_space<vmem>>, vector<2x128xf32>
    %c8_321 = arith.constant 8 : index
    %c0_322 = arith.constant 0 : index
    %316 = tpu.strided_load %arg20[%c8_321, %c0_322] {strides = array<i32: 2, 1>} : memref<32x128xf32, #tpu.memory_space<vmem>>, vector<2x128xf32>
    %c9_323 = arith.constant 9 : index
    %c0_324 = arith.constant 0 : index
    %317 = tpu.strided_load %arg20[%c9_323, %c0_324] {strides = array<i32: 2, 1>} : memref<32x128xf32, #tpu.memory_space<vmem>>, vector<2x128xf32>
    %318 = arith.maximumf %314, %315 : vector<2x128xf32>
    %319 = arith.maximumf %316, %317 : vector<2x128xf32>
    %320 = arith.maximumf %318, %319 : vector<2x128xf32>
    %c0_325 = arith.constant 0 : index
    %c0_326 = arith.constant 0 : index
    %321 = vector.load %arg21[%c0_325, %c0_326] : memref<64x128xf32, #tpu.memory_space<vmem>>, vector<2x128xf32>
    tpu.vector_store %arg21[%c0_325, %c0_326], %320 {strides = array<i32>} : memref<64x128xf32, #tpu.memory_space<vmem>>, vector<2x128xf32>,
    %c16_327 = arith.constant 16 : index
    %c0_328 = arith.constant 0 : index
    %322 = tpu.strided_load %arg20[%c16_327, %c0_328] {strides = array<i32: 2, 1>} : memref<32x128xf32, #tpu.memory_space<vmem>>, vector<2x128xf32>
    %c17_329 = arith.constant 17 : index
    %c0_330 = arith.constant 0 : index
    %323 = tpu.strided_load %arg20[%c17_329, %c0_330] {strides = array<i32: 2, 1>} : memref<32x128xf32, #tpu.memory_space<vmem>>, vector<2x128xf32>
    %c24_331 = arith.constant 24 : index
    %c0_332 = arith.constant 0 : index
    %324 = tpu.strided_load %arg20[%c24_331, %c0_332] {strides = array<i32: 2, 1>} : memref<32x128xf32, #tpu.memory_space<vmem>>, vector<2x128xf32>
    %c25_333 = arith.constant 25 : index
    %c0_334 = arith.constant 0 : index
    %325 = tpu.strided_load %arg20[%c25_333, %c0_334] {strides = array<i32: 2, 1>} : memref<32x128xf32, #tpu.memory_space<vmem>>, vector<2x128xf32>
    %326 = arith.maximumf %322, %323 : vector<2x128xf32>
    %327 = arith.maximumf %324, %325 : vector<2x128xf32>
    %328 = arith.maximumf %326, %327 : vector<2x128xf32>
    %c2_335 = arith.constant 2 : index
    %c0_336 = arith.constant 0 : index
    %329 = vector.load %arg21[%c2_335, %c0_336] : memref<64x128xf32, #tpu.memory_space<vmem>>, vector<2x128xf32>
    tpu.vector_store %arg21[%c2_335, %c0_336], %328 {strides = array<i32>} : memref<64x128xf32, #tpu.memory_space<vmem>>, vector<2x128xf32>,
    %c0_337 = arith.constant 0 : index
    %c0_338 = arith.constant 0 : index
    %330 = vector.load %arg21[%c0_337, %c0_338] : memref<64x128xf32, #tpu.memory_space<vmem>>, vector<4x128xf32>
    %c112_i32 = arith.constant 112 : i32
    %331 = tpu.dynamic_rotate %330 by %c112_i32 dim 1 : vector<4x128xf32>, i32 -> vector<4x128xf32>
    %332 = arith.maximumf %330, %331 : vector<4x128xf32>
    %c0_339 = arith.constant 0 : index
    %c0_340 = arith.constant 0 : index
    %333 = vector.load %arg13[%c0_339, %c0_340] : memref<128x8xf32, #tpu.memory_space<vmem>>, vector<128x8xf32>
    %cst_341 = arith.constant dense<0.000000e+00> : vector<4x8xf32>
    %334 = tpu.matmul %332, %333, %cst_341 {dimension_numbers = #tpu.dot_dimension_numbers<[1], [0], [0], [1], [0, 0, 1, 1], [], []>} : vector<4x128xf32>, vector<128x8xf32>, vector<4x8xf32> -> vector<4x8xf32>
    %cst_342 = arith.constant dense<0.000000e+00> : vector<8xf32>
    %335 = vector.multi_reduction <add>, %334, %cst_342 [0] : vector<4x8xf32> to vector<8xf32>
    %336 = vector.shape_cast %335 : vector<8xf32> to vector<1x8xf32>
    %c0_343 = arith.constant 0 : index
    %c0_344 = arith.constant 0 : index
    %337 = vector.load %arg14[%c0_343, %c0_344] : memref<1x8xf32, #tpu.memory_space<vmem>>, vector<1x8xf32>
    %338 = arith.addf %336, %337 : vector<1x8xf32>
    %cst_345 = arith.constant dense<0xFF800000> : vector<1xf32>
    %339 = vector.multi_reduction <maximumf>, %338, %cst_345 [1] : vector<1x8xf32> to vector<1xf32>
    %340 = vector.shape_cast %339 : vector<1xf32> to vector<1x1xf32>
    %341 = vector.broadcast %340 : vector<1x1xf32> to vector<1x8xf32>
    %342 = arith.subf %338, %341 : vector<1x8xf32>
    %343 = math.exp %342 : vector<1x8xf32>
    %cst_346 = arith.constant dense<0.000000e+00> : vector<1xf32>
    %344 = vector.multi_reduction <add>, %343, %cst_346 [1] : vector<1x8xf32> to vector<1xf32>
    %345 = vector.shape_cast %344 : vector<1xf32> to vector<1x1xf32>
    %346 = vector.broadcast %345 : vector<1x1xf32> to vector<1x8xf32>
    %347 = arith.divf %343, %346 : vector<1x8xf32>
    %c0_347 = arith.constant 0 : index
    %c0_348 = arith.constant 0 : index
    %c0_349 = arith.constant 0 : index
    %348 = vector.load %arg15[%c0_347, %c0_348, %c0_349] : memref<1x1x8xf32, #tpu.memory_space<vmem>>, vector<1x1x8xf32>
    %349 = vector.shape_cast %348 : vector<1x1x8xf32> to vector<1x8xf32>
    %350 = vector.shape_cast %347 : vector<1x8xf32> to vector<1x1x8xf32>
    tpu.vector_store %arg15[%c0_347, %c0_348, %c0_349], %350 {strides = array<i32>} : memref<1x1x8xf32, #tpu.memory_space<vmem>>, vector<1x1x8xf32>,
    return
  }
  func.func @transform_0(%arg0: i32) -> (i32, i32, i32) {
    %c0_i32 = arith.constant 0 : i32
    %c0_i32_0 = arith.constant 0 : i32
    %c0_i32_1 = arith.constant 0 : i32
    return %arg0, %c0_i32, %c0_i32_0 : i32, i32, i32
  }
  func.func @transform_1(%arg0: i32) -> (i32, i32, i32) {
    %c0_i32 = arith.constant 0 : i32
    %c0_i32_0 = arith.constant 0 : i32
    %c0_i32_1 = arith.constant 0 : i32
    %c0_i32_2 = arith.constant 0 : i32
    return %c0_i32, %c0_i32_0, %c0_i32_1 : i32, i32, i32
  }
  func.func @transform_2(%arg0: i32) -> (i32, i32) {
    %c0_i32 = arith.constant 0 : i32
    %c0_i32_0 = arith.constant 0 : i32
    %c0_i32_1 = arith.constant 0 : i32
    return %c0_i32, %c0_i32_0 : i32, i32
  }
  func.func @transform_3(%arg0: i32) -> (i32, i32) {
    %c0_i32 = arith.constant 0 : i32
    %c0_i32_0 = arith.constant 0 : i32
    %c0_i32_1 = arith.constant 0 : i32
    return %c0_i32, %c0_i32_0 : i32, i32
  }
  func.func @transform_4(%arg0: i32) -> (i32, i32) {
    %c0_i32 = arith.constant 0 : i32
    %c0_i32_0 = arith.constant 0 : i32
    %c0_i32_1 = arith.constant 0 : i32
    return %c0_i32, %c0_i32_0 : i32, i32
  }
  func.func @transform_5(%arg0: i32) -> (i32, i32, i32) {
    %c0_i32 = arith.constant 0 : i32
    %c0_i32_0 = arith.constant 0 : i32
    %c0_i32_1 = arith.constant 0 : i32
    %c0_i32_2 = arith.constant 0 : i32
    return %c0_i32, %c0_i32_0, %c0_i32_1 : i32, i32, i32
  }
  func.func @transform_6(%arg0: i32) -> (i32, i32) {
    %c0_i32 = arith.constant 0 : i32
    %c0_i32_0 = arith.constant 0 : i32
    %c0_i32_1 = arith.constant 0 : i32
    return %c0_i32, %c0_i32_0 : i32, i32
  }
  func.func @transform_7(%arg0: i32) -> (i32, i32) {
    %c0_i32 = arith.constant 0 : i32
    %c0_i32_0 = arith.constant 0 : i32
    %c0_i32_1 = arith.constant 0 : i32
    return %c0_i32, %c0_i32_0 : i32, i32
  }
  func.func @transform_8(%arg0: i32) -> (i32, i32) {
    %c0_i32 = arith.constant 0 : i32
    %c0_i32_0 = arith.constant 0 : i32
    %c0_i32_1 = arith.constant 0 : i32
    return %c0_i32, %c0_i32_0 : i32, i32
  }
  func.func @transform_9(%arg0: i32) -> (i32, i32, i32) {
    %c0_i32 = arith.constant 0 : i32
    %c0_i32_0 = arith.constant 0 : i32
    %c0_i32_1 = arith.constant 0 : i32
    %c0_i32_2 = arith.constant 0 : i32
    return %c0_i32, %c0_i32_0, %c0_i32_1 : i32, i32, i32
  }
  func.func @transform_10(%arg0: i32) -> (i32, i32) {
    %c0_i32 = arith.constant 0 : i32
    %c0_i32_0 = arith.constant 0 : i32
    %c0_i32_1 = arith.constant 0 : i32
    return %c0_i32, %c0_i32_0 : i32, i32
  }
  func.func @transform_11(%arg0: i32) -> (i32, i32) {
    %c0_i32 = arith.constant 0 : i32
    %c0_i32_0 = arith.constant 0 : i32
    %c0_i32_1 = arith.constant 0 : i32
    return %c0_i32, %c0_i32_0 : i32, i32
  }
  func.func @transform_12(%arg0: i32) -> (i32, i32) {
    %c0_i32 = arith.constant 0 : i32
    %c0_i32_0 = arith.constant 0 : i32
    %c0_i32_1 = arith.constant 0 : i32
    return %c0_i32, %c0_i32_0 : i32, i32
  }
  func.func @transform_13(%arg0: i32) -> (i32, i32) {
    %c0_i32 = arith.constant 0 : i32
    %c0_i32_0 = arith.constant 0 : i32
    %c0_i32_1 = arith.constant 0 : i32
    return %c0_i32, %c0_i32_0 : i32, i32
  }
  func.func @transform_14(%arg0: i32) -> (i32, i32, i32) {
    %c0_i32 = arith.constant 0 : i32
    %c0_i32_0 = arith.constant 0 : i32
    %c0_i32_1 = arith.constant 0 : i32
    return %arg0, %c0_i32, %c0_i32_0 : i32, i32, i32
  }
}

</mosaic_0001>

<bundles_post_ra>
// kernel: sfcn_forward.1
= control target key start
LH: loop header
LB: loop body
LE: loop exit
PB: predicated region body
PF: predicated region fallthrough
CT: control target
= control target key end

     0   :  { %19 = vsyncpa [#allocation9], 0  ;;  %s10289_s0 = inlined_call_operand.vmem [shape: f32[2,432,64], index: 0, kind: input, shape index: {}]   ;;  %s10290_s1 = inlined_call_operand.vmem [shape: f32[9,64,128], index: 1, kind: input, shape index: {}]   ;;  %s10291_s2 = inlined_call_operand.vmem [shape: f32[1,128], index: 2, kind: input, shape index: {}]   ;;  %s10292_s3 = inlined_call_operand.vmem [shape: f32[1,128], index: 3, kind: input, shape index: {}]   ;;  %s10293_s4 = inlined_call_operand.vmem [shape: f32[128,64], index: 4, kind: input, shape index: {}]   ;;  %s10294_s5 = inlined_call_operand.vmem [shape: f32[9,64,128], index: 5, kind: input, shape index: {}]   ;;  %s10295_s6 = inlined_call_operand.vmem [shape: f32[1,128], index: 6, kind: input, shape index: {}]   ;;  %s10296_s7 = inlined_call_operand.vmem [shape: f32[1,128], index: 7, kind: input, shape index: {}]   ;;  %s10297_s8 = inlined_call_operand.vmem [shape: f32[128,32], index: 8, kind: input, shape index: {}]   ;;  %s10298_s9 = inlined_call_operand.vmem [shape: f32[9,32,128], index: 9, kind: input, shape index: {}]   ;;  %s10299_s10 = inlined_call_operand.vmem [shape: f32[1,128], index: 10, kind: input, shape index: {}]   ;;  %s10300_s11 = inlined_call_operand.vmem [shape: f32[1,128], index: 11, kind: input, shape index: {}]   ;;  %s10301_s12 = inlined_call_operand.vmem [shape: f32[128,8], index: 12, kind: input, shape index: {}]   ;;  %s10302_s13 = inlined_call_operand.vmem [shape: f32[1,8], index: 13, kind: input, shape index: {}]   ;;  %s10303_s14 = inlined_call_operand.hbm [shape: f32[2,1,8], index: 14, kind: output, shape index: {}]  }
   0x1   :  { %21 = vsyncpa [#allocation9 + $0x1], 0  ;;  %s7618_s29 = smov 0   ;;  %s7620_s30 = smov 0  }
   0x2   :  { %s7622_s15 = smov 0   ;;  %s7624_s16 = smov 0  }
   0x3 LB: > { %10309 = sst [smem:[#allocation11_spill]] %s7526_s29  ;;  %s7639_s17 = sadd.s32 4294967295, %s7538_s16   ;;  %s7538_s16 = sphi %s7624_s16, %s10318_s16   ;;  %s7534_s15 = sphi %s7622_s15, %s10320_s15   ;;  %s7530_s30 = sphi %s7620_s30, %s10322_s30   ;;  %s7526_s29 = sphi %s7618_s29, %s10321_s29  }
   0x4   : > { %10310 = sst [smem:[#allocation12_spill]] %s7534_s15  ;;  %s6656_s18 = sadd.s32 4294967294, %s7538_s16  }
   0x5   : > { %s7643_s19 = sadd.s32 1, %s7538_s16   ;;  %s333_s20 = sadd.s32 1, %s7534_s15 }
   0x6   : > { %10311 = sst [smem:[#allocation13_spill]] %s7643_s19  ;;  %s330_s21 = ssub.s32 %s7538_s16, %s7643_s19 }
   0x7   : > { %p343_p0 = scmp.ne.s32.totalorder %s7534_s15, %s7530_s30  ;;  %p331_p1 = scmp.eq.s32.totalorder %s330_s21, 0 }
   0x8   : > { %p344_p2 = scmp.eq.s32.totalorder %s7639_s17, 1  ;;  %p349_p3 = scmp.ne.s32.totalorder %s7530_s30, %s7526_s29 }
   0x9   : > { %p350_p4 = scmp.eq.s32.totalorder %s6656_s18, 1  ;;  %p6659_p7 = scmp.ge.s32.totalorder %s7538_s16, 1 }
   0xa   : > { %s7654_s22 = scalar_select %p331_p1, %s7534_s15, %s333_s20  }
   0xb   : > { %p7656_p5 = por %p344_p2, %p343_p0  ;;  %p7660_p6 = por %p350_p4, %p349_p3 }
   0xc   : > { %10312 = sst [smem:[#allocation14_spill]] %s7654_s22  ;;  %p415_p8 = scmp.lt.s32.totalorder %s7538_s16, 3 }
   0xd   : > { %s10314_s24 = scalar_select %p7660_p6, 1, 0 }
   0xe   : > { %p416_p9 = pnand %p6659_p7, %p415_p8 }
   0xf   : > { %10315 = sst [smem:[#allocation15_spill]] %s10314_s24  ;;  %p460_p10 = scmp.lt.s32.totalorder (!%p416_p9), %s7639_s17, 1 }
  0x10   : > { %419 = sbr.rel (%p416_p9) target bundleno = 2955 (0xb8b), region = 76  ;;  %s7540_s29 = smov (!%p416_p9), 120  }
  0x11   : > { %s7542_s19 = smov (!%p416_p9), 112   ;;  %s458_s27 = sand.u32 (!%p416_p9), 1, %s7530_s30  }
  0x12   : > { %s6597_s20 = scalar_lea.hbm (!%p416_p9), %s10303_s14, %s7639_s17  ;;  %s459_s22 = scalar_lea.vmem (!%p416_p9), [#allocation8], %s458_s27 }
  0x13   : > { %s6601_s15 = sshll.u32 (!%p416_p9), %s6597_s20, 4  ;;  %s6602_s15 = int_to_ptr.hbm [resolvable:$true] %s6601_s15 }
  0x15   : > { %v6668_v0 = vld [vmem:[%s10290_s1 + $0x78] sm:$0xff]  ;;  %v6667_v3 = vld [vmem:[%s10290_s1 + $0x70] sm:$0xff]  ;;  %v6666_v6 = vld [vmem:[%s10290_s1 + $0x68] sm:$0xff]  ;;  %s461_s24 = scalar_select %p460_p10, %s7639_s17, 1  ;;  %vm465_vm0 = vcmask 523264   ;;  %vm486_vm1 = vcmask 261120  }
  0x16   : > { %v548_v1 = vld [vmem:[%s10290_s1 + $0x38] sm:$0xff]  ;;  %754 = vmatpush.msra.mxu0 %v6668_v0  ;;  %v547_v4 = vld [vmem:[%s10290_s1 + $0x30] sm:$0xff]  ;;  %v546_v7 = vld [vmem:[%s10290_s1 + $0x28] sm:$0xff]  ;;  %vm5974_vm2 = vcmask 257024   ;;  %vm5976_vm3 = vcmask 261124   ;;  %vm6552_vm4 = vcmask 60416  }
  0x17   : > { %v6770_v2 = vld [vmem:[%s10290_s1 + $0xb8] sm:$0xff]  ;;  %1053 = vmatpush.msra.mxu1 %v548_v1  ;;  %v6769_v5 = vld [vmem:[%s10290_s1 + $0xb0] sm:$0xff]  ;;  %v6768_v8 = vld [vmem:[%s10290_s1 + $0xa8] sm:$0xff]  ;;  %s7421_s18 = smul.u32 432, %s461_s24  ;;  %vm6562_vm5 = vcmask 57344   ;;  %s7496_s24 = scalar_lea.hbm %s10303_s14, 2 }
  0x18   : > { %1408 = vmatpush.msra.mxu2 %v6770_v2  ;;  %755 = vmatpush.msra.mxu0 %v6667_v3  ;;  %v6665_v9 = vld [vmem:[%s10290_s1 + $0x60] sm:$0xff]  ;;  %v6664_v12 = vld [vmem:[%s10290_s1 + $0x58] sm:$0xff]  ;;  %v6663_v15 = vld [vmem:[%s10290_s1 + $0x50] sm:$0xff] }
  0x19   : > { %1054 = vmatpush.msra.mxu1 %v547_v4  ;;  %v545_v10 = vld [vmem:[%s10290_s1 + $0x20] sm:$0xff]  ;;  %v544_v13 = vld [vmem:[%s10290_s1 + $0x18] sm:$0xff]  ;;  %v543_v16 = vld [vmem:[%s10290_s1 + $0x10] sm:$0xff]  ;;  %s7725_s21 = scalar_lea.vmem %s10289_s0, %s7421_s18 }
  0x1a   : > { %1409 = vmatpush.msra.mxu2 %v6769_v5  ;;  %756 = vmatpush.msra.mxu0 %v6666_v6  ;;  %v6767_v11 = vld [vmem:[%s10290_s1 + $0xa0] sm:$0xff]  ;;  %v6766_v14 = vld [vmem:[%s10290_s1 + $0x98] sm:$0xff]  ;;  %v6765_v17 = vld [vmem:[%s10290_s1 + $0x90] sm:$0xff] }
  0x1b   : > { %1055 = vmatpush.msra.mxu1 %v546_v7  ;;  %v6662_v18 = vld [vmem:[%s10290_s1 + $0x48] sm:$0xff]  ;;  %v6661_v21 = vld [vmem:[%s10290_s1 + $0x40] sm:$0xff]  ;;  %v6825_v27 = vld [vmem:[%s10290_s1 + $0xf8] sm:$0xff] }
  0x1c   : > { %1410 = vmatpush.msra.mxu2 %v6768_v8  ;;  %757 = vmatpush.msra.mxu0 %v6665_v9  ;;  %v542_v19 = vld [vmem:[%s10290_s1 + $0x8] sm:$0xff]  ;;  %v541_v22 = vld [vmem:[%s10290_s1] sm:$0xff]  ;;  %v6824_v31 = vld [vmem:[%s10290_s1 + $0xf0] sm:$0xff] }
  0x1d   : > { %1056 = vmatpush.msra.mxu1 %v545_v10  ;;  %v6764_v20 = vld [vmem:[%s10290_s1 + $0x88] sm:$0xff]  ;;  %v6763_v23 = vld [vmem:[%s10290_s1 + $0x80] sm:$0xff]  ;;  %v551_v32 = vld [vmem:[%s7725_s21 + $0x11] sm:$0xff] }
  0x1e   : > { %1411 = vmatpush.msra.mxu2 %v6767_v11  ;;  %758 = vmatpush.msra.mxu0 %v6664_v12  ;;  %v549_v24 = vld [vmem:[%s7725_s21 + $0x1] sm:$0xff]  ;;  %v550_v28 = vld [vmem:[%s7725_s21 + $0x9] sm:$0xff]  ;;  %v1205_v34 = vld [vmem:[%s7725_s21 + $0x12] sm:$0xff] }
  0x1f   : > { %1057 = vmatpush.msra.mxu1 %v544_v13  ;;  %v494_v25 = vld [vmem:[%s7725_s21] sm:$0xff]  ;;  %v495_v29 = vld [vmem:[%s7725_s21 + $0x8] sm:$0xff]  ;;  %v496_v33 = vld [vmem:[%s7725_s21 + $0x10] sm:$0xff] }
  0x20   : > { %1412 = vmatpush.msra.mxu2 %v6766_v14  ;;  %759 = vmatpush.msra.mxu0 %v6663_v15  ;;  %v1203_v26 = vld [vmem:[%s7725_s21 + $0x2] sm:$0xff]  ;;  %v1204_v30 = vld [vmem:[%s7725_s21 + $0xa] sm:$0xff]  ;;  %v7770_v35 = vld [vmem:[%s7725_s21 + $0x19] sm:$0xff] }
  0x21   : > { %1058 = vmatpush.msra.mxu1 %v543_v16  ;;  %v7773_v36 = vld [vmem:[%s7725_s21 + $0x18] sm:$0xff]  ;;  %v7785_v38 = vld [vmem:[%s7725_s21 + $0x21] sm:$0xff]  ;;  %v7794_v41 = vld [vmem:[%s7725_s21 + $0x29] sm:$0xff] }
  0x22   : > { %1413 = vmatpush.msra.mxu2 %v6765_v17  ;;  %760 = vmatpush.msra.mxu0 %v6662_v18  ;;  %v7776_v37 = vld [vmem:[%s7725_s21 + $0x1a] sm:$0xff]  ;;  %v1207_v40 = vld [vmem:[%s7725_s21 + $0x22] sm:$0xff]  ;;  %v1208_v43 = vld [vmem:[%s7725_s21 + $0x2a] sm:$0xff] }
  0x23   : > { %1059 = vmatpush.msra.mxu1 %v542_v19  ;;  %v498_v39 = vld [vmem:[%s7725_s21 + $0x20] sm:$0xff]  ;;  %v499_v42 = vld [vmem:[%s7725_s21 + $0x28] sm:$0xff]  ;;  %v7803_v44 = vld [vmem:[%s7725_s21 + $0x31] sm:$0xff] }
  0x24   : > { %1414 = vmatpush.msra.mxu2 %v6764_v20  ;;  %761 = vmatpush.msra.mxu0 %v6661_v21  ;;  %v500_v45 = vld [vmem:[%s7725_s21 + $0x30] sm:$0xff]  ;;  %v556_v47 = vld [vmem:[%s7725_s21 + $0x39] sm:$0xff]  ;;  %v6823_v50 = vld [vmem:[%s10290_s1 + $0xe8] sm:$0xff] }
  0x25   : > { %1060 = vmatpush.msra.mxu1 %v541_v22  ;;  %6669 = vmatmul.msk.f32.vlgmr.msra.gmra.mxu0 %vm465_vm0, %v549_v24  ;;  %v1209_v46 = vld [vmem:[%s7725_s21 + $0x32] sm:$0xff]  ;;  %v1210_v49 = vld [vmem:[%s7725_s21 + $0x3a] sm:$0xff]  ;;  %v1211_v53 = vld [vmem:[%s7725_s21 + $0x42] sm:$0xff] }
  0x26   : > { %1415 = vmatpush.msra.mxu2 %v6763_v23  ;;  %6716 = vmatmul.msk.f32.vlgmr.msra.gmra.mxu1 %vm465_vm0, %v494_v25  ;;  %v501_v48 = vld [vmem:[%s7725_s21 + $0x38] sm:$0xff]  ;;  %v557_v51 = vld [vmem:[%s7725_s21 + $0x41] sm:$0xff]  ;;  %v558_v54 = vld [vmem:[%s7725_s21 + $0x49] sm:$0xff] }
  0x27   : > { %6771 = vmatmul.msk.f32.vlgmr.msra.gmra.mxu2 %vm465_vm0, %v1203_v26  ;;  %2212 = vmatpush.msrb.mxu0 %v6825_v27  ;;  %v502_v52 = vld [vmem:[%s7725_s21 + $0x40] sm:$0xff]  ;;  %v503_v55 = vld [vmem:[%s7725_s21 + $0x48] sm:$0xff]  ;;  %v559_v57 = vld [vmem:[%s7725_s21 + $0x51] sm:$0xff] }
  0x28   : > { %v1212_v56 = vld [vmem:[%s7725_s21 + $0x4a] sm:$0xff]  ;;  %v1213_v59 = vld [vmem:[%s7725_s21 + $0x52] sm:$0xff]  ;;  %v1214_v62 = vld [vmem:[%s7725_s21 + $0x5a] sm:$0xff] }
  0x29   : > { %2213 = vmatpush.msrb.mxu0 %v6824_v31  ;;  %v504_v58 = vld [vmem:[%s7725_s21 + $0x50] sm:$0xff]  ;;  %v560_v60 = vld [vmem:[%s7725_s21 + $0x59] sm:$0xff]  ;;  %v561_v63 = vld [vmem:[%s7725_s21 + $0x61] sm:$0xff] }
  0x2a   : > { %v505_v61 = vld [vmem:[%s7725_s21 + $0x58] sm:$0xff]  ;;  %v506_v0 = vld [vmem:[%s7725_s21 + $0x60] sm:$0xff]  ;;  %v562_v2 = vld [vmem:[%s7725_s21 + $0x69] sm:$0xff] }
  0x2b   : > { %2214 = vmatpush.msrb.mxu0 %v6823_v50  ;;  %v1215_v1 = vld [vmem:[%s7725_s21 + $0x62] sm:$0xff]  ;;  %v1216_v4 = vld [vmem:[%s7725_s21 + $0x6a] sm:$0xff]  ;;  %v1217_v7 = vld [vmem:[%s7725_s21 + $0x72] sm:$0xff] }
  0x2c   : > { %v507_v3 = vld [vmem:[%s7725_s21 + $0x68] sm:$0xff]  ;;  %v563_v5 = vld [vmem:[%s7725_s21 + $0x71] sm:$0xff]  ;;  %v6822_v8 = vld [vmem:[%s10290_s1 + $0xe0] sm:$0xff] }
  0x2d   : > { %6670 = vmatmul.msk.f32.gmra.mxu0 %vm465_vm0, %v550_v28  ;;  %v508_v6 = vld [vmem:[%s7725_s21 + $0x70] sm:$0xff]  ;;  %v564_v9 = vld [vmem:[%s7725_s21 + $0x79] sm:$0xff]  ;;  %v565_v13 = vld [vmem:[%s7725_s21 + $0x81] sm:$0xff] }
  0x2e   : > { %6717 = vmatmul.msk.f32.gmra.mxu1 %vm465_vm0, %v495_v29  ;;  %2215 = vmatpush.msrb.mxu0 %v6822_v8  ;;  %v509_v10 = vld [vmem:[%s7725_s21 + $0x78] sm:$0xff]  ;;  %v510_v15 = vld [vmem:[%s7725_s21 + $0x80] sm:$0xff]  ;;  %v566_v21 = vld [vmem:[%s7725_s21 + $0x89] sm:$0xff] }
  0x2f   : > { %6772 = vmatmul.msk.f32.gmra.mxu2 %vm465_vm0, %v1204_v30  ;;  %v1218_v11 = vld [vmem:[%s7725_s21 + $0x7a] sm:$0xff]  ;;  %v1219_v16 = vld [vmem:[%s7725_s21 + $0x82] sm:$0xff]  ;;  %v1220_v24 = vld [vmem:[%s7725_s21 + $0x8a] sm:$0xff] }
  0x30   : > { %v511_v23 = vld [vmem:[%s7725_s21 + $0x88] sm:$0xff]  ;;  %v567_v29 = vld [vmem:[%s7725_s21 + $0x91] sm:$0xff] }
  0x31   : > { %v512_v31 = vld [vmem:[%s7725_s21 + $0x90] sm:$0xff] }
  0x35   : > { %6671 = vmatmul.msk.f32.gmra.mxu0 %vm465_vm0, %v551_v32  ;;  %v1221_v32 = vld [vmem:[%s7725_s21 + $0x92] sm:$0xff] }
  0x36   : > { %6718 = vmatmul.msk.f32.gmra.mxu1 %vm465_vm0, %v496_v33 }
  0x37   : > { %6773 = vmatmul.msk.f32.gmra.mxu2 %vm465_vm0, %v1205_v34 }
  0x3d   : > { %6672 = vmatmul.msk.f32.gmra.mxu0 %vm465_vm0, %v7770_v35 }
  0x3e   : > { %6719 = vmatmul.msk.f32.gmra.mxu1 %vm465_vm0, %v7773_v36 }
  0x3f   : > { %6774 = vmatmul.msk.f32.gmra.mxu2 %vm465_vm0, %v7776_v37 }
  0x45   : > { %6673 = vmatmul.msk.f32.gmra.mxu0 %vm465_vm0, %v7785_v38 }
  0x46   : > { %6720 = vmatmul.msk.f32.gmra.mxu1 %vm465_vm0, %v498_v39 }
  0x47   : > { %6775 = vmatmul.msk.f32.gmra.mxu2 %vm465_vm0, %v1207_v40 }
  0x4d   : > { %6674 = vmatmul.msk.f32.gmra.mxu0 %vm465_vm0, %v7794_v41 }
  0x4e   : > { %6721 = vmatmul.msk.f32.gmra.mxu1 %vm465_vm0, %v499_v42  ;;  %v568_v42 = vld [vmem:[%s7725_s21 + $0x99] sm:$0xff] }
  0x4f   : > { %6776 = vmatmul.msk.f32.gmra.mxu2 %vm465_vm0, %v1208_v43 }
  0x55   : > { %6675 = vmatmul.msk.f32.gmra.mxu0 %vm465_vm0, %v7803_v44 }
  0x56   : > { %6722 = vmatmul.msk.f32.gmra.mxu1 %vm465_vm0, %v500_v45  ;;  %v513_v45 = vld [vmem:[%s7725_s21 + $0x98] sm:$0xff] }
  0x57   : > { %6777 = vmatmul.msk.f32.gmra.mxu2 %vm465_vm0, %v1209_v46  ;;  %v1222_v46 = vld [vmem:[%s7725_s21 + $0x9a] sm:$0xff] }
  0x5d   : > { %6676 = vmatmul.msk.f32.gmra.mxu0 %vm465_vm0, %v556_v47 }
  0x5e   : > { %6723 = vmatmul.msk.f32.gmra.mxu1 %vm465_vm0, %v501_v48 }
  0x5f   : > { %6778 = vmatmul.msk.f32.gmra.mxu2 %vm465_vm0, %v1210_v49 }
  0x65   : > { %6677 = vmatmul.msk.f32.gmra.mxu0 %vm465_vm0, %v557_v51  ;;  %v569_v51 = vld [vmem:[%s7725_s21 + $0xa1] sm:$0xff] }
  0x66   : > { %6724 = vmatmul.msk.f32.gmra.mxu1 %vm465_vm0, %v502_v52 }
  0x67   : > { %6779 = vmatmul.msk.f32.gmra.mxu2 %vm465_vm0, %v1211_v53  ;;  %v514_v53 = vld [vmem:[%s7725_s21 + $0xa0] sm:$0xff] }
  0x6d   : > { %6678 = vmatmul.msk.f32.gmra.mxu0 %vm465_vm0, %v558_v54  ;;  %v1223_v54 = vld [vmem:[%s7725_s21 + $0xa2] sm:$0xff] }
  0x6e   : > { %6725 = vmatmul.msk.f32.gmra.mxu1 %vm465_vm0, %v503_v55  ;;  %v6821_v55 = vld [vmem:[%s10290_s1 + $0xd8] sm:$0xff] }
  0x6f   : > { %6780 = vmatmul.msk.f32.gmra.mxu2 %vm465_vm0, %v1212_v56  ;;  %2216 = vmatpush.msrb.mxu0 %v6821_v55 }
  0x75   : > { %6679 = vmatmul.msk.f32.gmra.mxu0 %vm465_vm0, %v559_v57 }
  0x76   : > { %6726 = vmatmul.msk.f32.gmra.mxu1 %vm465_vm0, %v504_v58 }
  0x77   : > { %6781 = vmatmul.msk.f32.gmra.mxu2 %vm465_vm0, %v1213_v59 }
  0x7d   : > { %6680 = vmatmul.msk.f32.gmra.mxu0 %vm465_vm0, %v560_v60  ;;  %v570_v60 = vld [vmem:[%s7725_s21 + $0xa9] sm:$0xff] }
  0x7e   : > { %6727 = vmatmul.msk.f32.gmra.mxu1 %vm465_vm0, %v505_v61 }
  0x7f   : > { %6782 = vmatmul.msk.f32.gmra.mxu2 %vm465_vm0, %v1214_v62  ;;  %v515_v62 = vld [vmem:[%s7725_s21 + $0xa8] sm:$0xff] }
  0x85   : > { %6681 = vmatmul.msk.f32.gmra.mxu0 %vm465_vm0, %v561_v63  ;;  %v1224_v63 = vld [vmem:[%s7725_s21 + $0xaa] sm:$0xff] }
  0x86   : > { %6728 = vmatmul.msk.f32.gmra.mxu1 %vm465_vm0, %v506_v0 }
  0x87   : > { %6783 = vmatmul.msk.f32.gmra.mxu2 %vm465_vm0, %v1215_v1 }
  0x8d   : > { %6682 = vmatmul.msk.f32.gmra.mxu0 %vm465_vm0, %v562_v2 }
  0x8e   : > { %6729 = vmatmul.msk.f32.gmra.mxu1 %vm465_vm0, %v507_v3 }
  0x8f   : > { %6784 = vmatmul.msk.f32.gmra.mxu2 %vm465_vm0, %v1216_v4  ;;  %v571_v4 = vld [vmem:[%s7725_s21 + $0xb1] sm:$0xff] }
  0x95   : > { %6683 = vmatmul.msk.f32.gmra.mxu0 %vm465_vm0, %v563_v5 }
  0x96   : > { %6730 = vmatmul.msk.f32.gmra.mxu1 %vm465_vm0, %v508_v6  ;;  %v516_v6 = vld [vmem:[%s7725_s21 + $0xb0] sm:$0xff] }
  0x97   : > { %6785 = vmatmul.msk.f32.gmra.mxu2 %vm465_vm0, %v1217_v7  ;;  %v1225_v7 = vld [vmem:[%s7725_s21 + $0xb2] sm:$0xff] }
  0x9d   : > { %6684 = vmatmul.msk.f32.gmra.mxu0 %vm465_vm0, %v564_v9 }
  0x9e   : > { %6731 = vmatmul.msk.f32.gmra.mxu1 %vm465_vm0, %v509_v10 }
  0x9f   : > { %6786 = vmatmul.msk.f32.gmra.mxu2 %vm465_vm0, %v1218_v11 }
  0xa2   : > { %v763_v12 = vpop.f32.mrf.mxu0 }
  0xa3   : > { %v1062_v14 = vpop.f32.mrf.mxu1 }
  0xa4   : > { %v1063_v17 = vadd.f32 %v1062_v14, %v763_v12  ;;  %v572_v12 = vld [vmem:[%s7725_s21 + $0xb9] sm:$0xff] }
  0xa5   : > { %6685 = vmatmul.msk.f32.gmra.mxu0 %vm465_vm0, %v565_v13  ;;  %v517_v14 = vld [vmem:[%s7725_s21 + $0xb8] sm:$0xff] }
  0xa6   : > { %6732 = vmatmul.msk.f32.gmra.mxu1 %vm465_vm0, %v510_v15  ;;  %v1226_v15 = vld [vmem:[%s7725_s21 + $0xba] sm:$0xff] }
  0xa7   : > { %6787 = vmatmul.msk.f32.gmra.mxu2 %vm465_vm0, %v1219_v16 }
  0xaa   : > { %v1417_v18 = vpop.f32.mrf.mxu2  ;;  %v766_v20 = vpop.f32.mrf.mxu0 }
  0xab   : > { %v1558_v19 = vadd.f32 %v1417_v18, %v1063_v17  ;;  %v1065_v22 = vpop.f32.mrf.mxu1 }
  0xac   : > { %v1066_v25 = vadd.f32 %v1065_v22, %v766_v20  ;;  %v573_v20 = vld [vmem:[%s7725_s21 + $0xc1] sm:$0xff] }
  0xad   : > { %1605 = vst [vmem:[#allocation2] sm:$0xff] %v1558_v19  ;;  %6686 = vmatmul.msk.f32.gmra.mxu0 %vm465_vm0, %v566_v21  ;;  %v518_v22 = vld [vmem:[%s7725_s21 + $0xc0] sm:$0xff] }
  0xae   : > { %6733 = vmatmul.msk.f32.gmra.mxu1 %vm465_vm0, %v511_v23  ;;  %v1227_v23 = vld [vmem:[%s7725_s21 + $0xc2] sm:$0xff] }
  0xaf   : > { %6788 = vmatmul.msk.f32.gmra.mxu2 %vm465_vm0, %v1220_v24 }
  0xb2   : > { %v1420_v26 = vpop.f32.mrf.mxu2  ;;  %v769_v28 = vpop.f32.mrf.mxu0 }
  0xb3   : > { %v1559_v27 = vadd.f32 %v1420_v26, %v1066_v25  ;;  %v1068_v30 = vpop.f32.mrf.mxu1 }
  0xb4   : > { %v1069_v33 = vadd.f32 %v1068_v30, %v769_v28  ;;  %v574_v28 = vld [vmem:[%s7725_s21 + $0xc9] sm:$0xff] }
  0xb5   : > { %1606 = vst [vmem:[#allocation2 + $0x8] sm:$0xff] %v1559_v27  ;;  %6687 = vmatmul.msk.f32.gmra.mxu0 %vm465_vm0, %v567_v29  ;;  %v519_v30 = vld [vmem:[%s7725_s21 + $0xc8] sm:$0xff] }
  0xb6   : > { %6734 = vmatmul.msk.f32.gmra.mxu1 %vm465_vm0, %v512_v31  ;;  %v1228_v31 = vld [vmem:[%s7725_s21 + $0xca] sm:$0xff] }
  0xb7   : > { %6789 = vmatmul.msk.f32.gmra.mxu2 %vm465_vm0, %v1221_v32 }
  0xba   : > { %v1423_v34 = vpop.f32.mrf.mxu2  ;;  %v772_v40 = vpop.f32.mrf.mxu0 }
  0xbb   : > { %v1560_v39 = vadd.f32 %v1423_v34, %v1069_v33  ;;  %v1071_v43 = vpop.f32.mrf.mxu1 }
  0xbc   : > { %v1072_v47 = vadd.f32 %v1071_v43, %v772_v40  ;;  %v575_v40 = vld [vmem:[%s7725_s21 + $0xd1] sm:$0xff] }
  0xbd   : > { %1607 = vst [vmem:[#allocation2 + $0x10] sm:$0xff] %v1560_v39  ;;  %6688 = vmatmul.msk.f32.gmra.mxu0 %vm465_vm0, %v568_v42  ;;  %v520_v43 = vld [vmem:[%s7725_s21 + $0xd0] sm:$0xff] }
  0xbe   : > { %6735 = vmatmul.msk.f32.gmra.mxu1 %vm465_vm0, %v513_v45  ;;  %v1229_v45 = vld [vmem:[%s7725_s21 + $0xd2] sm:$0xff] }
  0xbf   : > { %6790 = vmatmul.msk.f32.gmra.mxu2 %vm465_vm0, %v1222_v46  ;;  %v6820_v46 = vld [vmem:[%s10290_s1 + $0xd0] sm:$0xff] }
  0xc0   : > { %2217 = vmatpush.msrb.mxu0 %v6820_v46 }
  0xc2   : > { %v1426_v48 = vpop.f32.mrf.mxu2  ;;  %v775_v50 = vpop.f32.mrf.mxu0 }
  0xc3   : > { %v1561_v49 = vadd.f32 %v1426_v48, %v1072_v47  ;;  %v1074_v52 = vpop.f32.mrf.mxu1 }
  0xc4   : > { %v1075_v56 = vadd.f32 %v1074_v52, %v775_v50 }
  0xc5   : > { %1608 = vst [vmem:[#allocation2 + $0x18] sm:$0xff] %v1561_v49  ;;  %6689 = vmatmul.msk.f32.gmra.mxu0 %vm465_vm0, %v569_v51  ;;  %v576_v51 = vld [vmem:[%s7725_s21 + $0xd9] sm:$0xff] }
  0xc6   : > { %6736 = vmatmul.msk.f32.gmra.mxu1 %vm465_vm0, %v514_v53  ;;  %v521_v53 = vld [vmem:[%s7725_s21 + $0xd8] sm:$0xff] }
  0xc7   : > { %6791 = vmatmul.msk.f32.gmra.mxu2 %vm465_vm0, %v1223_v54  ;;  %v1230_v54 = vld [vmem:[%s7725_s21 + $0xda] sm:$0xff] }
  0xca   : > { %v1429_v57 = vpop.f32.mrf.mxu2  ;;  %v778_v59 = vpop.f32.mrf.mxu0 }
  0xcb   : > { %v1562_v58 = vadd.f32 %v1429_v57, %v1075_v56  ;;  %v1077_v61 = vpop.f32.mrf.mxu1 }
  0xcc   : > { %v1078_v0 = vadd.f32 %v1077_v61, %v778_v59  ;;  %v577_v59 = vld [vmem:[%s7725_s21 + $0xe1] sm:$0xff] }
  0xcd   : > { %1609 = vst [vmem:[#allocation2 + $0x20] sm:$0xff] %v1562_v58  ;;  %6690 = vmatmul.msk.f32.gmra.mxu0 %vm465_vm0, %v570_v60  ;;  %v522_v61 = vld [vmem:[%s7725_s21 + $0xe0] sm:$0xff] }
  0xce   : > { %6737 = vmatmul.msk.f32.gmra.mxu1 %vm465_vm0, %v515_v62  ;;  %v1231_v62 = vld [vmem:[%s7725_s21 + $0xe2] sm:$0xff] }
  0xcf   : > { %6792 = vmatmul.msk.f32.gmra.mxu2 %vm465_vm0, %v1224_v63 }
  0xd2   : > { %v1432_v1 = vpop.f32.mrf.mxu2  ;;  %v781_v3 = vpop.f32.mrf.mxu0 }
  0xd3   : > { %v1563_v2 = vadd.f32 %v1432_v1, %v1078_v0  ;;  %v1080_v5 = vpop.f32.mrf.mxu1 }
  0xd4   : > { %v1081_v8 = vadd.f32 %v1080_v5, %v781_v3  ;;  %v578_v3 = vld [vmem:[%s7725_s21 + $0xe9] sm:$0xff] }
  0xd5   : > { %1610 = vst [vmem:[#allocation2 + $0x28] sm:$0xff] %v1563_v2  ;;  %6691 = vmatmul.msk.f32.gmra.mxu0 %vm465_vm0, %v571_v4  ;;  %v523_v5 = vld [vmem:[%s7725_s21 + $0xe8] sm:$0xff] }
  0xd6   : > { %6738 = vmatmul.msk.f32.gmra.mxu1 %vm465_vm0, %v516_v6  ;;  %v1232_v6 = vld [vmem:[%s7725_s21 + $0xea] sm:$0xff] }
  0xd7   : > { %6793 = vmatmul.msk.f32.gmra.mxu2 %vm465_vm0, %v1225_v7 }
  0xda   : > { %v1435_v9 = vpop.f32.mrf.mxu2  ;;  %v784_v11 = vpop.f32.mrf.mxu0 }
  0xdb   : > { %v1564_v10 = vadd.f32 %v1435_v9, %v1081_v8  ;;  %v1083_v13 = vpop.f32.mrf.mxu1 }
  0xdc   : > { %v1084_v16 = vadd.f32 %v1083_v13, %v784_v11  ;;  %v579_v11 = vld [vmem:[%s7725_s21 + $0xf1] sm:$0xff] }
  0xdd   : > { %1611 = vst [vmem:[#allocation2 + $0x30] sm:$0xff] %v1564_v10  ;;  %6692 = vmatmul.msk.f32.gmra.mxu0 %vm465_vm0, %v572_v12  ;;  %v524_v13 = vld [vmem:[%s7725_s21 + $0xf0] sm:$0xff] }
  0xde   : > { %6739 = vmatmul.msk.f32.gmra.mxu1 %vm465_vm0, %v517_v14  ;;  %v1233_v14 = vld [vmem:[%s7725_s21 + $0xf2] sm:$0xff] }
  0xdf   : > { %6794 = vmatmul.msk.f32.gmra.mxu2 %vm465_vm0, %v1226_v15 }
  0xe2   : > { %v1438_v17 = vpop.f32.mrf.mxu2  ;;  %v787_v19 = vpop.f32.mrf.mxu0 }
  0xe3   : > { %v1565_v18 = vadd.f32 %v1438_v17, %v1084_v16  ;;  %v1086_v21 = vpop.f32.mrf.mxu1 }
  0xe4   : > { %v1087_v24 = vadd.f32 %v1086_v21, %v787_v19  ;;  %v580_v19 = vld [vmem:[%s7725_s21 + $0xf9] sm:$0xff] }
  0xe5   : > { %1612 = vst [vmem:[#allocation2 + $0x38] sm:$0xff] %v1565_v18  ;;  %6693 = vmatmul.msk.f32.gmra.mxu0 %vm465_vm0, %v573_v20  ;;  %v525_v21 = vld [vmem:[%s7725_s21 + $0xf8] sm:$0xff] }
  0xe6   : > { %6740 = vmatmul.msk.f32.gmra.mxu1 %vm465_vm0, %v518_v22  ;;  %v1234_v22 = vld [vmem:[%s7725_s21 + $0xfa] sm:$0xff] }
  0xe7   : > { %6795 = vmatmul.msk.f32.gmra.mxu2 %vm465_vm0, %v1227_v23  ;;  %v6819_v23 = vld [vmem:[%s10290_s1 + $0xc8] sm:$0xff] }
  0xe8   : > { %2218 = vmatpush.msrb.mxu0 %v6819_v23 }
  0xea   : > { %v1441_v25 = vpop.f32.mrf.mxu2  ;;  %v790_v27 = vpop.f32.mrf.mxu0 }
  0xeb   : > { %v1566_v26 = vadd.f32 %v1441_v25, %v1087_v24  ;;  %v1089_v29 = vpop.f32.mrf.mxu1 }
  0xec   : > { %v1090_v32 = vadd.f32 %v1089_v29, %v790_v27 }
  0xed   : > { %1613 = vst [vmem:[#allocation2 + $0x40] sm:$0xff] %v1566_v26  ;;  %6694 = vmatmul.msk.f32.gmra.mxu0 %vm465_vm0, %v574_v28  ;;  %v581_v28 = vld [vmem:[%s7725_s21 + $0x101] sm:$0xff] }
  0xee   : > { %6741 = vmatmul.msk.f32.gmra.mxu1 %vm465_vm0, %v519_v30  ;;  %v526_v30 = vld [vmem:[%s7725_s21 + $0x100] sm:$0xff] }
  0xef   : > { %6796 = vmatmul.msk.f32.gmra.mxu2 %vm465_vm0, %v1228_v31  ;;  %v1235_v31 = vld [vmem:[%s7725_s21 + $0x102] sm:$0xff] }
  0xf2   : > { %v1444_v33 = vpop.f32.mrf.mxu2  ;;  %v793_v39 = vpop.f32.mrf.mxu0 }
  0xf3   : > { %v1567_v34 = vadd.f32 %v1444_v33, %v1090_v32  ;;  %v1092_v42 = vpop.f32.mrf.mxu1 }
  0xf4   : > { %v1093_v47 = vadd.f32 %v1092_v42, %v793_v39 }
  0xf5   : > { %1614 = vst [vmem:[#allocation2 + $0x48] sm:$0xff] %v1567_v34  ;;  %6695 = vmatmul.msk.f32.gmra.mxu0 %vm465_vm0, %v575_v40  ;;  %v582_v40 = vld [vmem:[%s7725_s21 + $0x109] sm:$0xff] }
  0xf6   : > { %6742 = vmatmul.msk.f32.gmra.mxu1 %vm465_vm0, %v520_v43  ;;  %v527_v43 = vld [vmem:[%s7725_s21 + $0x108] sm:$0xff] }
  0xf7   : > { %6797 = vmatmul.msk.f32.gmra.mxu2 %vm465_vm0, %v1229_v45  ;;  %v1236_v45 = vld [vmem:[%s7725_s21 + $0x10a] sm:$0xff] }
  0xfa   : > { %v1447_v48 = vpop.f32.mrf.mxu2  ;;  %v796_v50 = vpop.f32.mrf.mxu0 }
  0xfb   : > { %v1568_v49 = vadd.f32 %v1447_v48, %v1093_v47  ;;  %v1095_v52 = vpop.f32.mrf.mxu1 }
  0xfc   : > { %v1096_v55 = vadd.f32 %v1095_v52, %v796_v50  ;;  %v583_v50 = vld [vmem:[%s7725_s21 + $0x111] sm:$0xff] }
  0xfd   : > { %1615 = vst [vmem:[#allocation2 + $0x50] sm:$0xff] %v1568_v49  ;;  %6696 = vmatmul.msk.f32.gmra.mxu0 %vm465_vm0, %v576_v51  ;;  %v528_v52 = vld [vmem:[%s7725_s21 + $0x110] sm:$0xff] }
  0xfe   : > { %6743 = vmatmul.msk.f32.gmra.mxu1 %vm465_vm0, %v521_v53  ;;  %v1237_v53 = vld [vmem:[%s7725_s21 + $0x112] sm:$0xff] }
  0xff   : > { %6798 = vmatmul.msk.f32.gmra.mxu2 %vm465_vm0, %v1230_v54 }
 0x102   : > { %v1450_v56 = vpop.f32.mrf.mxu2  ;;  %v799_v58 = vpop.f32.mrf.mxu0 }
 0x103   : > { %v1569_v57 = vadd.f32 %v1450_v56, %v1096_v55  ;;  %v1098_v60 = vpop.f32.mrf.mxu1 }
 0x104   : > { %v1099_v63 = vadd.f32 %v1098_v60, %v799_v58  ;;  %v584_v58 = vld [vmem:[%s7725_s21 + $0x119] sm:$0xff] }
 0x105   : > { %1616 = vst [vmem:[#allocation2 + $0x58] sm:$0xff] %v1569_v57  ;;  %6697 = vmatmul.msk.f32.gmra.mxu0 %vm465_vm0, %v577_v59  ;;  %v529_v60 = vld [vmem:[%s7725_s21 + $0x118] sm:$0xff] }
 0x106   : > { %6744 = vmatmul.msk.f32.gmra.mxu1 %vm465_vm0, %v522_v61  ;;  %v1238_v61 = vld [vmem:[%s7725_s21 + $0x11a] sm:$0xff] }
 0x107   : > { %6799 = vmatmul.msk.f32.gmra.mxu2 %vm465_vm0, %v1231_v62 }
 0x10a   : > { %v1453_v0 = vpop.f32.mrf.mxu2  ;;  %v802_v2 = vpop.f32.mrf.mxu0 }
 0x10b   : > { %v1570_v1 = vadd.f32 %v1453_v0, %v1099_v63  ;;  %v1101_v4 = vpop.f32.mrf.mxu1 }
 0x10c   : > { %v1102_v7 = vadd.f32 %v1101_v4, %v802_v2  ;;  %v585_v2 = vld [vmem:[%s7725_s21 + $0x121] sm:$0xff] }
 0x10d   : > { %1617 = vst [vmem:[#allocation2 + $0x60] sm:$0xff] %v1570_v1  ;;  %6698 = vmatmul.msk.f32.gmra.mxu0 %vm465_vm0, %v578_v3  ;;  %v530_v4 = vld [vmem:[%s7725_s21 + $0x120] sm:$0xff] }
 0x10e   : > { %6745 = vmatmul.msk.f32.gmra.mxu1 %vm465_vm0, %v523_v5  ;;  %v1239_v5 = vld [vmem:[%s7725_s21 + $0x122] sm:$0xff] }
 0x10f   : > { %6800 = vmatmul.msk.f32.gmra.mxu2 %vm465_vm0, %v1232_v6 }
 0x112   : > { %v1456_v8 = vpop.f32.mrf.mxu2  ;;  %v805_v10 = vpop.f32.mrf.mxu0 }
 0x113   : > { %v1571_v9 = vadd.f32 %v1456_v8, %v1102_v7  ;;  %v1104_v12 = vpop.f32.mrf.mxu1 }
 0x114   : > { %v1105_v15 = vadd.f32 %v1104_v12, %v805_v10  ;;  %v586_v10 = vld [vmem:[%s7725_s21 + $0x129] sm:$0xff] }
 0x115   : > { %1618 = vst [vmem:[#allocation2 + $0x68] sm:$0xff] %v1571_v9  ;;  %6699 = vmatmul.msk.f32.gmra.mxu0 %vm465_vm0, %v579_v11  ;;  %v531_v12 = vld [vmem:[%s7725_s21 + $0x128] sm:$0xff] }
 0x116   : > { %6746 = vmatmul.msk.f32.gmra.mxu1 %vm465_vm0, %v524_v13  ;;  %v1240_v13 = vld [vmem:[%s7725_s21 + $0x12a] sm:$0xff] }
 0x117   : > { %6801 = vmatmul.msk.f32.gmra.mxu2 %vm465_vm0, %v1233_v14  ;;  %v6818_v14 = vld [vmem:[%s10290_s1 + $0xc0] sm:$0xff] }
 0x118   : > { %2219 = vmatpush.msrb.mxu0 %v6818_v14 }
 0x11a   : > { %v1459_v16 = vpop.f32.mrf.mxu2  ;;  %v808_v18 = vpop.f32.mrf.mxu0 }
 0x11b   : > { %v1572_v17 = vadd.f32 %v1459_v16, %v1105_v15  ;;  %v1107_v20 = vpop.f32.mrf.mxu1 }
 0x11c   : > { %v1108_v24 = vadd.f32 %v1107_v20, %v808_v18 }
 0x11d   : > { %1619 = vst [vmem:[#allocation2 + $0x70] sm:$0xff] %v1572_v17  ;;  %6700 = vmatmul.msk.f32.gmra.mxu0 %vm465_vm0, %v580_v19  ;;  %v587_v19 = vld [vmem:[%s7725_s21 + $0x131] sm:$0xff] }
 0x11e   : > { %6747 = vmatmul.msk.f32.gmra.mxu1 %vm465_vm0, %v525_v21  ;;  %v532_v21 = vld [vmem:[%s7725_s21 + $0x130] sm:$0xff] }
 0x11f   : > { %6802 = vmatmul.msk.f32.gmra.mxu2 %vm465_vm0, %v1234_v22  ;;  %v1241_v22 = vld [vmem:[%s7725_s21 + $0x132] sm:$0xff] }
 0x122   : > { %v1462_v25 = vpop.f32.mrf.mxu2  ;;  %v811_v27 = vpop.f32.mrf.mxu0 }
 0x123   : > { %v1573_v26 = vadd.f32 %v1462_v25, %v1108_v24  ;;  %v1110_v29 = vpop.f32.mrf.mxu1 }
 0x124   : > { %v1111_v32 = vadd.f32 %v1110_v29, %v811_v27  ;;  %v588_v27 = vld [vmem:[%s7725_s21 + $0x139] sm:$0xff] }
 0x125   : > { %1620 = vst [vmem:[#allocation2 + $0x78] sm:$0xff] %v1573_v26  ;;  %6701 = vmatmul.msk.f32.gmra.mxu0 %vm465_vm0, %v581_v28  ;;  %v533_v29 = vld [vmem:[%s7725_s21 + $0x138] sm:$0xff] }
 0x126   : > { %6748 = vmatmul.msk.f32.gmra.mxu1 %vm465_vm0, %v526_v30  ;;  %v1242_v30 = vld [vmem:[%s7725_s21 + $0x13a] sm:$0xff] }
 0x127   : > { %6803 = vmatmul.msk.f32.gmra.mxu2 %vm465_vm0, %v1235_v31 }
 0x12a   : > { %v1465_v33 = vpop.f32.mrf.mxu2  ;;  %v814_v39 = vpop.f32.mrf.mxu0 }
 0x12b   : > { %v1574_v34 = vadd.f32 %v1465_v33, %v1111_v32  ;;  %v1113_v42 = vpop.f32.mrf.mxu1 }
 0x12c   : > { %v1114_v46 = vadd.f32 %v1113_v42, %v814_v39  ;;  %v589_v39 = vld [vmem:[%s7725_s21 + $0x141] sm:$0xff] }
 0x12d   : > { %1621 = vst [vmem:[#allocation2 + $0x80] sm:$0xff] %v1574_v34  ;;  %6702 = vmatmul.msk.f32.gmra.mxu0 %vm465_vm0, %v582_v40  ;;  %v534_v42 = vld [vmem:[%s7725_s21 + $0x140] sm:$0xff] }
 0x12e   : > { %6749 = vmatmul.msk.f32.gmra.mxu1 %vm465_vm0, %v527_v43  ;;  %v1243_v43 = vld [vmem:[%s7725_s21 + $0x142] sm:$0xff] }
 0x12f   : > { %6804 = vmatmul.msk.f32.gmra.mxu2 %vm465_vm0, %v1236_v45  ;;  %v6833_v45 = vld [vmem:[%s10290_s1 + $0x138] sm:$0xff] }
 0x130   : > { %1913 = vmatpush.msra.mxu3 %v6833_v45 }
 0x132   : > { %v1468_v47 = vpop.f32.mrf.mxu2  ;;  %v817_v49 = vpop.f32.mrf.mxu0 }
 0x133   : > { %v1575_v48 = vadd.f32 %v1468_v47, %v1114_v46  ;;  %v1116_v51 = vpop.f32.mrf.mxu1  ;;  %v6832_v47 = vld [vmem:[%s10290_s1 + $0x130] sm:$0xff] }
 0x134   : > { %v1117_v54 = vadd.f32 %v1116_v51, %v817_v49  ;;  %1914 = vmatpush.msra.mxu3 %v6832_v47  ;;  %v590_v51 = vld [vmem:[%s7725_s21 + $0x149] sm:$0xff]  ;;  %v595_v47 = vld [vmem:[%s7725_s21 + $0x171] sm:$0xff] }
 0x135   : > { %1622 = vst [vmem:[#allocation2 + $0x88] sm:$0xff] %v1575_v48  ;;  %6703 = vmatmul.msk.f32.gmra.mxu0 %vm465_vm0, %v583_v50 }
 0x136   : > { %6750 = vmatmul.msk.f32.gmra.mxu1 %vm465_vm0, %v528_v52  ;;  %v6831_v52 = vld [vmem:[%s10290_s1 + $0x128] sm:$0xff] }
 0x137   : > { %6805 = vmatmul.msk.f32.gmra.mxu2 %vm465_vm0, %v1237_v53  ;;  %1915 = vmatpush.msra.mxu3 %v6831_v52 }
 0x13a   : > { %v1471_v55 = vpop.f32.mrf.mxu2  ;;  %v820_v57 = vpop.f32.mrf.mxu0 }
 0x13b   : > { %v1576_v56 = vadd.f32 %v1471_v55, %v1117_v54  ;;  %v1119_v59 = vpop.f32.mrf.mxu1  ;;  %v535_v54 = vld [vmem:[%s7725_s21 + $0x148] sm:$0xff] }
 0x13c   : > { %v1120_v62 = vadd.f32 %v1119_v59, %v820_v57  ;;  %v1244_v55 = vld [vmem:[%s7725_s21 + $0x14a] sm:$0xff]  ;;  %v6829_v57 = vld [vmem:[%s10290_s1 + $0x118] sm:$0xff] }
 0x13d   : > { %1623 = vst [vmem:[#allocation2 + $0x90] sm:$0xff] %v1576_v56  ;;  %6704 = vmatmul.msk.f32.gmra.mxu0 %vm465_vm0, %v584_v58  ;;  %v6830_v56 = vld [vmem:[%s10290_s1 + $0x120] sm:$0xff]  ;;  %v6828_v59 = vld [vmem:[%s10290_s1 + $0x110] sm:$0xff] }
 0x13e   : > { %6751 = vmatmul.msk.f32.gmra.mxu1 %vm465_vm0, %v529_v60  ;;  %1916 = vmatpush.msra.mxu3 %v6830_v56  ;;  %v6935_v60 = vld [vmem:[%s10290_s1 + $0x178] sm:$0xff]  ;;  %v1713_v56 = vld [vmem:[%s7725_s21 + $0x41] sm:$0xff] }
 0x13f   : > { %6806 = vmatmul.msk.f32.gmra.mxu2 %vm465_vm0, %v1238_v61  ;;  %2567 = vmatpush.msrb.mxu1 %v6935_v60 }
 0x140   : > { %1917 = vmatpush.msra.mxu3 %v6829_v57 }
 0x142   : > { %v1474_v63 = vpop.f32.mrf.mxu2  ;;  %v823_v1 = vpop.f32.mrf.mxu0  ;;  %1918 = vmatpush.msra.mxu3 %v6828_v59 }
 0x143   : > { %v1577_v0 = vadd.f32 %v1474_v63, %v1120_v62  ;;  %v1122_v3 = vpop.f32.mrf.mxu1 }
 0x144   : > { %v1123_v6 = vadd.f32 %v1122_v3, %v823_v1  ;;  %v6827_v1 = vld [vmem:[%s10290_s1 + $0x108] sm:$0xff] }
 0x145   : > { %1624 = vst [vmem:[#allocation2 + $0x98] sm:$0xff] %v1577_v0  ;;  %6705 = vmatmul.msk.f32.gmra.mxu0 %vm465_vm0, %v585_v2  ;;  %v591_v0 = vld [vmem:[%s7725_s21 + $0x151] sm:$0xff]  ;;  %1919 = vmatpush.msra.mxu3 %v6827_v1 }
 0x146   : > { %6752 = vmatmul.msk.f32.gmra.mxu1 %vm465_vm0, %v530_v4  ;;  %v6934_v2 = vld [vmem:[%s10290_s1 + $0x170] sm:$0xff] }
 0x147   : > { %6807 = vmatmul.msk.f32.gmra.mxu2 %vm465_vm0, %v1239_v5  ;;  %v536_v4 = vld [vmem:[%s7725_s21 + $0x150] sm:$0xff]  ;;  %2568 = vmatpush.msrb.mxu1 %v6934_v2 }
 0x148   : > { %v1245_v5 = vld [vmem:[%s7725_s21 + $0x152] sm:$0xff] }
 0x14a   : > { %v1477_v7 = vpop.f32.mrf.mxu2  ;;  %v826_v9 = vpop.f32.mrf.mxu0 }
 0x14b   : > { %v1578_v8 = vadd.f32 %v1477_v7, %v1123_v6  ;;  %v1125_v11 = vpop.f32.mrf.mxu1  ;;  %v6826_v6 = vld [vmem:[%s10290_s1 + $0x100] sm:$0xff]  ;;  %v6933_v7 = vld [vmem:[%s10290_s1 + $0x168] sm:$0xff] }
 0x14c   : > { %v1126_v15 = vadd.f32 %v1125_v11, %v826_v9  ;;  %1920 = vmatpush.msra.mxu3 %v6826_v6  ;;  %v6990_v9 = vld [vmem:[%s10290_s1 + $0x1b8] sm:$0xff]  ;;  %2569 = vmatpush.msrb.mxu1 %v6933_v7  ;;  %v2364_v7 = vld [vmem:[%s7725_s21 + $0x2a] sm:$0xff] }
 0x14d   : > { %1625 = vst [vmem:[#allocation2 + $0xa0] sm:$0xff] %v1578_v8  ;;  %6706 = vmatmul.msk.f32.gmra.mxu0 %vm465_vm0, %v586_v10  ;;  %v6998_v8 = vld [vmem:[%s10290_s1 + $0x1f8] sm:$0xff]  ;;  %v6932_v10 = vld [vmem:[%s10290_s1 + $0x160] sm:$0xff]  ;;  %6834 = vmatmul.msk.f32.vlgmr.msra.gmra.mxu3 %vm465_vm0, %v7770_v35  ;;  %v6929_v35 = vld [vmem:[%s10290_s1 + $0x148] sm:$0xff] }
 0x14e   : > { %6753 = vmatmul.msk.f32.gmra.mxu1 %vm465_vm0, %v531_v12  ;;  %3166 = vmatpush.msrb.mxu2 %v6998_v8  ;;  %v6931_v12 = vld [vmem:[%s10290_s1 + $0x158] sm:$0xff]  ;;  %v7099_v8 = vld [vmem:[%s10290_s1 + $0x230] sm:$0xff] }
 0x14f   : > { %6808 = vmatmul.msk.f32.gmra.mxu2 %vm465_vm0, %v1240_v13  ;;  %3465 = vmatpush.msrb.mxu3 %v6990_v9  ;;  %v1715_v9 = vld [vmem:[%s7725_s21 + $0x51] sm:$0xff] }
 0x150   : > { %2570 = vmatpush.msrb.mxu1 %v6932_v10 }
 0x152   : > { %v1480_v16 = vpop.f32.mrf.mxu2  ;;  %v829_v18 = vpop.f32.mrf.mxu0  ;;  %2571 = vmatpush.msrb.mxu1 %v6931_v12 }
 0x153   : > { %v1579_v17 = vadd.f32 %v1480_v16, %v1126_v15  ;;  %v1128_v20 = vpop.f32.mrf.mxu1  ;;  %v592_v16 = vld [vmem:[%s7725_s21 + $0x159] sm:$0xff] }
 0x154   : > { %v1129_v23 = vadd.f32 %v1128_v20, %v829_v18  ;;  %v1246_v20 = vld [vmem:[%s7725_s21 + $0x15a] sm:$0xff] }
 0x155   : > { %1626 = vst [vmem:[#allocation2 + $0xa8] sm:$0xff] %v1579_v17  ;;  %6707 = vmatmul.msk.f32.gmra.mxu0 %vm465_vm0, %v587_v19  ;;  %v6930_v17 = vld [vmem:[%s10290_s1 + $0x150] sm:$0xff]  ;;  %v537_v19 = vld [vmem:[%s7725_s21 + $0x158] sm:$0xff]  ;;  %6835 = vmatmul.msk.f32.gmra.mxu3 %vm465_vm0, %v7785_v38 }
 0x156   : > { %6754 = vmatmul.msk.f32.gmra.mxu1 %vm465_vm0, %v532_v21  ;;  %v7100_v21 = vld [vmem:[%s10290_s1 + $0x238] sm:$0xff] }
 0x157   : > { %6809 = vmatmul.msk.f32.gmra.mxu2 %vm465_vm0, %v1241_v22  ;;  %2572 = vmatpush.msrb.mxu1 %v6930_v17  ;;  %v6928_v22 = vld [vmem:[%s10290_s1 + $0x140] sm:$0xff] }
 0x158   : > { %3820 = vmatpush.msra.mxu0 %v7100_v21  ;;  %v1716_v17 = vld [vmem:[%s7725_s21 + $0x59] sm:$0xff] }
 0x159   : > { %2573 = vmatpush.msrb.mxu1 %v6929_v35  ;;  %v1656_v21 = vld [vmem:[%s7725_s21 + $0x38] sm:$0xff] }
 0x15a   : > { %v1483_v24 = vpop.f32.mrf.mxu2  ;;  %v832_v26 = vpop.f32.mrf.mxu0  ;;  %3821 = vmatpush.msra.mxu0 %v7099_v8 }
 0x15b   : > { %v1580_v25 = vadd.f32 %v1483_v24, %v1129_v23  ;;  %v1131_v28 = vpop.f32.mrf.mxu1  ;;  %2574 = vmatpush.msrb.mxu1 %v6928_v22 }
 0x15c   : > { %v1132_v31 = vadd.f32 %v1131_v28, %v832_v26 }
 0x15d   : > { %1627 = vst [vmem:[#allocation2 + $0xb0] sm:$0xff] %v1580_v25  ;;  %6708 = vmatmul.msk.f32.gmra.mxu0 %vm465_vm0, %v588_v27  ;;  %v593_v27 = vld [vmem:[%s7725_s21 + $0x161] sm:$0xff]  ;;  %6836 = vmatmul.msk.f32.gmra.mxu3 %vm465_vm0, %v7794_v41 }
 0x15e   : > { %6755 = vmatmul.msk.f32.gmra.mxu1 %vm465_vm0, %v533_v29  ;;  %v538_v29 = vld [vmem:[%s7725_s21 + $0x160] sm:$0xff] }
 0x15f   : > { %6810 = vmatmul.msk.f32.gmra.mxu2 %vm465_vm0, %v1242_v30  ;;  %v1247_v30 = vld [vmem:[%s7725_s21 + $0x162] sm:$0xff] }
 0x162   : > { %v1486_v32 = vpop.f32.mrf.mxu2  ;;  %v835_v34 = vpop.f32.mrf.mxu0 }
 0x163   : > { %v1581_v33 = vadd.f32 %v1486_v32, %v1132_v31  ;;  %v1134_v40 = vpop.f32.mrf.mxu1 }
 0x164   : > { %v1135_v46 = vadd.f32 %v1134_v40, %v835_v34  ;;  %v594_v34 = vld [vmem:[%s7725_s21 + $0x169] sm:$0xff] }
 0x165   : > { %1628 = vst [vmem:[#allocation2 + $0xb8] sm:$0xff] %v1581_v33  ;;  %6709 = vmatmul.msk.f32.gmra.mxu0 %vm465_vm0, %v589_v39  ;;  %v539_v40 = vld [vmem:[%s7725_s21 + $0x168] sm:$0xff]  ;;  %6837 = vmatmul.msk.f32.gmra.mxu3 %vm465_vm0, %v7803_v44 }
 0x166   : > { %6756 = vmatmul.msk.f32.gmra.mxu1 %vm465_vm0, %v534_v42  ;;  %v1248_v42 = vld [vmem:[%s7725_s21 + $0x16a] sm:$0xff] }
 0x167   : > { %6811 = vmatmul.msk.f32.gmra.mxu2 %vm465_vm0, %v1243_v43 }
 0x16a   : > { %v1489_v48 = vpop.f32.mrf.mxu2  ;;  %v838_v50 = vpop.f32.mrf.mxu0 }
 0x16b   : > { %v1582_v49 = vadd.f32 %v1489_v48, %v1135_v46  ;;  %v1137_v53 = vpop.f32.mrf.mxu1 }
 0x16c   : > { %v1138_v58 = vadd.f32 %v1137_v53, %v838_v50  ;;  %v1249_v50 = vld [vmem:[%s7725_s21 + $0x172] sm:$0xff] }
 0x16d   : > { %1629 = vst [vmem:[#allocation2 + $0xc0] sm:$0xff] %v1582_v49  ;;  %6710 = vmatmul.msk.f32.gmra.mxu0 %vm465_vm0, %v590_v51  ;;  %v540_v49 = vld [vmem:[%s7725_s21 + $0x170] sm:$0xff]  ;;  %v1712_v51 = vld [vmem:[%s7725_s21 + $0x39] sm:$0xff] }
 0x16e   : > { %6757 = vmatmul.msk.f32.gmra.mxu1 %vm465_vm0, %v535_v54  ;;  %6838 = vmatmul.msk.f32.gmra.mxu3 %vm465_vm0, %v1712_v51  ;;  %v2369_v51 = vld [vmem:[%s7725_s21 + $0x52] sm:$0xff] }
 0x16f   : > { %6812 = vmatmul.msk.f32.gmra.mxu2 %vm465_vm0, %v1244_v55 }
 0x172   : > { %v1492_v61 = vpop.f32.mrf.mxu2  ;;  %v841_v63 = vpop.f32.mrf.mxu0 }
 0x173   : > { %v1583_v62 = vadd.f32 %v1492_v61, %v1138_v58  ;;  %v1140_v3 = vpop.f32.mrf.mxu1  ;;  %v1653_v61 = vld [vmem:[%s7725_s21 + $0x20] sm:$0xff] }
 0x174   : > { %v1141_v11 = vadd.f32 %v1140_v3, %v841_v63  ;;  %v2363_v63 = vld [vmem:[%s7725_s21 + $0x22] sm:$0xff] }
 0x175   : > { %1630 = vst [vmem:[#allocation2 + $0xc8] sm:$0xff] %v1583_v62  ;;  %6711 = vmatmul.msk.f32.gmra.mxu0 %vm465_vm0, %v591_v0  ;;  %v6997_v0 = vld [vmem:[%s10290_s1 + $0x1f0] sm:$0xff] }
 0x176   : > { %6758 = vmatmul.msk.f32.gmra.mxu1 %vm465_vm0, %v536_v4  ;;  %6839 = vmatmul.msk.f32.gmra.mxu3 %vm465_vm0, %v1713_v56 }
 0x177   : > { %6813 = vmatmul.msk.f32.gmra.mxu2 %vm465_vm0, %v1245_v5  ;;  %v1654_v5 = vld [vmem:[%s7725_s21 + $0x28] sm:$0xff] }
 0x178   : > { %3167 = vmatpush.msrb.mxu2 %v6997_v0 }
 0x17a   : > { %v1495_v13 = vpop.f32.mrf.mxu2  ;;  %v844_v15 = vpop.f32.mrf.mxu0 }
 0x17b   : > { %v1584_v14 = vadd.f32 %v1495_v13, %v1141_v11  ;;  %v1143_v18 = vpop.f32.mrf.mxu1 }
 0x17c   : > { %v1144_v23 = vadd.f32 %v1143_v18, %v844_v15 }
 0x17d   : > { %1631 = vst [vmem:[#allocation2 + $0xd0] sm:$0xff] %v1584_v14  ;;  %6712 = vmatmul.msk.f32.gmra.mxu0 %vm465_vm0, %v592_v16  ;;  %v1655_v14 = vld [vmem:[%s7725_s21 + $0x30] sm:$0xff] }
 0x17e   : > { %6759 = vmatmul.msk.f32.gmra.mxu1 %vm465_vm0, %v537_v19  ;;  %v2365_v16 = vld [vmem:[%s7725_s21 + $0x32] sm:$0xff] }
 0x17f   : > { %6814 = vmatmul.msk.f32.gmra.mxu2 %vm465_vm0, %v1246_v20 }
 0x182   : > { %v1498_v24 = vpop.f32.mrf.mxu2  ;;  %v847_v26 = vpop.f32.mrf.mxu0 }
 0x183   : > { %v1585_v25 = vadd.f32 %v1498_v24, %v1144_v23  ;;  %v1146_v28 = vpop.f32.mrf.mxu1  ;;  %v2366_v23 = vld [vmem:[%s7725_s21 + $0x3a] sm:$0xff] }
 0x184   : > { %v1147_v38 = vadd.f32 %v1146_v28, %v847_v26  ;;  %v1717_v24 = vld [vmem:[%s7725_s21 + $0x61] sm:$0xff] }
 0x185   : > { %1632 = vst [vmem:[#allocation2 + $0xd8] sm:$0xff] %v1585_v25  ;;  %6713 = vmatmul.msk.f32.gmra.mxu0 %vm465_vm0, %v593_v27 }
 0x186   : > { %6760 = vmatmul.msk.f32.gmra.mxu1 %vm465_vm0, %v538_v29  ;;  %v1657_v29 = vld [vmem:[%s7725_s21 + $0x40] sm:$0xff] }
 0x187   : > { %6815 = vmatmul.msk.f32.gmra.mxu2 %vm465_vm0, %v1247_v30 }
 0x18a   : > { %v1501_v31 = vpop.f32.mrf.mxu2  ;;  %v850_v33 = vpop.f32.mrf.mxu0 }
 0x18b   : > { %v1586_v32 = vadd.f32 %v1501_v31, %v1147_v38  ;;  %v1149_v39 = vpop.f32.mrf.mxu1  ;;  %v2367_v38 = vld [vmem:[%s7725_s21 + $0x42] sm:$0xff] }
 0x18c   : > { %v1150_v41 = vadd.f32 %v1149_v39, %v850_v33  ;;  %v1718_v31 = vld [vmem:[%s7725_s21 + $0x69] sm:$0xff] }
 0x18d   : > { %1633 = vst [vmem:[#allocation2 + $0xe0] sm:$0xff] %v1586_v32  ;;  %6714 = vmatmul.msk.f32.gmra.mxu0 %vm465_vm0, %v594_v34 }
 0x18e   : > { %6761 = vmatmul.msk.f32.gmra.mxu1 %vm465_vm0, %v539_v40  ;;  %v1658_v40 = vld [vmem:[%s7725_s21 + $0x48] sm:$0xff] }
 0x18f   : > { %6816 = vmatmul.msk.f32.gmra.mxu2 %vm465_vm0, %v1248_v42 }
 0x192   : > { %v1504_v43 = vpop.f32.mrf.mxu2  ;;  %v853_v46 = vpop.f32.mrf.mxu0 }
 0x193   : > { %v1587_v45 = vadd.f32 %v1504_v43, %v1150_v41  ;;  %v1152_v48 = vpop.f32.mrf.mxu1  ;;  %v2368_v41 = vld [vmem:[%s7725_s21 + $0x4a] sm:$0xff] }
 0x194   : > { %v1153_v44 = vadd.f32 %v1152_v48, %v853_v46  ;;  %v1719_v43 = vld [vmem:[%s7725_s21 + $0x71] sm:$0xff] }
 0x195   : > { %1634 = vst [vmem:[#allocation2 + $0xe8] sm:$0xff] %v1587_v45  ;;  %6715 = vmatmul.msk.f32.gmra.mxu0 %vm465_vm0, %v595_v47 }
 0x196   : > { %6762 = vmatmul.msk.f32.gmra.mxu1 %vm465_vm0, %v540_v49  ;;  %v1659_v49 = vld [vmem:[%s7725_s21 + $0x50] sm:$0xff] }
 0x197   : > { %6817 = vmatmul.msk.f32.gmra.mxu2 %vm465_vm0, %v1249_v50 }
 0x19a   : > { %v1507_v52 = vpop.f32.mrf.mxu2  ;;  %v856_v54 = vpop.f32.mrf.mxu0 }
 0x19b   : > { %v1588_v53 = vadd.f32 %v1507_v52, %v1153_v44  ;;  %v1155_v55 = vpop.f32.mrf.mxu1  ;;  %v6996_v44 = vld [vmem:[%s10290_s1 + $0x1e8] sm:$0xff] }
 0x19c   : > { %v1156_v57 = vadd.f32 %v1155_v55, %v856_v54  ;;  %v6988_v52 = vld [vmem:[%s10290_s1 + $0x1a8] sm:$0xff]  ;;  %3168 = vmatpush.msrb.mxu2 %v6996_v44  ;;  %v7097_v44 = vld [vmem:[%s10290_s1 + $0x220] sm:$0xff] }
 0x19d   : > { %1635 = vst [vmem:[#allocation2 + $0xf0] sm:$0xff] %v1588_v53  ;;  %6881 = vmatmul.msk.f32.vlgmr.msrb.gmra.mxu0 %vm465_vm0, %v7773_v36  ;;  %v6989_v36 = vld [vmem:[%s10290_s1 + $0x1b0] sm:$0xff]  ;;  %v1720_v53 = vld [vmem:[%s7725_s21 + $0x79] sm:$0xff] }
 0x19e   : > { %6936 = vmatmul.msk.f32.vlgmr.msrb.gmra.mxu1 %vm465_vm0, %v7776_v37  ;;  %v1714_v37 = vld [vmem:[%s7725_s21 + $0x49] sm:$0xff]  ;;  %3466 = vmatpush.msrb.mxu3 %v6989_v36 }
 0x19f   : > { %6840 = vmatmul.msk.f32.gmra.mxu3 %vm465_vm0, %v1714_v37 }
 0x1a0   : > { %3467 = vmatpush.msrb.mxu3 %v6988_v52  ;;  %v1727_v52 = vld [vmem:[%s7725_s21 + $0xb1] sm:$0xff] }
 0x1a2   : > { %v1510_v58 = vpop.f32.mrf.mxu2  ;;  %v859_v60 = vpop.f32.mrf.mxu0 }
 0x1a3   : > { %v1589_v59 = vadd.f32 %v1510_v58, %v1156_v57  ;;  %v1158_v62 = vpop.f32.mrf.mxu1  ;;  %v1660_v58 = vld [vmem:[%s7725_s21 + $0x58] sm:$0xff] }
 0x1a4   : > { %v1159_v1 = vadd.f32 %v1158_v62, %v859_v60  ;;  %v2370_v60 = vld [vmem:[%s7725_s21 + $0x5a] sm:$0xff] }
 0x1a5   : > { %1636 = vst [vmem:[#allocation2 + $0xf8] sm:$0xff] %v1589_v59  ;;  %6882 = vmatmul.msk.f32.gmra.mxu0 %vm465_vm0, %v1653_v61  ;;  %v7098_v61 = vld [vmem:[%s10290_s1 + $0x228] sm:$0xff] }
 0x1a6   : > { %6937 = vmatmul.msk.f32.gmra.mxu1 %vm465_vm0, %v2363_v63  ;;  %v1721_v62 = vld [vmem:[%s7725_s21 + $0x81] sm:$0xff]  ;;  %3822 = vmatpush.msra.mxu0 %v7098_v61  ;;  %v1728_v61 = vld [vmem:[%s7725_s21 + $0xb9] sm:$0xff] }
 0x1a7   : > { %6841 = vmatmul.msk.f32.gmra.mxu3 %vm465_vm0, %v1715_v9  ;;  %v1662_v9 = vld [vmem:[%s7725_s21 + $0x68] sm:$0xff] }
 0x1a8   : > { %3823 = vmatpush.msra.mxu0 %v7097_v44  ;;  %v1733_v44 = vld [vmem:[%s7725_s21 + $0xe1] sm:$0xff] }
 0x1aa   : > { %v1513_v2 = vpop.f32.mrf.mxu2  ;;  %v862_v4 = vpop.f32.mrf.mxu0 }
 0x1ab   : > { %v1590_v3 = vadd.f32 %v1513_v2, %v1159_v1  ;;  %v1161_v6 = vpop.f32.mrf.mxu1  ;;  %v1661_v1 = vld [vmem:[%s7725_s21 + $0x60] sm:$0xff] }
 0x1ac   : > { %v1162_v10 = vadd.f32 %v1161_v6, %v862_v4  ;;  %v1722_v4 = vld [vmem:[%s7725_s21 + $0x89] sm:$0xff] }
 0x1ad   : > { %1637 = vst [vmem:[#allocation2 + $0x100] sm:$0xff] %v1590_v3  ;;  %6883 = vmatmul.msk.f32.gmra.mxu0 %vm465_vm0, %v1654_v5  ;;  %v2371_v3 = vld [vmem:[%s7725_s21 + $0x62] sm:$0xff] }
 0x1ae   : > { %6938 = vmatmul.msk.f32.gmra.mxu1 %vm465_vm0, %v2364_v7 }
 0x1af   : > { %6842 = vmatmul.msk.f32.gmra.mxu3 %vm465_vm0, %v1716_v17  ;;  %v1663_v17 = vld [vmem:[%s7725_s21 + $0x70] sm:$0xff] }
 0x1b2   : > { %v1516_v11 = vpop.f32.mrf.mxu2  ;;  %v865_v13 = vpop.f32.mrf.mxu0 }
 0x1b3   : > { %v1591_v12 = vadd.f32 %v1516_v11, %v1162_v10  ;;  %v1164_v15 = vpop.f32.mrf.mxu1  ;;  %v2372_v11 = vld [vmem:[%s7725_s21 + $0x6a] sm:$0xff] }
 0x1b4   : > { %v1165_v18 = vadd.f32 %v1164_v15, %v865_v13 }
 0x1b5   : > { %1638 = vst [vmem:[#allocation2 + $0x108] sm:$0xff] %v1591_v12  ;;  %6884 = vmatmul.msk.f32.gmra.mxu0 %vm465_vm0, %v1655_v14  ;;  %v1723_v12 = vld [vmem:[%s7725_s21 + $0x91] sm:$0xff] }
 0x1b6   : > { %6939 = vmatmul.msk.f32.gmra.mxu1 %vm465_vm0, %v2365_v16 }
 0x1b7   : > { %6843 = vmatmul.msk.f32.gmra.mxu3 %vm465_vm0, %v1717_v24  ;;  %v1664_v24 = vld [vmem:[%s7725_s21 + $0x78] sm:$0xff] }
 0x1ba   : > { %v1519_v19 = vpop.f32.mrf.mxu2  ;;  %v868_v35 = vpop.f32.mrf.mxu0 }
 0x1bb   : > { %v1592_v20 = vadd.f32 %v1519_v19, %v1165_v18  ;;  %v1167_v22 = vpop.f32.mrf.mxu1  ;;  %v2373_v19 = vld [vmem:[%s7725_s21 + $0x72] sm:$0xff] }
 0x1bc   : > { %v1168_v25 = vadd.f32 %v1167_v22, %v868_v35 }
 0x1bd   : > { %1639 = vst [vmem:[#allocation2 + $0x110] sm:$0xff] %v1592_v20  ;;  %6885 = vmatmul.msk.f32.gmra.mxu0 %vm465_vm0, %v1656_v21  ;;  %v1724_v20 = vld [vmem:[%s7725_s21 + $0x99] sm:$0xff] }
 0x1be   : > { %6940 = vmatmul.msk.f32.gmra.mxu1 %vm465_vm0, %v2366_v23 }
 0x1bf   : > { %6844 = vmatmul.msk.f32.gmra.mxu3 %vm465_vm0, %v1718_v31 }
 0x1c2   : > { %v1522_v26 = vpop.f32.mrf.mxu2  ;;  %v871_v28 = vpop.f32.mrf.mxu0 }
 0x1c3   : > { %v1593_v27 = vadd.f32 %v1522_v26, %v1168_v25  ;;  %v1170_v30 = vpop.f32.mrf.mxu1 }
 0x1c4   : > { %v1171_v32 = vadd.f32 %v1170_v30, %v871_v28  ;;  %v1725_v28 = vld [vmem:[%s7725_s21 + $0xa1] sm:$0xff] }
 0x1c5   : > { %1640 = vst [vmem:[#allocation2 + $0x118] sm:$0xff] %v1593_v27  ;;  %6886 = vmatmul.msk.f32.gmra.mxu0 %vm465_vm0, %v1657_v29  ;;  %v2374_v27 = vld [vmem:[%s7725_s21 + $0x7a] sm:$0xff] }
 0x1c6   : > { %6941 = vmatmul.msk.f32.gmra.mxu1 %vm465_vm0, %v2367_v38 }
 0x1c7   : > { %6845 = vmatmul.msk.f32.gmra.mxu3 %vm465_vm0, %v1719_v43 }
 0x1ca   : > { %v1525_v33 = vpop.f32.mrf.mxu2  ;;  %v874_v39 = vpop.f32.mrf.mxu0 }
 0x1cb   : > { %v1594_v34 = vadd.f32 %v1525_v33, %v1171_v32  ;;  %v1173_v42 = vpop.f32.mrf.mxu1  ;;  %v1665_v32 = vld [vmem:[%s7725_s21 + $0x80] sm:$0xff] }
 0x1cc   : > { %v1174_v45 = vadd.f32 %v1173_v42, %v874_v39  ;;  %v2375_v39 = vld [vmem:[%s7725_s21 + $0x82] sm:$0xff] }
 0x1cd   : > { %1641 = vst [vmem:[#allocation2 + $0x120] sm:$0xff] %v1594_v34  ;;  %6887 = vmatmul.msk.f32.gmra.mxu0 %vm465_vm0, %v1658_v40  ;;  %v6995_v40 = vld [vmem:[%s10290_s1 + $0x1e0] sm:$0xff] }
 0x1ce   : > { %6942 = vmatmul.msk.f32.gmra.mxu1 %vm465_vm0, %v2368_v41  ;;  %v6987_v42 = vld [vmem:[%s10290_s1 + $0x1a0] sm:$0xff]  ;;  %3169 = vmatpush.msrb.mxu2 %v6995_v40  ;;  %v1726_v41 = vld [vmem:[%s7725_s21 + $0xa9] sm:$0xff] }
 0x1cf   : > { %6846 = vmatmul.msk.f32.gmra.mxu3 %vm465_vm0, %v1720_v53  ;;  %v1732_v40 = vld [vmem:[%s7725_s21 + $0xd9] sm:$0xff] }
 0x1d0   : > { %v1922_v25 = vpop.f32.mrf.mxu3  ;;  %3468 = vmatpush.msrb.mxu3 %v6987_v42  ;;  %v2767_v42 = vld [vmem:[#allocation2 + $0x18] sm:$0xff] }
 0x1d2   : > { %v1528_v46 = vpop.f32.mrf.mxu2  ;;  %v877_v48 = vpop.f32.mrf.mxu0 }
 0x1d3   : > { %v1595_v47 = vadd.f32 %v1528_v46, %v1174_v45  ;;  %v1176_v50 = vpop.f32.mrf.mxu1 }
 0x1d4   : > { %v1177_v54 = vadd.f32 %v1176_v50, %v877_v48  ;;  %v1666_v48 = vld [vmem:[%s7725_s21 + $0x88] sm:$0xff] }
 0x1d5   : > { %1642 = vst [vmem:[#allocation2 + $0x128] sm:$0xff] %v1595_v47  ;;  %6888 = vmatmul.msk.f32.gmra.mxu0 %vm465_vm0, %v1659_v49 }
 0x1d6   : > { %6943 = vmatmul.msk.f32.gmra.mxu1 %vm465_vm0, %v2369_v51  ;;  %v2376_v51 = vld [vmem:[%s7725_s21 + $0x8a] sm:$0xff] }
 0x1d7   : > { %6847 = vmatmul.msk.f32.gmra.mxu3 %vm465_vm0, %v1721_v62 }
 0x1d8   : > { %v1925_v33 = vpop.f32.mrf.mxu3 }
 0x1da   : > { %v1531_v55 = vpop.f32.mrf.mxu2  ;;  %v880_v57 = vpop.f32.mrf.mxu0 }
 0x1db   : > { %v1596_v56 = vadd.f32 %v1531_v55, %v1177_v54  ;;  %v1179_v59 = vpop.f32.mrf.mxu1 }
 0x1dc   : > { %v1180_v63 = vadd.f32 %v1179_v59, %v880_v57  ;;  %v1667_v57 = vld [vmem:[%s7725_s21 + $0x90] sm:$0xff] }
 0x1dd   : > { %1643 = vst [vmem:[#allocation2 + $0x130] sm:$0xff] %v1596_v56  ;;  %6889 = vmatmul.msk.f32.gmra.mxu0 %vm465_vm0, %v1660_v58 }
 0x1de   : > { %6944 = vmatmul.msk.f32.gmra.mxu1 %vm465_vm0, %v2370_v60  ;;  %v2377_v60 = vld [vmem:[%s7725_s21 + $0x92] sm:$0xff] }
 0x1df   : > { %6848 = vmatmul.msk.f32.gmra.mxu3 %vm465_vm0, %v1722_v4  ;;  %v2378_v4 = vld [vmem:[%s7725_s21 + $0x9a] sm:$0xff] }
 0x1e0   : > { %v1928_v49 = vpop.f32.mrf.mxu3 }
 0x1e2   : > { %v1534_v0 = vpop.f32.mrf.mxu2  ;;  %v883_v37 = vpop.f32.mrf.mxu0 }
 0x1e3   : > { %v1597_v36 = vadd.f32 %v1534_v0, %v1180_v63  ;;  %v1182_v2 = vpop.f32.mrf.mxu1 }
 0x1e4   : > { %v1183_v5 = vadd.f32 %v1182_v2, %v883_v37  ;;  %v1668_v37 = vld [vmem:[%s7725_s21 + $0x98] sm:$0xff] }
 0x1e5   : > { %1644 = vst [vmem:[#allocation2 + $0x138] sm:$0xff] %v1597_v36  ;;  %6890 = vmatmul.msk.f32.gmra.mxu0 %vm465_vm0, %v1661_v1 }
 0x1e6   : > { %6945 = vmatmul.msk.f32.gmra.mxu1 %vm465_vm0, %v2371_v3 }
 0x1e7   : > { %6849 = vmatmul.msk.f32.gmra.mxu3 %vm465_vm0, %v1723_v12 }
 0x1e8   : > { %v1931_v58 = vpop.f32.mrf.mxu3 }
 0x1ea   : > { %v1537_v6 = vpop.f32.mrf.mxu2  ;;  %v886_v8 = vpop.f32.mrf.mxu0 }
 0x1eb   : > { %v1598_v7 = vadd.f32 %v1537_v6, %v1183_v5  ;;  %v1185_v10 = vpop.f32.mrf.mxu1  ;;  %v1729_v6 = vld [vmem:[%s7725_s21 + $0xc1] sm:$0xff] }
 0x1ec   : > { %v1186_v13 = vadd.f32 %v1185_v10, %v886_v8  ;;  %v1669_v10 = vld [vmem:[%s7725_s21 + $0xa0] sm:$0xff] }
 0x1ed   : > { %1645 = vst [vmem:[#allocation2 + $0x140] sm:$0xff] %v1598_v7  ;;  %6891 = vmatmul.msk.f32.gmra.mxu0 %vm465_vm0, %v1662_v9  ;;  %v2764_v7 = vld [vmem:[#allocation2] sm:$0xff] }
 0x1ee   : > { %6946 = vmatmul.msk.f32.gmra.mxu1 %vm465_vm0, %v2372_v11 }
 0x1ef   : > { %6850 = vmatmul.msk.f32.gmra.mxu3 %vm465_vm0, %v1724_v20  ;;  %v1670_v20 = vld [vmem:[%s7725_s21 + $0xa8] sm:$0xff] }
 0x1f1   : > { %v8260_v1 = vpop.f32.mrf.mxu3 }
 0x1f2   : > { %v1540_v14 = vpop.f32.mrf.mxu2  ;;  %v889_v16 = vpop.f32.mrf.mxu0 }
 0x1f3   : > { %v1599_v15 = vadd.f32 %v1540_v14, %v1186_v13  ;;  %v1188_v18 = vpop.f32.mrf.mxu1  ;;  %v2379_v14 = vld [vmem:[%s7725_s21 + $0xa2] sm:$0xff] }
 0x1f4   : > { %v1189_v35 = vadd.f32 %v1188_v18, %v889_v16  ;;  %v1730_v16 = vld [vmem:[%s7725_s21 + $0xc9] sm:$0xff] }
 0x1f5   : > { %1646 = vst [vmem:[#allocation2 + $0x148] sm:$0xff] %v1599_v15  ;;  %6892 = vmatmul.msk.f32.gmra.mxu0 %vm465_vm0, %v1663_v17  ;;  %v2765_v17 = vld [vmem:[#allocation2 + $0x8] sm:$0xff] }
 0x1f6   : > { %6947 = vmatmul.msk.f32.gmra.mxu1 %vm465_vm0, %v2373_v19 }
 0x1f7   : > { %6851 = vmatmul.msk.f32.gmra.mxu3 %vm465_vm0, %v1725_v28  ;;  %v6994_v28 = vld [vmem:[%s10290_s1 + $0x1d8] sm:$0xff] }
 0x1f8   : > { %3170 = vmatpush.msrb.mxu2 %v6994_v28  ;;  %v6985_v28 = vld [vmem:[%s10290_s1 + $0x190] sm:$0xff] }
 0x1f9   : > { %v8268_v11 = vpop.f32.mrf.mxu3 }
 0x1fa   : > { %v1543_v21 = vpop.f32.mrf.mxu2  ;;  %v892_v23 = vpop.f32.mrf.mxu0 }
 0x1fb   : > { %v1600_v22 = vadd.f32 %v1543_v21, %v1189_v35  ;;  %v1191_v26 = vpop.f32.mrf.mxu1 }
 0x1fc   : > { %v1192_v29 = vadd.f32 %v1191_v26, %v892_v23  ;;  %v2380_v23 = vld [vmem:[%s7725_s21 + $0xaa] sm:$0xff] }
 0x1fd   : > { %1647 = vst [vmem:[#allocation2 + $0x150] sm:$0xff] %v1600_v22  ;;  %6893 = vmatmul.msk.f32.gmra.mxu0 %vm465_vm0, %v1664_v24  ;;  %v2766_v26 = vld [vmem:[#allocation2 + $0x10] sm:$0xff] }
 0x1fe   : > { %6948 = vmatmul.msk.f32.gmra.mxu1 %vm465_vm0, %v2374_v27 }
 0x1ff   : > { %6852 = vmatmul.msk.f32.gmra.mxu3 %vm465_vm0, %v1726_v41 }
 0x202   : > { %v1546_v30 = vpop.f32.mrf.mxu2  ;;  %v895_v31 = vpop.f32.mrf.mxu0 }
 0x203   : > { %v1601_v38 = vadd.f32 %v1546_v30, %v1192_v29  ;;  %v1194_v34 = vpop.f32.mrf.mxu1  ;;  %v6986_v29 = vld [vmem:[%s10290_s1 + $0x198] sm:$0xff] }
 0x204   : > { %v1195_v43 = vadd.f32 %v1194_v34, %v895_v31  ;;  %3469 = vmatpush.msrb.mxu3 %v6986_v29  ;;  %v2381_v34 = vld [vmem:[%s7725_s21 + $0xb2] sm:$0xff] }
 0x205   : > { %1648 = vst [vmem:[#allocation2 + $0x158] sm:$0xff] %v1601_v38  ;;  %6894 = vmatmul.msk.f32.gmra.mxu0 %vm465_vm0, %v1665_v32  ;;  %v1671_v38 = vld [vmem:[%s7725_s21 + $0xb0] sm:$0xff] }
 0x206   : > { %6949 = vmatmul.msk.f32.gmra.mxu1 %vm465_vm0, %v2375_v39  ;;  %3470 = vmatpush.msrb.mxu3 %v6985_v28 }
 0x207   : > { %6853 = vmatmul.msk.f32.gmra.mxu3 %vm465_vm0, %v1727_v52  ;;  %v2768_v52 = vld [vmem:[#allocation2 + $0x20] sm:$0xff] }
 0x20a   : > { %v1549_v45 = vpop.f32.mrf.mxu2  ;;  %v898_v47 = vpop.f32.mrf.mxu0 }
 0x20b   : > { %v1602_v46 = vadd.f32 %v1549_v45, %v1195_v43  ;;  %v1197_v50 = vpop.f32.mrf.mxu1  ;;  %v7096_v43 = vld [vmem:[%s10290_s1 + $0x218] sm:$0xff] }
 0x20c   : > { %v1198_v53 = vadd.f32 %v1197_v50, %v898_v47  ;;  %3824 = vmatpush.msra.mxu0 %v7096_v43  ;;  %v2382_v50 = vld [vmem:[%s7725_s21 + $0xba] sm:$0xff] }
 0x20d   : > { %1649 = vst [vmem:[#allocation2 + $0x160] sm:$0xff] %v1602_v46  ;;  %6895 = vmatmul.msk.f32.gmra.mxu0 %vm465_vm0, %v1666_v48  ;;  %v1672_v46 = vld [vmem:[%s7725_s21 + $0xb8] sm:$0xff] }
 0x20e   : > { %6950 = vmatmul.msk.f32.gmra.mxu1 %vm465_vm0, %v2376_v51 }
 0x20f   : > { %6854 = vmatmul.msk.f32.gmra.mxu3 %vm465_vm0, %v1728_v61  ;;  %v1734_v61 = vld [vmem:[%s7725_s21 + $0xe9] sm:$0xff] }
 0x212   : > { %v1552_v54 = vpop.f32.mrf.mxu2  ;;  %v901_v56 = vpop.f32.mrf.mxu0 }
 0x213   : > { %v1603_v55 = vadd.f32 %v1552_v54, %v1198_v53  ;;  %v1200_v59 = vpop.f32.mrf.mxu1 }
 0x214   : > { %v1201_v62 = vadd.f32 %v1200_v59, %v901_v56  ;;  %v2383_v59 = vld [vmem:[%s7725_s21 + $0xc2] sm:$0xff] }
 0x215   : > { %1650 = vst [vmem:[#allocation2 + $0x168] sm:$0xff] %v1603_v55  ;;  %6896 = vmatmul.msk.f32.gmra.mxu0 %vm465_vm0, %v1667_v57  ;;  %v1673_v55 = vld [vmem:[%s7725_s21 + $0xc0] sm:$0xff] }
 0x216   : > { %6951 = vmatmul.msk.f32.gmra.mxu1 %vm465_vm0, %v2377_v60 }
 0x217   : > { %6855 = vmatmul.msk.f32.gmra.mxu3 %vm465_vm0, %v1729_v6  ;;  %v2770_v6 = vld [vmem:[#allocation2 + $0x30] sm:$0xff] }
 0x21a   : > { %v1555_v63 = vpop.f32.mrf.mxu2  ;;  %v2221_v36 = vpop.f32.mrf.mxu0 }
 0x21b   : > { %v1604_v0 = vadd.f32 %v1555_v63, %v1201_v62  ;;  %v2222_v2 = vadd.f32 %v2221_v36, %v1922_v25  ;;  %v2576_v3 = vpop.f32.mrf.mxu1  ;;  %v1731_v25 = vld [vmem:[%s7725_s21 + $0xd1] sm:$0xff]  ;;  %v2769_v62 = vld [vmem:[#allocation2 + $0x28] sm:$0xff] }
 0x21c   : > { %v1674_v36 = vld [vmem:[%s7725_s21 + $0xc8] sm:$0xff] }
 0x21d   : > { %1651 = vst [vmem:[#allocation2 + $0x170] sm:$0xff] %v1604_v0  ;;  %v2717_v5 = vadd.f32 %v2576_v3, %v2222_v2  ;;  %6897 = vmatmul.msk.f32.gmra.mxu0 %vm465_vm0, %v1668_v37  ;;  %v2384_v3 = vld [vmem:[%s7725_s21 + $0xca] sm:$0xff] }
 0x21e   : > { %6952 = vmatmul.msk.f32.gmra.mxu1 %vm465_vm0, %v2378_v4 }
 0x21f   : > { %v2811_v8 = vadd.f32 %v2764_v7, %v2717_v5  ;;  %6856 = vmatmul.msk.f32.gmra.mxu3 %vm465_vm0, %v1730_v16  ;;  %v1735_v5 = vld [vmem:[%s7725_s21 + $0xf1] sm:$0xff] }
 0x220   : > { %v2771_v16 = vld [vmem:[#allocation2 + $0x38] sm:$0xff] }
 0x221   : > { %2858 = vst [vmem:[#allocation2] sm:$0xff] %v2811_v8 }
 0x222   : > { %v2224_v9 = vpop.f32.mrf.mxu0  ;;  %v8276_v35 = vpop.f32.mrf.mxu3 }
 0x223   : > { %v2225_v12 = vadd.f32 %v2224_v9, %v1925_v33  ;;  %v2579_v13 = vpop.f32.mrf.mxu1  ;;  %v1675_v9 = vld [vmem:[%s7725_s21 + $0xd0] sm:$0xff] }
 0x225   : > { %v2718_v15 = vadd.f32 %v2579_v13, %v2225_v12  ;;  %6898 = vmatmul.msk.f32.gmra.mxu0 %vm465_vm0, %v1669_v10  ;;  %v2385_v13 = vld [vmem:[%s7725_s21 + $0xd2] sm:$0xff] }
 0x226   : > { %6953 = vmatmul.msk.f32.gmra.mxu1 %vm465_vm0, %v2379_v14 }
 0x227   : > { %v2812_v18 = vadd.f32 %v2765_v17, %v2718_v15  ;;  %6857 = vmatmul.msk.f32.gmra.mxu3 %vm465_vm0, %v1731_v25  ;;  %v1736_v15 = vld [vmem:[%s7725_s21 + $0xf9] sm:$0xff] }
 0x228   : > { %v2772_v25 = vld [vmem:[#allocation2 + $0x40] sm:$0xff] }
 0x229   : > { %2859 = vst [vmem:[#allocation2 + $0x8] sm:$0xff] %v2812_v18 }
 0x22a   : > { %v2227_v19 = vpop.f32.mrf.mxu0  ;;  %v1943_v31 = vpop.f32.mrf.mxu3 }
 0x22b   : > { %v2228_v21 = vadd.f32 %v2227_v19, %v1928_v49  ;;  %v2582_v22 = vpop.f32.mrf.mxu1  ;;  %v1676_v19 = vld [vmem:[%s7725_s21 + $0xd8] sm:$0xff] }
 0x22d   : > { %v2719_v24 = vadd.f32 %v2582_v22, %v2228_v21  ;;  %6899 = vmatmul.msk.f32.gmra.mxu0 %vm465_vm0, %v1670_v20  ;;  %v2386_v22 = vld [vmem:[%s7725_s21 + $0xda] sm:$0xff] }
 0x22e   : > { %6954 = vmatmul.msk.f32.gmra.mxu1 %vm465_vm0, %v2380_v23 }
 0x22f   : > { %v2813_v27 = vadd.f32 %v2766_v26, %v2719_v24  ;;  %6858 = vmatmul.msk.f32.gmra.mxu3 %vm465_vm0, %v1732_v40  ;;  %v1737_v24 = vld [vmem:[%s7725_s21 + $0x101] sm:$0xff] }
 0x230   : > { %v2773_v40 = vld [vmem:[#allocation2 + $0x48] sm:$0xff] }
 0x231   : > { %2860 = vst [vmem:[#allocation2 + $0x10] sm:$0xff] %v2813_v27  ;;  %v6993_v27 = vld [vmem:[%s10290_s1 + $0x1d0] sm:$0xff] }
 0x232   : > { %v2230_v30 = vpop.f32.mrf.mxu0  ;;  %v1946_v47 = vpop.f32.mrf.mxu3  ;;  %3171 = vmatpush.msrb.mxu2 %v6993_v27  ;;  %v6984_v27 = vld [vmem:[%s10290_s1 + $0x188] sm:$0xff] }
 0x233   : > { %v2231_v32 = vadd.f32 %v2230_v30, %v1931_v58  ;;  %v2585_v33 = vpop.f32.mrf.mxu1  ;;  %v1677_v30 = vld [vmem:[%s7725_s21 + $0xe0] sm:$0xff]  ;;  %3471 = vmatpush.msrb.mxu3 %v6984_v27 }
 0x235   : > { %v2720_v39 = vadd.f32 %v2585_v33, %v2231_v32  ;;  %6900 = vmatmul.msk.f32.gmra.mxu0 %vm465_vm0, %v1671_v38  ;;  %v2387_v33 = vld [vmem:[%s7725_s21 + $0xe2] sm:$0xff] }
 0x236   : > { %6955 = vmatmul.msk.f32.gmra.mxu1 %vm465_vm0, %v2381_v34 }
 0x237   : > { %v2814_v41 = vadd.f32 %v2767_v42, %v2720_v39  ;;  %6859 = vmatmul.msk.f32.gmra.mxu3 %vm465_vm0, %v1733_v44  ;;  %v1738_v39 = vld [vmem:[%s7725_s21 + $0x109] sm:$0xff] }
 0x238   : > { %v2774_v44 = vld [vmem:[#allocation2 + $0x50] sm:$0xff] }
 0x239   : > { %2861 = vst [vmem:[#allocation2 + $0x18] sm:$0xff] %v2814_v41  ;;  %v7095_v41 = vld [vmem:[%s10290_s1 + $0x210] sm:$0xff] }
 0x23a   : > { %v2233_v45 = vpop.f32.mrf.mxu0  ;;  %v1949_v56 = vpop.f32.mrf.mxu3  ;;  %3825 = vmatpush.msra.mxu0 %v7095_v41 }
 0x23b   : > { %v2234_v48 = vadd.f32 %v2233_v45, %v8260_v1  ;;  %v2588_v49 = vpop.f32.mrf.mxu1  ;;  %v1678_v45 = vld [vmem:[%s7725_s21 + $0xe8] sm:$0xff] }
 0x23d   : > { %v2721_v51 = vadd.f32 %v2588_v49, %v2234_v48  ;;  %6901 = vmatmul.msk.f32.gmra.mxu0 %vm465_vm0, %v1672_v46  ;;  %v2388_v49 = vld [vmem:[%s7725_s21 + $0xea] sm:$0xff] }
 0x23e   : > { %6956 = vmatmul.msk.f32.gmra.mxu1 %vm465_vm0, %v2382_v50 }
 0x23f   : > { %v2815_v53 = vadd.f32 %v2768_v52, %v2721_v51  ;;  %6860 = vmatmul.msk.f32.gmra.mxu3 %vm465_vm0, %v1734_v61  ;;  %v1739_v51 = vld [vmem:[%s7725_s21 + $0x111] sm:$0xff] }
 0x240   : > { %v2775_v61 = vld [vmem:[#allocation2 + $0x58] sm:$0xff] }
 0x241   : > { %2862 = vst [vmem:[#allocation2 + $0x20] sm:$0xff] %v2815_v53 }
 0x242   : > { %v2236_v54 = vpop.f32.mrf.mxu0  ;;  %v8313_v37 = vpop.f32.mrf.mxu3 }
 0x243   : > { %v2237_v57 = vadd.f32 %v2236_v54, %v8268_v11  ;;  %v2591_v58 = vpop.f32.mrf.mxu1  ;;  %v1679_v54 = vld [vmem:[%s7725_s21 + $0xf0] sm:$0xff] }
 0x245   : > { %v2722_v60 = vadd.f32 %v2591_v58, %v2237_v57  ;;  %6902 = vmatmul.msk.f32.gmra.mxu0 %vm465_vm0, %v1673_v55  ;;  %v2389_v58 = vld [vmem:[%s7725_s21 + $0xf2] sm:$0xff] }
 0x246   : > { %6957 = vmatmul.msk.f32.gmra.mxu1 %vm465_vm0, %v2383_v59 }
 0x247   : > { %v2816_v63 = vadd.f32 %v2769_v62, %v2722_v60  ;;  %6861 = vmatmul.msk.f32.gmra.mxu3 %vm465_vm0, %v1735_v5  ;;  %v1740_v60 = vld [vmem:[%s7725_s21 + $0x119] sm:$0xff] }
 0x248   : > { %v2776_v5 = vld [vmem:[#allocation2 + $0x60] sm:$0xff] }
 0x249   : > { %2863 = vst [vmem:[#allocation2 + $0x28] sm:$0xff] %v2816_v63 }
 0x24a   : > { %v2239_v0 = vpop.f32.mrf.mxu0  ;;  %v8322_v10 = vpop.f32.mrf.mxu3 }
 0x24b   : > { %v2240_v1 = vadd.f32 %v2239_v0, %v8276_v35  ;;  %v2594_v2 = vpop.f32.mrf.mxu1  ;;  %v1680_v0 = vld [vmem:[%s7725_s21 + $0xf8] sm:$0xff] }
 0x24d   : > { %v2723_v4 = vadd.f32 %v2594_v2, %v2240_v1  ;;  %6903 = vmatmul.msk.f32.gmra.mxu0 %vm465_vm0, %v1674_v36  ;;  %v2390_v2 = vld [vmem:[%s7725_s21 + $0xfa] sm:$0xff] }
 0x24e   : > { %6958 = vmatmul.msk.f32.gmra.mxu1 %vm465_vm0, %v2384_v3 }
 0x24f   : > { %v2817_v7 = vadd.f32 %v2770_v6, %v2723_v4  ;;  %6862 = vmatmul.msk.f32.gmra.mxu3 %vm465_vm0, %v1736_v15  ;;  %v1741_v4 = vld [vmem:[%s7725_s21 + $0x121] sm:$0xff] }
 0x250   : > { %v2777_v15 = vld [vmem:[#allocation2 + $0x68] sm:$0xff] }
 0x251   : > { %2864 = vst [vmem:[#allocation2 + $0x30] sm:$0xff] %v2817_v7 }
 0x252   : > { %v2242_v8 = vpop.f32.mrf.mxu0  ;;  %v8330_v20 = vpop.f32.mrf.mxu3 }
 0x253   : > { %v2243_v11 = vadd.f32 %v2242_v8, %v1943_v31  ;;  %v2597_v12 = vpop.f32.mrf.mxu1  ;;  %v1681_v8 = vld [vmem:[%s7725_s21 + $0x100] sm:$0xff] }
 0x255   : > { %v2724_v14 = vadd.f32 %v2597_v12, %v2243_v11  ;;  %6904 = vmatmul.msk.f32.gmra.mxu0 %vm465_vm0, %v1675_v9  ;;  %v2391_v12 = vld [vmem:[%s7725_s21 + $0x102] sm:$0xff] }
 0x256   : > { %6959 = vmatmul.msk.f32.gmra.mxu1 %vm465_vm0, %v2385_v13 }
 0x257   : > { %v2818_v17 = vadd.f32 %v2771_v16, %v2724_v14  ;;  %6863 = vmatmul.msk.f32.gmra.mxu3 %vm465_vm0, %v1737_v24  ;;  %v1742_v14 = vld [vmem:[%s7725_s21 + $0x129] sm:$0xff] }
 0x258   : > { %v2778_v24 = vld [vmem:[#allocation2 + $0x70] sm:$0xff] }
 0x259   : > { %2865 = vst [vmem:[#allocation2 + $0x38] sm:$0xff] %v2818_v17 }
 0x25a   : > { %v2245_v18 = vpop.f32.mrf.mxu0  ;;  %v1961_v38 = vpop.f32.mrf.mxu3 }
 0x25b   : > { %v2246_v35 = vadd.f32 %v2245_v18, %v1946_v47  ;;  %v2600_v21 = vpop.f32.mrf.mxu1  ;;  %v1682_v18 = vld [vmem:[%s7725_s21 + $0x108] sm:$0xff] }
 0x25d   : > { %v2725_v23 = vadd.f32 %v2600_v21, %v2246_v35  ;;  %6905 = vmatmul.msk.f32.gmra.mxu0 %vm465_vm0, %v1676_v19  ;;  %v2392_v21 = vld [vmem:[%s7725_s21 + $0x10a] sm:$0xff] }
 0x25e   : > { %6960 = vmatmul.msk.f32.gmra.mxu1 %vm465_vm0, %v2386_v22 }
 0x25f   : > { %v2819_v26 = vadd.f32 %v2772_v25, %v2725_v23  ;;  %6864 = vmatmul.msk.f32.gmra.mxu3 %vm465_vm0, %v1738_v39  ;;  %v1743_v23 = vld [vmem:[%s7725_s21 + $0x131] sm:$0xff] }
 0x260   : > { %v2779_v39 = vld [vmem:[#allocation2 + $0x78] sm:$0xff] }
 0x261   : > { %2866 = vst [vmem:[#allocation2 + $0x40] sm:$0xff] %v2819_v26  ;;  %v6992_v26 = vld [vmem:[%s10290_s1 + $0x1c8] sm:$0xff] }
 0x262   : > { %v2248_v29 = vpop.f32.mrf.mxu0  ;;  %v1964_v46 = vpop.f32.mrf.mxu3  ;;  %3172 = vmatpush.msrb.mxu2 %v6992_v26  ;;  %v6983_v26 = vld [vmem:[%s10290_s1 + $0x180] sm:$0xff] }
 0x263   : > { %v2249_v31 = vadd.f32 %v2248_v29, %v1949_v56  ;;  %v2603_v32 = vpop.f32.mrf.mxu1  ;;  %v1683_v29 = vld [vmem:[%s7725_s21 + $0x110] sm:$0xff]  ;;  %3472 = vmatpush.msrb.mxu3 %v6983_v26 }
 0x264   : > { %v1695_v26 = vld [vmem:[%s7725_s21 + $0x170] sm:$0xff] }
 0x265   : > { %v2726_v34 = vadd.f32 %v2603_v32, %v2249_v31  ;;  %6906 = vmatmul.msk.f32.gmra.mxu0 %vm465_vm0, %v1677_v30  ;;  %v2393_v32 = vld [vmem:[%s7725_s21 + $0x112] sm:$0xff] }
 0x266   : > { %6961 = vmatmul.msk.f32.gmra.mxu1 %vm465_vm0, %v2387_v33 }
 0x267   : > { %v2820_v42 = vadd.f32 %v2773_v40, %v2726_v34  ;;  %6865 = vmatmul.msk.f32.gmra.mxu3 %vm465_vm0, %v1739_v51  ;;  %v1744_v34 = vld [vmem:[%s7725_s21 + $0x139] sm:$0xff] }
 0x268   : > { %v2780_v51 = vld [vmem:[#allocation2 + $0x80] sm:$0xff] }
 0x269   : > { %2867 = vst [vmem:[#allocation2 + $0x48] sm:$0xff] %v2820_v42  ;;  %v7094_v42 = vld [vmem:[%s10290_s1 + $0x208] sm:$0xff] }
 0x26a   : > { %v2251_v43 = vpop.f32.mrf.mxu0  ;;  %v1967_v55 = vpop.f32.mrf.mxu3  ;;  %3826 = vmatpush.msra.mxu0 %v7094_v42 }
 0x26b   : > { %v2252_v47 = vadd.f32 %v2251_v43, %v8313_v37  ;;  %v2606_v48 = vpop.f32.mrf.mxu1  ;;  %v1684_v43 = vld [vmem:[%s7725_s21 + $0x118] sm:$0xff] }
 0x26d   : > { %v2727_v50 = vadd.f32 %v2606_v48, %v2252_v47  ;;  %6907 = vmatmul.msk.f32.gmra.mxu0 %vm465_vm0, %v1678_v45  ;;  %v2394_v48 = vld [vmem:[%s7725_s21 + $0x11a] sm:$0xff] }
 0x26e   : > { %6962 = vmatmul.msk.f32.gmra.mxu1 %vm465_vm0, %v2388_v49 }
 0x26f   : > { %v2821_v52 = vadd.f32 %v2774_v44, %v2727_v50  ;;  %6866 = vmatmul.msk.f32.gmra.mxu3 %vm465_vm0, %v1740_v60  ;;  %v1745_v50 = vld [vmem:[%s7725_s21 + $0x141] sm:$0xff] }
 0x270   : > { %v2781_v60 = vld [vmem:[#allocation2 + $0x88] sm:$0xff] }
 0x271   : > { %2868 = vst [vmem:[#allocation2 + $0x50] sm:$0xff] %v2821_v52 }
 0x272   : > { %v2254_v53 = vpop.f32.mrf.mxu0  ;;  %v8367_v36 = vpop.f32.mrf.mxu3 }
 0x273   : > { %v2255_v56 = vadd.f32 %v2254_v53, %v8322_v10  ;;  %v2609_v57 = vpop.f32.mrf.mxu1  ;;  %v1685_v53 = vld [vmem:[%s7725_s21 + $0x120] sm:$0xff] }
 0x275   : > { %v2728_v59 = vadd.f32 %v2609_v57, %v2255_v56  ;;  %6908 = vmatmul.msk.f32.gmra.mxu0 %vm465_vm0, %v1679_v54  ;;  %v2395_v57 = vld [vmem:[%s7725_s21 + $0x122] sm:$0xff] }
 0x276   : > { %6963 = vmatmul.msk.f32.gmra.mxu1 %vm465_vm0, %v2389_v58 }
 0x277   : > { %v2822_v62 = vadd.f32 %v2775_v61, %v2728_v59  ;;  %6867 = vmatmul.msk.f32.gmra.mxu3 %vm465_vm0, %v1741_v4  ;;  %v1746_v59 = vld [vmem:[%s7725_s21 + $0x149] sm:$0xff] }
 0x278   : > { %v2782_v4 = vld [vmem:[#allocation2 + $0x90] sm:$0xff] }
 0x279   : > { %2869 = vst [vmem:[#allocation2 + $0x58] sm:$0xff] %v2822_v62 }
 0x27a   : > { %v2257_v63 = vpop.f32.mrf.mxu0  ;;  %v8376_v9 = vpop.f32.mrf.mxu3 }
 0x27b   : > { %v2258_v37 = vadd.f32 %v2257_v63, %v8330_v20  ;;  %v2612_v1 = vpop.f32.mrf.mxu1  ;;  %v1686_v63 = vld [vmem:[%s7725_s21 + $0x128] sm:$0xff] }
 0x27d   : > { %v2729_v3 = vadd.f32 %v2612_v1, %v2258_v37  ;;  %6909 = vmatmul.msk.f32.gmra.mxu0 %vm465_vm0, %v1680_v0  ;;  %v2396_v1 = vld [vmem:[%s7725_s21 + $0x12a] sm:$0xff] }
 0x27e   : > { %6964 = vmatmul.msk.f32.gmra.mxu1 %vm465_vm0, %v2390_v2 }
 0x27f   : > { %v2823_v6 = vadd.f32 %v2776_v5, %v2729_v3  ;;  %6868 = vmatmul.msk.f32.gmra.mxu3 %vm465_vm0, %v1742_v14  ;;  %v1747_v3 = vld [vmem:[%s7725_s21 + $0x151] sm:$0xff] }
 0x280   : > { %v2783_v14 = vld [vmem:[#allocation2 + $0x98] sm:$0xff] }
 0x281   : > { %2870 = vst [vmem:[#allocation2 + $0x60] sm:$0xff] %v2823_v6 }
 0x282   : > { %v2260_v7 = vpop.f32.mrf.mxu0  ;;  %v8384_v19 = vpop.f32.mrf.mxu3 }
 0x283   : > { %v2261_v10 = vadd.f32 %v2260_v7, %v1961_v38  ;;  %v2615_v11 = vpop.f32.mrf.mxu1  ;;  %v1687_v7 = vld [vmem:[%s7725_s21 + $0x130] sm:$0xff] }
 0x285   : > { %v2730_v13 = vadd.f32 %v2615_v11, %v2261_v10  ;;  %6910 = vmatmul.msk.f32.gmra.mxu0 %vm465_vm0, %v1681_v8  ;;  %v2397_v11 = vld [vmem:[%s7725_s21 + $0x132] sm:$0xff] }
 0x286   : > { %6965 = vmatmul.msk.f32.gmra.mxu1 %vm465_vm0, %v2391_v12 }
 0x287   : > { %v2824_v16 = vadd.f32 %v2777_v15, %v2730_v13  ;;  %6869 = vmatmul.msk.f32.gmra.mxu3 %vm465_vm0, %v1743_v23  ;;  %v1748_v13 = vld [vmem:[%s7725_s21 + $0x159] sm:$0xff] }
 0x288   : > { %v2784_v23 = vld [vmem:[#allocation2 + $0xa0] sm:$0xff] }
 0x289   : > { %2871 = vst [vmem:[#allocation2 + $0x68] sm:$0xff] %v2824_v16 }
 0x28a   : > { %v2263_v17 = vpop.f32.mrf.mxu0  ;;  %v1979_v30 = vpop.f32.mrf.mxu3 }
 0x28b   : > { %v2264_v20 = vadd.f32 %v2263_v17, %v1964_v46  ;;  %v2618_v35 = vpop.f32.mrf.mxu1  ;;  %v1688_v17 = vld [vmem:[%s7725_s21 + $0x138] sm:$0xff] }
 0x28d   : > { %v2731_v22 = vadd.f32 %v2618_v35, %v2264_v20  ;;  %6911 = vmatmul.msk.f32.gmra.mxu0 %vm465_vm0, %v1682_v18  ;;  %v2398_v35 = vld [vmem:[%s7725_s21 + $0x13a] sm:$0xff] }
 0x28e   : > { %6966 = vmatmul.msk.f32.gmra.mxu1 %vm465_vm0, %v2392_v21 }
 0x28f   : > { %v2825_v25 = vadd.f32 %v2778_v24, %v2731_v22  ;;  %6870 = vmatmul.msk.f32.gmra.mxu3 %vm465_vm0, %v1744_v34  ;;  %v1749_v22 = vld [vmem:[%s7725_s21 + $0x161] sm:$0xff] }
 0x290   : > { %v2785_v34 = vld [vmem:[#allocation2 + $0xa8] sm:$0xff] }
 0x291   : > { %2872 = vst [vmem:[#allocation2 + $0x70] sm:$0xff] %v2825_v25  ;;  %v6991_v25 = vld [vmem:[%s10290_s1 + $0x1c0] sm:$0xff] }
 0x292   : > { %v2266_v28 = vpop.f32.mrf.mxu0  ;;  %v1982_v45 = vpop.f32.mrf.mxu3  ;;  %3173 = vmatpush.msrb.mxu2 %v6991_v25 }
 0x293   : > { %v2267_v38 = vadd.f32 %v2266_v28, %v1967_v55  ;;  %v2621_v31 = vpop.f32.mrf.mxu1  ;;  %v1689_v28 = vld [vmem:[%s7725_s21 + $0x140] sm:$0xff] }
 0x295   : > { %v2732_v33 = vadd.f32 %v2621_v31, %v2267_v38  ;;  %6912 = vmatmul.msk.f32.gmra.mxu0 %vm465_vm0, %v1683_v29  ;;  %v2399_v31 = vld [vmem:[%s7725_s21 + $0x142] sm:$0xff] }
 0x296   : > { %6967 = vmatmul.msk.f32.gmra.mxu1 %vm465_vm0, %v2393_v32 }
 0x297   : > { %v2826_v40 = vadd.f32 %v2779_v39, %v2732_v33  ;;  %6871 = vmatmul.msk.f32.gmra.mxu3 %vm465_vm0, %v1745_v50  ;;  %v1750_v33 = vld [vmem:[%s7725_s21 + $0x169] sm:$0xff] }
 0x298   : > { %v2786_v50 = vld [vmem:[#allocation2 + $0xb0] sm:$0xff] }
 0x299   : > { %2873 = vst [vmem:[#allocation2 + $0x78] sm:$0xff] %v2826_v40  ;;  %v7093_v40 = vld [vmem:[%s10290_s1 + $0x200] sm:$0xff] }
 0x29a   : > { %v2269_v41 = vpop.f32.mrf.mxu0  ;;  %v1985_v54 = vpop.f32.mrf.mxu3  ;;  %3827 = vmatpush.msra.mxu0 %v7093_v40  ;;  %v1696_v40 = vld [vmem:[%s7725_s21 + $0x178] sm:$0xff] }
 0x29b   : > { %v2270_v46 = vadd.f32 %v2269_v41, %v8367_v36  ;;  %v2624_v47 = vpop.f32.mrf.mxu1  ;;  %v1690_v41 = vld [vmem:[%s7725_s21 + $0x148] sm:$0xff] }
 0x29d   : > { %v2733_v49 = vadd.f32 %v2624_v47, %v2270_v46  ;;  %6913 = vmatmul.msk.f32.gmra.mxu0 %vm465_vm0, %v1684_v43  ;;  %v2400_v47 = vld [vmem:[%s7725_s21 + $0x14a] sm:$0xff] }
 0x29e   : > { %6968 = vmatmul.msk.f32.gmra.mxu1 %vm465_vm0, %v2394_v48 }
 0x29f   : > { %v2827_v44 = vadd.f32 %v2780_v51, %v2733_v49  ;;  %6872 = vmatmul.msk.f32.gmra.mxu3 %vm465_vm0, %v1746_v59  ;;  %v1751_v49 = vld [vmem:[%s7725_s21 + $0x171] sm:$0xff] }
 0x2a0   : > { %v2787_v59 = vld [vmem:[#allocation2 + $0xb8] sm:$0xff] }
 0x2a1   : > { %2874 = vst [vmem:[#allocation2 + $0x80] sm:$0xff] %v2827_v44 }
 0x2a2   : > { %v2272_v52 = vpop.f32.mrf.mxu0  ;;  %v8421_v0 = vpop.f32.mrf.mxu3 }
 0x2a3   : > { %v2273_v55 = vadd.f32 %v2272_v52, %v8376_v9  ;;  %v2627_v56 = vpop.f32.mrf.mxu1  ;;  %v1691_v52 = vld [vmem:[%s7725_s21 + $0x150] sm:$0xff] }
 0x2a5   : > { %v2734_v58 = vadd.f32 %v2627_v56, %v2273_v55  ;;  %6914 = vmatmul.msk.f32.gmra.mxu0 %vm465_vm0, %v1685_v53  ;;  %v2401_v56 = vld [vmem:[%s7725_s21 + $0x152] sm:$0xff] }
 0x2a6   : > { %6969 = vmatmul.msk.f32.gmra.mxu1 %vm465_vm0, %v2395_v57 }
 0x2a7   : > { %v2828_v61 = vadd.f32 %v2781_v60, %v2734_v58  ;;  %6873 = vmatmul.msk.f32.gmra.mxu3 %vm465_vm0, %v1747_v3  ;;  %v1752_v58 = vld [vmem:[%s7725_s21 + $0x179] sm:$0xff] }
 0x2a8   : > { %v2788_v3 = vld [vmem:[#allocation2 + $0xc0] sm:$0xff] }
 0x2a9   : > { %2875 = vst [vmem:[#allocation2 + $0x88] sm:$0xff] %v2828_v61 }
 0x2aa   : > { %v2275_v62 = vpop.f32.mrf.mxu0  ;;  %v8430_v8 = vpop.f32.mrf.mxu3 }
 0x2ab   : > { %v2276_v36 = vadd.f32 %v2275_v62, %v8384_v19  ;;  %v2630_v37 = vpop.f32.mrf.mxu1  ;;  %v1692_v62 = vld [vmem:[%s7725_s21 + $0x158] sm:$0xff] }
 0x2ad   : > { %v2735_v2 = vadd.f32 %v2630_v37, %v2276_v36  ;;  %6915 = vmatmul.msk.f32.gmra.mxu0 %vm465_vm0, %v1686_v63  ;;  %v2402_v37 = vld [vmem:[%s7725_s21 + $0x15a] sm:$0xff] }
 0x2ae   : > { %6970 = vmatmul.msk.f32.gmra.mxu1 %vm465_vm0, %v2396_v1 }
 0x2af   : > { %v2829_v5 = vadd.f32 %v2782_v4, %v2735_v2  ;;  %6874 = vmatmul.msk.f32.gmra.mxu3 %vm465_vm0, %v1748_v13  ;;  %v1753_v2 = vld [vmem:[%s7725_s21 + $0x181] sm:$0xff] }
 0x2b0   : > { %v2789_v13 = vld [vmem:[#allocation2 + $0xc8] sm:$0xff] }
 0x2b1   : > { %2876 = vst [vmem:[#allocation2 + $0x90] sm:$0xff] %v2829_v5 }
 0x2b2   : > { %v2278_v6 = vpop.f32.mrf.mxu0  ;;  %v8438_v18 = vpop.f32.mrf.mxu3 }
 0x2b3   : > { %v2279_v9 = vadd.f32 %v2278_v6, %v1979_v30  ;;  %v2633_v10 = vpop.f32.mrf.mxu1  ;;  %v1693_v6 = vld [vmem:[%s7725_s21 + $0x160] sm:$0xff] }
 0x2b5   : > { %v2736_v12 = vadd.f32 %v2633_v10, %v2279_v9  ;;  %6916 = vmatmul.msk.f32.gmra.mxu0 %vm465_vm0, %v1687_v7  ;;  %v2403_v10 = vld [vmem:[%s7725_s21 + $0x162] sm:$0xff] }
 0x2b6   : > { %6971 = vmatmul.msk.f32.gmra.mxu1 %vm465_vm0, %v2397_v11 }
 0x2b7   : > { %v2830_v15 = vadd.f32 %v2783_v14, %v2736_v12  ;;  %6875 = vmatmul.msk.f32.gmra.mxu3 %vm465_vm0, %v1749_v22  ;;  %v1754_v12 = vld [vmem:[%s7725_s21 + $0x189] sm:$0xff] }
 0x2b8   : > { %v2905_v22 = vld [vmem:[%s7725_s21 + $0x30] sm:$0xff] }
 0x2b9   : > { %2877 = vst [vmem:[#allocation2 + $0x98] sm:$0xff] %v2830_v15 }
 0x2ba   : > { %v2281_v16 = vpop.f32.mrf.mxu0  ;;  %v1997_v29 = vpop.f32.mrf.mxu3 }
 0x2bb   : > { %v2282_v19 = vadd.f32 %v2281_v16, %v1982_v45  ;;  %v2636_v20 = vpop.f32.mrf.mxu1  ;;  %v1694_v16 = vld [vmem:[%s7725_s21 + $0x168] sm:$0xff] }
 0x2bd   : > { %v2737_v21 = vadd.f32 %v2636_v20, %v2282_v19  ;;  %6917 = vmatmul.msk.f32.gmra.mxu0 %vm465_vm0, %v1688_v17  ;;  %v2404_v20 = vld [vmem:[%s7725_s21 + $0x16a] sm:$0xff] }
 0x2be   : > { %6972 = vmatmul.msk.f32.gmra.mxu1 %vm465_vm0, %v2398_v35 }
 0x2bf   : > { %v2831_v24 = vadd.f32 %v2784_v23, %v2737_v21  ;;  %6876 = vmatmul.msk.f32.gmra.mxu3 %vm465_vm0, %v1750_v33  ;;  %v2961_v21 = vld [vmem:[%s7725_s21 + $0x31] sm:$0xff] }
 0x2c0   : > { %v2790_v23 = vld [vmem:[#allocation2 + $0xd0] sm:$0xff]  ;;  %6999 = vmatmul.msk.f32.vlgmr.msrb.gmra.mxu2 %vm465_vm0, %v2961_v21  ;;  %v2791_v33 = vld [vmem:[#allocation2 + $0xd8] sm:$0xff]  ;;  %v2967_v21 = vld [vmem:[%s7725_s21 + $0x61] sm:$0xff] }
 0x2c1   : > { %2878 = vst [vmem:[#allocation2 + $0xa0] sm:$0xff] %v2831_v24 }
 0x2c2   : > { %v2284_v27 = vpop.f32.mrf.mxu0  ;;  %v2000_v43 = vpop.f32.mrf.mxu3 }
 0x2c3   : > { %v2285_v30 = vadd.f32 %v2284_v27, %v1985_v54  ;;  %v2639_v38 = vpop.f32.mrf.mxu1 }
 0x2c5   : > { %v2738_v32 = vadd.f32 %v2639_v38, %v2285_v30  ;;  %6918 = vmatmul.msk.f32.gmra.mxu0 %vm465_vm0, %v1689_v28  ;;  %v2405_v30 = vld [vmem:[%s7725_s21 + $0x172] sm:$0xff] }
 0x2c6   : > { %6973 = vmatmul.msk.f32.gmra.mxu1 %vm465_vm0, %v2399_v31  ;;  %v2962_v31 = vld [vmem:[%s7725_s21 + $0x39] sm:$0xff] }
 0x2c7   : > { %v2832_v39 = vadd.f32 %v2785_v34, %v2738_v32  ;;  %6877 = vmatmul.msk.f32.gmra.mxu3 %vm465_vm0, %v1751_v49  ;;  %v2906_v32 = vld [vmem:[%s7725_s21 + $0x38] sm:$0xff]  ;;  %v2792_v49 = vld [vmem:[#allocation2 + $0xe0] sm:$0xff] }
 0x2c8   : > { %7000 = vmatmul.msk.f32.gmra.mxu2 %vm465_vm0, %v2962_v31  ;;  %v2912_v31 = vld [vmem:[%s7725_s21 + $0x68] sm:$0xff] }
 0x2c9   : > { %2879 = vst [vmem:[#allocation2 + $0xa8] sm:$0xff] %v2832_v39 }
 0x2ca   : > { %v2287_v42 = vpop.f32.mrf.mxu0  ;;  %v2003_v53 = vpop.f32.mrf.mxu3 }
 0x2cb   : > { %v2288_v45 = vadd.f32 %v2287_v42, %v8421_v0  ;;  %v2642_v46 = vpop.f32.mrf.mxu1 }
 0x2cd   : > { %v2739_v48 = vadd.f32 %v2642_v46, %v2288_v45  ;;  %6919 = vmatmul.msk.f32.gmra.mxu0 %vm465_vm0, %v1690_v41  ;;  %v2406_v45 = vld [vmem:[%s7725_s21 + $0x17a] sm:$0xff] }
 0x2ce   : > { %6974 = vmatmul.msk.f32.gmra.mxu1 %vm465_vm0, %v2400_v47  ;;  %v2963_v47 = vld [vmem:[%s7725_s21 + $0x41] sm:$0xff] }
 0x2cf   : > { %v2833_v51 = vadd.f32 %v2786_v50, %v2739_v48  ;;  %6878 = vmatmul.msk.f32.gmra.mxu3 %vm465_vm0, %v1752_v58  ;;  %v2907_v48 = vld [vmem:[%s7725_s21 + $0x40] sm:$0xff]  ;;  %v2908_v58 = vld [vmem:[%s7725_s21 + $0x48] sm:$0xff] }
 0x2d0   : > { %7001 = vmatmul.msk.f32.gmra.mxu2 %vm465_vm0, %v2963_v47  ;;  %v2798_v47 = vld [vmem:[#allocation2 + $0x110] sm:$0xff] }
 0x2d1   : > { %2880 = vst [vmem:[#allocation2 + $0xb0] sm:$0xff] %v2833_v51 }
 0x2d2   : > { %v2290_v44 = vpop.f32.mrf.mxu0  ;;  %v2006_v63 = vpop.f32.mrf.mxu3 }
 0x2d3   : > { %v2291_v54 = vadd.f32 %v2290_v44, %v8430_v8  ;;  %v2645_v55 = vpop.f32.mrf.mxu1  ;;  %v1697_v44 = vld [vmem:[%s7725_s21 + $0x180] sm:$0xff] }
 0x2d5   : > { %v2740_v57 = vadd.f32 %v2645_v55, %v2291_v54  ;;  %6920 = vmatmul.msk.f32.gmra.mxu0 %vm465_vm0, %v1691_v52  ;;  %v2407_v55 = vld [vmem:[%s7725_s21 + $0x182] sm:$0xff] }
 0x2d6   : > { %6975 = vmatmul.msk.f32.gmra.mxu1 %vm465_vm0, %v2401_v56 }
 0x2d7   : > { %v2834_v60 = vadd.f32 %v2787_v59, %v2740_v57  ;;  %6879 = vmatmul.msk.f32.gmra.mxu3 %vm465_vm0, %v1753_v2  ;;  %v2964_v57 = vld [vmem:[%s7725_s21 + $0x49] sm:$0xff]  ;;  %v2965_v2 = vld [vmem:[%s7725_s21 + $0x51] sm:$0xff] }
 0x2d8   : > { %v2793_v59 = vld [vmem:[#allocation2 + $0xe8] sm:$0xff]  ;;  %7002 = vmatmul.msk.f32.gmra.mxu2 %vm465_vm0, %v2964_v57 }
 0x2d9   : > { %2881 = vst [vmem:[#allocation2 + $0xb8] sm:$0xff] %v2834_v60 }
 0x2da   : > { %v2293_v61 = vpop.f32.mrf.mxu0  ;;  %v8482_v7 = vpop.f32.mrf.mxu3 }
 0x2db   : > { %v2294_v0 = vadd.f32 %v2293_v61, %v8438_v18  ;;  %v2648_v36 = vpop.f32.mrf.mxu1 }
 0x2dd   : > { %v2741_v1 = vadd.f32 %v2648_v36, %v2294_v0  ;;  %6921 = vmatmul.msk.f32.gmra.mxu0 %vm465_vm0, %v1692_v62  ;;  %v1698_v62 = vld [vmem:[%s7725_s21 + $0x188] sm:$0xff] }
 0x2de   : > { %6976 = vmatmul.msk.f32.gmra.mxu1 %vm465_vm0, %v2402_v37  ;;  %v2408_v37 = vld [vmem:[%s7725_s21 + $0x18a] sm:$0xff] }
 0x2df   : > { %v2835_v4 = vadd.f32 %v2788_v3, %v2741_v1  ;;  %6880 = vmatmul.msk.f32.gmra.mxu3 %vm465_vm0, %v1754_v12  ;;  %v2909_v3 = vld [vmem:[%s7725_s21 + $0x50] sm:$0xff]  ;;  %v2966_v12 = vld [vmem:[%s7725_s21 + $0x59] sm:$0xff] }
 0x2e0   : > { %7003 = vmatmul.msk.f32.gmra.mxu2 %vm465_vm0, %v2965_v2 }
 0x2e1   : > { %2882 = vst [vmem:[#allocation2 + $0xc0] sm:$0xff] %v2835_v4  ;;  %v2794_v4 = vld [vmem:[#allocation2 + $0xf0] sm:$0xff] }
 0x2e2   : > { %v2296_v5 = vpop.f32.mrf.mxu0  ;;  %v8490_v17 = vpop.f32.mrf.mxu3 }
 0x2e3   : > { %v2297_v8 = vadd.f32 %v2296_v5, %v1997_v29  ;;  %v2651_v9 = vpop.f32.mrf.mxu1 }
 0x2e5   : > { %v2742_v11 = vadd.f32 %v2651_v9, %v2297_v8  ;;  %6922 = vmatmul.msk.f32.gmra.mxu0 %vm465_vm0, %v1693_v6 }
 0x2e6   : > { %6977 = vmatmul.msk.f32.gmra.mxu1 %vm465_vm0, %v2403_v10 }
 0x2e7   : > { %v2836_v14 = vadd.f32 %v2789_v13, %v2742_v11  ;;  %7046 = vmatmul.msk.f32.vlgmr.msrb.gmra.mxu3 %vm465_vm0, %v2905_v22  ;;  %v2910_v13 = vld [vmem:[%s7725_s21 + $0x58] sm:$0xff]  ;;  %v2911_v22 = vld [vmem:[%s7725_s21 + $0x60] sm:$0xff] }
 0x2e8   : > { %7004 = vmatmul.msk.f32.gmra.mxu2 %vm465_vm0, %v2966_v12 }
 0x2e9   : > { %2883 = vst [vmem:[#allocation2 + $0xc8] sm:$0xff] %v2836_v14  ;;  %v2795_v14 = vld [vmem:[#allocation2 + $0xf8] sm:$0xff] }
 0x2ea   : > { %v2299_v15 = vpop.f32.mrf.mxu0  ;;  %v8500_v27 = vpop.f32.mrf.mxu3 }
 0x2eb   : > { %v2300_v18 = vadd.f32 %v2299_v15, %v2000_v43  ;;  %v2654_v19 = vpop.f32.mrf.mxu1 }
 0x2ed   : > { %v2743_v35 = vadd.f32 %v2654_v19, %v2300_v18  ;;  %6923 = vmatmul.msk.f32.gmra.mxu0 %vm465_vm0, %v1694_v16 }
 0x2ee   : > { %6978 = vmatmul.msk.f32.gmra.mxu1 %vm465_vm0, %v2404_v20 }
 0x2ef   : > { %v2837_v24 = vadd.f32 %v2790_v23, %v2743_v35  ;;  %7047 = vmatmul.msk.f32.gmra.mxu3 %vm465_vm0, %v2906_v32  ;;  %v2796_v23 = vld [vmem:[#allocation2 + $0x100] sm:$0xff]  ;;  %v2797_v32 = vld [vmem:[#allocation2 + $0x108] sm:$0xff] }
 0x2f0   : > { %7005 = vmatmul.msk.f32.gmra.mxu2 %vm465_vm0, %v2967_v21 }
 0x2f1   : > { %2884 = vst [vmem:[#allocation2 + $0xd0] sm:$0xff] %v2837_v24 }
 0x2f2   : > { %v2302_v25 = vpop.f32.mrf.mxu0  ;;  %v8510_v42 = vpop.f32.mrf.mxu3 }
 0x2f3   : > { %v2303_v28 = vadd.f32 %v2302_v25, %v2003_v53  ;;  %v2657_v29 = vpop.f32.mrf.mxu1 }
 0x2f5   : > { %v2744_v38 = vadd.f32 %v2657_v29, %v2303_v28  ;;  %6924 = vmatmul.msk.f32.gmra.mxu0 %vm465_vm0, %v1695_v26  ;;  %v3617_v26 = vld [vmem:[%s7725_s21 + $0x42] sm:$0xff] }
 0x2f6   : > { %6979 = vmatmul.msk.f32.gmra.mxu1 %vm465_vm0, %v2405_v30 }
 0x2f7   : > { %v2838_v34 = vadd.f32 %v2791_v33, %v2744_v38  ;;  %7048 = vmatmul.msk.f32.gmra.mxu3 %vm465_vm0, %v2907_v48  ;;  %v2968_v38 = vld [vmem:[%s7725_s21 + $0x69] sm:$0xff] }
 0x2f8   : > { %7006 = vmatmul.msk.f32.gmra.mxu2 %vm465_vm0, %v2968_v38 }
 0x2f9   : > { %2885 = vst [vmem:[#allocation2 + $0xd8] sm:$0xff] %v2838_v34 }
 0x2fa   : > { %v2305_v39 = vpop.f32.mrf.mxu0  ;;  %v2021_v52 = vpop.f32.mrf.mxu3 }
 0x2fb   : > { %v2306_v41 = vadd.f32 %v2305_v39, %v2006_v63  ;;  %v2660_v43 = vpop.f32.mrf.mxu1  ;;  %v3618_v39 = vld [vmem:[%s7725_s21 + $0x4a] sm:$0xff] }
 0x2fd   : > { %v2745_v46 = vadd.f32 %v2660_v43, %v2306_v41  ;;  %6925 = vmatmul.msk.f32.gmra.mxu0 %vm465_vm0, %v1696_v40 }
 0x2fe   : > { %6980 = vmatmul.msk.f32.gmra.mxu1 %vm465_vm0, %v2406_v45  ;;  %v2969_v45 = vld [vmem:[%s7725_s21 + $0x71] sm:$0xff] }
 0x2ff   : > { %v2839_v50 = vadd.f32 %v2792_v49, %v2745_v46  ;;  %7049 = vmatmul.msk.f32.gmra.mxu3 %vm465_vm0, %v2908_v58  ;;  %v2913_v46 = vld [vmem:[%s7725_s21 + $0x70] sm:$0xff] }
 0x300   : > { %7007 = vmatmul.msk.f32.gmra.mxu2 %vm465_vm0, %v2969_v45 }
 0x301   : > { %2886 = vst [vmem:[#allocation2 + $0xe0] sm:$0xff] %v2839_v50  ;;  %v3619_v50 = vld [vmem:[%s7725_s21 + $0x52] sm:$0xff] }
 0x302   : > { %v2308_v51 = vpop.f32.mrf.mxu0  ;;  %v2024_v63 = vpop.f32.mrf.mxu3 }
 0x303   : > { %v2309_v53 = vadd.f32 %v2308_v51, %v8482_v7  ;;  %v2663_v54 = vpop.f32.mrf.mxu1  ;;  %v3615_v7 = vld [vmem:[%s7725_s21 + $0x32] sm:$0xff] }
 0x305   : > { %v2746_v56 = vadd.f32 %v2663_v54, %v2309_v53  ;;  %6926 = vmatmul.msk.f32.gmra.mxu0 %vm465_vm0, %v1697_v44  ;;  %v2970_v54 = vld [vmem:[%s7725_s21 + $0x79] sm:$0xff] }
 0x306   : > { %6981 = vmatmul.msk.f32.gmra.mxu1 %vm465_vm0, %v2407_v55  ;;  %v2914_v55 = vld [vmem:[%s7725_s21 + $0x78] sm:$0xff] }
 0x307   : > { %v2840_v60 = vadd.f32 %v2793_v59, %v2746_v56  ;;  %7050 = vmatmul.msk.f32.gmra.mxu3 %vm465_vm0, %v2909_v3  ;;  %v2799_v56 = vld [vmem:[#allocation2 + $0x118] sm:$0xff]  ;;  %v3621_v3 = vld [vmem:[%s7725_s21 + $0x62] sm:$0xff] }
 0x308   : > { %7008 = vmatmul.msk.f32.gmra.mxu2 %vm465_vm0, %v2970_v54  ;;  %v3620_v59 = vld [vmem:[%s7725_s21 + $0x5a] sm:$0xff] }
 0x309   : > { %2887 = vst [vmem:[#allocation2 + $0xe8] sm:$0xff] %v2840_v60 }
 0x30a   : > { %v2311_v61 = vpop.f32.mrf.mxu0  ;;  %v2027_v8 = vpop.f32.mrf.mxu3 }
 0x30b   : > { %v2312_v0 = vadd.f32 %v2311_v61, %v8490_v17  ;;  %v2666_v36 = vpop.f32.mrf.mxu1  ;;  %v3616_v17 = vld [vmem:[%s7725_s21 + $0x3a] sm:$0xff] }
 0x30d   : > { %v2747_v1 = vadd.f32 %v2666_v36, %v2312_v0  ;;  %6927 = vmatmul.msk.f32.gmra.mxu0 %vm465_vm0, %v1698_v62  ;;  %v2971_v0 = vld [vmem:[%s7725_s21 + $0x81] sm:$0xff] }
 0x30e   : > { %6982 = vmatmul.msk.f32.gmra.mxu1 %vm465_vm0, %v2408_v37  ;;  %v2915_v36 = vld [vmem:[%s7725_s21 + $0x80] sm:$0xff] }
 0x30f   : > { %v2841_v5 = vadd.f32 %v2794_v4, %v2747_v1  ;;  %7051 = vmatmul.msk.f32.gmra.mxu3 %vm465_vm0, %v2910_v13  ;;  %v2800_v37 = vld [vmem:[#allocation2 + $0x120] sm:$0xff]  ;;  %v3622_v13 = vld [vmem:[%s7725_s21 + $0x6a] sm:$0xff] }
 0x310   : > { %7009 = vmatmul.msk.f32.gmra.mxu2 %vm465_vm0, %v2971_v0 }
 0x311   : > { %2888 = vst [vmem:[#allocation2 + $0xf0] sm:$0xff] %v2841_v5 }
 0x312   : > { %v2314_v6 = vpop.f32.mrf.mxu0  ;;  %v2030_v18 = vpop.f32.mrf.mxu3 }
 0x313   : > { %v2315_v9 = vadd.f32 %v2314_v6, %v8500_v27  ;;  %v2669_v10 = vpop.f32.mrf.mxu1 }
 0x315   : > { %v2748_v11 = vadd.f32 %v2669_v10, %v2315_v9  ;;  %7101 = vmatmul.msk.f32.vlgmr.msra.gmra.mxu0 %vm465_vm0, %v3615_v7  ;;  %v2916_v9 = vld [vmem:[%s7725_s21 + $0x88] sm:$0xff] }
 0x316   : > { %v2801_v10 = vld [vmem:[#allocation2 + $0x128] sm:$0xff] }
 0x317   : > { %v2842_v15 = vadd.f32 %v2795_v14, %v2748_v11  ;;  %7052 = vmatmul.msk.f32.gmra.mxu3 %vm465_vm0, %v2911_v22  ;;  %v3623_v22 = vld [vmem:[%s7725_s21 + $0x72] sm:$0xff] }
 0x319   : > { %2889 = vst [vmem:[#allocation2 + $0xf8] sm:$0xff] %v2842_v15 }
 0x31a   : > { %v2317_v16 = vpop.f32.mrf.mxu0  ;;  %v2033_v27 = vpop.f32.mrf.mxu3 }
 0x31b   : > { %v2318_v19 = vadd.f32 %v2317_v16, %v8510_v42  ;;  %v2672_v20 = vpop.f32.mrf.mxu1 }
 0x31d   : > { %v2749_v35 = vadd.f32 %v2672_v20, %v2318_v19  ;;  %7102 = vmatmul.msk.f32.gmra.mxu0 %vm465_vm0, %v3616_v17  ;;  %v2917_v19 = vld [vmem:[%s7725_s21 + $0x90] sm:$0xff] }
 0x31e   : > { %v2802_v20 = vld [vmem:[#allocation2 + $0x130] sm:$0xff] }
 0x31f   : > { %v2843_v24 = vadd.f32 %v2796_v23, %v2749_v35  ;;  %7053 = vmatmul.msk.f32.gmra.mxu3 %vm465_vm0, %v2912_v31  ;;  %v3624_v31 = vld [vmem:[%s7725_s21 + $0x7a] sm:$0xff] }
 0x321   : > { %2890 = vst [vmem:[#allocation2 + $0x100] sm:$0xff] %v2843_v24 }
 0x322   : > { %v2320_v25 = vpop.f32.mrf.mxu0  ;;  %v2036_v40 = vpop.f32.mrf.mxu3 }
 0x323   : > { %v2321_v28 = vadd.f32 %v2320_v25, %v2021_v52  ;;  %v2675_v29 = vpop.f32.mrf.mxu1 }
 0x325   : > { %v2750_v30 = vadd.f32 %v2675_v29, %v2321_v28  ;;  %7103 = vmatmul.msk.f32.gmra.mxu0 %vm465_vm0, %v3617_v26  ;;  %v2918_v28 = vld [vmem:[%s7725_s21 + $0x98] sm:$0xff] }
 0x326   : > { %v2803_v29 = vld [vmem:[#allocation2 + $0x138] sm:$0xff] }
 0x327   : > { %v2844_v33 = vadd.f32 %v2797_v32, %v2750_v30  ;;  %7054 = vmatmul.msk.f32.gmra.mxu3 %vm465_vm0, %v2913_v46  ;;  %v3625_v46 = vld [vmem:[%s7725_s21 + $0x82] sm:$0xff] }
 0x329   : > { %2891 = vst [vmem:[#allocation2 + $0x108] sm:$0xff] %v2844_v33 }
 0x32a   : > { %v2323_v34 = vpop.f32.mrf.mxu0  ;;  %v2039_v51 = vpop.f32.mrf.mxu3 }
 0x32b   : > { %v2324_v42 = vadd.f32 %v2323_v34, %v2024_v63  ;;  %v2678_v41 = vpop.f32.mrf.mxu1 }
 0x32d   : > { %v2751_v43 = vadd.f32 %v2678_v41, %v2324_v42  ;;  %7104 = vmatmul.msk.f32.gmra.mxu0 %vm465_vm0, %v3618_v39  ;;  %v2919_v42 = vld [vmem:[%s7725_s21 + $0xa0] sm:$0xff] }
 0x32e   : > { %v2804_v41 = vld [vmem:[#allocation2 + $0x140] sm:$0xff] }
 0x32f   : > { %v2845_v48 = vadd.f32 %v2798_v47, %v2751_v43  ;;  %7055 = vmatmul.msk.f32.gmra.mxu3 %vm465_vm0, %v2914_v55  ;;  %v3626_v55 = vld [vmem:[%s7725_s21 + $0x8a] sm:$0xff] }
 0x331   : > { %2892 = vst [vmem:[#allocation2 + $0x110] sm:$0xff] %v2845_v48 }
 0x332   : > { %v2326_v49 = vpop.f32.mrf.mxu0  ;;  %v2042_v60 = vpop.f32.mrf.mxu3 }
 0x333   : > { %v2327_v44 = vadd.f32 %v2326_v49, %v2027_v8  ;;  %v2681_v52 = vpop.f32.mrf.mxu1  ;;  %v2972_v8 = vld [vmem:[%s7725_s21 + $0x89] sm:$0xff] }
 0x334   : > { %7010 = vmatmul.msk.f32.gmra.mxu2 %vm465_vm0, %v2972_v8 }
 0x335   : > { %v2752_v53 = vadd.f32 %v2681_v52, %v2327_v44  ;;  %7105 = vmatmul.msk.f32.gmra.mxu0 %vm465_vm0, %v3619_v50  ;;  %v2920_v44 = vld [vmem:[%s7725_s21 + $0xa8] sm:$0xff] }
 0x336   : > { %v2805_v52 = vld [vmem:[#allocation2 + $0x148] sm:$0xff] }
 0x337   : > { %v2846_v57 = vadd.f32 %v2799_v56, %v2752_v53  ;;  %7056 = vmatmul.msk.f32.gmra.mxu3 %vm465_vm0, %v2915_v36 }
 0x339   : > { %2893 = vst [vmem:[#allocation2 + $0x118] sm:$0xff] %v2846_v57 }
 0x33a   : > { %v2329_v58 = vpop.f32.mrf.mxu0  ;;  %v2045_v4 = vpop.f32.mrf.mxu3 }
 0x33b   : > { %v2330_v61 = vadd.f32 %v2329_v58, %v2030_v18  ;;  %v2684_v62 = vpop.f32.mrf.mxu1  ;;  %v2973_v18 = vld [vmem:[%s7725_s21 + $0x91] sm:$0xff] }
 0x33c   : > { %7011 = vmatmul.msk.f32.gmra.mxu2 %vm465_vm0, %v2973_v18  ;;  %v2808_v18 = vld [vmem:[#allocation2 + $0x160] sm:$0xff] }
 0x33d   : > { %v2753_v63 = vadd.f32 %v2684_v62, %v2330_v61  ;;  %7106 = vmatmul.msk.f32.gmra.mxu0 %vm465_vm0, %v3620_v59  ;;  %v2921_v61 = vld [vmem:[%s7725_s21 + $0xb0] sm:$0xff] }
 0x33e   : > { %v2806_v62 = vld [vmem:[#allocation2 + $0x150] sm:$0xff] }
 0x33f   : > { %v2847_v1 = vadd.f32 %v2800_v37, %v2753_v63  ;;  %7057 = vmatmul.msk.f32.gmra.mxu3 %vm465_vm0, %v2916_v9  ;;  %v3627_v37 = vld [vmem:[%s7725_s21 + $0x92] sm:$0xff] }
 0x341   : > { %2894 = vst [vmem:[#allocation2 + $0x120] sm:$0xff] %v2847_v1 }
 0x342   : > { %v2332_v2 = vpop.f32.mrf.mxu0  ;;  %v2048_v14 = vpop.f32.mrf.mxu3 }
 0x343   : > { %v2333_v5 = vadd.f32 %v2332_v2, %v2033_v27  ;;  %v2687_v6 = vpop.f32.mrf.mxu1  ;;  %v2974_v27 = vld [vmem:[%s7725_s21 + $0x99] sm:$0xff]  ;;  %v3175_v0 = vpop.f32.mrf.mxu2 }
 0x344   : > { %7012 = vmatmul.msk.f32.gmra.mxu2 %vm465_vm0, %v2974_v27  ;;  %v2924_v27 = vld [vmem:[%s7725_s21 + $0xc8] sm:$0xff] }
 0x345   : > { %v2754_v7 = vadd.f32 %v2687_v6, %v2333_v5  ;;  %7107 = vmatmul.msk.f32.gmra.mxu0 %vm465_vm0, %v3621_v3  ;;  %v2978_v5 = vld [vmem:[%s7725_s21 + $0xb9] sm:$0xff] }
 0x346   : > { %v2922_v6 = vld [vmem:[%s7725_s21 + $0xb8] sm:$0xff] }
 0x347   : > { %v2848_v11 = vadd.f32 %v2801_v10, %v2754_v7  ;;  %7058 = vmatmul.msk.f32.gmra.mxu3 %vm465_vm0, %v2917_v19  ;;  %v2807_v7 = vld [vmem:[#allocation2 + $0x158] sm:$0xff] }
 0x349   : > { %2895 = vst [vmem:[#allocation2 + $0x128] sm:$0xff] %v2848_v11  ;;  %v3628_v11 = vld [vmem:[%s7725_s21 + $0x9a] sm:$0xff] }
 0x34a   : > { %v2335_v12 = vpop.f32.mrf.mxu0  ;;  %v2051_v23 = vpop.f32.mrf.mxu3 }
 0x34b   : > { %v2336_v15 = vadd.f32 %v2335_v12, %v2036_v40  ;;  %v2690_v16 = vpop.f32.mrf.mxu1  ;;  %v2975_v40 = vld [vmem:[%s7725_s21 + $0xa1] sm:$0xff]  ;;  %v3178_v9 = vpop.f32.mrf.mxu2 }
 0x34c   : > { %7013 = vmatmul.msk.f32.gmra.mxu2 %vm465_vm0, %v2975_v40  ;;  %v4449_v40 = vld [vmem:[%s10293_s4 + $0x78] sm:$0xff] }
 0x34d   : > { %v2755_v17 = vadd.f32 %v2690_v16, %v2336_v15  ;;  %7108 = vmatmul.msk.f32.gmra.mxu0 %vm465_vm0, %v3622_v13  ;;  %v2979_v16 = vld [vmem:[%s7725_s21 + $0xc1] sm:$0xff]  ;;  %4450 = vmatpush.msra.mxu1 %v4449_v40 }
 0x34f   : > { %v2849_v35 = vadd.f32 %v2802_v20, %v2755_v17  ;;  %7059 = vmatmul.msk.f32.gmra.mxu3 %vm465_vm0, %v2918_v28  ;;  %v2923_v17 = vld [vmem:[%s7725_s21 + $0xc0] sm:$0xff]  ;;  %v2809_v28 = vld [vmem:[#allocation2 + $0x168] sm:$0xff] }
 0x351   : > { %2896 = vst [vmem:[#allocation2 + $0x130] sm:$0xff] %v2849_v35 }
 0x352   : > { %v2338_v21 = vpop.f32.mrf.mxu0  ;;  %v2054_v32 = vpop.f32.mrf.mxu3 }
 0x353   : > { %v2339_v24 = vadd.f32 %v2338_v21, %v2039_v51  ;;  %v2693_v25 = vpop.f32.mrf.mxu1  ;;  %v2976_v51 = vld [vmem:[%s7725_s21 + $0xa9] sm:$0xff]  ;;  %v8623_v20 = vpop.f32.mrf.mxu2 }
 0x354   : > { %7014 = vmatmul.msk.f32.gmra.mxu2 %vm465_vm0, %v2976_v51  ;;  %v3629_v21 = vld [vmem:[%s7725_s21 + $0xa2] sm:$0xff] }
 0x355   : > { %v2756_v26 = vadd.f32 %v2693_v25, %v2339_v24  ;;  %7109 = vmatmul.msk.f32.gmra.mxu0 %vm465_vm0, %v3623_v22 }
 0x357   : > { %v2850_v30 = vadd.f32 %v2803_v29, %v2756_v26  ;;  %7060 = vmatmul.msk.f32.gmra.mxu3 %vm465_vm0, %v2919_v42  ;;  %v2980_v26 = vld [vmem:[%s7725_s21 + $0xc9] sm:$0xff]  ;;  %v2981_v42 = vld [vmem:[%s7725_s21 + $0xd1] sm:$0xff] }
 0x359   : > { %2897 = vst [vmem:[#allocation2 + $0x138] sm:$0xff] %v2850_v30 }
 0x35a   : > { %v2341_v38 = vpop.f32.mrf.mxu0  ;;  %v2057_v47 = vpop.f32.mrf.mxu3 }
 0x35b   : > { %v2342_v33 = vadd.f32 %v2341_v38, %v2042_v60  ;;  %v2696_v34 = vpop.f32.mrf.mxu1  ;;  %v2977_v60 = vld [vmem:[%s7725_s21 + $0xb1] sm:$0xff]  ;;  %v8631_v30 = vpop.f32.mrf.mxu2 }
 0x35c   : > { %7015 = vmatmul.msk.f32.gmra.mxu2 %vm465_vm0, %v2977_v60 }
 0x35d   : > { %v2757_v39 = vadd.f32 %v2696_v34, %v2342_v33  ;;  %7110 = vmatmul.msk.f32.gmra.mxu0 %vm465_vm0, %v3624_v31  ;;  %v3630_v31 = vld [vmem:[%s7725_s21 + $0xaa] sm:$0xff] }
 0x35f   : > { %v2851_v43 = vadd.f32 %v2804_v41, %v2757_v39  ;;  %7061 = vmatmul.msk.f32.gmra.mxu3 %vm465_vm0, %v2920_v44  ;;  %v2925_v41 = vld [vmem:[%s7725_s21 + $0xd0] sm:$0xff]  ;;  %v8652_v44 = vld [vmem:[%s10291_s2] ss:$0 sm:$0xff] }
 0x361   : > { %2898 = vst [vmem:[#allocation2 + $0x140] sm:$0xff] %v2851_v43  ;;  %v2810_v43 = vld [vmem:[#allocation2 + $0x170] sm:$0xff] }
 0x362   : > { %v2344_v45 = vpop.f32.mrf.mxu0  ;;  %v2060_v56 = vpop.f32.mrf.mxu3 }
 0x363   : > { %v2345_v48 = vadd.f32 %v2344_v45, %v2045_v4  ;;  %v2699_v49 = vpop.f32.mrf.mxu1 }
 0x364   : > { %7016 = vmatmul.msk.f32.gmra.mxu2 %vm465_vm0, %v2978_v5 }
 0x365   : > { %v2758_v50 = vadd.f32 %v2699_v49, %v2345_v48  ;;  %7111 = vmatmul.msk.f32.gmra.mxu0 %vm465_vm0, %v3625_v46  ;;  %v3631_v49 = vld [vmem:[%s7725_s21 + $0xb2] sm:$0xff] }
 0x367   : > { %v2852_v53 = vadd.f32 %v2805_v52, %v2758_v50  ;;  %7062 = vmatmul.msk.f32.gmra.mxu3 %vm465_vm0, %v2921_v61  ;;  %v4017_v52 = vld [vmem:[#allocation2] sm:$0xff] }
 0x369   : > { %2899 = vst [vmem:[#allocation2 + $0x148] sm:$0xff] %v2852_v53 }
 0x36a   : > { %v2347_v54 = vpop.f32.mrf.mxu0  ;;  %v3474_v1 = vpop.f32.mrf.mxu3 }
 0x36b   : > { %v2348_v57 = vadd.f32 %v2347_v54, %v2048_v14  ;;  %v2702_v58 = vpop.f32.mrf.mxu1  ;;  %v3475_v46 = vadd.f32 %v3474_v1, %v3175_v0  ;;  %v8657_v54 = vld [vmem:[%s10292_s3] ss:$0 sm:$0xff] }
 0x36c   : > { %7017 = vmatmul.msk.f32.gmra.mxu2 %vm465_vm0, %v2979_v16  ;;  %v2984_v16 = vld [vmem:[%s7725_s21 + $0xe9] sm:$0xff] }
 0x36d   : > { %v2759_v59 = vadd.f32 %v2702_v58, %v2348_v57  ;;  %7112 = vmatmul.msk.f32.gmra.mxu0 %vm465_vm0, %v3626_v55  ;;  %v2982_v55 = vld [vmem:[%s7725_s21 + $0xd9] sm:$0xff] }
 0x36f   : > { %v2853_v63 = vadd.f32 %v2806_v62, %v2759_v59  ;;  %7063 = vmatmul.msk.f32.gmra.mxu3 %vm465_vm0, %v2922_v6  ;;  %v3632_v62 = vld [vmem:[%s7725_s21 + $0xba] sm:$0xff] }
 0x371   : > { %2900 = vst [vmem:[#allocation2 + $0x150] sm:$0xff] %v2853_v63 }
 0x372   : > { %v2350_v36 = vpop.f32.mrf.mxu0  ;;  %v3477_v12 = vpop.f32.mrf.mxu3 }
 0x373   : > { %v2351_v2 = vadd.f32 %v2350_v36, %v2051_v23  ;;  %v2705_v3 = vpop.f32.mrf.mxu1  ;;  %v3478_v58 = vadd.f32 %v3477_v12, %v3178_v9  ;;  %v3633_v9 = vld [vmem:[%s7725_s21 + $0xc2] sm:$0xff] }
 0x374   : > { %7018 = vmatmul.msk.f32.gmra.mxu2 %vm465_vm0, %v2980_v26  ;;  %v4020_v26 = vld [vmem:[#allocation2 + $0x18] sm:$0xff] }
 0x375   : > { %v2760_v4 = vadd.f32 %v2705_v3, %v2351_v2  ;;  %7113 = vmatmul.msk.f32.gmra.mxu0 %vm465_vm0, %v3627_v37  ;;  %v4018_v37 = vld [vmem:[#allocation2 + $0x8] sm:$0xff]  ;;  %v2927_v3 = vld [vmem:[%s7725_s21 + $0xe0] sm:$0xff] }
 0x376   : > { %v2983_v2 = vld [vmem:[%s7725_s21 + $0xe1] sm:$0xff] }
 0x377   : > { %v2854_v8 = vadd.f32 %v2807_v7, %v2760_v4  ;;  %7064 = vmatmul.msk.f32.gmra.mxu3 %vm465_vm0, %v2923_v17  ;;  %v2928_v17 = vld [vmem:[%s7725_s21 + $0xe8] sm:$0xff] }
 0x379   : > { %2901 = vst [vmem:[#allocation2 + $0x158] sm:$0xff] %v2854_v8 }
 0x37a   : > { %v2353_v10 = vpop.f32.mrf.mxu0  ;;  %v3480_v22 = vpop.f32.mrf.mxu3 }
 0x37b   : > { %v2354_v13 = vadd.f32 %v2353_v10, %v2054_v32  ;;  %v2708_v14 = vpop.f32.mrf.mxu1  ;;  %v3481_v5 = vadd.f32 %v3480_v22, %v8623_v20  ;;  %v3634_v22 = vld [vmem:[%s7725_s21 + $0xca] sm:$0xff] }
 0x37c   : > { %7019 = vmatmul.msk.f32.gmra.mxu2 %vm465_vm0, %v2981_v42 }
 0x37d   : > { %v2761_v15 = vadd.f32 %v2708_v14, %v2354_v13  ;;  %7114 = vmatmul.msk.f32.gmra.mxu0 %vm465_vm0, %v3628_v11  ;;  %v4019_v13 = vld [vmem:[#allocation2 + $0x10] sm:$0xff] }
 0x37f   : > { %v2855_v19 = vadd.f32 %v2808_v18, %v2761_v15  ;;  %7065 = vmatmul.msk.f32.gmra.mxu3 %vm465_vm0, %v2924_v27  ;;  %v4448_v15 = vld [vmem:[%s10293_s4 + $0x70] sm:$0xff] }
 0x380   : > { %4451 = vmatpush.msra.mxu1 %v4448_v15 }
 0x381   : > { %2902 = vst [vmem:[#allocation2 + $0x160] sm:$0xff] %v2855_v19 }
 0x382   : > { %v2356_v35 = vpop.f32.mrf.mxu0  ;;  %v8634_v32 = vpop.f32.mrf.mxu3 }
 0x383   : > { %v2357_v23 = vadd.f32 %v2356_v35, %v2057_v47  ;;  %v2711_v24 = vpop.f32.mrf.mxu1  ;;  %v8644_v47 = vpop.f32.mrf.mxu2  ;;  %v3484_v19 = vadd.f32 %v8634_v32, %v8631_v30 }
 0x384   : > { %7020 = vmatmul.msk.f32.gmra.mxu2 %vm465_vm0, %v2982_v55 }
 0x385   : > { %v2762_v25 = vadd.f32 %v2711_v24, %v2357_v23  ;;  %7115 = vmatmul.msk.f32.gmra.mxu0 %vm465_vm0, %v3629_v21 }
 0x387   : > { %v2856_v29 = vadd.f32 %v2809_v28, %v2762_v25  ;;  %7066 = vmatmul.msk.f32.gmra.mxu3 %vm465_vm0, %v2925_v41  ;;  %v2985_v28 = vld [vmem:[%s7725_s21 + $0xf1] sm:$0xff]  ;;  %v4021_v41 = vld [vmem:[#allocation2 + $0x20] sm:$0xff] }
 0x389   : > { %2903 = vst [vmem:[#allocation2 + $0x168] sm:$0xff] %v2856_v29  ;;  %v2929_v29 = vld [vmem:[%s7725_s21 + $0xf0] sm:$0xff] }
 0x38a   : > { %v2359_v38 = vpop.f32.mrf.mxu0  ;;  %v8647_v50 = vpop.f32.mrf.mxu3 }
 0x38b   : > { %v2360_v33 = vadd.f32 %v2359_v38, %v2060_v56  ;;  %v2714_v34 = vpop.f32.mrf.mxu1  ;;  %v2926_v56 = vld [vmem:[%s7725_s21 + $0xd8] sm:$0xff]  ;;  %v8666_v60 = vpop.f32.mrf.mxu2  ;;  %v3487_v38 = vadd.f32 %v8647_v50, %v8644_v47 }
 0x38c   : > { %7021 = vmatmul.msk.f32.gmra.mxu2 %vm465_vm0, %v2983_v2 }
 0x38d   : > { %v2763_v39 = vadd.f32 %v2714_v34, %v2360_v33  ;;  %7116 = vmatmul.msk.f32.gmra.mxu0 %vm465_vm0, %v3630_v31  ;;  %v3635_v34 = vld [vmem:[%s7725_s21 + $0xd2] sm:$0xff] }
 0x38f   : > { %v2857_v45 = vadd.f32 %v2810_v43, %v2763_v39  ;;  %7067 = vmatmul.msk.f32.gmra.mxu3 %vm465_vm0, %v2926_v56 }
 0x391   : > { %2904 = vst [vmem:[#allocation2 + $0x170] sm:$0xff] %v2857_v45  ;;  %v2986_v45 = vld [vmem:[%s7725_s21 + $0xf9] sm:$0xff] }
 0x392   : > { %v3829_v48 = vpop.f32.mrf.mxu0  ;;  %v8669_v63 = vpop.f32.mrf.mxu3 }
 0x393   : > { %v3970_v51 = vadd.f32 %v3829_v48, %v3475_v46  ;;  %v8679_v7 = vpop.f32.mrf.mxu2  ;;  %v2930_v46 = vld [vmem:[%s7725_s21 + $0xf8] sm:$0xff]  ;;  %v3490_v48 = vadd.f32 %v8669_v63, %v8666_v60  ;;  %v2987_v60 = vld [vmem:[%s7725_s21 + $0x101] sm:$0xff] }
 0x394   : > { %7022 = vmatmul.msk.f32.gmra.mxu2 %vm465_vm0, %v2984_v16 }
 0x395   : > { %v4064_v53 = vadd.f32 %v4017_v52, %v3970_v51  ;;  %7117 = vmatmul.msk.f32.gmra.mxu0 %vm465_vm0, %v3631_v49  ;;  %v3636_v52 = vld [vmem:[%s7725_s21 + $0xda] sm:$0xff] }
 0x397   : > { %v4115_v57 = vmul.f32 %v8652_v44, %v4064_v53  ;;  %7068 = vmatmul.msk.f32.gmra.mxu3 %vm465_vm0, %v2927_v3  ;;  %v3637_v3 = vld [vmem:[%s7725_s21 + $0xe2] sm:$0xff] }
 0x399   : > { %v4166_v59 = vadd.f32 %v8657_v54, %v4115_v57  ;;  %v4022_v57 = vld [vmem:[#allocation2 + $0x28] sm:$0xff] }
 0x39a   : > { %v3832_v61 = vpop.f32.mrf.mxu0  ;;  %v8682_v10 = vpop.f32.mrf.mxu3 }
 0x39b   : > { %v4213_v0 = vmax.f32 %v4166_v59, 0.0  ;;  %v3971_v36 = vadd.f32 %v3832_v61, %v3478_v58  ;;  %v8696_v35 = vpop.f32.mrf.mxu2  ;;  %v4447_v59 = vld [vmem:[%s10293_s4 + $0x68] sm:$0xff]  ;;  %v2931_v61 = vld [vmem:[%s7725_s21 + $0x100] sm:$0xff]  ;;  %v3493_v63 = vadd.f32 %v8682_v10, %v8679_v7 }
 0x39c   : > { %7023 = vmatmul.msk.f32.gmra.mxu2 %vm465_vm0, %v2985_v28  ;;  %4452 = vmatpush.msra.mxu1 %v4447_v59 }
 0x39d   : > { %4260 = vst [vmem:[#allocation2] sm:$0xff] %v4213_v0  ;;  %v4065_v1 = vadd.f32 %v4018_v37, %v3971_v36  ;;  %7118 = vmatmul.msk.f32.gmra.mxu0 %vm465_vm0, %v3632_v62 }
 0x39f   : > { %v4116_v4 = vmul.f32 %v8652_v44, %v4065_v1  ;;  %7069 = vmatmul.msk.f32.gmra.mxu3 %vm465_vm0, %v2928_v17 }
 0x3a1   : > { %v4167_v6 = vadd.f32 %v8657_v54, %v4116_v4 }
 0x3a2   : > { %v3835_v8 = vpop.f32.mrf.mxu0  ;;  %v8699_v23 = vpop.f32.mrf.mxu3 }
 0x3a3   : > { %v4214_v11 = vmax.f32 %v4167_v6, 0.0  ;;  %v3972_v12 = vadd.f32 %v3835_v8, %v3481_v5  ;;  %v8710_v32 = vpop.f32.mrf.mxu2  ;;  %v3496_v16 = vadd.f32 %v8699_v23, %v8696_v35 }
 0x3a4   : > { %7024 = vmatmul.msk.f32.gmra.mxu2 %vm465_vm0, %v2986_v45  ;;  %v2934_v45 = vld [vmem:[%s7725_s21 + $0x118] sm:$0xff] }
 0x3a5   : > { %4261 = vst [vmem:[#allocation2 + $0x8] sm:$0xff] %v4214_v11  ;;  %v4066_v14 = vadd.f32 %v4019_v13, %v3972_v12  ;;  %7119 = vmatmul.msk.f32.gmra.mxu0 %vm465_vm0, %v3633_v9  ;;  %v4023_v11 = vld [vmem:[#allocation2 + $0x30] sm:$0xff] }
 0x3a6   : > { %v2988_v13 = vld [vmem:[%s7725_s21 + $0x109] sm:$0xff] }
 0x3a7   : > { %v4117_v18 = vmul.f32 %v8652_v44, %v4066_v14  ;;  %7070 = vmatmul.msk.f32.gmra.mxu3 %vm465_vm0, %v2929_v29  ;;  %v2932_v14 = vld [vmem:[%s7725_s21 + $0x108] sm:$0xff] }
 0x3a9   : > { %v4168_v20 = vadd.f32 %v8657_v54, %v4117_v18 }
 0x3aa   : > { %v3838_v21 = vpop.f32.mrf.mxu0  ;;  %v8713_v39 = vpop.f32.mrf.mxu3 }
 0x3ab   : > { %v4215_v24 = vmax.f32 %v4168_v20, 0.0  ;;  %v3973_v25 = vadd.f32 %v3838_v21, %v3484_v19  ;;  %v8724_v50 = vpop.f32.mrf.mxu2  ;;  %v3638_v21 = vld [vmem:[%s7725_s21 + $0xea] sm:$0xff]  ;;  %v3499_v29 = vadd.f32 %v8713_v39, %v8710_v32  ;;  %v4446_v32 = vld [vmem:[%s10293_s4 + $0x60] sm:$0xff] }
 0x3ac   : > { %7025 = vmatmul.msk.f32.gmra.mxu2 %vm465_vm0, %v2987_v60  ;;  %v4307_v37 = vld [vmem:[#allocation2] ss:$2 sm:$0xff]  ;;  %v4309_v1 = vld [vmem:[#allocation2 + $0x1] ss:$2 sm:$0xff]  ;;  %4453 = vmatpush.msra.mxu1 %v4446_v32  ;;  %v2938_v32 = vld [vmem:[%s7725_s21 + $0x138] sm:$0xff] }
 0x3ad   : > { %4262 = vst [vmem:[#allocation2 + $0x10] sm:$0xff] %v4215_v24  ;;  %v4067_v27 = vadd.f32 %v4020_v26, %v3973_v25  ;;  %7120 = vmatmul.msk.f32.gmra.mxu0 %vm465_vm0, %v3634_v22  ;;  %v4314_v7 = vmax.f32 %v4307_v37, %v4309_v1  ;;  %v4024_v24 = vld [vmem:[#allocation2 + $0x38] sm:$0xff]  ;;  %v2991_v60 = vld [vmem:[%s7725_s21 + $0x121] sm:$0xff] }
 0x3ae   : > { %v2989_v26 = vld [vmem:[%s7725_s21 + $0x111] sm:$0xff]  ;;  %v2990_v39 = vld [vmem:[%s7725_s21 + $0x119] sm:$0xff]  ;;  %v3641_v37 = vld [vmem:[%s7725_s21 + $0x102] sm:$0xff] }
 0x3af   : > { %v4118_v30 = vmul.f32 %v8652_v44, %v4067_v27  ;;  %7071 = vmatmul.msk.f32.gmra.mxu3 %vm465_vm0, %v2930_v46  ;;  %v2933_v27 = vld [vmem:[%s7725_s21 + $0x110] sm:$0xff] }
 0x3b1   : > { %v4169_v31 = vadd.f32 %v8657_v54, %v4118_v30 }
 0x3b2   : > { %v3841_v33 = vpop.f32.mrf.mxu0  ;;  %v8727_v53 = vpop.f32.mrf.mxu3 }
 0x3b3   : > { %v4216_v40 = vmax.f32 %v4169_v31, 0.0  ;;  %v3974_v42 = vadd.f32 %v3841_v33, %v3487_v38  ;;  %v8741_v36 = vpop.f32.mrf.mxu2  ;;  %v3639_v33 = vld [vmem:[%s7725_s21 + $0xf2] sm:$0xff] }
 0x3b4   : > { %7026 = vmatmul.msk.f32.gmra.mxu2 %vm465_vm0, %v2988_v13 }
 0x3b5   : > { %4263 = vst [vmem:[#allocation2 + $0x18] sm:$0xff] %v4216_v40  ;;  %v4068_v43 = vadd.f32 %v4021_v41, %v3974_v42  ;;  %7121 = vmatmul.msk.f32.gmra.mxu0 %vm465_vm0, %v3635_v34  ;;  %v4025_v41 = vld [vmem:[#allocation2 + $0x40] sm:$0xff] }
 0x3b7   : > { %v4119_v47 = vmul.f32 %v8652_v44, %v4068_v43  ;;  %7072 = vmatmul.msk.f32.gmra.mxu3 %vm465_vm0, %v2931_v61 }
 0x3b9   : > { %v4170_v49 = vadd.f32 %v8657_v54, %v4119_v47  ;;  %v3502_v47 = vadd.f32 %v8727_v53, %v8724_v50  ;;  %v2935_v50 = vld [vmem:[%s7725_s21 + $0x120] sm:$0xff] }
 0x3ba   : > { %v3844_v51 = vpop.f32.mrf.mxu0  ;;  %v8744_v4 = vpop.f32.mrf.mxu3 }
 0x3bb   : > { %v4217_v55 = vmax.f32 %v4170_v49, 0.0  ;;  %v3975_v56 = vadd.f32 %v3844_v51, %v3490_v48  ;;  %v8760_v19 = vpop.f32.mrf.mxu2  ;;  %v3505_v61 = vadd.f32 %v8744_v4, %v8741_v36  ;;  %v2936_v36 = vld [vmem:[%s7725_s21 + $0x128] sm:$0xff] }
 0x3bc   : > { %7027 = vmatmul.msk.f32.gmra.mxu2 %vm465_vm0, %v2989_v26  ;;  %v3643_v26 = vld [vmem:[%s7725_s21 + $0x112] sm:$0xff] }
 0x3bd   : > { %4264 = vst [vmem:[#allocation2 + $0x20] sm:$0xff] %v4217_v55  ;;  %v4069_v58 = vadd.f32 %v4022_v57, %v3975_v56  ;;  %7122 = vmatmul.msk.f32.gmra.mxu0 %vm465_vm0, %v3636_v52  ;;  %v3640_v52 = vld [vmem:[%s7725_s21 + $0xfa] sm:$0xff] }
 0x3bf   : > { %v4120_v62 = vmul.f32 %v8652_v44, %v4069_v58  ;;  %7073 = vmatmul.msk.f32.gmra.mxu3 %vm465_vm0, %v2932_v14  ;;  %v4026_v58 = vld [vmem:[#allocation2 + $0x48] sm:$0xff] }
 0x3c1   : > { %v4171_v0 = vadd.f32 %v8657_v54, %v4120_v62 }
 0x3c2   : > { %v3847_v2 = vpop.f32.mrf.mxu0  ;;  %v8763_v22 = vpop.f32.mrf.mxu3 }
 0x3c3   : > { %v4218_v5 = vmax.f32 %v4171_v0, 0.0  ;;  %v3976_v6 = vadd.f32 %v3847_v2, %v3493_v63  ;;  %v8774_v38 = vpop.f32.mrf.mxu2 }
 0x3c4   : > { %v4311_v8 = vld [vmem:[#allocation2 + $0x18] ss:$2 sm:$0xff]  ;;  %v4313_v9 = vld [vmem:[#allocation2 + $0x19] ss:$2 sm:$0xff]  ;;  %7028 = vmatmul.msk.f32.gmra.mxu2 %vm465_vm0, %v2990_v39 }
 0x3c5   : > { %v4315_v10 = vmax.f32 %v4311_v8, %v4313_v9  ;;  %4265 = vst [vmem:[#allocation2 + $0x28] sm:$0xff] %v4218_v5  ;;  %v4070_v12 = vadd.f32 %v4023_v11, %v3976_v6  ;;  %7123 = vmatmul.msk.f32.gmra.mxu0 %vm465_vm0, %v3637_v3  ;;  %v4027_v5 = vld [vmem:[#allocation2 + $0x50] sm:$0xff]  ;;  %v3508_v9 = vadd.f32 %v8763_v22, %v8760_v19  ;;  %v4445_v19 = vld [vmem:[%s10293_s4 + $0x58] sm:$0xff] }
 0x3c6   : > { %v2992_v8 = vld [vmem:[%s7725_s21 + $0x129] sm:$0xff]  ;;  %4454 = vmatpush.msra.mxu1 %v4445_v19 }
 0x3c7   : > { %v4121_v15 = vmul.f32 %v8652_v44, %v4070_v12  ;;  %v8753_v17 = vmax.f32 %v4314_v7, %v4315_v10  ;;  %7074 = vmatmul.msk.f32.gmra.mxu3 %vm465_vm0, %v2933_v27  ;;  %v3642_v12 = vld [vmem:[%s7725_s21 + $0x10a] sm:$0xff] }
 0x3c9   : > { %v4172_v18 = vadd.f32 %v8657_v54, %v4121_v15  ;;  %4317 = vst [vmem:[#allocation7] sm:$0xff] %v8753_v17  ;;  %4410 = vrot.lane.b32.xlu0 %v8753_v17, %s7540_s29 }
 0x3ca   : > { %v3850_v20 = vpop.f32.mrf.mxu0  ;;  %v8777_v34 = vpop.f32.mrf.mxu3 }
 0x3cb   : > { %v4219_v35 = vmax.f32 %v4172_v18, 0.0  ;;  %v3977_v23 = vadd.f32 %v3850_v20, %v3496_v16  ;;  %v8791_v49 = vpop.f32.mrf.mxu2  ;;  %v4028_v16 = vld [vmem:[#allocation2 + $0x58] sm:$0xff] }
 0x3cc   : > { %7029 = vmatmul.msk.f32.gmra.mxu2 %vm465_vm0, %v2991_v60  ;;  %v2993_v20 = vld [vmem:[%s7725_s21 + $0x131] sm:$0xff]  ;;  %v2939_v60 = vld [vmem:[%s7725_s21 + $0x140] sm:$0xff] }
 0x3cd   : > { %4266 = vst [vmem:[#allocation2 + $0x30] sm:$0xff] %v4219_v35  ;;  %v4071_v25 = vadd.f32 %v4024_v24, %v3977_v23  ;;  %7124 = vmatmul.msk.f32.gmra.mxu0 %vm465_vm0, %v3638_v21  ;;  %v2937_v21 = vld [vmem:[%s7725_s21 + $0x130] sm:$0xff]  ;;  %v3511_v35 = vadd.f32 %v8777_v34, %v8774_v38 }
 0x3cf   : > { %v4122_v28 = vmul.f32 %v8652_v44, %v4071_v25  ;;  %7075 = vmatmul.msk.f32.gmra.mxu3 %vm465_vm0, %v2934_v45 }
 0x3d1   : > { %v4173_v30 = vadd.f32 %v8657_v54, %v4122_v28 }
 0x3d2   : > { %v3853_v31 = vpop.f32.mrf.mxu0  ;;  %v8794_v55 = vpop.f32.mrf.mxu3 }
 0x3d3   : > { %v4220_v40 = vmax.f32 %v4173_v30, 0.0  ;;  %v3978_v42 = vadd.f32 %v3853_v31, %v3499_v29  ;;  %v8805_v63 = vpop.f32.mrf.mxu2  ;;  %v3514_v45 = vadd.f32 %v8794_v55, %v8791_v49 }
 0x3d4   : > { %7030 = vmatmul.msk.f32.gmra.mxu2 %vm465_vm0, %v2992_v8 }
 0x3d5   : > { %4267 = vst [vmem:[#allocation2 + $0x38] sm:$0xff] %v4220_v40  ;;  %v4072_v43 = vadd.f32 %v4025_v41, %v3978_v42  ;;  %7125 = vmatmul.msk.f32.gmra.mxu0 %vm465_vm0, %v3639_v33  ;;  %v4029_v33 = vld [vmem:[#allocation2 + $0x60] sm:$0xff] }
 0x3d7   : > { %v4123_v46 = vmul.f32 %v8652_v44, %v4072_v43  ;;  %7076 = vmatmul.msk.f32.gmra.mxu3 %vm465_vm0, %v2935_v50  ;;  %v2994_v43 = vld [vmem:[%s7725_s21 + $0x139] sm:$0xff] }
 0x3d9   : > { %v4174_v48 = vadd.f32 %v8657_v54, %v4123_v46 }
 0x3da   : > { %v3856_v51 = vpop.f32.mrf.mxu0  ;;  %v8808_v1 = vpop.f32.mrf.mxu3 }
 0x3db   : > { %v4221_v56 = vmax.f32 %v4174_v48, 0.0  ;;  %v3979_v57 = vadd.f32 %v3856_v51, %v3502_v47  ;;  %v8819_v7 = vpop.f32.mrf.mxu2 }
 0x3dc   : > { %7031 = vmatmul.msk.f32.gmra.mxu2 %vm465_vm0, %v2993_v20  ;;  %v4319_v27 = vld [vmem:[#allocation2 + $0x30] ss:$2 sm:$0xff]  ;;  %v4321_v28 = vld [vmem:[#allocation2 + $0x31] ss:$2 sm:$0xff] }
 0x3dd   : > { %4268 = vst [vmem:[#allocation2 + $0x40] sm:$0xff] %v4221_v56  ;;  %v4073_v59 = vadd.f32 %v4026_v58, %v3979_v57  ;;  %7126 = vmatmul.msk.f32.gmra.mxu0 %vm465_vm0, %v3640_v52  ;;  %v4326_v34 = vmax.f32 %v4319_v27, %v4321_v28  ;;  %v3644_v52 = vld [vmem:[%s7725_s21 + $0x11a] sm:$0xff]  ;;  %v4030_v57 = vld [vmem:[#allocation2 + $0x68] sm:$0xff] }
 0x3de   : > { %v4441_v27 = vld [vmem:[%s10293_s4 + $0x38] sm:$0xff] }
 0x3df   : > { %v4124_v53 = vmul.f32 %v8652_v44, %v4073_v59  ;;  %7077 = vmatmul.msk.f32.gmra.mxu3 %vm465_vm0, %v2936_v36  ;;  %v2995_v59 = vld [vmem:[%s7725_s21 + $0x141] sm:$0xff]  ;;  %v4521_v36 = vld [vmem:[%s10294_s5 + $0x38] sm:$0xff] }
 0x3e0   : > { %4706 = vmatpush.msra.mxu3 %v4521_v36 }
 0x3e1   : > { %v4175_v62 = vadd.f32 %v8657_v54, %v4124_v53  ;;  %v3517_v53 = vadd.f32 %v8808_v1, %v8805_v63  ;;  %v4444_v63 = vld [vmem:[%s10293_s4 + $0x50] sm:$0xff]  ;;  %v7155_v1 = vld [vmem:[%s10294_s5 + $0x78] sm:$0xff] }
 0x3e2   : > { %v3859_v0 = vpop.f32.mrf.mxu0  ;;  %v8822_v13 = vpop.f32.mrf.mxu3  ;;  %4455 = vmatpush.msra.mxu1 %v4444_v63  ;;  %4599 = vmatpush.msra.mxu2 %v7155_v1  ;;  %v3649_v1 = vld [vmem:[%s7725_s21 + $0x142] sm:$0xff] }
 0x3e3   : > { %v4222_v2 = vmax.f32 %v4175_v62, 0.0  ;;  %v3980_v3 = vadd.f32 %v3859_v0, %v3505_v61  ;;  %v8836_v24 = vpop.f32.mrf.mxu2 }
 0x3e4   : > { %7032 = vmatmul.msk.f32.gmra.mxu2 %vm465_vm0, %v2994_v43  ;;  %v2998_v43 = vld [vmem:[%s7725_s21 + $0x159] sm:$0xff] }
 0x3e5   : > { %4269 = vst [vmem:[#allocation2 + $0x48] sm:$0xff] %v4222_v2  ;;  %v4074_v6 = vadd.f32 %v4027_v5, %v3980_v3  ;;  %7127 = vmatmul.msk.f32.gmra.mxu0 %vm465_vm0, %v3641_v37  ;;  %v3645_v37 = vld [vmem:[%s7725_s21 + $0x122] sm:$0xff] }
 0x3e7   : > { %v4125_v4 = vmul.f32 %v8652_v44, %v4074_v6  ;;  %7078 = vmatmul.msk.f32.gmra.mxu3 %vm465_vm0, %v2937_v21  ;;  %v4031_v6 = vld [vmem:[#allocation2 + $0x70] sm:$0xff] }
 0x3e9   : > { %v4176_v11 = vadd.f32 %v8657_v54, %v4125_v4  ;;  %v2996_v4 = vld [vmem:[%s7725_s21 + $0x149] sm:$0xff] }
 0x3ea   : > { %v3862_v10 = vpop.f32.mrf.mxu0  ;;  %v8839_v29 = vpop.f32.mrf.mxu3 }
 0x3eb   : > { %v4223_v14 = vmax.f32 %v4176_v11, 0.0  ;;  %v3981_v15 = vadd.f32 %v3862_v10, %v3508_v9  ;;  %v8855_v48 = vpop.f32.mrf.mxu2  ;;  %v2940_v9 = vld [vmem:[%s7725_s21 + $0x148] sm:$0xff]  ;;  %v3520_v10 = vadd.f32 %v8822_v13, %v8819_v7  ;;  %v4032_v13 = vld [vmem:[#allocation2 + $0x78] sm:$0xff] }
 0x3ec   : > { %7033 = vmatmul.msk.f32.gmra.mxu2 %vm465_vm0, %v2995_v59  ;;  %v4443_v7 = vld [vmem:[%s10293_s4 + $0x48] sm:$0xff] }
 0x3ed   : > { %4270 = vst [vmem:[#allocation2 + $0x50] sm:$0xff] %v4223_v14  ;;  %v4075_v18 = vadd.f32 %v4028_v16, %v3981_v15  ;;  %7128 = vmatmul.msk.f32.gmra.mxu0 %vm465_vm0, %v3642_v12  ;;  %v3646_v16 = vld [vmem:[%s7725_s21 + $0x12a] sm:$0xff]  ;;  %4456 = vmatpush.msra.mxu1 %v4443_v7 }
 0x3ee   : > { %v2944_v7 = vld [vmem:[%s7725_s21 + $0x168] sm:$0xff] }
 0x3ef   : > { %v4126_v22 = vmul.f32 %v8652_v44, %v4075_v18  ;;  %7079 = vmatmul.msk.f32.gmra.mxu3 %vm465_vm0, %v2938_v32  ;;  %v2942_v32 = vld [vmem:[%s7725_s21 + $0x158] sm:$0xff] }
 0x3f1   : > { %v4177_v23 = vadd.f32 %v8657_v54, %v4126_v22  ;;  %v2997_v22 = vld [vmem:[%s7725_s21 + $0x151] sm:$0xff] }
 0x3f2   : > { %v3865_v25 = vpop.f32.mrf.mxu0  ;;  %v8858_v56 = vpop.f32.mrf.mxu3 }
 0x3f3   : > { %v4224_v30 = vmax.f32 %v4177_v23, 0.0  ;;  %v3982_v31 = vadd.f32 %v3865_v25, %v3511_v35  ;;  %v8869_v62 = vpop.f32.mrf.mxu2  ;;  %v2941_v35 = vld [vmem:[%s7725_s21 + $0x150] sm:$0xff]  ;;  %v4442_v23 = vld [vmem:[%s10293_s4 + $0x40] sm:$0xff] }
 0x3f4   : > { %v4323_v40 = vld [vmem:[#allocation2 + $0x48] ss:$2 sm:$0xff]  ;;  %v4325_v42 = vld [vmem:[#allocation2 + $0x49] ss:$2 sm:$0xff]  ;;  %7034 = vmatmul.msk.f32.gmra.mxu2 %vm465_vm0, %v2996_v4  ;;  %4457 = vmatpush.msra.mxu1 %v4442_v23 }
 0x3f5   : > { %4271 = vst [vmem:[#allocation2 + $0x58] sm:$0xff] %v4224_v30  ;;  %v4076_v38 = vadd.f32 %v4029_v33, %v3982_v31  ;;  %7129 = vmatmul.msk.f32.gmra.mxu0 %vm465_vm0, %v3643_v26  ;;  %v4327_v41 = vmax.f32 %v4323_v40, %v4325_v42  ;;  %v3523_v26 = vadd.f32 %v8839_v29, %v8836_v24  ;;  %v4440_v24 = vld [vmem:[%s10293_s4 + $0x30] sm:$0xff] }
 0x3f6   : > { %4458 = vmatpush.msra.mxu1 %v4441_v27  ;;  %v3647_v31 = vld [vmem:[%s7725_s21 + $0x132] sm:$0xff] }
 0x3f7   : > { %v4127_v39 = vmul.f32 %v8652_v44, %v4076_v38  ;;  %v8848_v46 = vmax.f32 %v4326_v34, %v4327_v41  ;;  %7080 = vmatmul.msk.f32.gmra.mxu3 %vm465_vm0, %v2939_v60  ;;  %v4439_v38 = vld [vmem:[%s10293_s4 + $0x28] sm:$0xff]  ;;  %v4033_v34 = vld [vmem:[#allocation2 + $0x80] sm:$0xff] }
 0x3f8   : > { %4459 = vmatpush.msra.mxu1 %v4440_v24  ;;  %v4435_v60 = vld [vmem:[%s10293_s4 + $0x8] sm:$0xff] }
 0x3f9   : > { %v4178_v47 = vadd.f32 %v8657_v54, %v4127_v39  ;;  %4329 = vst [vmem:[#allocation7 + $0x8] sm:$0xff] %v8848_v46  ;;  %4412 = vrot.lane.b32.xlu0 %v8848_v46, %s7540_s29  ;;  %v4438_v39 = vld [vmem:[%s10293_s4 + $0x20] sm:$0xff] }
 0x3fa   : > { %v3868_v51 = vpop.f32.mrf.mxu0  ;;  %v8872_v2 = vpop.f32.mrf.mxu3  ;;  %4460 = vmatpush.msra.mxu1 %v4439_v38 }
 0x3fb   : > { %v4225_v49 = vmax.f32 %v4178_v47, 0.0  ;;  %v3983_v55 = vadd.f32 %v3868_v51, %v3514_v45  ;;  %v8892_v14 = vpop.f32.mrf.mxu2  ;;  %v3526_v47 = vadd.f32 %v8858_v56, %v8855_v48  ;;  %v4437_v51 = vld [vmem:[%s10293_s4 + $0x18] sm:$0xff]  ;;  %v4436_v48 = vld [vmem:[%s10293_s4 + $0x10] sm:$0xff] }
 0x3fc   : > { %7035 = vmatmul.msk.f32.gmra.mxu2 %vm465_vm0, %v2997_v22  ;;  %4461 = vmatpush.msra.mxu1 %v4438_v39 }
 0x3fd   : > { %4272 = vst [vmem:[#allocation2 + $0x60] sm:$0xff] %v4225_v49  ;;  %v4077_v58 = vadd.f32 %v4030_v57, %v3983_v55  ;;  %7130 = vmatmul.msk.f32.gmra.mxu0 %vm465_vm0, %v3644_v52  ;;  %v3648_v55 = vld [vmem:[%s7725_s21 + $0x13a] sm:$0xff] }
 0x3fe   : > { %4462 = vmatpush.msra.mxu1 %v4437_v51  ;;  %v4520_v51 = vld [vmem:[%s10294_s5 + $0x30] sm:$0xff] }
 0x3ff   : > { %v4128_v50 = vmul.f32 %v8652_v44, %v4077_v58  ;;  %7081 = vmatmul.msk.f32.gmra.mxu3 %vm465_vm0, %v2940_v9 }
 0x400   : > { %4463 = vmatpush.msra.mxu1 %v4436_v48  ;;  %4707 = vmatpush.msra.mxu3 %v4520_v51  ;;  %v2946_v48 = vld [vmem:[%s7725_s21 + $0x178] sm:$0xff] }
 0x401   : > { %v4179_v61 = vadd.f32 %v8657_v54, %v4128_v50  ;;  %v4034_v50 = vld [vmem:[#allocation2 + $0x88] sm:$0xff] }
 0x402   : > { %v3871_v0 = vpop.f32.mrf.mxu0  ;;  %v8895_v18 = vpop.f32.mrf.mxu3  ;;  %4464 = vmatpush.msra.mxu1 %v4435_v60 }
 0x403   : > { %v4226_v3 = vmax.f32 %v4179_v61, 0.0  ;;  %v3984_v5 = vadd.f32 %v3871_v0, %v3517_v53  ;;  %v8915_v30 = vpop.f32.mrf.mxu2  ;;  %v2999_v61 = vld [vmem:[%s7725_s21 + $0x161] sm:$0xff] }
 0x404   : > { %7036 = vmatmul.msk.f32.gmra.mxu2 %vm465_vm0, %v2998_v43  ;;  %v2943_v0 = vld [vmem:[%s7725_s21 + $0x160] sm:$0xff]  ;;  %v3651_v43 = vld [vmem:[%s7725_s21 + $0x152] sm:$0xff] }
 0x405   : > { %4273 = vst [vmem:[#allocation2 + $0x68] sm:$0xff] %v4226_v3  ;;  %v4078_v8 = vadd.f32 %v4031_v6, %v3984_v5  ;;  %7131 = vmatmul.msk.f32.gmra.mxu0 %vm465_vm0, %v3645_v37  ;;  %v4434_v37 = vld [vmem:[%s10293_s4] sm:$0xff]  ;;  %v3529_v5 = vadd.f32 %v8872_v2, %v8869_v62  ;;  %v4035_v62 = vld [vmem:[#allocation2 + $0x90] sm:$0xff] }
 0x406   : > { %4465 = vmatpush.msra.mxu1 %v4434_v37 }
 0x407   : > { %v4129_v11 = vmul.f32 %v8652_v44, %v4078_v8  ;;  %7082 = vmatmul.msk.f32.gmra.mxu3 %vm465_vm0, %v2941_v35 }
 0x409   : > { %v4180_v12 = vadd.f32 %v8657_v54, %v4129_v11 }
 0x40a   : > { %v3874_v15 = vpop.f32.mrf.mxu0  ;;  %v8921_v33 = vpop.f32.mrf.mxu3 }
 0x40b   : > { %v4227_v19 = vmax.f32 %v4180_v12, 0.0  ;;  %v3985_v20 = vadd.f32 %v3874_v15, %v3520_v10  ;;  %v8941_v49 = vpop.f32.mrf.mxu2 }
 0x40c   : > { %7037 = vmatmul.msk.f32.gmra.mxu2 %vm465_vm0, %v2999_v61  ;;  %v4331_v36 = vld [vmem:[#allocation2 + $0x60] ss:$2 sm:$0xff]  ;;  %v4333_v4 = vld [vmem:[#allocation2 + $0x61] ss:$2 sm:$0xff] }
 0x40d   : > { %4274 = vst [vmem:[#allocation2 + $0x70] sm:$0xff] %v4227_v19  ;;  %v4079_v21 = vadd.f32 %v4032_v13, %v3985_v20  ;;  %7132 = vmatmul.msk.f32.gmra.mxu0 %vm465_vm0, %v3646_v16  ;;  %v4338_v16 = vmax.f32 %v4331_v36, %v4333_v4  ;;  %v3000_v20 = vld [vmem:[%s7725_s21 + $0x169] sm:$0xff] }
 0x40f   : > { %v4130_v25 = vmul.f32 %v8652_v44, %v4079_v21  ;;  %7083 = vmatmul.msk.f32.gmra.mxu3 %vm465_vm0, %v2942_v32  ;;  %v3532_v21 = vadd.f32 %v8895_v18, %v8892_v14 }
 0x411   : > { %v4181_v28 = vadd.f32 %v8657_v54, %v4130_v25 }
 0x412   : > { %v3877_v29 = vpop.f32.mrf.mxu0  ;;  %v8947_v57 = vpop.f32.mrf.mxu3 }
 0x413   : > { %v4228_v40 = vmax.f32 %v4181_v28, 0.0  ;;  %v3986_v42 = vadd.f32 %v3877_v29, %v3523_v26  ;;  %v8964_v8 = vpop.f32.mrf.mxu2  ;;  %v3650_v26 = vld [vmem:[%s7725_s21 + $0x14a] sm:$0xff]  ;;  %v4036_v28 = vld [vmem:[#allocation2 + $0x98] sm:$0xff] }
 0x414   : > { %7038 = vmatmul.msk.f32.gmra.mxu2 %vm465_vm0, %v3000_v20  ;;  %v3001_v29 = vld [vmem:[%s7725_s21 + $0x171] sm:$0xff] }
 0x415   : > { %4275 = vst [vmem:[#allocation2 + $0x78] sm:$0xff] %v4228_v40  ;;  %v4080_v41 = vadd.f32 %v4033_v34, %v3986_v42  ;;  %7133 = vmatmul.msk.f32.gmra.mxu0 %vm465_vm0, %v3647_v31  ;;  %v2945_v31 = vld [vmem:[%s7725_s21 + $0x170] sm:$0xff]  ;;  %v3535_v42 = vadd.f32 %v8921_v33, %v8915_v30 }
 0x416   : > { %v7154_v33 = vld [vmem:[%s10294_s5 + $0x70] sm:$0xff] }
 0x417   : > { %v4131_v45 = vmul.f32 %v8652_v44, %v4080_v41  ;;  %7084 = vmatmul.msk.f32.gmra.mxu3 %vm465_vm0, %v2943_v0  ;;  %4600 = vmatpush.msra.mxu2 %v7154_v33 }
 0x419   : > { %v4182_v52 = vadd.f32 %v8657_v54, %v4131_v45 }
 0x41a   : > { %v3880_v56 = vpop.f32.mrf.mxu0  ;;  %v8967_v9 = vpop.f32.mrf.mxu3 }
 0x41b   : > { %v4229_v58 = vmax.f32 %v4182_v52, 0.0  ;;  %v3987_v59 = vadd.f32 %v3880_v56, %v3526_v47  ;;  %v8982_v23 = vpop.f32.mrf.mxu2  ;;  %v4037_v47 = vld [vmem:[#allocation2 + $0xa0] sm:$0xff] }
 0x41c   : > { %7039 = vmatmul.msk.f32.gmra.mxu2 %vm465_vm0, %v3001_v29  ;;  %v3002_v52 = vld [vmem:[%s7725_s21 + $0x179] sm:$0xff] }
 0x41d   : > { %4276 = vst [vmem:[#allocation2 + $0x80] sm:$0xff] %v4229_v58  ;;  %v4081_v53 = vadd.f32 %v4034_v50, %v3987_v59  ;;  %7134 = vmatmul.msk.f32.gmra.mxu0 %vm465_vm0, %v3648_v55  ;;  %v3538_v55 = vadd.f32 %v8947_v57, %v8941_v49  ;;  %v3652_v50 = vld [vmem:[%s7725_s21 + $0x15a] sm:$0xff] }
 0x41f   : > { %v4132_v3 = vmul.f32 %v8652_v44, %v4081_v53  ;;  %7085 = vmatmul.msk.f32.gmra.mxu3 %vm465_vm0, %v2944_v7 }
 0x421   : > { %v4183_v6 = vadd.f32 %v8657_v54, %v4132_v3  ;;  %v4038_v3 = vld [vmem:[#allocation2 + $0xa8] sm:$0xff] }
 0x422   : > { %v3883_v63 = vpop.f32.mrf.mxu0  ;;  %v8985_v27 = vpop.f32.mrf.mxu3 }
 0x423   : > { %v4230_v11 = vmax.f32 %v4183_v6, 0.0  ;;  %v3988_v10 = vadd.f32 %v3883_v63, %v3529_v5  ;;  %v8996_v34 = vpop.f32.mrf.mxu2  ;;  %v3003_v5 = vld [vmem:[%s7725_s21 + $0x181] sm:$0xff] }
 0x424   : > { %v4335_v2 = vld [vmem:[#allocation2 + $0x78] ss:$2 sm:$0xff]  ;;  %v4337_v12 = vld [vmem:[#allocation2 + $0x79] ss:$2 sm:$0xff]  ;;  %7040 = vmatmul.msk.f32.gmra.mxu2 %vm465_vm0, %v3002_v52 }
 0x425   : > { %4277 = vst [vmem:[#allocation2 + $0x88] sm:$0xff] %v4230_v11  ;;  %v4082_v15 = vadd.f32 %v4035_v62, %v3988_v10  ;;  %7135 = vmatmul.msk.f32.gmra.mxu0 %vm465_vm0, %v3649_v1  ;;  %v4339_v19 = vmax.f32 %v4335_v2, %v4337_v12  ;;  %v2947_v6 = vld [vmem:[%s7725_s21 + $0x180] sm:$0xff]  ;;  %v3541_v1 = vadd.f32 %v8967_v9, %v8964_v8  ;;  %v4039_v12 = vld [vmem:[#allocation2 + $0xb0] sm:$0xff]  ;;  %v2948_v9 = vld [vmem:[%s7725_s21 + $0x188] sm:$0xff] }
 0x426   : > { %v3653_v11 = vld [vmem:[%s7725_s21 + $0x162] sm:$0xff]  ;;  %v3006_v52 = vld [vmem:[%s7725_s21 + $0x199] sm:$0xff] }
 0x427   : > { %v4133_v13 = vmul.f32 %v8652_v44, %v4082_v15  ;;  %v8975_v22 = vmax.f32 %v4338_v16, %v4339_v19  ;;  %7086 = vmatmul.msk.f32.gmra.mxu3 %vm465_vm0, %v2945_v31  ;;  %v3004_v8 = vld [vmem:[%s7725_s21 + $0x189] sm:$0xff]  ;;  %v3544_v19 = vadd.f32 %v8985_v27, %v8982_v23  ;;  %v3005_v23 = vld [vmem:[%s7725_s21 + $0x191] sm:$0xff] }
 0x428   : > { %v2949_v27 = vld [vmem:[%s7725_s21 + $0x190] sm:$0xff] }
 0x429   : > { %v4184_v35 = vadd.f32 %v8657_v54, %v4133_v13  ;;  %4414 = vrot.lane.b32.xlu1 %v8975_v22, %s7540_s29 }
 0x42a   : > { %v3886_v25 = vpop.f32.mrf.mxu0  ;;  %v8999_v32 = vpop.f32.mrf.mxu3 }
 0x42b   : > { %v4231_v14 = vmax.f32 %v4184_v35, 0.0  ;;  %v3989_v18 = vadd.f32 %v3886_v25, %v3532_v21  ;;  %v9016_v59 = vpop.f32.mrf.mxu2  ;;  %v3654_v21 = vld [vmem:[%s7725_s21 + $0x16a] sm:$0xff] }
 0x42c   : > { %7041 = vmatmul.msk.f32.gmra.mxu2 %vm465_vm0, %v3003_v5  ;;  %v2951_v5 = vld [vmem:[%s7725_s21 + $0x1a0] sm:$0xff] }
 0x42d   : > { %4278 = vst [vmem:[#allocation2 + $0x90] sm:$0xff] %v4231_v14  ;;  %v4083_v24 = vadd.f32 %v4036_v28, %v3989_v18  ;;  %7136 = vmatmul.msk.f32.gmra.mxu0 %vm465_vm0, %v3650_v26  ;;  %v4040_v14 = vld [vmem:[#allocation2 + $0xb8] sm:$0xff] }
 0x42f   : > { %v4134_v40 = vmul.f32 %v8652_v44, %v4083_v24  ;;  %7087 = vmatmul.msk.f32.gmra.mxu3 %vm465_vm0, %v2946_v48  ;;  %v3547_v24 = vadd.f32 %v8999_v32, %v8996_v34  ;;  %v2950_v48 = vld [vmem:[%s7725_s21 + $0x198] sm:$0xff] }
 0x431   : > { %v4185_v38 = vadd.f32 %v8657_v54, %v4134_v40 }
 0x432   : > { %v3889_v41 = vpop.f32.mrf.mxu0  ;;  %v9019_v53 = vpop.f32.mrf.mxu3 }
 0x433   : > { %v4232_v39 = vmax.f32 %v4185_v38, 0.0  ;;  %v3990_v45 = vadd.f32 %v3889_v41, %v3535_v42  ;;  %v9031_v36 = vpop.f32.mrf.mxu2  ;;  %v3655_v42 = vld [vmem:[%s7725_s21 + $0x172] sm:$0xff] }
 0x434   : > { %7042 = vmatmul.msk.f32.gmra.mxu2 %vm465_vm0, %v3004_v8 }
 0x435   : > { %4279 = vst [vmem:[#allocation2 + $0x98] sm:$0xff] %v4232_v39  ;;  %v4084_v30 = vadd.f32 %v4037_v47, %v3990_v45  ;;  %7137 = vmatmul.msk.f32.gmra.mxu0 %vm465_vm0, %v3651_v43  ;;  %v4041_v47 = vld [vmem:[#allocation2 + $0xc0] sm:$0xff] }
 0x437   : > { %v4135_v56 = vmul.f32 %v8652_v44, %v4084_v30  ;;  %7088 = vmatmul.msk.f32.gmra.mxu3 %vm465_vm0, %v2947_v6 }
 0x439   : > { %v4186_v58 = vadd.f32 %v8657_v54, %v4135_v56 }
 0x43a   : > { %v3892_v60 = vpop.f32.mrf.mxu0  ;;  %v9034_v10 = vpop.f32.mrf.mxu3 }
 0x43b   : > { %v4233_v61 = vmax.f32 %v4186_v58, 0.0  ;;  %v3991_v0 = vadd.f32 %v3892_v60, %v3538_v55  ;;  %v4411_v37 = vpop.permute.xlu0 %4410  ;;  %v9045_v7 = vpop.f32.mrf.mxu2  ;;  %v3550_v55 = vadd.f32 %v9019_v53, %v9016_v59 }
 0x43c   : > { %v4426_v49 = vmax.f32 %v8753_v17, %v4411_v37  ;;  %7043 = vmatmul.msk.f32.gmra.mxu2 %vm465_vm0, %v3005_v23  ;;  %v4343_v38 = vld [vmem:[#allocation2 + $0x90] ss:$2 sm:$0xff]  ;;  %v4345_v41 = vld [vmem:[#allocation2 + $0x91] ss:$2 sm:$0xff] }
 0x43d   : > { %4280 = vst [vmem:[#allocation2 + $0xa0] sm:$0xff] %v4233_v61  ;;  %v4085_v57 = vadd.f32 %v4038_v3, %v3991_v0  ;;  %7138 = vmatmul.msk.f32.gmra.mxu0 %vm465_vm0, %v3652_v50  ;;  %v4350_v33 = vmax.f32 %v4343_v38, %v4345_v41  ;;  %v3656_v0 = vld [vmem:[%s7725_s21 + $0x17a] sm:$0xff]  ;;  %v4042_v3 = vld [vmem:[#allocation2 + $0xc8] sm:$0xff] }
 0x43e   : > { %4466 = vmatmul.f32.vlgmr.msra.gmra.mxu1 %v4426_v49  ;;  %v4044_v23 = vld [vmem:[#allocation2 + $0xd8] sm:$0xff] }
 0x43f   : > { %v4136_v63 = vmul.f32 %v8652_v44, %v4085_v57  ;;  %7089 = vmatmul.msk.f32.gmra.mxu3 %vm465_vm0, %v2948_v9  ;;  %v3007_v57 = vld [vmem:[%s7725_s21 + $0x1a1] sm:$0xff] }
 0x441   : > { %v4187_v17 = vadd.f32 %v8657_v54, %v4136_v63  ;;  %v3553_v63 = vadd.f32 %v9034_v10, %v9031_v36  ;;  %v9100_v36 = vld [vmem:[%s10291_s2] ss:$0 sm:$0xff] }
 0x442   : > { %v3895_v4 = vpop.f32.mrf.mxu0  ;;  %v9048_v35 = vpop.f32.mrf.mxu3 }
 0x443   : > { %v4234_v62 = vmax.f32 %v4187_v17, 0.0  ;;  %v3992_v2 = vadd.f32 %v3895_v4, %v3541_v1  ;;  %v9059_v31 = vpop.f32.mrf.mxu2  ;;  %v3556_v9 = vadd.f32 %v9048_v35, %v9045_v7 }
 0x444   : > { %7044 = vmatmul.msk.f32.gmra.mxu2 %vm465_vm0, %v3006_v52 }
 0x445   : > { %4281 = vst [vmem:[#allocation2 + $0xa8] sm:$0xff] %v4234_v62  ;;  %v4086_v15 = vadd.f32 %v4039_v12, %v3992_v2  ;;  %7139 = vmatmul.msk.f32.gmra.mxu0 %vm465_vm0, %v3653_v11  ;;  %v3657_v11 = vld [vmem:[%s7725_s21 + $0x182] sm:$0xff] }
 0x447   : > { %v4137_v16 = vmul.f32 %v8652_v44, %v4086_v15  ;;  %7090 = vmatmul.msk.f32.gmra.mxu3 %vm465_vm0, %v2949_v27  ;;  %v4043_v15 = vld [vmem:[#allocation2 + $0xd0] sm:$0xff] }
 0x449   : > { %v4188_v20 = vadd.f32 %v8657_v54, %v4137_v16  ;;  %v9108_v16 = vld [vmem:[%s10292_s3] ss:$0 sm:$0xff] }
 0x44a   : > { %v3898_v13 = vpop.f32.mrf.mxu0  ;;  %v9062_v43 = vpop.f32.mrf.mxu3 }
 0x44b   : > { %v4235_v25 = vmax.f32 %v4188_v20, 0.0  ;;  %v3993_v26 = vadd.f32 %v3898_v13, %v3544_v19  ;;  %v9077_v50 = vpop.f32.mrf.mxu2 }
 0x44c   : > { %7045 = vmatmul.msk.f32.gmra.mxu2 %vm465_vm0, %v3007_v57  ;;  %v4047_v57 = vld [vmem:[#allocation2 + $0xf0] sm:$0xff] }
 0x44d   : > { %4282 = vst [vmem:[#allocation2 + $0xb0] sm:$0xff] %v4235_v25  ;;  %v4087_v18 = vadd.f32 %v4040_v14, %v3993_v26  ;;  %7140 = vmatmul.msk.f32.gmra.mxu0 %vm465_vm0, %v3654_v21  ;;  %v3658_v21 = vld [vmem:[%s7725_s21 + $0x18a] sm:$0xff] }
 0x44f   : > { %v4138_v28 = vmul.f32 %v8652_v44, %v4087_v18  ;;  %7091 = vmatmul.msk.f32.gmra.mxu3 %vm465_vm0, %v2950_v48  ;;  %v4046_v48 = vld [vmem:[#allocation2 + $0xe8] sm:$0xff] }
 0x451   : > { %v4189_v29 = vadd.f32 %v8657_v54, %v4138_v28  ;;  %v3559_v28 = vadd.f32 %v9062_v43, %v9059_v31 }
 0x452   : > { %v3901_v40 = vpop.f32.mrf.mxu0  ;;  %v3561_v37 = vpop.f32.mrf.mxu3 }
 0x453   : > { %v4236_v39 = vmax.f32 %v4189_v29, 0.0  ;;  %v3994_v45 = vadd.f32 %v3901_v40, %v3547_v24  ;;  %v3265_v17 = vpop.f32.mrf.mxu2  ;;  %v3562_v31 = vadd.f32 %v3561_v37, %v9077_v50 }
 0x454   : > { %v4347_v34 = vld [vmem:[#allocation2 + $0xa8] ss:$2 sm:$0xff]  ;;  %v4349_v32 = vld [vmem:[#allocation2 + $0xa9] ss:$2 sm:$0xff] }
 0x455   : > { %4283 = vst [vmem:[#allocation2 + $0xb8] sm:$0xff] %v4236_v39  ;;  %v4088_v30 = vadd.f32 %v4041_v47, %v3994_v45  ;;  %7141 = vmatmul.msk.f32.gmra.mxu0 %vm465_vm0, %v3655_v42  ;;  %v4351_v51 = vmax.f32 %v4347_v34, %v4349_v32  ;;  %v3659_v42 = vld [vmem:[%s7725_s21 + $0x192] sm:$0xff]  ;;  %v4045_v39 = vld [vmem:[#allocation2 + $0xe0] sm:$0xff] }
 0x457   : > { %v4139_v56 = vmul.f32 %v8652_v44, %v4088_v30  ;;  %v9070_v58 = vmax.f32 %v4350_v33, %v4351_v51  ;;  %7092 = vmatmul.msk.f32.gmra.mxu3 %vm465_vm0, %v2951_v5  ;;  %v3660_v30 = vld [vmem:[%s7725_s21 + $0x19a] sm:$0xff] }
 0x459   : > { %v4190_v60 = vadd.f32 %v8657_v54, %v4139_v56  ;;  %4416 = vrot.lane.b32.xlu1 %v9070_v58, %s7540_s29 }
 0x45a   : > { %v3904_v61 = vpop.f32.mrf.mxu0  ;;  %v3564_v62 = vpop.f32.mrf.mxu3 }
 0x45b   : > { %v4237_v59 = vmax.f32 %v4190_v60, 0.0  ;;  %v3995_v53 = vadd.f32 %v3904_v61, %v3550_v55  ;;  %v3268_v20 = vpop.f32.mrf.mxu2  ;;  %v3565_v60 = vadd.f32 %v3564_v62, %v3265_v17 }
 0x45d   : > { %4284 = vst [vmem:[#allocation2 + $0xc0] sm:$0xff] %v4237_v59  ;;  %v4089_v49 = vadd.f32 %v4042_v3, %v3995_v53  ;;  %7142 = vmatmul.msk.f32.gmra.mxu0 %vm465_vm0, %v3656_v0  ;;  %v3661_v0 = vld [vmem:[%s7725_s21 + $0x1a2] sm:$0xff]  ;;  %s6599_s21 = sshll.u32 %s459_s22, 4  ;;  %s6600_s21 = int_to_ptr.vmem [resolvable:$true] %s6599_s21 }
 0x45f   : > { %v4140_v6 = vmul.f32 %v8652_v44, %v4089_v49  ;;  %v7153_v44 = vld [vmem:[%s10294_s5 + $0x68] sm:$0xff] }
 0x460   : > { %4601 = vmatpush.msra.mxu2 %v7153_v44 }
 0x461   : > { %v4191_v1 = vadd.f32 %v8657_v54, %v4140_v6  ;;  %v4519_v54 = vld [vmem:[%s10294_s5 + $0x28] sm:$0xff] }
 0x462   : > { %v3907_v4 = vpop.f32.mrf.mxu0  ;;  %4708 = vmatpush.msra.mxu3 %v4519_v54  ;;  %v3567_v25 = vpop.f32.mrf.mxu3  ;;  %v7152_v54 = vld [vmem:[%s10294_s5 + $0x60] sm:$0xff] }
 0x463   : > { %v4238_v2 = vmax.f32 %v4191_v1, 0.0  ;;  %v3996_v12 = vadd.f32 %v3907_v4, %v3553_v63  ;;  %v9118_v29 = vpop.f32.mrf.mxu2  ;;  %v3568_v62 = vadd.f32 %v3567_v25, %v3268_v20  ;;  %4602 = vmatpush.msra.mxu2 %v7152_v54 }
 0x465   : > { %4285 = vst [vmem:[#allocation2 + $0xc8] sm:$0xff] %v4238_v2  ;;  %v4090_v8 = vadd.f32 %v4043_v15, %v3996_v12  ;;  %7143 = vmatmul.msk.f32.gmra.mxu0 %vm465_vm0, %v3657_v11 }
 0x467   : > { %v4141_v10 = vmul.f32 %v9100_v36, %v4090_v8 }
 0x469   : > { %v4192_v19 = vadd.f32 %v9108_v16, %v4141_v10  ;;  %v4518_v10 = vld [vmem:[%s10294_s5 + $0x20] sm:$0xff] }
 0x46a   : > { %v3910_v13 = vpop.f32.mrf.mxu0  ;;  %v9121_v38 = vpop.f32.mrf.mxu3  ;;  %4709 = vmatpush.msra.mxu3 %v4518_v10 }
 0x46b   : > { %v4239_v26 = vmax.f32 %v4192_v19, 0.0  ;;  %v3997_v14 = vadd.f32 %v3910_v13, %v3556_v9  ;;  %v4413_v18 = vpop.permute.xlu0 %4412  ;;  %v9127_v34 = vpop.f32.mrf.mxu2  ;;  %v4048_v9 = vld [vmem:[#allocation2 + $0xf8] sm:$0xff] }
 0x46c   : > { %v4427_v27 = vmax.f32 %v8848_v46, %v4413_v18  ;;  %v4355_v37 = vld [vmem:[#allocation2 + $0xc0] ss:$2 sm:$0xff]  ;;  %v4357_v59 = vld [vmem:[#allocation2 + $0xc1] ss:$2 sm:$0xff]  ;;  %v7151_v13 = vld [vmem:[%s10294_s5 + $0x58] sm:$0xff]  ;;  %v3571_v18 = vadd.f32 %v9121_v38, %v9118_v29 }
 0x46d   : > { %4286 = vst [vmem:[#allocation2 + $0xd0] sm:$0xff] %v4239_v26  ;;  %v4091_v7 = vadd.f32 %v4044_v23, %v3997_v14  ;;  %7144 = vmatmul.msk.f32.gmra.mxu0 %vm465_vm0, %v3658_v21  ;;  %v4362_v17 = vmax.f32 %v4355_v37, %v4357_v59  ;;  %v4517_v21 = vld [vmem:[%s10294_s5 + $0x18] sm:$0xff]  ;;  %4603 = vmatpush.msra.mxu2 %v7151_v13  ;;  %v7541_v26 = vmov 0.0   ;;  %v7150_v23 = vld [vmem:[%s10294_s5 + $0x50] sm:$0xff]  ;;  %v4514_v38 = vld [vmem:[%s10294_s5] sm:$0xff] }
 0x46e   : > { %4469 = vmatmul.f32.gmra.mxu1 %v4427_v27  ;;  %4710 = vmatpush.msra.mxu3 %v4517_v21  ;;  %466 = vst.msk [vmem:[#allocation3] sm:$0xff] %vm465_vm0, %v7541_v26  ;;  %v4516_v27 = vld [vmem:[%s10294_s5 + $0x10] sm:$0xff] }
 0x46f   : > { %v4142_v35 = vmul.f32 %v9100_v36, %v4091_v7  ;;  %467 = vst.msk [vmem:[#allocation3 + $0x8] sm:$0xff] %vm465_vm0, %v7541_v26  ;;  %4604 = vmatpush.msra.mxu2 %v7150_v23 }
 0x470   : > { %4711 = vmatpush.msra.mxu3 %v4516_v27  ;;  %468 = vst.msk [vmem:[#allocation3 + $0x10] sm:$0xff] %vm465_vm0, %v7541_v26 }
 0x471   : > { %v4193_v24 = vadd.f32 %v9108_v16, %v4142_v35  ;;  %v7149_v35 = vld [vmem:[%s10294_s5 + $0x48] sm:$0xff]  ;;  %469 = vst.msk [vmem:[#allocation3 + $0x18] sm:$0xff] %vm465_vm0, %v7541_v26 }
 0x472   : > { %v3913_v40 = vpop.f32.mrf.mxu0  ;;  %v9130_v33 = vpop.f32.mrf.mxu3  ;;  %4605 = vmatpush.msra.mxu2 %v7149_v35  ;;  %470 = vst.msk [vmem:[#allocation3 + $0x20] sm:$0xff] %vm465_vm0, %v7541_v26 }
 0x473   : > { %v4240_v46 = vmax.f32 %v4193_v24, 0.0  ;;  %v3998_v41 = vadd.f32 %v3913_v40, %v3559_v28  ;;  %v9136_v49 = vpop.f32.mrf.mxu2  ;;  %v4515_v28 = vld [vmem:[%s10294_s5 + $0x8] sm:$0xff]  ;;  %471 = vst.msk [vmem:[#allocation3 + $0x28] sm:$0xff] %vm465_vm0, %v7541_v26 }
 0x474   : > { %4712 = vmatpush.msra.mxu3 %v4515_v28  ;;  %472 = vst.msk [vmem:[#allocation3 + $0x30] sm:$0xff] %vm465_vm0, %v7541_v26 }
 0x475   : > { %4287 = vst [vmem:[#allocation2 + $0xd8] sm:$0xff] %v4240_v46  ;;  %v4092_v45 = vadd.f32 %v4045_v39, %v3998_v41  ;;  %7145 = vmatmul.msk.f32.gmra.mxu0 %vm465_vm0, %v3659_v42  ;;  %v7148_v42 = vld [vmem:[%s10294_s5 + $0x40] sm:$0xff]  ;;  %v4499_v39 = vld [vmem:[#allocation3] sm:$0xff] }
 0x476   : > { %v4049_v46 = vld [vmem:[#allocation2 + $0x100] sm:$0xff]  ;;  %4606 = vmatpush.msra.mxu2 %v7148_v42  ;;  %4713 = vmatpush.msra.mxu3 %v4514_v38  ;;  %473 = vst.msk [vmem:[#allocation3 + $0x38] sm:$0xff] %vm465_vm0, %v7541_v26 }
 0x477   : > { %v4143_v47 = vmul.f32 %v9100_v36, %v4092_v45  ;;  %v4522_v45 = vld [vmem:[#allocation3 + $0x1] sm:$0xff]  ;;  %7171 = vmatmul.msk.f32.vlgmr.msra.gmra.mxu3 %vm465_vm0, %v4499_v39  ;;  %474 = vst.msk [vmem:[#allocation3 + $0x40] sm:$0xff] %vm465_vm0, %v7541_v26 }
 0x478   : > { %7156 = vmatmul.msk.f32.vlgmr.msra.gmra.mxu2 %vm465_vm0, %v4522_v45  ;;  %475 = vst.msk [vmem:[#allocation3 + $0x48] sm:$0xff] %vm465_vm0, %v7541_v26  ;;  %v4054_v45 = vld [vmem:[#allocation2 + $0x128] sm:$0xff] }
 0x479   : > { %v4194_v43 = vadd.f32 %v9108_v16, %v4143_v47  ;;  %476 = vst.msk [vmem:[#allocation3 + $0x50] sm:$0xff] %vm465_vm0, %v7541_v26 }
 0x47a   : > { %v3916_v32 = vpop.f32.mrf.mxu0  ;;  %v9138_v63 = vpop.f32.mrf.mxu3  ;;  %477 = vst.msk [vmem:[#allocation3 + $0x58] sm:$0xff] %vm465_vm0, %v7541_v26 }
 0x47b   : > { %v4241_v51 = vmax.f32 %v4194_v43, 0.0  ;;  %v3999_v52 = vadd.f32 %v3916_v32, %v3562_v31  ;;  %v9153_v20 = vpop.f32.mrf.mxu2  ;;  %v3574_v31 = vadd.f32 %v9130_v33, %v9127_v34  ;;  %478 = vst.msk [vmem:[#allocation3 + $0x60] sm:$0xff] %vm465_vm0, %v7541_v26 }
 0x47c   : > { %479 = vst.msk [vmem:[#allocation3 + $0x68] sm:$0xff] %vm465_vm0, %v7541_v26 }
 0x47d   : > { %4288 = vst [vmem:[#allocation2 + $0xe0] sm:$0xff] %v4241_v51  ;;  %v4093_v56 = vadd.f32 %v4046_v48, %v3999_v52  ;;  %7146 = vmatmul.msk.f32.gmra.mxu0 %vm465_vm0, %v3660_v30  ;;  %v4050_v48 = vld [vmem:[#allocation2 + $0x108] sm:$0xff] }
 0x47e   : > { %480 = vst.msk [vmem:[#allocation3 + $0x70] sm:$0xff] %vm465_vm0, %v7541_v26 }
 0x47f   : > { %v4144_v55 = vmul.f32 %v9100_v36, %v4093_v56  ;;  %481 = vst.msk [vmem:[#allocation3 + $0x78] sm:$0xff] %vm465_vm0, %v7541_v26 }
 0x480   : > { %482 = vst.msk [vmem:[#allocation3 + $0x80] sm:$0xff] %vm465_vm0, %v7541_v26 }
 0x481   : > { %v4195_v50 = vadd.f32 %v9108_v16, %v4144_v55  ;;  %v4523_v55 = vld [vmem:[#allocation3 + $0x9] sm:$0xff]  ;;  %483 = vst.msk [vmem:[#allocation3 + $0x88] sm:$0xff] %vm465_vm0, %v7541_v26 }
 0x482   : > { %v3919_v61 = vpop.f32.mrf.mxu0  ;;  %v9161_v25 = vpop.f32.mrf.mxu3  ;;  %7157 = vmatmul.msk.f32.gmra.mxu2 %vm465_vm0, %v4523_v55  ;;  %484 = vst.msk [vmem:[#allocation3 + $0x90] sm:$0xff] %vm465_vm0, %v7541_v26  ;;  %v4055_v55 = vld [vmem:[#allocation2 + $0x130] sm:$0xff] }
 0x483   : > { %v4242_v53 = vmax.f32 %v4195_v50, 0.0  ;;  %v4000_v3 = vadd.f32 %v3919_v61, %v3565_v60  ;;  %v3283_v43 = vpop.f32.mrf.mxu2  ;;  %v4500_v50 = vld [vmem:[#allocation3 + $0x8] sm:$0xff]  ;;  %485 = vst.msk [vmem:[#allocation3 + $0x98] sm:$0xff] %vm465_vm0, %v7541_v26 }
 0x484   : > { %v4359_v5 = vld [vmem:[#allocation2 + $0xd8] ss:$2 sm:$0xff]  ;;  %v4361_v6 = vld [vmem:[#allocation2 + $0xd9] ss:$2 sm:$0xff]  ;;  %7172 = vmatmul.msk.f32.gmra.mxu3 %vm465_vm0, %v4500_v50  ;;  %488 = vst.msk [vmem:[#allocation5 + $0x8] sm:$0xff] %vm486_vm1, %v7541_v26 }
 0x485   : > { %4289 = vst [vmem:[#allocation2 + $0xe8] sm:$0xff] %v4242_v53  ;;  %v4094_v1 = vadd.f32 %v4047_v57, %v4000_v3  ;;  %7147 = vmatmul.msk.f32.gmra.mxu0 %vm465_vm0, %v3661_v0  ;;  %v4363_v4 = vmax.f32 %v4359_v5, %v4361_v6  ;;  %v3577_v0 = vadd.f32 %v9138_v63, %v9136_v49  ;;  %v4051_v57 = vld [vmem:[#allocation2 + $0x110] sm:$0xff] }
 0x486   : > { %v3580_v63 = vadd.f32 %v9161_v25, %v9153_v20  ;;  %v4053_v25 = vld [vmem:[#allocation2 + $0x120] sm:$0xff]  ;;  %489 = vst.msk [vmem:[#allocation5 + $0x10] sm:$0xff] %vm486_vm1, %v7541_v26 }
 0x487   : > { %v4145_v11 = vmul.f32 %v9100_v36, %v4094_v1  ;;  %v9142_v2 = vmax.f32 %v4362_v17, %v4363_v4  ;;  %487 = vst.msk [vmem:[#allocation5] sm:$0xff] %vm486_vm1, %v7541_v26 }
 0x488   : > { %490 = vst.msk [vmem:[#allocation5 + $0x18] sm:$0xff] %vm486_vm1, %v7541_v26 }
 0x489   : > { %v4196_v12 = vadd.f32 %v9108_v16, %v4145_v11  ;;  %4418 = vrot.lane.b32.xlu2 %v9142_v2, %s7540_s29  ;;  %491 = vst.msk [vmem:[#allocation5 + $0x20] sm:$0xff] %vm486_vm1, %v7541_v26 }
 0x48a   : > { %v3922_v15 = vpop.f32.mrf.mxu0  ;;  %v3582_v32 = vpop.f32.mrf.mxu3  ;;  %492 = vst.msk [vmem:[#allocation5 + $0x28] sm:$0xff] %vm486_vm1, %v7541_v26 }
 0x48b   : > { %v4243_v8 = vmax.f32 %v4196_v12, 0.0  ;;  %v4001_v44 = vadd.f32 %v3922_v15, %v3568_v62  ;;  %v3286_v37 = vpop.f32.mrf.mxu2  ;;  %v4052_v12 = vld [vmem:[#allocation2 + $0x118] sm:$0xff]  ;;  %v3583_v54 = vadd.f32 %v3582_v32, %v3283_v43  ;;  %493 = vst.msk [vmem:[#allocation5 + $0x30] sm:$0xff] %vm486_vm1, %v7541_v26  ;;  %v7397_v26 = vld [vmem:[%s10298_s9 + $0xf0] sm:$0xff] }
 0x48d   : > { %4290 = vst [vmem:[#allocation2 + $0xf0] sm:$0xff] %v4243_v8  ;;  %v4095_v19 = vadd.f32 %v4048_v9, %v4001_v44 }
 0x48f   : > { %v4146_v14 = vmul.f32 %v9100_v36, %v4095_v19 }
 0x491   : > { %v4197_v7 = vadd.f32 %v9108_v16, %v4146_v14 }
 0x492   : > { %v3925_v24 = vpop.f32.mrf.mxu0  ;;  %v3585_v53 = vpop.f32.mrf.mxu3 }
 0x493   : > { %v4244_v29 = vmax.f32 %v4197_v7, 0.0  ;;  %v4002_v40 = vadd.f32 %v3925_v24, %v3571_v18  ;;  %v3289_v62 = vpop.f32.mrf.mxu2 }
 0x495   : > { %4291 = vst [vmem:[#allocation2 + $0xf8] sm:$0xff] %v4244_v29  ;;  %v4096_v41 = vadd.f32 %v4049_v46, %v4002_v40  ;;  %v3586_v29 = vadd.f32 %v3585_v53, %v3286_v37 }
 0x497   : > { %v4147_v47 = vmul.f32 %v9100_v36, %v4096_v41 }
 0x499   : > { %v4198_v30 = vadd.f32 %v9108_v16, %v4147_v47 }
 0x49a   : > { %v3928_v51 = vpop.f32.mrf.mxu0  ;;  %v3588_v15 = vpop.f32.mrf.mxu3 }
 0x49b   : > { %v4245_v34 = vmax.f32 %v4198_v30, 0.0  ;;  %v4003_v33 = vadd.f32 %v3928_v51, %v3574_v31  ;;  %v4415_v52 = vpop.permute.xlu1 %4414  ;;  %v3292_v35 = vpop.f32.mrf.mxu2  ;;  %v3589_v43 = vadd.f32 %v3588_v15, %v3289_v62 }
 0x49c   : > { %v4428_v56 = vmax.f32 %v8975_v22, %v4415_v52  ;;  %v4367_v19 = vld [vmem:[#allocation2 + $0xf0] ss:$2 sm:$0xff]  ;;  %v4369_v13 = vld [vmem:[#allocation2 + $0xf1] ss:$2 sm:$0xff] }
 0x49d   : > { %4292 = vst [vmem:[#allocation2 + $0x100] sm:$0xff] %v4245_v34  ;;  %v4097_v60 = vadd.f32 %v4050_v48, %v4003_v33  ;;  %v4374_v27 = vmax.f32 %v4367_v19, %v4369_v13 }
 0x49e   : > { %4472 = vmatmul.f32.gmra.mxu1 %v4428_v56 }
 0x49f   : > { %v4148_v61 = vmul.f32 %v9100_v36, %v4097_v60 }
 0x4a1   : > { %v4199_v22 = vadd.f32 %v9108_v16, %v4148_v61 }
 0x4a2   : > { %v3931_v59 = vpop.f32.mrf.mxu0  ;;  %v3591_v28 = vpop.f32.mrf.mxu3 }
 0x4a3   : > { %v4246_v3 = vmax.f32 %v4199_v22, 0.0  ;;  %v4004_v49 = vadd.f32 %v3931_v59, %v3577_v0  ;;  %v3295_v32 = vpop.f32.mrf.mxu2  ;;  %v3592_v61 = vadd.f32 %v3591_v28, %v3292_v35  ;;  %v9263_v22 = vld [vmem:[#allocation3 + $0x19] sm:$0xff] }
 0x4a5   : > { %4293 = vst [vmem:[#allocation2 + $0x108] sm:$0xff] %v4246_v3  ;;  %v4098_v5 = vadd.f32 %v4051_v57, %v4004_v49 }
 0x4a7   : > { %v4149_v6 = vmul.f32 %v9100_v36, %v4098_v5 }
 0x4a9   : > { %v4200_v1 = vadd.f32 %v9108_v16, %v4149_v6  ;;  %v4056_v6 = vld [vmem:[#allocation2 + $0x138] sm:$0xff] }
 0x4aa   : > { %v3934_v17 = vpop.f32.mrf.mxu0  ;;  %v3594_v30 = vpop.f32.mrf.mxu3 }
 0x4ab   : > { %v4247_v4 = vmax.f32 %v4200_v1, 0.0  ;;  %v4005_v11 = vadd.f32 %v3934_v17, %v3580_v63  ;;  %v3298_v37 = vpop.f32.mrf.mxu2 }
 0x4ad   : > { %4294 = vst [vmem:[#allocation2 + $0x110] sm:$0xff] %v4247_v4  ;;  %v4099_v8 = vadd.f32 %v4052_v12, %v4005_v11  ;;  %v3595_v4 = vadd.f32 %v3594_v30, %v3295_v32 }
 0x4af   : > { %v4150_v44 = vmul.f32 %v9100_v36, %v4099_v8 }
 0x4b1   : > { %v4201_v10 = vadd.f32 %v9108_v16, %v4150_v44  ;;  %v4057_v44 = vld [vmem:[#allocation2 + $0x140] sm:$0xff] }
 0x4b2   : > { %v3937_v9 = vpop.f32.mrf.mxu0  ;;  %v3597_v53 = vpop.f32.mrf.mxu3 }
 0x4b3   : > { %v4248_v21 = vmax.f32 %v4201_v10, 0.0  ;;  %v4006_v20 = vadd.f32 %v3937_v9, %v3583_v54  ;;  %v3301_v8 = vpop.f32.mrf.mxu2  ;;  %v3598_v9 = vadd.f32 %v3597_v53, %v3298_v37 }
 0x4b4   : > { %v4371_v14 = vld [vmem:[#allocation2 + $0x108] ss:$2 sm:$0xff]  ;;  %v4373_v18 = vld [vmem:[#allocation2 + $0x109] ss:$2 sm:$0xff] }
 0x4b5   : > { %4295 = vst [vmem:[#allocation2 + $0x118] sm:$0xff] %v4248_v21  ;;  %v4100_v23 = vadd.f32 %v4053_v25, %v4006_v20  ;;  %v4375_v7 = vmax.f32 %v4371_v14, %v4373_v18  ;;  %v4058_v25 = vld [vmem:[#allocation2 + $0x148] sm:$0xff] }
 0x4b7   : > { %v4151_v24 = vmul.f32 %v9100_v36, %v4100_v23  ;;  %v9245_v40 = vmax.f32 %v4374_v27, %v4375_v7 }
 0x4b9   : > { %v4202_v42 = vadd.f32 %v9108_v16, %v4151_v24  ;;  %4420 = vrot.lane.b32.xlu2 %v9245_v40, %s7540_s29 }
 0x4ba   : > { %v3940_v38 = vpop.f32.mrf.mxu0 }
 0x4bb   : > { %v4249_v46 = vmax.f32 %v4202_v42, 0.0  ;;  %v4007_v41 = vadd.f32 %v3940_v38, %v3586_v29  ;;  %v4467_v39 = vpop.f32.mrf.mxu1  ;;  %v3304_v18 = vpop.f32.mrf.mxu2 }
 0x4bc   : > { %4491 = vst.msk [vmem:[#allocation3 + $0x11] sm:$0xff] %vm465_vm0, %v4467_v39 }
 0x4bd   : > { %4296 = vst [vmem:[#allocation2 + $0x120] sm:$0xff] %v4249_v46  ;;  %v4101_v47 = vadd.f32 %v4054_v45, %v4007_v41  ;;  %v4059_v41 = vld [vmem:[#allocation2 + $0x150] sm:$0xff] }
 0x4bf   : > { %v4152_v31 = vmul.f32 %v9100_v36, %v4101_v47 }
 0x4c1   : > { %v4203_v51 = vadd.f32 %v9108_v16, %v4152_v31 }
 0x4c2   : > { %v3943_v34 = vpop.f32.mrf.mxu0 }
 0x4c3   : > { %v4250_v33 = vmax.f32 %v4203_v51, 0.0  ;;  %v4008_v52 = vadd.f32 %v3943_v34, %v3589_v43  ;;  %v9253_v48 = vld [vmem:[#allocation3 + $0x11] sm:$0xff]  ;;  %v3307_v34 = vpop.f32.mrf.mxu2 }
 0x4c4   : > { %v9255_v56 = vld [vmem:[#allocation3 + $0x10] sm:$0xff]  ;;  %7158 = vmatmul.msk.f32.gmra.mxu2 %vm465_vm0, %v9253_v48  ;;  %v9265_v5 = vld [vmem:[#allocation3 + $0x18] sm:$0xff] }
 0x4c5   : > { %7173 = vmatmul.msk.f32.gmra.mxu3 %vm465_vm0, %v9255_v56  ;;  %4297 = vst [vmem:[#allocation2 + $0x128] sm:$0xff] %v4250_v33  ;;  %v4102_v60 = vadd.f32 %v4055_v55, %v4008_v52 }
 0x4c7   : > { %v4153_v50 = vmul.f32 %v9100_v36, %v4102_v60 }
 0x4c9   : > { %v4204_v0 = vadd.f32 %v9108_v16, %v4153_v50 }
 0x4ca   : > { %v3946_v59 = vpop.f32.mrf.mxu0 }
 0x4cb   : > { %v4251_v3 = vmax.f32 %v4204_v0, 0.0  ;;  %v4009_v49 = vadd.f32 %v3946_v59, %v3592_v61  ;;  %v4417_v57 = vpop.permute.xlu1 %4416  ;;  %v4060_v0 = vld [vmem:[#allocation2 + $0x158] sm:$0xff] }
 0x4cc   : > { %v4429_v63 = vmax.f32 %v9070_v58, %v4417_v57  ;;  %7159 = vmatmul.msk.f32.gmra.mxu2 %vm465_vm0, %v9263_v22  ;;  %v3600_v58 = vpop.f32.mrf.mxu3  ;;  %v4379_v24 = vld [vmem:[#allocation2 + $0x120] ss:$2 sm:$0xff]  ;;  %v4381_v29 = vld [vmem:[#allocation2 + $0x121] ss:$2 sm:$0xff] }
 0x4cd   : > { %7174 = vmatmul.msk.f32.gmra.mxu3 %vm465_vm0, %v9265_v5  ;;  %4298 = vst [vmem:[#allocation2 + $0x130] sm:$0xff] %v4251_v3  ;;  %v4103_v1 = vadd.f32 %v4056_v6, %v4009_v49  ;;  %v3601_v7 = vadd.f32 %v3600_v58, %v3301_v8  ;;  %v4386_v43 = vmax.f32 %v4379_v24, %v4381_v29  ;;  %v3310_v49 = vpop.f32.mrf.mxu2 }
 0x4ce   : > { %4475 = vmatmul.f32.gmra.mxu1 %v4429_v63 }
 0x4cf   : > { %v4154_v17 = vmul.f32 %v9100_v36, %v4103_v1 }
 0x4d1   : > { %v4205_v11 = vadd.f32 %v9108_v16, %v4154_v17 }
 0x4d2   : > { %v3949_v62 = vpop.f32.mrf.mxu0 }
 0x4d3   : > { %v4252_v12 = vmax.f32 %v4205_v11, 0.0  ;;  %v4010_v15 = vadd.f32 %v3949_v62, %v3595_v4  ;;  %v4061_v11 = vld [vmem:[#allocation2 + $0x160] sm:$0xff] }
 0x4d4   : > { %v3603_v23 = vpop.f32.mrf.mxu3 }
 0x4d5   : > { %4299 = vst [vmem:[#allocation2 + $0x138] sm:$0xff] %v4252_v12  ;;  %v4104_v54 = vadd.f32 %v4057_v44, %v4010_v15  ;;  %v3604_v51 = vadd.f32 %v3603_v23, %v3304_v18  ;;  %v9298_v44 = vld [vmem:[#allocation3 + $0x29] sm:$0xff] }
 0x4d7   : > { %v4155_v10 = vmul.f32 %v9100_v36, %v4104_v54 }
 0x4d9   : > { %v4206_v19 = vadd.f32 %v9108_v16, %v4155_v10 }
 0x4da   : > { %v3952_v13 = vpop.f32.mrf.mxu0 }
 0x4db   : > { %v4253_v21 = vmax.f32 %v4206_v19, 0.0  ;;  %v4011_v20 = vadd.f32 %v3952_v13, %v3598_v9  ;;  %v4062_v19 = vld [vmem:[#allocation2 + $0x168] sm:$0xff]  ;;  %v3313_v13 = vpop.f32.mrf.mxu2 }
 0x4dc   : > { %v3606_v52 = vpop.f32.mrf.mxu3 }
 0x4dd   : > { %4300 = vst [vmem:[#allocation2 + $0x140] sm:$0xff] %v4253_v21  ;;  %v4105_v14 = vadd.f32 %v4058_v25, %v4011_v20  ;;  %v3607_v53 = vadd.f32 %v3606_v52, %v3307_v34  ;;  %v7193_v34 = vld [vmem:[%s10294_s5 + $0xb8] sm:$0xff]  ;;  %v7192_v52 = vld [vmem:[%s10294_s5 + $0xb0] sm:$0xff] }
 0x4de   : > { %4837 = vmatpush.msrb.mxu1 %v7193_v34 }
 0x4df   : > { %v4156_v27 = vmul.f32 %v9100_v36, %v4105_v14 }
 0x4e0   : > { %4838 = vmatpush.msrb.mxu1 %v7192_v52  ;;  %v7218_v52 = vld [vmem:[%s10294_s5 + $0x108] sm:$0xff] }
 0x4e1   : > { %v4207_v35 = vadd.f32 %v9108_v16, %v4156_v27 }
 0x4e2   : > { %v3955_v28 = vpop.f32.mrf.mxu0 }
 0x4e3   : > { %v4254_v42 = vmax.f32 %v4207_v35, 0.0  ;;  %v4012_v38 = vadd.f32 %v3955_v28, %v3601_v7  ;;  %v4419_v46 = vpop.permute.xlu2 %4418  ;;  %v4063_v35 = vld [vmem:[#allocation2 + $0x170] sm:$0xff] }
 0x4e4   : > { %v4430_v39 = vmax.f32 %v9142_v2, %v4419_v46  ;;  %v4383_v45 = vld [vmem:[#allocation2 + $0x138] ss:$2 sm:$0xff]  ;;  %v4385_v47 = vld [vmem:[#allocation2 + $0x139] ss:$2 sm:$0xff]  ;;  %v3609_v6 = vpop.f32.mrf.mxu3 }
 0x4e5   : > { %4301 = vst [vmem:[#allocation2 + $0x148] sm:$0xff] %v4254_v42  ;;  %v4106_v31 = vadd.f32 %v4059_v41, %v4012_v38  ;;  %v4387_v32 = vmax.f32 %v4383_v45, %v4385_v47  ;;  %v3610_v15 = vadd.f32 %v3609_v6, %v3310_v49 }
 0x4e6   : > { %4478 = vmatmul.f32.gmra.mxu1 %v4430_v39 }
 0x4e7   : > { %v4157_v30 = vmul.f32 %v9100_v36, %v4106_v31  ;;  %v9280_v33 = vmax.f32 %v4386_v43, %v4387_v32 }
 0x4e9   : > { %v4208_v55 = vadd.f32 %v9108_v16, %v4157_v30  ;;  %4422 = vrot.lane.b32.xlu0 %v9280_v33, %s7540_s29 }
 0x4ea   : > { %v3958_v2 = vpop.f32.mrf.mxu0 }
 0x4eb   : > { %v4255_v60 = vmax.f32 %v4208_v55, 0.0  ;;  %v4013_v50 = vadd.f32 %v3958_v2, %v3604_v51  ;;  %v4470_v61 = vpop.f32.mrf.mxu1  ;;  %v7191_v55 = vld [vmem:[%s10294_s5 + $0xa8] sm:$0xff] }
 0x4ec   : > { %4492 = vst.msk [vmem:[#allocation3 + $0x21] sm:$0xff] %vm465_vm0, %v4470_v61  ;;  %v3612_v21 = vpop.f32.mrf.mxu3  ;;  %4839 = vmatpush.msrb.mxu1 %v7191_v55  ;;  %v7210_v55 = vld [vmem:[%s10294_s5 + $0xc8] sm:$0xff] }
 0x4ed   : > { %4302 = vst [vmem:[#allocation2 + $0x150] sm:$0xff] %v4255_v60  ;;  %v4107_v37 = vadd.f32 %v4060_v0, %v4013_v50  ;;  %v3613_v14 = vadd.f32 %v3612_v21, %v3313_v13  ;;  %v7190_v60 = vld [vmem:[%s10294_s5 + $0xa0] sm:$0xff]  ;;  %v7189_v0 = vld [vmem:[%s10294_s5 + $0x98] sm:$0xff]  ;;  %v7214_v13 = vld [vmem:[%s10294_s5 + $0xe8] sm:$0xff] }
 0x4ee   : > { %4840 = vmatpush.msrb.mxu1 %v7190_v60  ;;  %v7209_v60 = vld [vmem:[%s10294_s5 + $0xc0] sm:$0xff] }
 0x4ef   : > { %v4158_v59 = vmul.f32 %v9100_v36, %v4107_v37  ;;  %v7188_v37 = vld [vmem:[%s10294_s5 + $0x90] sm:$0xff] }
 0x4f0   : > { %4841 = vmatpush.msrb.mxu1 %v7189_v0 }
 0x4f1   : > { %v4209_v3 = vadd.f32 %v9108_v16, %v4158_v59  ;;  %v9359_v59 = vld [vmem:[#allocation3 + $0x49] sm:$0xff] }
 0x4f2   : > { %v3961_v57 = vpop.f32.mrf.mxu0  ;;  %4842 = vmatpush.msrb.mxu1 %v7188_v37  ;;  %v7256_v37 = vld [vmem:[%s10294_s5 + $0x148] sm:$0xff] }
 0x4f3   : > { %v4256_v63 = vmax.f32 %v4209_v3, 0.0  ;;  %v4014_v1 = vadd.f32 %v3961_v57, %v3607_v53  ;;  %v9288_v17 = vld [vmem:[#allocation3 + $0x21] sm:$0xff]  ;;  %v7187_v57 = vld [vmem:[%s10294_s5 + $0x88] sm:$0xff] }
 0x4f4   : > { %v9290_v4 = vld [vmem:[#allocation3 + $0x20] sm:$0xff]  ;;  %7160 = vmatmul.msk.f32.gmra.mxu2 %vm465_vm0, %v9288_v17  ;;  %v9300_v9 = vld [vmem:[#allocation3 + $0x28] sm:$0xff]  ;;  %4843 = vmatpush.msrb.mxu1 %v7187_v57 }
 0x4f5   : > { %7175 = vmatmul.msk.f32.gmra.mxu3 %vm465_vm0, %v9290_v4  ;;  %4303 = vst [vmem:[#allocation2 + $0x158] sm:$0xff] %v4256_v63  ;;  %v4108_v62 = vadd.f32 %v4061_v11, %v4014_v1  ;;  %v7224_v11 = vld [vmem:[%s10294_s5 + $0x138] sm:$0xff] }
 0x4f6   : > { %5022 = vmatpush.msrb.mxu2 %v7224_v11 }
 0x4f7   : > { %v4159_v12 = vmul.f32 %v9100_v36, %v4108_v62  ;;  %v7216_v62 = vld [vmem:[%s10294_s5 + $0xf8] sm:$0xff] }
 0x4f8   : > { %5129 = vmatpush.msrb.mxu3 %v7216_v62 }
 0x4f9   : > { %v4210_v8 = vadd.f32 %v9108_v16, %v4159_v12  ;;  %v9389_v12 = vld [vmem:[#allocation3 + $0x59] sm:$0xff] }
 0x4fa   : > { %v3964_v58 = vpop.f32.mrf.mxu0 }
 0x4fb   : > { %v4257_v54 = vmax.f32 %v4210_v8, 0.0  ;;  %v4015_v10 = vadd.f32 %v3964_v58, %v3610_v15  ;;  %v7262_v8 = vld [vmem:[%s10294_s5 + $0x178] sm:$0xff]  ;;  %v7223_v58 = vld [vmem:[%s10294_s5 + $0x130] sm:$0xff] }
 0x4fc   : > { %7161 = vmatmul.msk.f32.gmra.mxu2 %vm465_vm0, %v9298_v44  ;;  %v4391_v38 = vld [vmem:[#allocation2 + $0x150] ss:$2 sm:$0xff]  ;;  %v4393_v46 = vld [vmem:[#allocation2 + $0x151] ss:$2 sm:$0xff] }
 0x4fd   : > { %7176 = vmatmul.msk.f32.gmra.mxu3 %vm465_vm0, %v9300_v9  ;;  %4304 = vst [vmem:[#allocation2 + $0x160] sm:$0xff] %v4257_v54  ;;  %v4109_v20 = vadd.f32 %v4062_v19, %v4015_v10  ;;  %v4398_v31 = vmax.f32 %v4391_v38, %v4393_v46  ;;  %v7215_v54 = vld [vmem:[%s10294_s5 + $0xf0] sm:$0xff]  ;;  %5023 = vmatpush.msrb.mxu2 %v7223_v58  ;;  %v7222_v19 = vld [vmem:[%s10294_s5 + $0x128] sm:$0xff]  ;;  %v7220_v46 = vld [vmem:[%s10294_s5 + $0x118] sm:$0xff] }
 0x4fe   : > { %5130 = vmatpush.msrb.mxu3 %v7215_v54  ;;  %v7261_v10 = vld [vmem:[%s10294_s5 + $0x170] sm:$0xff]  ;;  %v7293_v58 = vld [vmem:[%s10294_s5 + $0x1f8] sm:$0xff] }
 0x4ff   : > { %v4160_v25 = vmul.f32 %v9100_v36, %v4109_v20  ;;  %5024 = vmatpush.msrb.mxu2 %v7222_v19  ;;  %v9447_v38 = vld [vmem:[#allocation3 + $0x12] sm:$0xff]  ;;  %v7285_v54 = vld [vmem:[%s10294_s5 + $0x1b8] sm:$0xff] }
 0x500   : > { %5131 = vmatpush.msrb.mxu3 %v7214_v13  ;;  %v7331_v13 = vld [vmem:[%s10294_s5 + $0x238] sm:$0xff] }
 0x501   : > { %v4211_v18 = vadd.f32 %v9108_v16, %v4160_v25  ;;  %v7260_v25 = vld [vmem:[%s10294_s5 + $0x168] sm:$0xff] }
 0x502   : > { %v3967_v23 = vpop.f32.mrf.mxu0 }
 0x503   : > { %v4258_v27 = vmax.f32 %v4211_v18, 0.0  ;;  %v4016_v7 = vadd.f32 %v3967_v23, %v3613_v14  ;;  %v4760_v18 = vld [vmem:[#allocation3 + $0x2] sm:$0xff] }
 0x504   : > { %v7221_v23 = vld [vmem:[%s10294_s5 + $0x120] sm:$0xff] }
 0x505   : > { %4305 = vst [vmem:[#allocation2 + $0x168] sm:$0xff] %v4258_v27  ;;  %v4110_v28 = vadd.f32 %v4063_v35, %v4016_v7  ;;  %v7213_v27 = vld [vmem:[%s10294_s5 + $0xe0] sm:$0xff]  ;;  %5025 = vmatpush.msrb.mxu2 %v7221_v23 }
 0x506   : > { %5132 = vmatpush.msrb.mxu3 %v7213_v27  ;;  %v7291_v27 = vld [vmem:[%s10294_s5 + $0x1e8] sm:$0xff] }
 0x507   : > { %v4161_v24 = vmul.f32 %v9100_v36, %v4110_v28  ;;  %v4761_v28 = vld [vmem:[#allocation3 + $0xa] sm:$0xff]  ;;  %5026 = vmatpush.msrb.mxu2 %v7220_v46 }
 0x509   : > { %v4212_v29 = vadd.f32 %v9108_v16, %v4161_v24  ;;  %v7259_v24 = vld [vmem:[%s10294_s5 + $0x160] sm:$0xff] }
 0x50b   : > { %v4259_v42 = vmax.f32 %v4212_v29, 0.0  ;;  %v9439_v29 = vld [vmem:[#allocation3 + $0x69] sm:$0xff] }
 0x50d   : > { %4306 = vst [vmem:[#allocation2 + $0x170] sm:$0xff] %v4259_v42 }
 0x513   : > { %v4421_v41 = vpop.permute.xlu2 %4420 }
 0x514   : > { %v4431_v39 = vmax.f32 %v9245_v40, %v4421_v41  ;;  %v4395_v45 = vld [vmem:[#allocation2 + $0x168] ss:$2 sm:$0xff]  ;;  %v4397_v47 = vld [vmem:[#allocation2 + $0x169] ss:$2 sm:$0xff]  ;;  %v7212_v41 = vld [vmem:[%s10294_s5 + $0xd8] sm:$0xff] }
 0x515   : > { %v4399_v43 = vmax.f32 %v4395_v45, %v4397_v47  ;;  %v9324_v40 = vld [vmem:[#allocation3 + $0x39] sm:$0xff]  ;;  %5133 = vmatpush.msrb.mxu3 %v7212_v41  ;;  %v9464_v47 = vld [vmem:[#allocation3 + $0x22] sm:$0xff] }
 0x516   : > { %4481 = vmatmul.f32.gmra.mxu1 %v4431_v39  ;;  %v9457_v39 = vld [vmem:[#allocation3 + $0x1a] sm:$0xff] }
 0x517   : > { %v9311_v32 = vmax.f32 %v4398_v31, %v4399_v43  ;;  %v7258_v45 = vld [vmem:[%s10294_s5 + $0x158] sm:$0xff]  ;;  %v7219_v31 = vld [vmem:[%s10294_s5 + $0x110] sm:$0xff] }
 0x518   : > { %v7211_v43 = vld [vmem:[%s10294_s5 + $0xd0] sm:$0xff]  ;;  %5027 = vmatpush.msrb.mxu2 %v7219_v31  ;;  %v7329_v31 = vld [vmem:[%s10294_s5 + $0x228] sm:$0xff] }
 0x519   : > { %4424 = vrot.lane.b32.xlu1 %v9311_v32, %s7540_s29  ;;  %5134 = vmatpush.msrb.mxu3 %v7211_v43 }
 0x51a   : > { %5028 = vmatpush.msrb.mxu2 %v7218_v52  ;;  %v7290_v52 = vld [vmem:[%s10294_s5 + $0x1e0] sm:$0xff] }
 0x51b   : > { %v4473_v36 = vpop.f32.mrf.mxu1  ;;  %5135 = vmatpush.msrb.mxu3 %v7210_v55  ;;  %v7282_v55 = vld [vmem:[%s10294_s5 + $0x1a0] sm:$0xff] }
 0x51c   : > { %4493 = vst.msk [vmem:[#allocation3 + $0x31] sm:$0xff] %vm465_vm0, %v4473_v36  ;;  %v7257_v36 = vld [vmem:[%s10294_s5 + $0x150] sm:$0xff] }
 0x51d   : > { %5136 = vmatpush.msrb.mxu3 %v7209_v60 }
 0x51f   : > { %5582 = vmatpush.msra.mxu3 %v7285_v54 }
 0x523   : > { %v9316_v16 = vld [vmem:[#allocation3 + $0x31] sm:$0xff] }
 0x524   : > { %v9318_v30 = vld [vmem:[#allocation3 + $0x30] sm:$0xff]  ;;  %7162 = vmatmul.msk.f32.gmra.mxu2 %vm465_vm0, %v9316_v16  ;;  %v9326_v51 = vld [vmem:[#allocation3 + $0x38] sm:$0xff] }
 0x525   : > { %7177 = vmatmul.msk.f32.gmra.mxu3 %vm465_vm0, %v9318_v30  ;;  %v9481_v34 = vld [vmem:[#allocation3 + $0x32] sm:$0xff] }
 0x52c   : > { %7163 = vmatmul.msk.f32.gmra.mxu2 %vm465_vm0, %v9324_v40 }
 0x52d   : > { %7178 = vmatmul.msk.f32.gmra.mxu3 %vm465_vm0, %v9326_v51 }
 0x54b   : > { %v4476_v2 = vpop.f32.mrf.mxu1 }
 0x54c   : > { %4494 = vst.msk [vmem:[#allocation3 + $0x41] sm:$0xff] %vm465_vm0, %v4476_v2  ;;  %v7217_v2 = vld [vmem:[%s10294_s5 + $0x100] sm:$0xff] }
 0x54d   : > { %5029 = vmatpush.msrb.mxu2 %v7217_v2 }
 0x54f   : > { %5475 = vmatpush.msra.mxu2 %v7293_v58 }
 0x553   : > { %v9345_v50 = vld [vmem:[#allocation3 + $0x41] sm:$0xff] }
 0x554   : > { %v9347_v61 = vld [vmem:[#allocation3 + $0x40] sm:$0xff]  ;;  %7164 = vmatmul.msk.f32.gmra.mxu2 %vm465_vm0, %v9345_v50  ;;  %v9361_v3 = vld [vmem:[#allocation3 + $0x48] sm:$0xff] }
 0x555   : > { %7179 = vmatmul.msk.f32.gmra.mxu3 %vm465_vm0, %v9347_v61  ;;  %v9497_v0 = vld [vmem:[#allocation3 + $0x3a] sm:$0xff] }
 0x55b   : > { %v4423_v53 = vpop.permute.xlu0 %4422 }
 0x55c   : > { %v4432_v49 = vmax.f32 %v9280_v33, %v4423_v53  ;;  %7165 = vmatmul.msk.f32.gmra.mxu2 %vm465_vm0, %v9359_v59  ;;  %v7186_v33 = vld [vmem:[%s10294_s5 + $0x80] sm:$0xff] }
 0x55d   : > { %7180 = vmatmul.msk.f32.gmra.mxu3 %vm465_vm0, %v9361_v3  ;;  %4844 = vmatpush.msrb.mxu1 %v7186_v33  ;;  %v9504_v53 = vld [vmem:[#allocation3 + $0x42] sm:$0xff] }
 0x55e   : > { %4484 = vmatmul.f32.gmra.mxu1 %v4432_v49 }
 0x55f   : > { %5260 = vmatpush.msra.mxu1 %v7262_v8  ;;  %v9526_v8 = vpop.f32.mrf.mxu2 }
 0x561   : > { %5261 = vmatpush.msra.mxu1 %v7261_v10  ;;  %v9536_v10 = vpop.f32.mrf.mxu3 }
 0x563   : > { %v4479_v6 = vpop.f32.mrf.mxu1  ;;  %5262 = vmatpush.msra.mxu1 %v7260_v25 }
 0x564   : > { %4495 = vst.msk [vmem:[#allocation3 + $0x51] sm:$0xff] %vm465_vm0, %v4479_v6  ;;  %v7255_v6 = vld [vmem:[%s10294_s5 + $0x140] sm:$0xff] }
 0x565   : > { %5263 = vmatpush.msra.mxu1 %v7259_v24 }
 0x567   : > { %5264 = vmatpush.msra.mxu1 %v7258_v45 }
 0x569   : > { %5265 = vmatpush.msra.mxu1 %v7257_v36 }
 0x56b   : > { %v9372_v63 = vld [vmem:[#allocation3 + $0x51] sm:$0xff]  ;;  %5266 = vmatpush.msra.mxu1 %v7256_v37  ;;  %v7328_v37 = vld [vmem:[%s10294_s5 + $0x220] sm:$0xff] }
 0x56c   : > { %v9374_v1 = vld [vmem:[#allocation3 + $0x50] sm:$0xff]  ;;  %7166 = vmatmul.msk.f32.gmra.mxu2 %vm465_vm0, %v9372_v63  ;;  %v9391_v15 = vld [vmem:[#allocation3 + $0x58] sm:$0xff] }
 0x56d   : > { %7181 = vmatmul.msk.f32.gmra.mxu3 %vm465_vm0, %v9374_v1  ;;  %v9509_v57 = vld [vmem:[#allocation3 + $0x4a] sm:$0xff]  ;;  %5267 = vmatpush.msra.mxu1 %v7255_v6  ;;  %v9524_v62 = vld [vmem:[#allocation3 + $0x52] sm:$0xff]  ;;  %v7281_v6 = vld [vmem:[%s10294_s5 + $0x198] sm:$0xff] }
 0x574   : > { %7167 = vmatmul.msk.f32.gmra.mxu2 %vm465_vm0, %v9389_v12 }
 0x575   : > { %7182 = vmatmul.msk.f32.gmra.mxu3 %vm465_vm0, %v9391_v15 }
 0x58b   : > { %v4425_v21 = vpop.permute.xlu1 %4424 }
 0x58c   : > { %v4433_v20 = vmax.f32 %v9311_v32, %v4425_v21  ;;  %v9474_v32 = vld [vmem:[#allocation3 + $0x2a] sm:$0xff]  ;;  %v4611_v21 = vpop.f32.mrf.mxu2 }
 0x58e   : > { %4487 = vmatmul.f32.gmra.mxu1 %v4433_v20  ;;  %v4718_v20 = vpop.f32.mrf.mxu3 }
 0x593   : > { %v4482_v14 = vpop.f32.mrf.mxu1 }
 0x594   : > { %4496 = vst.msk [vmem:[#allocation3 + $0x61] sm:$0xff] %vm465_vm0, %v4482_v14  ;;  %v9563_v14 = vpop.f32.mrf.mxu2 }
 0x596   : > { %7194 = vmatmul.msk.f32.vlgmr.msrb.gmra.mxu1 %vm465_vm0, %v4760_v18 }
 0x597   : > { %5713 = vmatpush.msrb.mxu1 %v7331_v13  ;;  %v7327_v13 = vld [vmem:[%s10294_s5 + $0x218] sm:$0xff] }
 0x59b   : > { %v9427_v7 = vld [vmem:[#allocation3 + $0x61] sm:$0xff] }
 0x59c   : > { %v9429_v35 = vld [vmem:[#allocation3 + $0x60] sm:$0xff]  ;;  %7168 = vmatmul.msk.f32.gmra.mxu2 %vm465_vm0, %v9427_v7  ;;  %v9441_v42 = vld [vmem:[#allocation3 + $0x68] sm:$0xff]  ;;  %v4617_v23 = vpop.f32.mrf.mxu2 }
 0x59d   : > { %7183 = vmatmul.msk.f32.gmra.mxu3 %vm465_vm0, %v9429_v35  ;;  %v9542_v19 = vld [vmem:[#allocation3 + $0x5a] sm:$0xff]  ;;  %v9559_v25 = vld [vmem:[#allocation3 + $0x62] sm:$0xff] }
 0x59e   : > { %7195 = vmatmul.msk.f32.gmra.mxu1 %vm465_vm0, %v4761_v28  ;;  %v7283_v28 = vld [vmem:[%s10294_s5 + $0x1a8] sm:$0xff] }
 0x5a4   : > { %7169 = vmatmul.msk.f32.gmra.mxu2 %vm465_vm0, %v9439_v29  ;;  %v9592_v45 = vpop.f32.mrf.mxu2 }
 0x5a5   : > { %7184 = vmatmul.msk.f32.gmra.mxu3 %vm465_vm0, %v9441_v42 }
 0x5a6   : > { %7196 = vmatmul.msk.f32.gmra.mxu1 %vm465_vm0, %v9447_v38 }
 0x5ac   : > { %v4623_v2 = vpop.f32.mrf.mxu2 }
 0x5ad   : > { %v7279_v2 = vld [vmem:[%s10294_s5 + $0x188] sm:$0xff] }
 0x5ae   : > { %7197 = vmatmul.msk.f32.gmra.mxu1 %vm465_vm0, %v9457_v39 }
 0x5b6   : > { %7198 = vmatmul.msk.f32.gmra.mxu1 %vm465_vm0, %v9464_v47 }
 0x5be   : > { %7199 = vmatmul.msk.f32.gmra.mxu1 %vm465_vm0, %v9474_v32 }
 0x5c6   : > { %7200 = vmatmul.msk.f32.gmra.mxu1 %vm465_vm0, %v9481_v34 }
 0x5ce   : > { %7201 = vmatmul.msk.f32.gmra.mxu1 %vm465_vm0, %v9497_v0 }
 0x5d6   : > { %7202 = vmatmul.msk.f32.gmra.mxu1 %vm465_vm0, %v9504_v53 }
 0x5db   : > { %v4485_v49 = vpop.f32.mrf.mxu1 }
 0x5dc   : > { %4497 = vst.msk [vmem:[#allocation3 + $0x71] sm:$0xff] %vm465_vm0, %v4485_v49  ;;  %v9627_v49 = vpop.f32.mrf.mxu2 }
 0x5de   : > { %7203 = vmatmul.msk.f32.gmra.mxu1 %vm465_vm0, %v9509_v57 }
 0x5e3   : > { %v9516_v33 = vld [vmem:[#allocation3 + $0x71] sm:$0xff] }
 0x5e4   : > { %v9518_v11 = vld [vmem:[#allocation3 + $0x70] sm:$0xff]  ;;  %7170 = vmatmul.msk.f32.gmra.mxu2 %vm465_vm0, %v9516_v33  ;;  %v4629_v21 = vpop.f32.mrf.mxu2 }
 0x5e5   : > { %7185 = vmatmul.msk.f32.gmra.mxu3 %vm465_vm0, %v9518_v11  ;;  %v9574_v18 = vld [vmem:[#allocation3 + $0x6a] sm:$0xff]  ;;  %v9588_v46 = vld [vmem:[#allocation3 + $0x72] sm:$0xff] }
 0x5e6   : > { %7204 = vmatmul.msk.f32.gmra.mxu1 %vm465_vm0, %v9524_v62 }
 0x5ec   : > { %7225 = vmatmul.msk.f32.vlgmr.msrb.gmra.mxu2 %vm465_vm0, %v9253_v48  ;;  %v7292_v48 = vld [vmem:[%s10294_s5 + $0x1f0] sm:$0xff]  ;;  %v9662_v23 = vpop.f32.mrf.mxu2 }
 0x5ed   : > { %7240 = vmatmul.msk.f32.vlgmr.msrb.gmra.mxu3 %vm465_vm0, %v9255_v56  ;;  %v7284_v56 = vld [vmem:[%s10294_s5 + $0x1b0] sm:$0xff]  ;;  %5476 = vmatpush.msra.mxu2 %v7292_v48 }
 0x5ee   : > { %7205 = vmatmul.msk.f32.gmra.mxu1 %vm465_vm0, %v9542_v19  ;;  %5583 = vmatpush.msra.mxu3 %v7284_v56  ;;  %v7288_v56 = vld [vmem:[%s10294_s5 + $0x1d0] sm:$0xff] }
 0x5ef   : > { %5477 = vmatpush.msra.mxu2 %v7291_v27 }
 0x5f0   : > { %5584 = vmatpush.msra.mxu3 %v7283_v28 }
 0x5f1   : > { %5478 = vmatpush.msra.mxu2 %v7290_v52 }
 0x5f2   : > { %5585 = vmatpush.msra.mxu3 %v7282_v55  ;;  %v7287_v55 = vld [vmem:[%s10294_s5 + $0x1c8] sm:$0xff] }
 0x5f4   : > { %7226 = vmatmul.msk.f32.gmra.mxu2 %vm465_vm0, %v9263_v22  ;;  %v9565_v22 = vpop.f32.mrf.mxu3  ;;  %5586 = vmatpush.msra.mxu3 %v7281_v6  ;;  %v7278_v6 = vld [vmem:[%s10294_s5 + $0x180] sm:$0xff] }
 0x5f5   : > { %7241 = vmatmul.msk.f32.gmra.mxu3 %vm465_vm0, %v9265_v5  ;;  %v7330_v5 = vld [vmem:[%s10294_s5 + $0x230] sm:$0xff] }
 0x5f6   : > { %7206 = vmatmul.msk.f32.gmra.mxu1 %vm465_vm0, %v9559_v25 }
 0x5f7   : > { %5714 = vmatpush.msrb.mxu1 %v7330_v5  ;;  %v7280_v5 = vld [vmem:[%s10294_s5 + $0x190] sm:$0xff] }
 0x5f8   : > { %5587 = vmatpush.msra.mxu3 %v7280_v5 }
 0x5f9   : > { %5715 = vmatpush.msrb.mxu1 %v7329_v31 }
 0x5fa   : > { %5588 = vmatpush.msra.mxu3 %v7279_v2 }
 0x5fb   : > { %5716 = vmatpush.msrb.mxu1 %v7328_v37 }
 0x5fc   : > { %7227 = vmatmul.msk.f32.gmra.mxu2 %vm465_vm0, %v9288_v17  ;;  %v4724_v24 = vpop.f32.mrf.mxu3  ;;  %5589 = vmatpush.msra.mxu3 %v7278_v6 }
 0x5fd   : > { %7242 = vmatmul.msk.f32.gmra.mxu3 %vm465_vm0, %v9290_v4  ;;  %5717 = vmatpush.msrb.mxu1 %v7327_v13  ;;  %v7326_v24 = vld [vmem:[%s10294_s5 + $0x210] sm:$0xff]  ;;  %v7325_v13 = vld [vmem:[%s10294_s5 + $0x208] sm:$0xff] }
 0x5fe   : > { %7207 = vmatmul.msk.f32.gmra.mxu1 %vm465_vm0, %v9574_v18 }
 0x5ff   : > { %5718 = vmatpush.msrb.mxu1 %v7326_v24  ;;  %v9720_v24 = vld [vmem:[#allocation3 + $0x78] sm:$0xff] }
 0x601   : > { %5719 = vmatpush.msrb.mxu1 %v7325_v13 }
 0x604   : > { %7228 = vmatmul.msk.f32.gmra.mxu2 %vm465_vm0, %v9298_v44  ;;  %v9602_v43 = vpop.f32.mrf.mxu3 }
 0x605   : > { %7243 = vmatmul.msk.f32.gmra.mxu3 %vm465_vm0, %v9300_v9 }
 0x606   : > { %7208 = vmatmul.msk.f32.gmra.mxu1 %vm465_vm0, %v9588_v46 }
 0x60b   : > { %v4488_v41 = vpop.f32.mrf.mxu1 }
 0x60c   : > { %4498 = vst.msk [vmem:[#allocation3 + $0x81] sm:$0xff] %vm465_vm0, %v4488_v41  ;;  %7229 = vmatmul.msk.f32.gmra.mxu2 %vm465_vm0, %v9316_v16  ;;  %v4635_v41 = vpop.f32.mrf.mxu2 }
 0x60d   : > { %7244 = vmatmul.msk.f32.gmra.mxu3 %vm465_vm0, %v9318_v30 }
 0x60e   : > { %7263 = vmatmul.msk.f32.vlgmr.msra.gmra.mxu1 %vm465_vm0, %v9447_v38  ;;  %v4730_v38 = vpop.f32.mrf.mxu3 }
 0x613   : > { %v9606_v36 = vpop.f32.mrf.mxu1  ;;  %v9735_v2 = vld [vmem:[#allocation3 + $0x81] sm:$0xff] }
 0x614   : > { %7230 = vmatmul.msk.f32.gmra.mxu2 %vm465_vm0, %v9324_v40  ;;  %v9689_v38 = vpop.f32.mrf.mxu2 }
 0x615   : > { %7245 = vmatmul.msk.f32.gmra.mxu3 %vm465_vm0, %v9326_v51 }
 0x616   : > { %7264 = vmatmul.msk.f32.gmra.mxu1 %vm465_vm0, %v9457_v39  ;;  %v7289_v39 = vld [vmem:[%s10294_s5 + $0x1d8] sm:$0xff]  ;;  %v9637_v58 = vpop.f32.mrf.mxu3 }
 0x617   : > { %5479 = vmatpush.msra.mxu2 %v7289_v39  ;;  %v7286_v39 = vld [vmem:[%s10294_s5 + $0x1c0] sm:$0xff] }
 0x619   : > { %5480 = vmatpush.msra.mxu2 %v7288_v56  ;;  %v9716_v56 = vld [vmem:[#allocation3 + $0x79] sm:$0xff] }
 0x61b   : > { %v4849_v60 = vpop.f32.mrf.mxu1  ;;  %5481 = vmatpush.msra.mxu2 %v7287_v55 }
 0x61c   : > { %7231 = vmatmul.msk.f32.gmra.mxu2 %vm465_vm0, %v9345_v50 }
 0x61d   : > { %7246 = vmatmul.msk.f32.gmra.mxu3 %vm465_vm0, %v9347_v61  ;;  %5482 = vmatpush.msra.mxu2 %v7286_v39  ;;  %v9737_v39 = vld [vmem:[#allocation3 + $0x80] sm:$0xff] }
 0x61e   : > { %7265 = vmatmul.msk.f32.gmra.mxu1 %vm465_vm0, %v9464_v47  ;;  %v4736_v20 = vpop.f32.mrf.mxu3 }
 0x61f   : > { %v4641_v20 = vpop.f32.mrf.mxu2 }
 0x623   : > { %v9639_v54 = vpop.f32.mrf.mxu1 }
 0x624   : > { %7232 = vmatmul.msk.f32.gmra.mxu2 %vm465_vm0, %v9359_v59 }
 0x625   : > { %7247 = vmatmul.msk.f32.gmra.mxu3 %vm465_vm0, %v9361_v3 }
 0x626   : > { %7266 = vmatmul.msk.f32.gmra.mxu1 %vm465_vm0, %v9474_v32  ;;  %v9664_v27 = vpop.f32.mrf.mxu3 }
 0x627   : > { %v9726_v41 = vpop.f32.mrf.mxu2 }
 0x62b   : > { %v4855_v48 = vpop.f32.mrf.mxu1 }
 0x62c   : > { %7233 = vmatmul.msk.f32.gmra.mxu2 %vm465_vm0, %v9372_v63 }
 0x62d   : > { %7248 = vmatmul.msk.f32.gmra.mxu3 %vm465_vm0, %v9374_v1 }
 0x62e   : > { %7267 = vmatmul.msk.f32.gmra.mxu1 %vm465_vm0, %v9481_v34  ;;  %v4742_v31 = vpop.f32.mrf.mxu3 }
 0x62f   : > { %v4647_v6 = vpop.f32.mrf.mxu2 }
 0x633   : > { %v9666_v28 = vpop.f32.mrf.mxu1 }
 0x634   : > { %7234 = vmatmul.msk.f32.gmra.mxu2 %vm465_vm0, %v9389_v12 }
 0x635   : > { %7249 = vmatmul.msk.f32.gmra.mxu3 %vm465_vm0, %v9391_v15 }
 0x636   : > { %7268 = vmatmul.msk.f32.gmra.mxu1 %vm465_vm0, %v9497_v0  ;;  %v9691_v60 = vpop.f32.mrf.mxu3 }
 0x63b   : > { %v4861_v52 = vpop.f32.mrf.mxu1 }
 0x63c   : > { %7235 = vmatmul.msk.f32.gmra.mxu2 %vm465_vm0, %v9427_v7  ;;  %v7324_v52 = vld [vmem:[%s10294_s5 + $0x200] sm:$0xff] }
 0x63d   : > { %7250 = vmatmul.msk.f32.gmra.mxu3 %vm465_vm0, %v9429_v35  ;;  %5720 = vmatpush.msrb.mxu1 %v7324_v52 }
 0x63e   : > { %7269 = vmatmul.msk.f32.gmra.mxu1 %vm465_vm0, %v9504_v53  ;;  %v4748_v48 = vpop.f32.mrf.mxu3 }
 0x643   : > { %v9693_v37 = vpop.f32.mrf.mxu1 }
 0x644   : > { %7236 = vmatmul.msk.f32.gmra.mxu2 %vm465_vm0, %v9439_v29 }
 0x645   : > { %7251 = vmatmul.msk.f32.gmra.mxu3 %vm465_vm0, %v9441_v42 }
 0x646   : > { %7270 = vmatmul.msk.f32.gmra.mxu1 %vm465_vm0, %v9509_v57  ;;  %v9728_v31 = vpop.f32.mrf.mxu3 }
 0x64b   : > { %v4867_v21 = vpop.f32.mrf.mxu1 }
 0x64c   : > { %7237 = vmatmul.msk.f32.gmra.mxu2 %vm465_vm0, %v9516_v33 }
 0x64d   : > { %7252 = vmatmul.msk.f32.gmra.mxu3 %vm465_vm0, %v9518_v11 }
 0x64e   : > { %7271 = vmatmul.msk.f32.gmra.mxu1 %vm465_vm0, %v9524_v62  ;;  %v4754_v13 = vpop.f32.mrf.mxu3 }
 0x653   : > { %v9718_v5 = vpop.f32.mrf.mxu1 }
 0x654   : > { %7238 = vmatmul.msk.f32.gmra.mxu2 %vm465_vm0, %v9716_v56 }
 0x655   : > { %7253 = vmatmul.msk.f32.gmra.mxu3 %vm465_vm0, %v9720_v24 }
 0x656   : > { %7272 = vmatmul.msk.f32.gmra.mxu1 %vm465_vm0, %v9542_v19 }
 0x65b   : > { %v4873_v55 = vpop.f32.mrf.mxu1 }
 0x65c   : > { %7239 = vmatmul.msk.f32.gmra.mxu2 %vm465_vm0, %v9735_v2 }
 0x65d   : > { %7254 = vmatmul.msk.f32.gmra.mxu3 %vm465_vm0, %v9737_v39 }
 0x65e   : > { %7273 = vmatmul.msk.f32.gmra.mxu1 %vm465_vm0, %v9559_v25 }
 0x663   : > { %v9745_v21 = vpop.f32.mrf.mxu1 }
 0x664   : > { %7294 = vmatmul.msk.f32.vlgmr.msra.gmra.mxu2 %vm465_vm0, %v9288_v17 }
 0x665   : > { %7309 = vmatmul.msk.f32.vlgmr.msra.gmra.mxu3 %vm465_vm0, %v9290_v4 }
 0x666   : > { %7274 = vmatmul.msk.f32.gmra.mxu1 %vm465_vm0, %v9574_v18 }
 0x667   : > { %v4650_v20 = vpop.f32.mrf.mxu2 }
 0x668   : > { %v4757_v48 = vpop.f32.mrf.mxu3 }
 0x669   : > { %v9753_v52 = vadd.f32 %v4757_v48, %v4650_v20  ;;  %v9769_v20 = vld [vmem:[#allocation3 + $0x7a] sm:$0xff] }
 0x66b   : > { %v4879_v55 = vpop.f32.mrf.mxu1 }
 0x66c   : > { %7295 = vmatmul.msk.f32.gmra.mxu2 %vm465_vm0, %v9298_v44  ;;  %v9777_v55 = vld [vmem:[#allocation3 + $0x82] sm:$0xff] }
 0x66d   : > { %7310 = vmatmul.msk.f32.gmra.mxu3 %vm465_vm0, %v9300_v9 }
 0x66e   : > { %7275 = vmatmul.msk.f32.gmra.mxu1 %vm465_vm0, %v9588_v46 }
 0x66f   : > { %v5031_v17 = vpop.f32.mrf.mxu2 }
 0x670   : > { %v5138_v6 = vpop.f32.mrf.mxu3 }
 0x671   : > { %v9761_v4 = vadd.f32 %v5138_v6, %v5031_v17 }
 0x673   : > { %v9763_v13 = vpop.f32.mrf.mxu1 }
 0x674   : > { %7296 = vmatmul.msk.f32.gmra.mxu2 %vm465_vm0, %v9316_v16 }
 0x675   : > { %7311 = vmatmul.msk.f32.gmra.mxu3 %vm465_vm0, %v9318_v30 }
 0x676   : > { %7276 = vmatmul.msk.f32.gmra.mxu1 %vm465_vm0, %v9769_v20 }
 0x677   : > { %v5034_v44 = vpop.f32.mrf.mxu2 }
 0x678   : > { %v5141_v9 = vpop.f32.mrf.mxu3 }
 0x67b   : > { %v4885_v48 = vpop.f32.mrf.mxu1 }
 0x67c   : > { %7297 = vmatmul.msk.f32.gmra.mxu2 %vm465_vm0, %v9324_v40 }
 0x67d   : > { %7312 = vmatmul.msk.f32.gmra.mxu3 %vm465_vm0, %v9326_v51 }
 0x67e   : > { %7277 = vmatmul.msk.f32.gmra.mxu1 %vm465_vm0, %v9777_v55 }
 0x67f   : > { %v5037_v16 = vpop.f32.mrf.mxu2 }
 0x680   : > { %v5144_v30 = vpop.f32.mrf.mxu3 }
 0x681   : > { %v9781_v17 = vadd.f32 %v5144_v30, %v5037_v16 }
 0x683   : > { %v9783_v6 = vpop.f32.mrf.mxu1 }
 0x684   : > { %7298 = vmatmul.msk.f32.gmra.mxu2 %vm465_vm0, %v9345_v50 }
 0x685   : > { %7313 = vmatmul.msk.f32.gmra.mxu3 %vm465_vm0, %v9347_v61 }
 0x686   : > { %7332 = vmatmul.msk.f32.vlgmr.msrb.gmra.mxu1 %vm465_vm0, %v9464_v47 }
 0x687   : > { %v5040_v40 = vpop.f32.mrf.mxu2 }
 0x688   : > { %v5147_v51 = vpop.f32.mrf.mxu3  ;;  %v5388_v40 = vld [vmem:[#allocation3 + $0x90] sm:$0xff] }
 0x68b   : > { %v9791_v44 = vpop.f32.mrf.mxu1 }
 0x68c   : > { %7299 = vmatmul.msk.f32.gmra.mxu2 %vm465_vm0, %v9359_v59 }
 0x68d   : > { %7314 = vmatmul.msk.f32.gmra.mxu3 %vm465_vm0, %v9361_v3 }
 0x68e   : > { %7333 = vmatmul.msk.f32.gmra.mxu1 %vm465_vm0, %v9474_v32 }
 0x68f   : > { %v5043_v50 = vpop.f32.mrf.mxu2 }
 0x690   : > { %v5150_v9 = vpop.f32.mrf.mxu3 }
 0x691   : > { %v9799_v48 = vadd.f32 %v5150_v9, %v5043_v50 }
 0x693   : > { %v5272_v61 = vpop.f32.mrf.mxu1 }
 0x694   : > { %7300 = vmatmul.msk.f32.gmra.mxu2 %vm465_vm0, %v9372_v63 }
 0x695   : > { %7315 = vmatmul.msk.f32.gmra.mxu3 %vm465_vm0, %v9374_v1 }
 0x696   : > { %7334 = vmatmul.msk.f32.gmra.mxu1 %vm465_vm0, %v9481_v34 }
 0x697   : > { %v5046_v59 = vpop.f32.mrf.mxu2 }
 0x698   : > { %v5153_v47 = vpop.f32.mrf.mxu3 }
 0x69b   : > { %v9807_v3 = vpop.f32.mrf.mxu1 }
 0x69c   : > { %7301 = vmatmul.msk.f32.gmra.mxu2 %vm465_vm0, %v9389_v12 }
 0x69d   : > { %7316 = vmatmul.msk.f32.gmra.mxu3 %vm465_vm0, %v9391_v15 }
 0x69e   : > { %7335 = vmatmul.msk.f32.gmra.mxu1 %vm465_vm0, %v9497_v0 }
 0x69f   : > { %v9815_v63 = vpop.f32.mrf.mxu2 }
 0x6a0   : > { %v9817_v32 = vpop.f32.mrf.mxu3 }
 0x6a3   : > { %v5278_v1 = vpop.f32.mrf.mxu1 }
 0x6a4   : > { %7302 = vmatmul.msk.f32.gmra.mxu2 %vm465_vm0, %v9427_v7 }
 0x6a5   : > { %7317 = vmatmul.msk.f32.gmra.mxu3 %vm465_vm0, %v9429_v35 }
 0x6a6   : > { %7336 = vmatmul.msk.f32.gmra.mxu1 %vm465_vm0, %v9504_v53 }
 0x6a7   : > { %v5052_v12 = vpop.f32.mrf.mxu2 }
 0x6a8   : > { %v5159_v34 = vpop.f32.mrf.mxu3 }
 0x6a9   : > { %v5649_v34 = vld [vmem:[#allocation3 + $0x8a] sm:$0xff] }
 0x6ab   : > { %v9825_v15 = vpop.f32.mrf.mxu1 }
 0x6ac   : > { %7303 = vmatmul.msk.f32.gmra.mxu2 %vm465_vm0, %v9439_v29 }
 0x6ad   : > { %7318 = vmatmul.msk.f32.gmra.mxu3 %vm465_vm0, %v9441_v42 }
 0x6ae   : > { %7337 = vmatmul.msk.f32.gmra.mxu1 %vm465_vm0, %v9509_v57 }
 0x6af   : > { %v9833_v7 = vpop.f32.mrf.mxu2 }
 0x6b0   : > { %v9835_v0 = vpop.f32.mrf.mxu3 }
 0x6b3   : > { %v5284_v35 = vpop.f32.mrf.mxu1 }
 0x6b4   : > { %7304 = vmatmul.msk.f32.gmra.mxu2 %vm465_vm0, %v9516_v33 }
 0x6b5   : > { %7319 = vmatmul.msk.f32.gmra.mxu3 %vm465_vm0, %v9518_v11 }
 0x6b6   : > { %7338 = vmatmul.msk.f32.gmra.mxu1 %vm465_vm0, %v9524_v62 }
 0x6b7   : > { %v5058_v29 = vpop.f32.mrf.mxu2 }
 0x6b8   : > { %v5165_v53 = vpop.f32.mrf.mxu3 }
 0x6b9   : > { %v5650_v53 = vld [vmem:[#allocation3 + $0x92] sm:$0xff] }
 0x6bb   : > { %v9843_v42 = vpop.f32.mrf.mxu1 }
 0x6bc   : > { %7305 = vmatmul.msk.f32.gmra.mxu2 %vm465_vm0, %v9716_v56 }
 0x6bd   : > { %7320 = vmatmul.msk.f32.gmra.mxu3 %vm465_vm0, %v9720_v24  ;;  %v5411_v24 = vld [vmem:[#allocation3 + $0x89] sm:$0xff] }
 0x6be   : > { %7339 = vmatmul.msk.f32.gmra.mxu1 %vm465_vm0, %v9542_v19  ;;  %v5387_v19 = vld [vmem:[#allocation3 + $0x88] sm:$0xff] }
 0x6bf   : > { %v9851_v57 = vpop.f32.mrf.mxu2 }
 0x6c0   : > { %v9853_v33 = vpop.f32.mrf.mxu3 }
 0x6c3   : > { %v5290_v11 = vpop.f32.mrf.mxu1 }
 0x6c4   : > { %7306 = vmatmul.msk.f32.gmra.mxu2 %vm465_vm0, %v9735_v2 }
 0x6c5   : > { %7321 = vmatmul.msk.f32.gmra.mxu3 %vm465_vm0, %v9737_v39  ;;  %v5412_v39 = vld [vmem:[#allocation3 + $0x91] sm:$0xff] }
 0x6c6   : > { %7340 = vmatmul.msk.f32.gmra.mxu1 %vm465_vm0, %v9559_v25 }
 0x6c7   : > { %v5064_v62 = vpop.f32.mrf.mxu2 }
 0x6c8   : > { %v5171_v56 = vpop.f32.mrf.mxu3 }
 0x6cb   : > { %v9861_v16 = vpop.f32.mrf.mxu1 }
 0x6cc   : > { %7307 = vmatmul.msk.f32.gmra.mxu2 %vm465_vm0, %v5411_v24 }
 0x6cd   : > { %7322 = vmatmul.msk.f32.gmra.mxu3 %vm465_vm0, %v5387_v19  ;;  %v4716_v19 = vadd.f32 %v9536_v10, %v9526_v8  ;;  %v9902_v8 = vld [vmem:[%s10296_s7] ss:$0 sm:$0xff]  ;;  %v9907_v10 = vld [vmem:[%s10298_s9 + $0x18] sm:$0xff] }
 0x6ce   : > { %7341 = vmatmul.msk.f32.gmra.mxu1 %vm465_vm0, %v9574_v18  ;;  %6062 = vmatpush.msrb.mxu0 %v9907_v10 }
 0x6cf   : > { %v9867_v2 = vpop.f32.mrf.mxu2 }
 0x6d0   : > { %v9869_v30 = vpop.f32.mrf.mxu3 }
 0x6d3   : > { %v5296_v25 = vpop.f32.mrf.mxu1 }
 0x6d4   : > { %7308 = vmatmul.msk.f32.gmra.mxu2 %vm465_vm0, %v5412_v39 }
 0x6d5   : > { %7323 = vmatmul.msk.f32.gmra.mxu3 %vm465_vm0, %v5388_v40  ;;  %v5314_v40 = vadd.f32 %v9791_v44, %v9761_v4 }
 0x6d6   : > { %7342 = vmatmul.msk.f32.gmra.mxu1 %vm465_vm0, %v9588_v46 }
 0x6d7   : > { %v5070_v51 = vpop.f32.mrf.mxu2 }
 0x6d8   : > { %v5177_v50 = vpop.f32.mrf.mxu3 }
 0x6d9   : > { %v4891_v50 = vadd.f32 %v9606_v36, %v4716_v19 }
 0x6db   : > { %v9875_v9 = vpop.f32.mrf.mxu1 }
 0x6de   : > { %7343 = vmatmul.msk.f32.gmra.mxu1 %vm465_vm0, %v9769_v20 }
 0x6df   : > { %v5073_v18 = vpop.f32.mrf.mxu2 }
 0x6e0   : > { %v5180_v61 = vpop.f32.mrf.mxu3 }
 0x6e1   : > { %v5181_v62 = vadd.f32 %v5180_v61, %v5073_v18  ;;  %v5344_v18 = vadd.f32 %v5314_v40, %v4891_v50 }
 0x6e3   : > { %v5302_v59 = vpop.f32.mrf.mxu1 }
 0x6e6   : > { %7344 = vmatmul.msk.f32.gmra.mxu1 %vm465_vm0, %v9777_v55  ;;  %v4905_v55 = vadd.f32 %v9783_v6, %v9753_v52  ;;  %v9897_v52 = vld [vmem:[%s10295_s6] ss:$0 sm:$0xff] }
 0x6e7   : > { %v5484_v47 = vpop.f32.mrf.mxu2 }
 0x6e8   : > { %v5591_v1 = vpop.f32.mrf.mxu3 }
 0x6e9   : > { %v5592_v59 = vadd.f32 %v5591_v1, %v5484_v47 }
 0x6eb   : > { %v9881_v12 = vpop.f32.mrf.mxu1 }
 0x6ee   : > { %7345 = vmatmul.msk.f32.gmra.mxu1 %vm465_vm0, %v5649_v34 }
 0x6ef   : > { %v5487_v46 = vpop.f32.mrf.mxu2 }
 0x6f0   : > { %v5594_v35 = vpop.f32.mrf.mxu3 }
 0x6f1   : > { %v4722_v35 = vadd.f32 %v9565_v22, %v9563_v14 }
 0x6f3   : > { %v5308_v29 = vpop.f32.mrf.mxu1 }
 0x6f4   : > { %v5316_v29 = vadd.f32 %v9807_v3, %v9781_v17  ;;  %v4728_v17 = vadd.f32 %v9602_v43, %v9592_v45 }
 0x6f6   : > { %7346 = vmatmul.msk.f32.gmra.mxu1 %vm465_vm0, %v5650_v53  ;;  %v4893_v53 = vadd.f32 %v9639_v54, %v4722_v35  ;;  %v5318_v54 = vadd.f32 %v9825_v15, %v9799_v48  ;;  %v4895_v3 = vadd.f32 %v9666_v28, %v4728_v17 }
 0x6f7   : > { %v5490_v20 = vpop.f32.mrf.mxu2 }
 0x6f8   : > { %v5597_v11 = vpop.f32.mrf.mxu3 }
 0x6fb   : > { %v5311_v56 = vpop.f32.mrf.mxu1 }
 0x6fc   : > { %v5328_v24 = vadd.f32 %v5311_v56, %v5181_v62  ;;  %v5598_v62 = vadd.f32 %v5597_v11, %v5490_v20 }
 0x6fe   : > { %v9889_v39 = vadd.f32 %v5328_v24, %v4905_v55  ;;  %v5346_v55 = vadd.f32 %v5316_v29, %v4893_v53 }
 0x6ff   : > { %v5493_v25 = vpop.f32.mrf.mxu2 }
 0x700   : > { %v5600_v51 = vpop.f32.mrf.mxu3 }
 0x703   : > { %v5722_v34 = vpop.f32.mrf.mxu1 }
 0x704   : > { %v5767_v61 = vadd.f32 %v5722_v34, %v5592_v59 }
 0x706   : > { %v5797_v6 = vadd.f32 %v5767_v61, %v5344_v18 }
 0x707   : > { %v5496_v44 = vpop.f32.mrf.mxu2 }
 0x708   : > { %v5816_v36 = vmul.f32 %v9897_v52, %v5797_v6  ;;  %v5603_v47 = vpop.f32.mrf.mxu3  ;;  %v5348_v6 = vadd.f32 %v5318_v54, %v4895_v3 }
 0x709   : > { %v5604_v20 = vadd.f32 %v5603_v47, %v5496_v44  ;;  %v5157_v44 = vadd.f32 %v9817_v32, %v9815_v63  ;;  %v4734_v47 = vadd.f32 %v9637_v58, %v9627_v49  ;;  %v5163_v49 = vadd.f32 %v9835_v0, %v9833_v7 }
 0x70a   : > { %v5835_v4 = vadd.f32 %v9902_v8, %v5816_v36  ;;  %v4740_v58 = vadd.f32 %v9664_v27, %v9662_v23 }
 0x70b   : > { %v5725_v1 = vpop.f32.mrf.mxu1 }
 0x70c   : > { %v5850_v46 = vmax.f32 %v5835_v4, 0.0 }
 0x70e   : > { %5865 = vst [vmem:[#allocation4] sm:$0xff] %v5850_v46 }
 0x70f   : > { %v5499_v24 = vpop.f32.mrf.mxu2 }
 0x710   : > { %v5606_v40 = vpop.f32.mrf.mxu3 }
 0x713   : > { %v5728_v56 = vpop.f32.mrf.mxu1 }
 0x714   : > { %v5769_v19 = vadd.f32 %v5728_v56, %v5598_v62  ;;  %v5320_v56 = vadd.f32 %v9843_v42, %v5157_v44  ;;  %v4899_v42 = vadd.f32 %v9718_v5, %v4740_v58 }
 0x715   : > { %v5880_v11 = vld [vmem:[#allocation4] ss:$2 sm:$0xf]  ;;  %v5882_v18 = vld [vmem:[#allocation4 + $0x1] ss:$2 sm:$0xf] }
 0x716   : > { %v5799_v25 = vadd.f32 %v5769_v19, %v5346_v55  ;;  %v5887_v46 = vmax.f32 %v5880_v11, %v5882_v18  ;;  %v4897_v55 = vadd.f32 %v9693_v37, %v4734_v47  ;;  %v5322_v37 = vadd.f32 %v9861_v16, %v5163_v49 }
 0x717   : > { %v5502_v14 = vpop.f32.mrf.mxu2 }
 0x718   : > { %v5818_v51 = vmul.f32 %v9897_v52, %v5799_v25  ;;  %v5609_v22 = vpop.f32.mrf.mxu3  ;;  %v5352_v18 = vadd.f32 %v5322_v37, %v4899_v42 }
 0x719   : > { %v5610_v24 = vadd.f32 %v5609_v22, %v5502_v14 }
 0x71a   : > { %v5837_v50 = vadd.f32 %v9902_v8, %v5818_v51  ;;  %v5350_v51 = vadd.f32 %v5320_v56, %v4897_v55 }
 0x71b   : > { %v5731_v59 = vpop.f32.mrf.mxu1 }
 0x71c   : > { %v5852_v34 = vmax.f32 %v5837_v50, 0.0 }
 0x71e   : > { %5867 = vst [vmem:[#allocation4 + $0x10] sm:$0xff] %v5852_v34 }
 0x71f   : > { %v5505_v53 = vpop.f32.mrf.mxu2 }
 0x720   : > { %v5612_v43 = vpop.f32.mrf.mxu3  ;;  %v4746_v53 = vadd.f32 %v9691_v60, %v9689_v38 }
 0x723   : > { %v5734_v61 = vpop.f32.mrf.mxu1 }
 0x724   : > { %v5771_v36 = vadd.f32 %v5734_v61, %v5604_v20 }
 0x725   : > { %v5884_v4 = vld [vmem:[#allocation4 + $0x10] ss:$2 sm:$0xf]  ;;  %v5886_v1 = vld [vmem:[#allocation4 + $0x11] ss:$2 sm:$0xf] }
 0x726   : > { %v5888_v35 = vmax.f32 %v5884_v4, %v5886_v1  ;;  %v5801_v29 = vadd.f32 %v5771_v36, %v5348_v6 }
 0x727   : > { %v5508_v19 = vpop.f32.mrf.mxu2 }
 0x728   : > { %v5820_v62 = vmul.f32 %v9897_v52, %v5801_v29  ;;  %v5889_v45 = vmax.f32 %v5887_v46, %v5888_v35  ;;  %v5615_v40 = vpop.f32.mrf.mxu3  ;;  %v5169_v29 = vadd.f32 %v9853_v33, %v9851_v57 }
 0x729   : > { %v5616_v14 = vadd.f32 %v5615_v40, %v5508_v19  ;;  %v5175_v19 = vadd.f32 %v9869_v30, %v9867_v2 }
 0x72a   : > { %v5839_v48 = vadd.f32 %v9902_v8, %v5820_v62  ;;  %5890 = vst [vmem:[#allocation7] sm:$0xf] %v5889_v45  ;;  %v5324_v62 = vadd.f32 %v9875_v9, %v5169_v29 }
 0x72b   : > { %v5737_v28 = vpop.f32.mrf.mxu1  ;;  %v5326_v40 = vadd.f32 %v9881_v12, %v5175_v19 }
 0x72c   : > { %v5854_v15 = vmax.f32 %v5839_v48, 0.0  ;;  %v4901_v28 = vadd.f32 %v9745_v21, %v4746_v53  ;;  %v4752_v21 = vadd.f32 %v9728_v31, %v9726_v41  ;;  %v5986_v41 = vld [vmem:[%s10298_s9 + $0x10] sm:$0xff]  ;;  %v5950_v31 = vld [vmem:[%s10297_s8 + $0x78] sm:$0xff] }
 0x72d   : > { %6063 = vmatpush.msrb.mxu0 %v5986_v41  ;;  %5951 = vmatpush.msrb.mxu2 %v5950_v31  ;;  %v7373_v31 = vld [vmem:[%s10298_s9 + $0x90] sm:$0xff] }
 0x72e   : > { %5869 = vst [vmem:[#allocation4 + $0x20] sm:$0xff] %v5854_v15  ;;  %v5354_v47 = vadd.f32 %v5324_v62, %v4901_v28  ;;  %v5938_v62 = vld [vmem:[%s10297_s8 + $0x18] sm:$0xff] }
 0x72f   : > { %v5511_v32 = vpop.f32.mrf.mxu2 }
 0x730   : > { %v5618_v3 = vpop.f32.mrf.mxu3 }
 0x733   : > { %v5740_v25 = vpop.f32.mrf.mxu1 }
 0x734   : > { %v5773_v50 = vadd.f32 %v5740_v25, %v5610_v24  ;;  %v4903_v25 = vadd.f32 %v9763_v13, %v4752_v21  ;;  %v5949_v13 = vld [vmem:[%s10297_s8 + $0x70] sm:$0xff]  ;;  %v7347_v21 = vld [vmem:[%s10298_s9 + $0x20] sm:$0xff] }
 0x735   : > { %v5892_v22 = vld [vmem:[#allocation4 + $0x20] ss:$2 sm:$0xf]  ;;  %v5894_v20 = vld [vmem:[#allocation4 + $0x21] ss:$2 sm:$0xf]  ;;  %5952 = vmatpush.msrb.mxu2 %v5949_v13 }
 0x736   : > { %v5803_v59 = vadd.f32 %v5773_v50, %v5350_v51  ;;  %v5899_v4 = vmax.f32 %v5892_v22, %v5894_v20  ;;  %v7362_v13 = vld [vmem:[%s10298_s9 + $0x58] sm:$0xff] }
 0x737   : > { %v5514_v46 = vpop.f32.mrf.mxu2 }
 0x738   : > { %v5822_v34 = vmul.f32 %v9897_v52, %v5803_v59  ;;  %v5621_v0 = vpop.f32.mrf.mxu3 }
 0x739   : > { %v5622_v15 = vadd.f32 %v5621_v0, %v5514_v46 }
 0x73a   : > { %v5841_v17 = vadd.f32 %v9902_v8, %v5822_v34 }
 0x73b   : > { %v5743_v63 = vpop.f32.mrf.mxu1 }
 0x73c   : > { %v5856_v54 = vmax.f32 %v5841_v17, 0.0  ;;  %v5356_v17 = vadd.f32 %v5326_v40, %v4903_v25  ;;  %v5984_v40 = vld [vmem:[%s10298_s9] sm:$0xff]  ;;  %v5988_v25 = vld [vmem:[#allocation5 + $0x1] sm:$0xff] }
 0x73e   : > { %5871 = vst [vmem:[#allocation4 + $0x30] sm:$0xff] %v5856_v54 }
 0x73f   : > { %v5517_v45 = vpop.f32.mrf.mxu2 }
 0x740   : > { %v5624_v43 = vpop.f32.mrf.mxu3 }
 0x743   : > { %v5746_v11 = vpop.f32.mrf.mxu1 }
 0x744   : > { %v5775_v61 = vadd.f32 %v5746_v11, %v5616_v14 }
 0x745   : > { %v5896_v6 = vld [vmem:[#allocation4 + $0x30] ss:$2 sm:$0xf]  ;;  %v5898_v36 = vld [vmem:[#allocation4 + $0x31] ss:$2 sm:$0xf] }
 0x746   : > { %v5900_v1 = vmax.f32 %v5896_v6, %v5898_v36  ;;  %v5805_v7 = vadd.f32 %v5775_v61, %v5352_v18  ;;  %v5948_v61 = vld [vmem:[%s10297_s8 + $0x68] sm:$0xff]  ;;  %v5947_v6 = vld [vmem:[%s10297_s8 + $0x60] sm:$0xff] }
 0x747   : > { %v5520_v55 = vpop.f32.mrf.mxu2  ;;  %5953 = vmatpush.msrb.mxu2 %v5948_v61  ;;  %v7407_v61 = vld [vmem:[%s10298_s9 + $0x100] sm:$0xff] }
 0x748   : > { %v5824_v35 = vmul.f32 %v9897_v52, %v5805_v7  ;;  %v5901_v23 = vmax.f32 %v5899_v4, %v5900_v1  ;;  %v5627_v60 = vpop.f32.mrf.mxu3  ;;  %v5946_v1 = vld [vmem:[%s10297_s8 + $0x58] sm:$0xff]  ;;  %v5945_v7 = vld [vmem:[%s10297_s8 + $0x50] sm:$0xff] }
 0x749   : > { %v5628_v51 = vadd.f32 %v5627_v60, %v5520_v55  ;;  %5954 = vmatpush.msrb.mxu2 %v5947_v6  ;;  %v7394_v6 = vld [vmem:[%s10298_s9 + $0xd8] sm:$0xff] }
 0x74a   : > { %v5843_v27 = vadd.f32 %v9902_v8, %v5824_v35  ;;  %5902 = vst [vmem:[#allocation7 + $0x4] sm:$0xf] %v5901_v23  ;;  %v5944_v35 = vld [vmem:[%s10297_s8 + $0x48] sm:$0xff] }
 0x74b   : > { %v5749_v5 = vpop.f32.mrf.mxu1  ;;  %5955 = vmatpush.msrb.mxu2 %v5946_v1 }
 0x74c   : > { %v5858_v16 = vmax.f32 %v5843_v27, 0.0  ;;  %v5943_v27 = vld [vmem:[%s10297_s8 + $0x40] sm:$0xff]  ;;  %v5942_v5 = vld [vmem:[%s10297_s8 + $0x38] sm:$0xff] }
 0x74d   : > { %5956 = vmatpush.msrb.mxu2 %v5945_v7  ;;  %v7386_v7 = vld [vmem:[%s10298_s9 + $0xb8] sm:$0xff] }
 0x74e   : > { %5873 = vst [vmem:[#allocation4 + $0x40] sm:$0xff] %v5858_v16  ;;  %v5939_v16 = vld [vmem:[%s10297_s8 + $0x20] sm:$0xff] }
 0x74f   : > { %v5523_v32 = vpop.f32.mrf.mxu2  ;;  %5957 = vmatpush.msrb.mxu2 %v5944_v35  ;;  %v7392_v35 = vld [vmem:[%s10298_s9 + $0xc8] sm:$0xff] }
 0x750   : > { %v5630_v54 = vpop.f32.mrf.mxu3  ;;  %v7368_v32 = vld [vmem:[%s10298_s9 + $0x68] sm:$0xff] }
 0x751   : > { %v9947_v48 = vld [vmem:[#allocation7] sm:$0xff]  ;;  %5958 = vmatpush.msrb.mxu2 %v5943_v27  ;;  %v7367_v54 = vld [vmem:[%s10298_s9 + $0x60] sm:$0xff] }
 0x752   : > { %5929 = vrot.lane.b32.xlu2 %v9947_v48, %s7540_s29  ;;  %v7391_v27 = vld [vmem:[%s10298_s9 + $0xc0] sm:$0xff] }
 0x753   : > { %v5752_v44 = vpop.f32.mrf.mxu1  ;;  %5959 = vmatpush.msrb.mxu2 %v5942_v5  ;;  %v7383_v5 = vld [vmem:[%s10298_s9 + $0xa0] sm:$0xff] }
 0x754   : > { %v5777_v56 = vadd.f32 %v5752_v44, %v5622_v15  ;;  %v5937_v44 = vld [vmem:[%s10297_s8 + $0x10] sm:$0xff] }
 0x755   : > { %v5904_v50 = vld [vmem:[#allocation4 + $0x40] ss:$2 sm:$0xf]  ;;  %v5906_v59 = vld [vmem:[#allocation4 + $0x41] ss:$2 sm:$0xf] }
 0x756   : > { %v5807_v57 = vadd.f32 %v5777_v56, %v5354_v47  ;;  %v5911_v58 = vmax.f32 %v5904_v50, %v5906_v59  ;;  %v5936_v56 = vld [vmem:[%s10297_s8 + $0x8] sm:$0xff]  ;;  %v7398_v50 = vld [vmem:[%s10298_s9 + $0xf8] sm:$0xff] }
 0x757   : > { %v5526_v20 = vpop.f32.mrf.mxu2  ;;  %6345 = vmatpush.msra.mxu1 %v7398_v50  ;;  %v7396_v59 = vld [vmem:[%s10298_s9 + $0xe8] sm:$0xff] }
 0x758   : > { %v5826_v33 = vmul.f32 %v9897_v52, %v5807_v57  ;;  %v5633_v11 = vpop.f32.mrf.mxu3  ;;  %v5935_v57 = vld [vmem:[%s10297_s8] sm:$0xff] }
 0x759   : > { %v5634_v18 = vadd.f32 %v5633_v11, %v5526_v20  ;;  %6346 = vmatpush.msra.mxu1 %v7397_v26  ;;  %v7410_v20 = vld [vmem:[%s10298_s9 + $0x118] sm:$0xff]  ;;  %v7409_v11 = vld [vmem:[%s10298_s9 + $0x110] sm:$0xff] }
 0x75a   : > { %v5845_v38 = vadd.f32 %v9902_v8, %v5826_v33  ;;  %v5985_v33 = vld [vmem:[%s10298_s9 + $0x8] sm:$0xff] }
 0x75b   : > { %v5755_v9 = vpop.f32.mrf.mxu1  ;;  %6064 = vmatpush.msrb.mxu0 %v5985_v33  ;;  %6347 = vmatpush.msra.mxu1 %v7396_v59 }
 0x75c   : > { %v5860_v24 = vmax.f32 %v5845_v38, 0.0  ;;  %v7350_v9 = vld [vmem:[%s10298_s9 + $0x38] sm:$0xff] }
 0x75d   : > { %6021 = vmatpush.msrb.mxu3 %v7350_v9  ;;  %6065 = vmatpush.msrb.mxu0 %v5984_v40 }
 0x75e   : > { %5875 = vst [vmem:[#allocation4 + $0x50] sm:$0xff] %v5860_v24  ;;  %v7349_v24 = vld [vmem:[%s10298_s9 + $0x30] sm:$0xff] }
 0x75f   : > { %6022 = vmatpush.msrb.mxu3 %v7349_v24 }
 0x763   : > { %v5758_v34 = vpop.f32.mrf.mxu1 }
 0x764   : > { %v5779_v63 = vadd.f32 %v5758_v34, %v5628_v51  ;;  %v5980_v51 = vld [vmem:[#allocation5] sm:$0xff]  ;;  %v7395_v34 = vld [vmem:[%s10298_s9 + $0xe0] sm:$0xff] }
 0x765   : > { %v5908_v3 = vld [vmem:[#allocation4 + $0x50] ss:$2 sm:$0xf]  ;;  %v5910_v49 = vld [vmem:[#allocation4 + $0x51] ss:$2 sm:$0xf]  ;;  %7355 = vmatmul.msk.f32.vlgmr.msrb.gmra.mxu0 %vm486_vm1, %v5980_v51  ;;  %6348 = vmatpush.msra.mxu1 %v7395_v34 }
 0x766   : > { %v5912_v2 = vmax.f32 %v5908_v3, %v5910_v49  ;;  %v5809_v30 = vadd.f32 %v5779_v63, %v5356_v17  ;;  %v7370_v17 = vld [vmem:[%s10298_s9 + $0x78] sm:$0xff]  ;;  %v7369_v63 = vld [vmem:[%s10298_s9 + $0x70] sm:$0xff] }
 0x767   : > { %6220 = vmatpush.msra.mxu0 %v7370_v17  ;;  %v7374_v49 = vld [vmem:[%s10298_s9 + $0x98] sm:$0xff] }
 0x768   : > { %v5828_v12 = vmul.f32 %v9897_v52, %v5809_v30  ;;  %v5913_v37 = vmax.f32 %v5911_v58, %v5912_v2 }
 0x769   : > { %6221 = vmatpush.msra.mxu0 %v7369_v63 }
 0x76a   : > { %v5847_v42 = vadd.f32 %v9902_v8, %v5828_v12  ;;  %5914 = vst [vmem:[#allocation7 + $0x8] sm:$0xf] %v5913_v37  ;;  %v7372_v12 = vld [vmem:[%s10298_s9 + $0x88] sm:$0xff]  ;;  %v7361_v37 = vld [vmem:[%s10298_s9 + $0x50] sm:$0xff] }
 0x76b   : > { %v5761_v14 = vpop.f32.mrf.mxu1  ;;  %6222 = vmatpush.msra.mxu0 %v7368_v32 }
 0x76c   : > { %v5862_v22 = vmax.f32 %v5847_v42, 0.0  ;;  %v7360_v42 = vld [vmem:[%s10298_s9 + $0x48] sm:$0xff]  ;;  %v7371_v14 = vld [vmem:[%s10298_s9 + $0x80] sm:$0xff] }
 0x76d   : > { %6223 = vmatpush.msra.mxu0 %v7367_v54 }
 0x76e   : > { %5877 = vst [vmem:[#allocation4 + $0x60] sm:$0xff] %v5862_v22  ;;  %v7359_v22 = vld [vmem:[%s10298_s9 + $0x40] sm:$0xff] }
 0x76f   : > { %6436 = vmatpush.msrb.mxu0 %v7410_v20 }
 0x771   : > { %6437 = vmatpush.msrb.mxu0 %v7409_v11 }
 0x773   : > { %v5764_v36 = vpop.f32.mrf.mxu1 }
 0x774   : > { %v5781_v4 = vadd.f32 %v5764_v36, %v5634_v18  ;;  %v7408_v18 = vld [vmem:[%s10298_s9 + $0x108] sm:$0xff] }
 0x775   : > { %v5916_v29 = vld [vmem:[#allocation4 + $0x60] ss:$2 sm:$0xf]  ;;  %v5918_v53 = vld [vmem:[#allocation4 + $0x61] ss:$2 sm:$0xf]  ;;  %6438 = vmatpush.msrb.mxu0 %v7408_v18 }
 0x776   : > { %v5811_v46 = vadd.f32 %v5781_v4, %v9889_v39  ;;  %v5923_v28 = vmax.f32 %v5916_v29, %v5918_v53  ;;  %v7393_v4 = vld [vmem:[%s10298_s9 + $0xd0] sm:$0xff] }
 0x777   : > { %6439 = vmatpush.msrb.mxu0 %v7407_v61 }
 0x778   : > { %v5830_v0 = vmul.f32 %v9897_v52, %v5811_v46  ;;  %v5941_v52 = vld [vmem:[%s10297_s8 + $0x30] sm:$0xff] }
 0x779   : > { %5960 = vmatpush.msrb.mxu2 %v5941_v52 }
 0x77a   : > { %v5849_v23 = vadd.f32 %v9902_v8, %v5830_v0  ;;  %v5940_v8 = vld [vmem:[%s10297_s8 + $0x28] sm:$0xff]  ;;  %v7385_v0 = vld [vmem:[%s10298_s9 + $0xb0] sm:$0xff] }
 0x77b   : > { %5961 = vmatpush.msrb.mxu2 %v5940_v8 }
 0x77c   : > { %v5864_v39 = vmax.f32 %v5849_v23, 0.0  ;;  %v7384_v23 = vld [vmem:[%s10298_s9 + $0xa8] sm:$0xff] }
 0x77d   : > { %5962 = vmatpush.msrb.mxu2 %v5939_v16 }
 0x77e   : > { %5879 = vst [vmem:[#allocation4 + $0x70] sm:$0xff] %v5864_v39 }
 0x77f   : > { %5963 = vmatpush.msrb.mxu2 %v5938_v62 }
 0x781   : > { %5964 = vmatpush.msrb.mxu2 %v5937_v44 }
 0x783   : > { %5965 = vmatpush.msrb.mxu2 %v5936_v56 }
 0x785   : > { %v5920_v45 = vld [vmem:[#allocation4 + $0x70] ss:$2 sm:$0xf]  ;;  %v5922_v43 = vld [vmem:[#allocation4 + $0x71] ss:$2 sm:$0xf]  ;;  %5966 = vmatpush.msrb.mxu2 %v5935_v57 }
 0x786   : > { %v5924_v15 = vmax.f32 %v5920_v45, %v5922_v43  ;;  %v6315_v45 = vld [vmem:[#allocation5 + $0x29] sm:$0xff] }
 0x787   : > { %7417 = vmatpush.msra.mxu2 %v9907_v10  ;;  %v7348_v10 = vld [vmem:[%s10298_s9 + $0x28] sm:$0xff]  ;;  %v6406_v43 = vld [vmem:[#allocation5 + $0x2a] sm:$0xff] }
 0x788   : > { %v5925_v47 = vmax.f32 %v5923_v28, %v5924_v15  ;;  %6023 = vmatpush.msrb.mxu3 %v7348_v10  ;;  %v6306_v28 = vld [vmem:[#allocation5 + $0x28] sm:$0xff] }
 0x789   : > { %7418 = vmatpush.msra.mxu2 %v5986_v41 }
 0x78a   : > { %5926 = vst [vmem:[#allocation7 + $0xc] sm:$0xf] %v5925_v47  ;;  %6024 = vmatpush.msrb.mxu3 %v7347_v21 }
 0x78b   : > { %7419 = vmatpush.msra.mxu2 %v5985_v33  ;;  %7351 = vmatmul.msk.f32.vlgmr.msrb.gmra.mxu3 %vm486_vm1, %v5988_v25 }
 0x78c   : > { %6179 = vmatpush.msra.mxu3 %v7374_v49 }
 0x78d   : > { %7420 = vmatpush.msra.mxu2 %v5984_v40 }
 0x78e   : > { %6180 = vmatpush.msra.mxu3 %v7373_v31 }
 0x790   : > { %6181 = vmatpush.msra.mxu3 %v7372_v12 }
 0x791   : > { %v5928_v55 = vld [vmem:[#allocation7 + $0x8] sm:$0xff] }
 0x792   : > { %5931 = vrot.lane.b32.xlu0 %v5928_v55, %s7540_s29  ;;  %6182 = vmatpush.msra.mxu3 %v7371_v14  ;;  %s7490_s29 = sshra.s32 %s6602_s15, 4  ;;  %s7491_s29 = int_to_ptr.hbm [resolvable:$true] %s7490_s29 }
 0x793   : > { %s7492_s17 = scalar_lea.hbm %s7491_s29, 1  ;;  %p7497_p0 = scmp.lt.s32.totalorder %s7491_s29, %s10303_s14 }
 0x794   : > { %6386 = vmatpush.msrb.mxu3 %v7394_v6  ;;  %p7493_p11 = scmp.ne.s32.totalorder %s7491_s29, %s7492_s17  ;;  %p7498_p1 = scmp.lt.s32.totalorder %s7496_s24, %s7492_s17 }
 0x796   : > { %6387 = vmatpush.msrb.mxu3 %v7393_v4  ;;  %p7494_p12 = pnand %p7493_p11, %p7656_p5  ;;  %p7499_p2 = por %p7498_p1, %p7497_p0 }
 0x798   : > { %6388 = vmatpush.msrb.mxu3 %v7392_v35  ;;  %p7495_p13 = pneg %p7494_p12 }
 0x79a   : > { %6389 = vmatpush.msrb.mxu3 %v7391_v27  ;;  %p7500_p3 = pnand %p7499_p2, %p7495_p13 }
 0x7ac   : > { %v5930_v38 = vpop.permute.xlu2 %5929 }
 0x7ad   : > { %v5933_v60 = vmax.f32 %v9947_v48, %v5930_v38 }
 0x7af   : > { %5967 = vmatmul.f32.vlgmr.msrb.gmra.mxu2 %v5933_v60 }
 0x7b0   : > { %6112 = vmatpush.msrb.mxu2 %v7362_v13 }
 0x7b2   : > { %6113 = vmatpush.msrb.mxu2 %v7361_v37  ;;  %v10193_v37 = vld [vmem:[%s10300_s11] ss:$0 sm:$0xff] }
 0x7b4   : > { %6114 = vmatpush.msrb.mxu2 %v7360_v42 }
 0x7b6   : > { %6115 = vmatpush.msrb.mxu2 %v7359_v22 }
 0x7e2   : > { %v6067_v15 = vpop.f32.mrf.mxu0 }
 0x804   : > { %v5932_v48 = vpop.permute.xlu0 %5931 }
 0x805   : > { %v5934_v19 = vmax.f32 %v5928_v55, %v5932_v48 }
 0x807   : > { %5970 = vmatmul.f32.gmra.mxu2 %v5934_v19 }
 0x80e   : > { %v6026_v44 = vpop.f32.mrf.mxu3 }
 0x80f   : > { %v6068_v17 = vadd.f32 %v6067_v15, %v6026_v44 }
 0x832   : > { %v5968_v3 = vpop.f32.mrf.mxu2 }
 0x833   : > { %5975 = vst.msk [vmem:[#allocation5 + $0x9] sm:$0xf] %vm5974_vm2, %v5968_v3 }
 0x834   : > { %5977 = vst.msk [vmem:[#allocation5 + $0xd] sm:$0xf0] %vm5976_vm3, %v5968_v3 }
 0x83a   : > { %v5989_v58 = vld [vmem:[#allocation5 + $0x9] sm:$0xff] }
 0x83b   : > { %v5981_v2 = vld [vmem:[#allocation5 + $0x8] sm:$0xff]  ;;  %7352 = vmatmul.msk.f32.gmra.mxu3 %vm486_vm1, %v5989_v58  ;;  %v10084_v30 = vld [vmem:[#allocation5 + $0x11] sm:$0xff] }
 0x83c   : > { %7356 = vmatmul.msk.f32.gmra.mxu0 %vm486_vm1, %v5981_v2  ;;  %7399 = vmatmul.msk.f32.vlgmr.msra.gmra.mxu1 %vm486_vm1, %v10084_v30  ;;  %v10088_v41 = vld [vmem:[#allocation5 + $0x10] sm:$0xff]  ;;  %v6079_v39 = vld [vmem:[#allocation5 + $0x2] sm:$0xff] }
 0x83d   : > { %v6080_v16 = vld [vmem:[#allocation5 + $0xa] sm:$0xff] }
 0x843   : > { %7353 = vmatmul.msk.f32.gmra.mxu3 %vm486_vm1, %v10084_v30 }
 0x844   : > { %7357 = vmatmul.msk.f32.gmra.mxu0 %vm486_vm1, %v10088_v41 }
 0x84c   : > { %7379 = vmatmul.msk.f32.vlgmr.msra.gmra.mxu0 %vm486_vm1, %v5981_v2 }
 0x854   : > { %7380 = vmatmul.msk.f32.gmra.mxu0 %vm486_vm1, %v10088_v41 }
 0x88a   : > { %v5971_v36 = vpop.f32.mrf.mxu2 }
 0x88b   : > { %5978 = vst.msk [vmem:[#allocation5 + $0x19] sm:$0xf] %vm5974_vm2, %v5971_v36 }
 0x88c   : > { %5979 = vst.msk [vmem:[#allocation5 + $0x1d] sm:$0xf0] %vm5976_vm3, %v5971_v36 }
 0x892   : > { %v5991_v1 = vld [vmem:[#allocation5 + $0x19] sm:$0xff] }
 0x893   : > { %v5983_v46 = vld [vmem:[#allocation5 + $0x18] sm:$0xff]  ;;  %7354 = vmatmul.msk.f32.gmra.mxu3 %vm486_vm1, %v5991_v1  ;;  %7400 = vmatmul.msk.f32.gmra.mxu1 %vm486_vm1, %v5991_v1  ;;  %v6140_v52 = vld [vmem:[#allocation5 + $0x20] sm:$0xff] }
 0x894   : > { %7358 = vmatmul.msk.f32.vlgmr.msra.gmra.mxu2 %vm486_vm1, %v5983_v46  ;;  %7381 = vmatmul.msk.f32.gmra.mxu0 %vm486_vm1, %v5983_v46  ;;  %v6314_v8 = vld [vmem:[#allocation5 + $0x21] sm:$0xff]  ;;  %v6403_v29 = vld [vmem:[#allocation5 + $0x12] sm:$0xff] }
 0x895   : > { %6270 = vmatpush.msra.mxu2 %v7386_v7  ;;  %v6404_v53 = vld [vmem:[#allocation5 + $0x1a] sm:$0xff]  ;;  %v6405_v62 = vld [vmem:[#allocation5 + $0x22] sm:$0xff] }
 0x897   : > { %6271 = vmatpush.msra.mxu2 %v7385_v0 }
 0x899   : > { %6272 = vmatpush.msra.mxu2 %v7384_v23 }
 0x89b   : > { %7375 = vmatmul.msk.f32.vlgmr.msra.gmra.mxu3 %vm486_vm1, %v5989_v58  ;;  %7401 = vmatmul.msk.f32.gmra.mxu1 %vm486_vm1, %v6314_v8 }
 0x89c   : > { %7363 = vmatmul.msk.f32.vlgmr.msrb.gmra.mxu2 %vm486_vm1, %v6079_v39  ;;  %7382 = vmatmul.msk.f32.gmra.mxu0 %vm486_vm1, %v6140_v52 }
 0x89d   : > { %6273 = vmatpush.msra.mxu2 %v7383_v5 }
 0x8a3   : > { %7376 = vmatmul.msk.f32.gmra.mxu3 %vm486_vm1, %v10084_v30  ;;  %7402 = vmatmul.msk.f32.gmra.mxu1 %vm486_vm1, %v6315_v45 }
 0x8a4   : > { %7364 = vmatmul.msk.f32.gmra.mxu2 %vm486_vm1, %v6080_v16  ;;  %7411 = vmatmul.msk.f32.vlgmr.msrb.gmra.mxu0 %vm486_vm1, %v6403_v29 }
 0x8ab   : > { %7377 = vmatmul.msk.f32.gmra.mxu3 %vm486_vm1, %v5991_v1 }
 0x8ac   : > { %7365 = vmatmul.msk.f32.gmra.mxu2 %vm486_vm1, %v6403_v29  ;;  %7412 = vmatmul.msk.f32.gmra.mxu0 %vm486_vm1, %v6404_v53 }
 0x8b3   : > { %7378 = vmatmul.msk.f32.gmra.mxu3 %vm486_vm1, %v6314_v8 }
 0x8b4   : > { %7366 = vmatmul.msk.f32.gmra.mxu2 %vm486_vm1, %v6404_v53  ;;  %7413 = vmatmul.msk.f32.gmra.mxu0 %vm486_vm1, %v6405_v62 }
 0x8b9   : > { %v6070_v47 = vpop.f32.mrf.mxu0  ;;  %v6350_v34 = vpop.f32.mrf.mxu1 }
 0x8bb   : > { %7403 = vmatmul.msk.f32.vlgmr.msrb.gmra.mxu3 %vm486_vm1, %v10088_v41  ;;  %v10188_v41 = vld [vmem:[%s10299_s10] ss:$0 sm:$0xff] }
 0x8bc   : > { %7387 = vmatmul.msk.f32.vlgmr.msra.gmra.mxu2 %vm486_vm1, %v6080_v16  ;;  %7414 = vmatmul.msk.f32.gmra.mxu0 %vm486_vm1, %v6406_v43 }
 0x8be   : > { %v6029_v56 = vpop.f32.mrf.mxu3 }
 0x8bf   : > { %v6071_v42 = vadd.f32 %v6070_v47, %v6029_v56 }
 0x8c1   : > { %v6073_v57 = vpop.f32.mrf.mxu0 }
 0x8c3   : > { %7404 = vmatmul.msk.f32.gmra.mxu3 %vm486_vm1, %v5983_v46 }
 0x8c4   : > { %7388 = vmatmul.msk.f32.gmra.mxu2 %vm486_vm1, %v6403_v29 }
 0x8c6   : > { %v6032_v33 = vpop.f32.mrf.mxu3 }
 0x8c7   : > { %v6074_v35 = vadd.f32 %v6073_v57, %v6032_v33 }
 0x8c9   : > { %v6225_v55 = vpop.f32.mrf.mxu0 }
 0x8cb   : > { %7405 = vmatmul.msk.f32.gmra.mxu3 %vm486_vm1, %v6140_v52 }
 0x8cc   : > { %7389 = vmatmul.msk.f32.gmra.mxu2 %vm486_vm1, %v6404_v53 }
 0x8d1   : > { %v6228_v9 = vpop.f32.mrf.mxu0 }
 0x8d3   : > { %7406 = vmatmul.msk.f32.gmra.mxu3 %vm486_vm1, %v6306_v28 }
 0x8d4   : > { %7390 = vmatmul.msk.f32.gmra.mxu2 %vm486_vm1, %v6405_v62 }
 0x910   : > { %v6353_v31 = vpop.f32.mrf.mxu1 }
 0x911   : > { %v6231_v48 = vpop.f32.mrf.mxu0 }
 0x916   : > { %v6035_v38 = vpop.f32.mrf.mxu3 }
 0x917   : > { %v6076_v60 = vpop.f32.mrf.mxu2 }
 0x918   : > { %v6356_v0 = vpop.f32.mrf.mxu1  ;;  %v6077_v44 = vadd.f32 %v6076_v60, %v6035_v38 }
 0x919   : > { %v6234_v51 = vpop.f32.mrf.mxu0 }
 0x91e   : > { %v6184_v10 = vpop.f32.mrf.mxu3 }
 0x91f   : > { %v6117_v24 = vpop.f32.mrf.mxu2  ;;  %v6226_v63 = vadd.f32 %v6225_v55, %v6184_v10 }
 0x920   : > { %v6129_v3 = vadd.f32 %v6117_v24, %v6068_v17  ;;  %v6359_v15 = vpop.f32.mrf.mxu1 }
 0x921   : > { %v6441_v59 = vpop.f32.mrf.mxu0 }
 0x926   : > { %v6187_v21 = vpop.f32.mrf.mxu3 }
 0x927   : > { %v6120_v19 = vpop.f32.mrf.mxu2  ;;  %v6229_v14 = vadd.f32 %v6228_v9, %v6187_v21  ;;  %v6530_v21 = vld [vmem:[%s10301_s12 + $0x70] sm:$0xff] }
 0x928   : > { %v6130_v18 = vadd.f32 %v6120_v19, %v6071_v42  ;;  %v6531_v19 = vld [vmem:[%s10301_s12 + $0x78] sm:$0xff] }
 0x929   : > { %v6444_v13 = vpop.f32.mrf.mxu0  ;;  %6532 = vmatpush.msrb.mxu2 %v6531_v19 }
 0x92b   : > { %6533 = vmatpush.msrb.mxu2 %v6530_v21 }
 0x92e   : > { %v6190_v25 = vpop.f32.mrf.mxu3 }
 0x92f   : > { %v6123_v40 = vpop.f32.mrf.mxu2  ;;  %v6232_v23 = vadd.f32 %v6231_v48, %v6190_v25 }
 0x930   : > { %v6131_v8 = vadd.f32 %v6123_v40, %v6074_v35 }
 0x931   : > { %v6447_v27 = vpop.f32.mrf.mxu0 }
 0x936   : > { %v6193_v26 = vpop.f32.mrf.mxu3 }
 0x937   : > { %v6126_v50 = vpop.f32.mrf.mxu2  ;;  %v6235_v47 = vadd.f32 %v6234_v51, %v6193_v26 }
 0x938   : > { %v6132_v9 = vadd.f32 %v6126_v50, %v6077_v44  ;;  %v6529_v50 = vld [vmem:[%s10301_s12 + $0x68] sm:$0xff] }
 0x939   : > { %v6450_v57 = vpop.f32.mrf.mxu0  ;;  %6534 = vmatpush.msrb.mxu2 %v6529_v50 }
 0x93e   : > { %v6391_v54 = vpop.f32.mrf.mxu3 }
 0x93f   : > { %v6275_v32 = vpop.f32.mrf.mxu2  ;;  %v6392_v58 = vadd.f32 %v6391_v54, %v6350_v34 }
 0x940   : > { %v6287_v49 = vadd.f32 %v6275_v32, %v6226_v63  ;;  %v6528_v32 = vld [vmem:[%s10301_s12 + $0x60] sm:$0xff] }
 0x941   : > { %v6453_v30 = vadd.f32 %v6441_v59, %v6392_v58  ;;  %6535 = vmatpush.msrb.mxu2 %v6528_v32 }
 0x942   : > { %v6295_v2 = vadd.f32 %v6287_v49, %v6129_v3  ;;  %v6527_v49 = vld [vmem:[%s10301_s12 + $0x58] sm:$0xff] }
 0x943   : > { %6536 = vmatpush.msrb.mxu2 %v6527_v49 }
 0x944   : > { %v6461_v12 = vadd.f32 %v6453_v30, %v6295_v2  ;;  %v6526_v2 = vld [vmem:[%s10301_s12 + $0x50] sm:$0xff] }
 0x945   : > { %6537 = vmatpush.msrb.mxu2 %v6526_v2 }
 0x946   : > { %v6469_v22 = vmul.f32 %v10188_v41, %v6461_v12  ;;  %v6394_v11 = vpop.f32.mrf.mxu3  ;;  %v6522_v12 = vld [vmem:[%s10301_s12 + $0x30] sm:$0xff] }
 0x947   : > { %v6278_v20 = vpop.f32.mrf.mxu2  ;;  %v6395_v36 = vadd.f32 %v6394_v11, %v6353_v31  ;;  %v6525_v31 = vld [vmem:[%s10301_s12 + $0x48] sm:$0xff] }
 0x948   : > { %v6477_v61 = vadd.f32 %v10193_v37, %v6469_v22  ;;  %v6288_v6 = vadd.f32 %v6278_v20, %v6229_v14  ;;  %6538 = vmatpush.msrb.mxu2 %v6525_v31  ;;  %v6521_v14 = vld [vmem:[%s10301_s12 + $0x28] sm:$0xff] }
 0x949   : > { %v6454_v46 = vadd.f32 %v6444_v13, %v6395_v36  ;;  %v6523_v13 = vld [vmem:[%s10301_s12 + $0x38] sm:$0xff] }
 0x94a   : > { %v6481_v4 = vmax.f32 %v6477_v61, 0.0  ;;  %v6296_v1 = vadd.f32 %v6288_v6, %v6130_v18  ;;  %v6520_v61 = vld [vmem:[%s10301_s12 + $0x20] sm:$0xff]  ;;  %v6519_v36 = vld [vmem:[%s10301_s12 + $0x18] sm:$0xff] }
 0x94c   : > { %6485 = vst [vmem:[#allocation6] sm:$0xff] %v6481_v4  ;;  %v6462_v7 = vadd.f32 %v6454_v46, %v6296_v1  ;;  %v6518_v4 = vld [vmem:[%s10301_s12 + $0x10] sm:$0xff]  ;;  %v6517_v1 = vld [vmem:[%s10301_s12 + $0x8] sm:$0xff] }
 0x94e   : > { %v6470_v39 = vmul.f32 %v10188_v41, %v6462_v7  ;;  %v6397_v52 = vpop.f32.mrf.mxu3  ;;  %v6516_v7 = vld [vmem:[%s10301_s12] sm:$0xff] }
 0x94f   : > { %v6281_v5 = vpop.f32.mrf.mxu2  ;;  %v6398_v53 = vadd.f32 %v6397_v52, %v6356_v0 }
 0x950   : > { %v6478_v16 = vadd.f32 %v10193_v37, %v6470_v39  ;;  %v6289_v29 = vadd.f32 %v6281_v5, %v6232_v23 }
 0x951   : > { %v6455_v43 = vadd.f32 %v6447_v27, %v6398_v53 }
 0x952   : > { %v6482_v62 = vmax.f32 %v6478_v16, 0.0  ;;  %v6297_v45 = vadd.f32 %v6289_v29, %v6131_v8  ;;  %v6560_v29 = vld [vmem:[%s10302_s13] sm:$0x1] }
 0x953   : > { %v6489_v38 = vld [vmem:[#allocation6] ss:$2 sm:$0x3]  ;;  %v6491_v60 = vld [vmem:[#allocation6 + $0x1] ss:$2 sm:$0x3] }
 0x954   : > { %6486 = vst [vmem:[#allocation6 + $0x8] sm:$0xff] %v6482_v62  ;;  %v6463_v28 = vadd.f32 %v6455_v43, %v6297_v45  ;;  %v6496_v34 = vmax.f32 %v6489_v38, %v6491_v60 }
 0x956   : > { %v6471_v56 = vmul.f32 %v10188_v41, %v6463_v28  ;;  %v6400_v55 = vpop.f32.mrf.mxu3 }
 0x957   : > { %v6284_v33 = vpop.f32.mrf.mxu2  ;;  %v6401_v48 = vadd.f32 %v6400_v55, %v6359_v15 }
 0x958   : > { %v6479_v24 = vadd.f32 %v10193_v37, %v6471_v56  ;;  %v6290_v10 = vadd.f32 %v6284_v33, %v6235_v47 }
 0x959   : > { %v6456_v51 = vadd.f32 %v6450_v57, %v6401_v48 }
 0x95a   : > { %v6483_v40 = vmax.f32 %v6479_v24, 0.0  ;;  %v6298_v25 = vadd.f32 %v6290_v10, %v6132_v9 }
 0x95b   : > { %v6493_v26 = vld [vmem:[#allocation6 + $0x8] ss:$2 sm:$0x3]  ;;  %v6495_v59 = vld [vmem:[#allocation6 + $0x9] ss:$2 sm:$0x3] }
 0x95c   : > { %v6497_v17 = vmax.f32 %v6493_v26, %v6495_v59  ;;  %6487 = vst [vmem:[#allocation6 + $0x10] sm:$0xff] %v6483_v40  ;;  %v6464_v63 = vadd.f32 %v6456_v51, %v6298_v25 }
 0x95e   : > { %v6472_v54 = vmul.f32 %v10188_v41, %v6464_v63  ;;  %v6498_v3 = vmax.f32 %v6496_v34, %v6497_v17  ;;  %v6524_v41 = vld [vmem:[%s10301_s12 + $0x40] sm:$0xff] }
 0x95f   : > { %6539 = vmatpush.msrb.mxu2 %v6524_v41 }
 0x960   : > { %v6480_v58 = vadd.f32 %v10193_v37, %v6472_v54  ;;  %6499 = vst [vmem:[#allocation7] sm:$0x3] %v6498_v3 }
 0x961   : > { %6540 = vmatpush.msrb.mxu2 %v6523_v13 }
 0x962   : > { %v6484_v30 = vmax.f32 %v6480_v58, 0.0 }
 0x963   : > { %v6501_v37 = vld [vmem:[#allocation6 + $0x10] ss:$2 sm:$0x3]  ;;  %v6503_v42 = vld [vmem:[#allocation6 + $0x11] ss:$2 sm:$0x3]  ;;  %6541 = vmatpush.msrb.mxu2 %v6522_v12 }
 0x964   : > { %6488 = vst [vmem:[#allocation6 + $0x18] sm:$0xff] %v6484_v30  ;;  %v6508_v11 = vmax.f32 %v6501_v37, %v6503_v42 }
 0x965   : > { %6542 = vmatpush.msrb.mxu2 %v6521_v14 }
 0x967   : > { %6543 = vmatpush.msrb.mxu2 %v6520_v61 }
 0x969   : > { %6544 = vmatpush.msrb.mxu2 %v6519_v36 }
 0x96b   : > { %v6505_v22 = vld [vmem:[#allocation6 + $0x18] ss:$2 sm:$0x3]  ;;  %v6507_v20 = vld [vmem:[#allocation6 + $0x19] ss:$2 sm:$0x3]  ;;  %6545 = vmatpush.msrb.mxu2 %v6518_v4 }
 0x96c   : > { %v6509_v18 = vmax.f32 %v6505_v22, %v6507_v20 }
 0x96d   : > { %6546 = vmatpush.msrb.mxu2 %v6517_v1 }
 0x96e   : > { %v6510_v6 = vmax.f32 %v6508_v11, %v6509_v18 }
 0x96f   : > { %6547 = vmatpush.msrb.mxu2 %v6516_v7 }
 0x970   : > { %6511 = vst [vmem:[#allocation7 + $0x2] sm:$0x3] %v6510_v6 }
 0x977   : > { %v6512_v46 = vld [vmem:[#allocation7] sm:$0xf] }
 0x978   : > { %6513 = vrot.lane.b32.xlu1 %v6512_v46, %s7542_s19  ;;  %s6589_s19 = scalar_lea.sflag [#allocation9], %s458_s27 }
 0x9ea   : > { %v6514_v0 = vpop.permute.xlu1 %6513 }
 0x9eb   : > { %v6515_v35 = vmax.f32 %v6512_v46, %v6514_v0 }
 0x9ed   : > { %6548 = vmatmul.f32.vlgmr.msrb.gmra.mxu2 %v6515_v35 }
 0xa70   : > { %v6549_v23 = vpop.f32.mrf.mxu2 }
 0xa71   : > { %v6553_v27 = vsel %vm6552_vm4, %v6549_v23, 0.0 }
 0xa72   : > { %v6554_v39 = vrot.slane %v6553_v27, 4 }
 0xa74   : > { %v6555_v5 = vadd.f32 %v6554_v39, %v6553_v27 }
 0xa76   : > { %v6556_v52 = vrot.slane %v6555_v5, 2 }
 0xa78   : > { %v6557_v8 = vadd.f32 %v6556_v52, %v6555_v5 }
 0xa7a   : > { %v6558_v16 = vrot.slane %v6557_v8, 1 }
 0xa7c   : > { %v6559_v53 = vadd.f32 %v6558_v16, %v6557_v8 }
 0xa7e   : > { %v6561_v62 = vadd.f32 %v6560_v29, %v6559_v53 }
 0xa80   : > { %v6563_v45 = vsel %vm6562_vm5, %v6561_v62, -inf }
 0xa81   : > { %6564 = vmax.xlane.f32.xlu2 %v6563_v45 }
 0xaf4   : > { %v6565_v43 = vpop.xlane.xlu2 %6564 }
 0xaf5   : > { %v6566_v28 = vsub.f32 %v6561_v62, %v6565_v43 }
 0xaf7   : > { %v6567_v15 = vmul.f32 1.442695, %v6566_v28 }
 0xaf9   : > { %7470 = vpow2.f32 %v6567_v15 }
 0xaff   : > { %v7471_v44 = vpop.eup %7470 }
 0xb00   : > { %v6569_v47 = vsel %vm6562_vm5, %v7471_v44, 0.0 }
 0xb01   : > { %6570 = vadd.xlane.f32.xlu0 %v6569_v47 }
 0xb74   : > { %v6571_v56 = vpop.xlane.xlu0 %6570 }
 0xb75   : > { %7472 = vrcp.f32 %v6571_v56  ;;  %v6583_v9 = vand.u32 2147483648, %v6571_v56  ;;  %v6581_v10 = vand.u32 2147483647, %v6571_v56  ;;  %vm6577_vm7 = vweird.f32 %v6571_v56 }
 0xb77   : > { %v6584_v19 = vor.u32 1.1754944e-38, %v6583_v9  ;;  %vm6582_vm9 = vcmp.eq.f32.partialorder %v6581_v10, 8.507059e+37 }
 0xb7b   : > { %v7473_v57 = vpop.eup %7472 }
 0xb7c   : > { %v6573_v33 = vmul.f32 %v7473_v57, %v6571_v56  ;;  %vm6578_vm6 = vweird.f32 %v7473_v57 }
 0xb7d   : > { %vm6579_vm8 = vmor %vm6577_vm7, %vm6578_vm6 }
 0xb7e   : > { %v6574_v55 = vsub.f32 1.0, %v6573_v33 }
 0xb80   : > { %v6575_v24 = vmul.f32 %v7473_v57, %v6574_v55 }
 0xb82   : > { %v6576_v48 = vadd.f32 %v7473_v57, %v6575_v24 }
 0xb84   : > { %v6580_v21 = vsel %vm6579_vm8, %v7473_v57, %v6576_v48 }
 0xb85   : > { %v6585_v38 = vsel %vm6582_vm9, %v6584_v19, %v6580_v21 }
 0xb86   : > { %v6586_v60 = vmul.f32 %v7471_v44, %v6585_v38 }
 0xb88   : > { %6587 = vst.msk [vmem:[%s459_s22] sm:$0x1] %vm6562_vm5, %v6586_v60 }
 0xb89   : > { %7503 = shalt.err (!%p7500_p3)
}
 0xb8a   : > { %7422 = dma.vmem_to_hbm [thread:$0]  (%p7656_p5), %s6600_s21, 16, %s6602_s15, %s6589_s19  }
 0xb8b PF: > { %s10316_s27 = sld [smem:[#allocation11_spill]]  ;;  %p7428_p4 = scmp.ge.s32.totalorder %s7538_s16, 2 }
 0xb8d   : > { %p7425_p7 = pnand %p7428_p4, %p7660_p6 }
 0xb8f   : > { %p7426_p8 = pneg %p7425_p7 }
 0xb91   : > { %s6613_s22 = sand.u32 1, %s10316_s27  }
 0xb92   : > { %s6614_s25 = scalar_lea.sflag [#allocation9], %s6613_s22 }
 0xb93   : > { %7521 = dma.done.wait (%p7426_p8), %s6614_s25, 16  }
 0xb94   : > { %7523 = vsyncadd (%p7426_p8), %s6614_s25, 4294967280  ;;  %s10318_s16 = sld [smem:[#allocation13_spill]]  ;;  %s10321_s29 = smov %s7530_s30 }
 0xb95   : > { %s10319_s17 = sld [smem:[#allocation12_spill]] }
 0xb96   : > { %s10320_s15 = sld [smem:[#allocation14_spill]] }
 0xb9a   : > { %p24_p9 = scmp.ge.s32.totalorder %s10318_s16, 4  }
 0xb9b   : > { %s10322_s30 = smov %s10319_s17 }
 0xb9c   :  { %26 = sbr.rel (!%p24_p9) target bundleno = 3 (0x3), region = 188 }
 0xba1   :  { %6619 = vsyncpa [#allocation9], 1 }
 0xba2   :  { %6621 = vsyncpa [#allocation9 + $0x1], 1 }

</bundles_post_ra>
